<compile_context>
chip_gen: v7x
topology: tpu7x:2x2x1
jax: 0.10.0
libtpu: 0.0.40
codegen_flags: <defaults>
</compile_context>

<pallas_src>
import functools

import numpy as np
import jax
import jax.numpy as jnp
from jax import lax
from jax.experimental import pallas as pl
from jax.experimental.pallas import tpu as pltpu

BN_EPS = 1e-3                       # nn.BatchNorm2d(eps=0.001) in the module
# Per-kernel VMEM budget: tiles below use ~4 MiB, well under v7x's 64 MiB/TC.
VMEM_LIMIT = 32 * 1024 * 1024


def _pick_tile(dim, cap):
    """Largest divisor of `dim` <= cap, preferring lane/sublane alignment."""
    cap = min(cap, dim)
    for align in (128, 8):
        best = 0
        for t in range(align, cap + 1, align):
            if dim % t == 0:
                best = t
        if best:
            return best
    return dim                       # fall back to the full (un-tiled) dim


# ------------------------------ Pallas kernels ------------------------------ #

def _matmul_bias_kernel(x_ref, w_ref, b_ref, o_ref, acc_ref, *, relu):
    """out = act(x @ w + b); K is the last grid axis (reduction, 'arbitrary')."""
    k = pl.program_id(2)

    @pl.when(k == 0)
    def _():
        acc_ref[...] = jnp.zeros_like(acc_ref)

    acc_ref[...] += jnp.dot(x_ref[...].astype(jnp.bfloat16), w_ref[...],
                            preferred_element_type=jnp.float32)

    @pl.when(k == pl.num_programs(2) - 1)
    def _():
        out = acc_ref[...] + b_ref[...]
        if relu:
            out = jnp.maximum(out, 0.0)
        o_ref[...] = out.astype(o_ref.dtype)


def _conv1d3_bn_relu_kernel(x_ref, w_ref, b_ref, o_ref):
    """3-tap 1-D conv along the middle axis + folded-BN shift + ReLU.

    x_ref: (tr, L + 2, Cin) halo-padded rows (f32), w_ref: (3, Cin, Cout) bf16,
    b_ref: (1, Cout), o_ref: (tr, L, Cout).  The 3 taps stay an in-kernel
    reduction (no im2col tensor in HBM).
    """
    tr, lp2, cin = x_ref.shape
    L = lp2 - 2
    cout = o_ref.shape[-1]
    xb = x_ref[...]
    acc = jnp.zeros((tr * L, cout), jnp.float32)
    for t in range(3):                         # static, unrolled 3-tap loop
        xt = xb[:, t:t + L, :].reshape(tr * L, cin).astype(jnp.bfloat16)
        acc = acc + jnp.dot(xt, w_ref[t], preferred_element_type=jnp.float32)
    out = jnp.maximum(acc + b_ref[...], 0.0)
    o_ref[...] = out.reshape(tr, L, cout).astype(o_ref.dtype)


def _final_fused_kernel(x0_ref, x1_ref, w0_ref, w1_ref, b_ref, res_ref, o_ref,
                        *, scale, relu):
    """out = act((x0 @ w0 + x1 @ w1 + bias) * scale + residual).

    Replaces concat(x0, x1) @ W, the bias add, the residual scale-add and the
    optional ReLU of the reference module with a single fused kernel.
    """
    acc = jnp.dot(x0_ref[...].astype(jnp.bfloat16), w0_ref[...],
                  preferred_element_type=jnp.float32)
    acc = acc + jnp.dot(x1_ref[...].astype(jnp.bfloat16), w1_ref[...],
                        preferred_element_type=jnp.float32)
    out = acc + b_ref[...]
    if scale != 1.0:
        out = out * scale
    out = out + res_ref[...].astype(jnp.float32)
    if relu:
        out = jnp.maximum(out, 0.0)
    o_ref[...] = out.astype(o_ref.dtype)


# --------------------------------- wrappers --------------------------------- #

def matmul_bias_act(x, w, bias, *, relu, out_dtype):
    """x:(M,K) f32 @ w:(K,N) bf16 + bias:(1,N), tiled + pipelined, f32 acc."""
    M, K = x.shape
    N = w.shape[1]
    tm = _pick_tile(M, 256)
    tn = _pick_tile(N, 512)
    tk = _pick_tile(K, 1024)
    grid = (M // tm, N // tn, K // tk)
    kernel = functools.partial(_matmul_bias_kernel, relu=relu)
    return pl.pallas_call(
        kernel,
        out_shape=jax.ShapeDtypeStruct((M, N), out_dtype),
        grid_spec=pltpu.PrefetchScalarGridSpec(
            num_scalar_prefetch=0,
            grid=grid,
            in_specs=[
                pl.BlockSpec((tm, tk), lambda i, j, k: (i, k)),
                pl.BlockSpec((tk, tn), lambda i, j, k: (k, j)),
                pl.BlockSpec((1, tn), lambda i, j, k: (0, j)),
            ],
            out_specs=pl.BlockSpec((tm, tn), lambda i, j, k: (i, j)),
            scratch_shapes=[pltpu.VMEM((tm, tn), jnp.float32)],
        ),
        compiler_params=pltpu.CompilerParams(
            dimension_semantics=("parallel", "parallel", "arbitrary"),
            vmem_limit_bytes=VMEM_LIMIT),
        cost_estimate=pl.CostEstimate(
            flops=2 * M * N * K, transcendentals=0,
            bytes_accessed=M * K * x.dtype.itemsize + K * N * w.dtype.itemsize
            + M * N * np.dtype(out_dtype).itemsize),
    )(x, w, bias)


def conv1d3_bn_relu(x_rows, w_taps, bias, *, out_dtype):
    """x_rows:(R, L, C) -> 3-tap 'same' conv along L with folded BN + ReLU."""
    R, L, C = x_rows.shape
    cout = w_taps.shape[-1]
    # halo pad on the small 192-channel intermediate only (not the wide input).
    xp = jnp.pad(x_rows, ((0, 0), (1, 1), (0, 0)))
    tr = _pick_tile(R, 64)
    return pl.pallas_call(
        _conv1d3_bn_relu_kernel,
        out_shape=jax.ShapeDtypeStruct((R, L, cout), out_dtype),
        grid_spec=pltpu.PrefetchScalarGridSpec(
            num_scalar_prefetch=0,
            grid=(R // tr,),
            in_specs=[
                pl.BlockSpec((tr, L + 2, C), lambda r: (r, 0, 0)),
                pl.BlockSpec((3, C, cout), lambda r: (0, 0, 0)),
                pl.BlockSpec((1, cout), lambda r: (0, 0)),
            ],
            out_specs=pl.BlockSpec((tr, L, cout), lambda r: (r, 0, 0)),
        ),
        compiler_params=pltpu.CompilerParams(
            dimension_semantics=("parallel",),
            vmem_limit_bytes=VMEM_LIMIT),
    )(xp, w_taps, bias)


def final_fused(x0, x1, w0, w1, bias, residual, *, scale, relu, out_dtype):
    """out = act((x0 @ w0 + x1 @ w1 + bias) * scale + residual), tiled."""
    M, K0 = x0.shape
    K1 = x1.shape[1]
    N = w0.shape[1]
    tm = _pick_tile(M, 256)
    tn = _pick_tile(N, 512)
    kernel = functools.partial(_final_fused_kernel, scale=scale, relu=relu)
    return pl.pallas_call(
        kernel,
        out_shape=jax.ShapeDtypeStruct((M, N), out_dtype),
        grid_spec=pltpu.PrefetchScalarGridSpec(
            num_scalar_prefetch=0,
            grid=(M // tm, N // tn),
            in_specs=[
                pl.BlockSpec((tm, K0), lambda i, j: (i, 0)),
                pl.BlockSpec((tm, K1), lambda i, j: (i, 0)),
                pl.BlockSpec((K0, tn), lambda i, j: (0, j)),
                pl.BlockSpec((K1, tn), lambda i, j: (0, j)),
                pl.BlockSpec((1, tn), lambda i, j: (0, j)),
                pl.BlockSpec((tm, tn), lambda i, j: (i, j)),
            ],
            out_specs=pl.BlockSpec((tm, tn), lambda i, j: (i, j)),
        ),
        compiler_params=pltpu.CompilerParams(
            dimension_semantics=("parallel", "parallel"),
            vmem_limit_bytes=VMEM_LIMIT),
        cost_estimate=pl.CostEstimate(
            flops=2 * M * N * (K0 + K1), transcendentals=0,
            bytes_accessed=M * (K0 + K1) * 4 + (K0 + K1) * N * 2 + 2 * M * N * 4),
    )(x0, x1, w0, w1, bias, residual)


# ------------------------------ glue / forward ------------------------------ #

def _bn_fold(gamma, beta, mean, var):
    s = gamma / jnp.sqrt(var + BN_EPS)
    return s, beta - mean * s


def block8_forward(x_nchw, params, *, scale=1.0, no_relu=False):
    """Block8 forward. Input/output are NCHW (PyTorch convention)."""
    f32, bf16 = jnp.float32, jnp.bfloat16
    x = jnp.transpose(x_nchw, (0, 2, 3, 1))                   # NHWC
    N, H, W, Cin = x.shape
    M = N * H * W
    x2d = x.reshape(M, Cin)                                   # f32, also residual
    c_mid = params["b0_w"].shape[0]                           # 192

    # -- branch0 (1x1) and branch1[0] (1x1) share the wide input: ONE matmul
    #    with weights (BN scale folded) concatenated along the output axis.
    s0, t0 = _bn_fold(*params["b0_bn"])
    s1a, t1a = _bn_fold(*params["b1a_bn"])
    w0m = params["b0_w"][:, :, 0, 0].T * s0[None, :]          # (Cin, 192)
    w1am = params["b1a_w"][:, :, 0, 0].T * s1a[None, :]       # (Cin, 192)
    w01 = jnp.concatenate([w0m, w1am], axis=1).astype(bf16)   # (Cin, 384)
    b01 = jnp.concatenate([t0, t1a])[None, :].astype(f32)     # (1, 384)
    y01 = matmul_bias_act(x2d, w01, b01, relu=True, out_dtype=f32)
    x0 = y01[:, :c_mid]                                       # branch0 output
    y1 = y01[:, c_mid:]                                       # branch1 conv1 out

    # -- branch1[1]: (1,3) conv, padding (0,1): 3-tap conv along W
    s1b, t1b = _bn_fold(*params["b1b_bn"])
    w1b = jnp.stack([params["b1b_w"][:, :, 0, t].T * s1b[None, :]
                     for t in range(3)], axis=0).astype(bf16)  # (3, 192, 192)
    y2 = conv1d3_bn_relu(y1.reshape(N * H, W, c_mid), w1b,
                         t1b[None, :].astype(f32), out_dtype=f32)

    # -- branch1[2]: (3,1) conv, padding (1,0): 3-tap conv along H
    s1c, t1c = _bn_fold(*params["b1c_bn"])
    w1c = jnp.stack([params["b1c_w"][:, :, t, 0].T * s1c[None, :]
                     for t in range(3)], axis=0).astype(bf16)
    y2t = jnp.transpose(y2.reshape(N, H, W, c_mid), (0, 2, 1, 3))
    y3 = conv1d3_bn_relu(y2t.reshape(N * W, H, c_mid), w1c,
                         t1c[None, :].astype(f32), out_dtype=f32)
    x1 = jnp.transpose(y3.reshape(N, W, H, c_mid),
                       (0, 2, 1, 3)).reshape(M, c_mid)

    # -- final 1x1 conv (384 -> Cin) + bias + scale + residual + optional ReLU,
    #    consuming x0 / x1 directly (no concat) and the f32 residual x.
    wf = params["conv2_w"][:, :, 0, 0].T                      # (384, Cin)
    wf0 = wf[:c_mid].astype(bf16)
    wf1 = wf[c_mid:].astype(bf16)
    bf_ = params["conv2_b"][None, :].astype(f32)
    out2d = final_fused(x0, x1, wf0, wf1, bf_, x2d,
                        scale=scale, relu=not no_relu, out_dtype=x.dtype)
    out = out2d.reshape(N, H, W, Cin)
    # TODO(synk): callers that run NHWC end-to-end can skip these boundary
    #             transposes (kept here only to match the NCHW module API).
    return jnp.transpose(out, (0, 3, 1, 2))


# ------------------------------ reference (JAX) ------------------------------ #

def _conv_nchw(x, w, padding):
    return lax.conv_general_dilated(
        x, w, (1, 1), padding, dimension_numbers=("NCHW", "OIHW", "NCHW"))


def _bn_eval(x, bn):
    gamma, beta, mean, var = bn
    s = gamma / jnp.sqrt(var + BN_EPS)
    return x * s[None, :, None, None] + (beta - mean * s)[None, :, None, None]


def _basic_conv(x, w, bn, padding):
    return jax.nn.relu(_bn_eval(_conv_nchw(x, w, padding), bn))


def block8_reference(x, params, *, scale=1.0, no_relu=False):
    x0 = _basic_conv(x, params["b0_w"], params["b0_bn"], [(0, 0), (0, 0)])
    x1 = _basic_conv(x, params["b1a_w"], params["b1a_bn"], [(0, 0), (0, 0)])
    x1 = _basic_conv(x1, params["b1b_w"], params["b1b_bn"], [(0, 0), (1, 1)])
    x1 = _basic_conv(x1, params["b1c_w"], params["b1c_bn"], [(1, 1), (0, 0)])
    cat = jnp.concatenate([x0, x1], axis=1)
    out = _conv_nchw(cat, params["conv2_w"], [(0, 0), (0, 0)])
    out = out + params["conv2_b"][None, :, None, None]
    out = out * scale + x
    if not no_relu:
        out = jax.nn.relu(out)
    return out


# ---------------------------------- params ----------------------------------- #

def init_params(key, in_planes=1792, mid=192):
    ks = jax.random.split(key, 10)

    def conv_w(k, cout, cin, kh, kw):
        std = (2.0 / (cin * kh * kw)) ** 0.5
        return std * jax.random.normal(k, (cout, cin, kh, kw), jnp.float32)

    def bn(k, c):
        k1, k2, k3, k4 = jax.random.split(k, 4)
        return (jax.random.uniform(k1, (c,), jnp.float32, 0.8, 1.2),
                0.1 * jax.random.normal(k2, (c,), jnp.float32),
                0.1 * jax.random.normal(k3, (c,), jnp.float32),
                jax.random.uniform(k4, (c,), jnp.float32, 0.8, 1.2))

    return {
        "b0_w": conv_w(ks[0], mid, in_planes, 1, 1), "b0_bn": bn(ks[1], mid),
        "b1a_w": conv_w(ks[2], mid, in_planes, 1, 1), "b1a_bn": bn(ks[3], mid),
        "b1b_w": conv_w(ks[4], mid, mid, 1, 3), "b1b_bn": bn(ks[5], mid),
        "b1c_w": conv_w(ks[6], mid, mid, 3, 1), "b1c_bn": bn(ks[7], mid),
        "conv2_w": conv_w(ks[8], in_planes, 2 * mid, 1, 1),
        "conv2_b": 0.05 * jax.random.normal(ks[9], (in_planes,), jnp.float32),
    }


# ----------------------------------- main ------------------------------------ #

if __name__ == "__main__":
    key = jax.random.PRNGKey(0)
    k_x, k_p = jax.random.split(key)

    batch, spatial = 2, 16
    in_planes, mid = 1792, 192          # Block8's fixed channel counts
    scale, no_relu = 0.2, False

    x = jax.random.normal(k_x, (batch, in_planes, spatial, spatial), jnp.float32)
    params = init_params(k_p, in_planes, mid)

    fwd = jax.jit(functools.partial(block8_forward, scale=scale, no_relu=no_relu))
    out = jax.block_until_ready(fwd(x, params))

    ref = jax.block_until_ready(
        block8_reference(x, params, scale=scale, no_relu=no_relu))

    assert out.shape == ref.shape == (batch, in_planes, spatial, spatial)
    max_err = float(jnp.max(jnp.abs(out - ref)))
    ref_mag = float(jnp.max(jnp.abs(ref)))
    # Matmul operands are bf16 (f32 accumulation/epilogue), so tolerance is
    # relative to the output magnitude rather than the old f32-only 1e-4.
    assert max_err <= 2e-2 * ref_mag + 5e-3, \
        f"max err {max_err} (ref max {ref_mag})"

    print("KERNEL_OK")
</pallas_src>

<mosaic_0001>
module attributes {stable_mosaic.version = 11 : i64} {
  func.func @_matmul_bias_kernel(%arg0: i32, %arg1: i32, %arg2: i32, %arg3: memref<256x896xf32, #tpu.memory_space<vmem>>, %arg4: memref<896x384xbf16, #tpu.memory_space<vmem>>, %arg5: memref<1x384xf32, #tpu.memory_space<vmem>>, %arg6: memref<256x384xf32, #tpu.memory_space<vmem>>, %arg7: memref<256x384xf32, #tpu.memory_space<vmem>>) attributes {dimension_semantics = [#tpu.dimension_semantics<parallel>, #tpu.dimension_semantics<parallel>, #tpu.dimension_semantics<arbitrary>], iteration_bounds = array<i64: 2, 1, 2>, scalar_prefetch = 0 : i64, scratch_operands = 1 : i64, tpu.core_type = #tpu.core_type<tc>, window_params = [{transform_indices = @transform_0, window_bounds = array<i64: 256, 896>}, {transform_indices = @transform_1, window_bounds = array<i64: 896, 384>}, {transform_indices = @transform_2, window_bounds = array<i64: 1, 384>}, {transform_indices = @transform_3, window_bounds = array<i64: 256, 384>}]} {
    %c0_i32 = arith.constant 0 : i32
    %0 = arith.cmpi eq, %arg2, %c0_i32 : i32
    %1 = arith.extui %0 : i1 to i32
    %c0_i32_0 = arith.constant 0 : i32
    %2 = arith.cmpi ne, %1, %c0_i32_0 : i32
    scf.if %2 {
      %cst_9 = arith.constant 0.000000e+00 : f32
      %13 = vector.broadcast %cst_9 : f32 to vector<256x384xf32>
      %c0_10 = arith.constant 0 : index
      %c0_11 = arith.constant 0 : index
      %14 = vector.load %arg7[%c0_10, %c0_11] : memref<256x384xf32, #tpu.memory_space<vmem>>, vector<256x384xf32>
      tpu.vector_store %arg7[%c0_10, %c0_11], %13 {strides = array<i32>} : memref<256x384xf32, #tpu.memory_space<vmem>>, vector<256x384xf32>,
    } else {
    }
    %c0 = arith.constant 0 : index
    %c0_1 = arith.constant 0 : index
    %3 = vector.load %arg7[%c0, %c0_1] : memref<256x384xf32, #tpu.memory_space<vmem>>, vector<256x384xf32>
    %c0_2 = arith.constant 0 : index
    %c0_3 = arith.constant 0 : index
    %4 = vector.load %arg3[%c0_2, %c0_3] : memref<256x896xf32, #tpu.memory_space<vmem>>, vector<256x896xf32>
    %5 = arith.truncf %4 : vector<256x896xf32> to vector<256x896xbf16>
    %c0_4 = arith.constant 0 : index
    %c0_5 = arith.constant 0 : index
    %6 = vector.load %arg4[%c0_4, %c0_5] : memref<896x384xbf16, #tpu.memory_space<vmem>>, vector<896x384xbf16>
    %cst = arith.constant dense<0.000000e+00> : vector<256x384xf32>
    %7 = tpu.matmul %5, %6, %cst {dimension_numbers = #tpu.dot_dimension_numbers<[1], [0], [0], [1], [0, 0, 1, 1], [], []>} : vector<256x896xbf16>, vector<896x384xbf16>, vector<256x384xf32> -> vector<256x384xf32>
    %8 = arith.addf %3, %7 : vector<256x384xf32>
    %c0_6 = arith.constant 0 : index
    %c0_7 = arith.constant 0 : index
    %9 = vector.load %arg7[%c0_6, %c0_7] : memref<256x384xf32, #tpu.memory_space<vmem>>, vector<256x384xf32>
    tpu.vector_store %arg7[%c0_6, %c0_7], %8 {strides = array<i32>} : memref<256x384xf32, #tpu.memory_space<vmem>>, vector<256x384xf32>,
    %c1_i32 = arith.constant 1 : i32
    %10 = arith.cmpi eq, %arg2, %c1_i32 : i32
    %11 = arith.extui %10 : i1 to i32
    %c0_i32_8 = arith.constant 0 : i32
    %12 = arith.cmpi ne, %11, %c0_i32_8 : i32
    scf.if %12 {
      %c0_9 = arith.constant 0 : index
      %c0_10 = arith.constant 0 : index
      %13 = vector.load %arg7[%c0_9, %c0_10] : memref<256x384xf32, #tpu.memory_space<vmem>>, vector<256x384xf32>
      %c0_11 = arith.constant 0 : index
      %c0_12 = arith.constant 0 : index
      %14 = vector.load %arg5[%c0_11, %c0_12] : memref<1x384xf32, #tpu.memory_space<vmem>>, vector<1x384xf32>
      %15 = vector.broadcast %14 : vector<1x384xf32> to vector<256x384xf32>
      %16 = arith.addf %13, %15 : vector<256x384xf32>
      %cst_13 = arith.constant 0.000000e+00 : f32
      %17 = vector.broadcast %cst_13 : f32 to vector<256x384xf32>
      %18 = arith.maximumf %16, %17 : vector<256x384xf32>
      %c0_14 = arith.constant 0 : index
      %c0_15 = arith.constant 0 : index
      %19 = vector.load %arg6[%c0_14, %c0_15] : memref<256x384xf32, #tpu.memory_space<vmem>>, vector<256x384xf32>
      tpu.vector_store %arg6[%c0_14, %c0_15], %18 {strides = array<i32>} : memref<256x384xf32, #tpu.memory_space<vmem>>, vector<256x384xf32>,
    } else {
    }
    return
  }
  func.func @transform_0(%arg0: i32, %arg1: i32, %arg2: i32) -> (i32, i32) {
    %c0_i32 = arith.constant 0 : i32
    return %arg0, %arg2 : i32, i32
  }
  func.func @transform_1(%arg0: i32, %arg1: i32, %arg2: i32) -> (i32, i32) {
    %c0_i32 = arith.constant 0 : i32
    return %arg2, %arg1 : i32, i32
  }
  func.func @transform_2(%arg0: i32, %arg1: i32, %arg2: i32) -> (i32, i32) {
    %c0_i32 = arith.constant 0 : i32
    %c0_i32_0 = arith.constant 0 : i32
    return %c0_i32, %arg1 : i32, i32
  }
  func.func @transform_3(%arg0: i32, %arg1: i32, %arg2: i32) -> (i32, i32) {
    %c0_i32 = arith.constant 0 : i32
    return %arg0, %arg1 : i32, i32
  }
}

module attributes {stable_mosaic.version = 11 : i64} {
  func.func @_conv1d3_bn_relu_kernel(%arg0: i32, %arg1: memref<32x18x192xf32, #tpu.memory_space<vmem>>, %arg2: memref<3x192x192xbf16, #tpu.memory_space<vmem>>, %arg3: memref<1x192xf32, #tpu.memory_space<vmem>>, %arg4: memref<32x16x192xf32, #tpu.memory_space<vmem>>) attributes {dimension_semantics = [#tpu.dimension_semantics<parallel>], iteration_bounds = array<i64: 1>, scalar_prefetch = 0 : i64, scratch_operands = 0 : i64, tpu.core_type = #tpu.core_type<tc>, window_params = [{transform_indices = @transform_0, window_bounds = array<i64: 32, 18, 192>}, {pipeline_mode = #tpu.pipeline_mode<synchronous>, transform_indices = @transform_1, window_bounds = array<i64: 3, 192, 192>}, {pipeline_mode = #tpu.pipeline_mode<synchronous>, transform_indices = @transform_2, window_bounds = array<i64: 1, 192>}, {transform_indices = @transform_3, window_bounds = array<i64: 32, 16, 192>}]} {
    %c0 = arith.constant 0 : index
    %c0_0 = arith.constant 0 : index
    %c0_1 = arith.constant 0 : index
    %0 = vector.load %arg1[%c0, %c0_0, %c0_1] : memref<32x18x192xf32, #tpu.memory_space<vmem>>, vector<32x18x192xf32>
    %cst = arith.constant 0.000000e+00 : f32
    %1 = vector.broadcast %cst : f32 to vector<512x192xf32>
    %2 = vector.extract_strided_slice %0 {offsets = [0, 0, 0], sizes = [32, 16, 192], strides = [1, 1, 1]} : vector<32x18x192xf32> to vector<32x16x192xf32>
    %3 = vector.shape_cast %2 : vector<32x16x192xf32> to vector<512x192xf32>
    %4 = arith.truncf %3 : vector<512x192xf32> to vector<512x192xbf16>
    %c0_2 = arith.constant 0 : index
    %c0_3 = arith.constant 0 : index
    %c0_4 = arith.constant 0 : index
    %5 = vector.load %arg2[%c0_2, %c0_3, %c0_4] : memref<3x192x192xbf16, #tpu.memory_space<vmem>>, vector<1x192x192xbf16>
    %6 = vector.shape_cast %5 : vector<1x192x192xbf16> to vector<192x192xbf16>
    %cst_5 = arith.constant dense<0.000000e+00> : vector<512x192xf32>
    %7 = tpu.matmul %4, %6, %cst_5 {dimension_numbers = #tpu.dot_dimension_numbers<[1], [0], [0], [1], [0, 0, 1, 1], [], []>} : vector<512x192xbf16>, vector<192x192xbf16>, vector<512x192xf32> -> vector<512x192xf32>
    %8 = arith.addf %1, %7 : vector<512x192xf32>
    %9 = vector.extract_strided_slice %0 {offsets = [0, 1, 0], sizes = [32, 16, 192], strides = [1, 1, 1]} : vector<32x18x192xf32> to vector<32x16x192xf32>
    %10 = vector.shape_cast %9 : vector<32x16x192xf32> to vector<512x192xf32>
    %11 = arith.truncf %10 : vector<512x192xf32> to vector<512x192xbf16>
    %c1 = arith.constant 1 : index
    %c0_6 = arith.constant 0 : index
    %c0_7 = arith.constant 0 : index
    %12 = vector.load %arg2[%c1, %c0_6, %c0_7] : memref<3x192x192xbf16, #tpu.memory_space<vmem>>, vector<1x192x192xbf16>
    %13 = vector.shape_cast %12 : vector<1x192x192xbf16> to vector<192x192xbf16>
    %cst_8 = arith.constant dense<0.000000e+00> : vector<512x192xf32>
    %14 = tpu.matmul %11, %13, %cst_8 {dimension_numbers = #tpu.dot_dimension_numbers<[1], [0], [0], [1], [0, 0, 1, 1], [], []>} : vector<512x192xbf16>, vector<192x192xbf16>, vector<512x192xf32> -> vector<512x192xf32>
    %15 = arith.addf %8, %14 : vector<512x192xf32>
    %16 = vector.extract_strided_slice %0 {offsets = [0, 2, 0], sizes = [32, 16, 192], strides = [1, 1, 1]} : vector<32x18x192xf32> to vector<32x16x192xf32>
    %17 = vector.shape_cast %16 : vector<32x16x192xf32> to vector<512x192xf32>
    %18 = arith.truncf %17 : vector<512x192xf32> to vector<512x192xbf16>
    %c2 = arith.constant 2 : index
    %c0_9 = arith.constant 0 : index
    %c0_10 = arith.constant 0 : index
    %19 = vector.load %arg2[%c2, %c0_9, %c0_10] : memref<3x192x192xbf16, #tpu.memory_space<vmem>>, vector<1x192x192xbf16>
    %20 = vector.shape_cast %19 : vector<1x192x192xbf16> to vector<192x192xbf16>
    %cst_11 = arith.constant dense<0.000000e+00> : vector<512x192xf32>
    %21 = tpu.matmul %18, %20, %cst_11 {dimension_numbers = #tpu.dot_dimension_numbers<[1], [0], [0], [1], [0, 0, 1, 1], [], []>} : vector<512x192xbf16>, vector<192x192xbf16>, vector<512x192xf32> -> vector<512x192xf32>
    %22 = arith.addf %15, %21 : vector<512x192xf32>
    %c0_12 = arith.constant 0 : index
    %c0_13 = arith.constant 0 : index
    %23 = vector.load %arg3[%c0_12, %c0_13] : memref<1x192xf32, #tpu.memory_space<vmem>>, vector<1x192xf32>
    %24 = vector.broadcast %23 : vector<1x192xf32> to vector<512x192xf32>
    %25 = arith.addf %22, %24 : vector<512x192xf32>
    %cst_14 = arith.constant 0.000000e+00 : f32
    %26 = vector.broadcast %cst_14 : f32 to vector<512x192xf32>
    %27 = arith.maximumf %25, %26 : vector<512x192xf32>
    %28 = vector.shape_cast %27 : vector<512x192xf32> to vector<32x16x192xf32>
    %c0_15 = arith.constant 0 : index
    %c0_16 = arith.constant 0 : index
    %c0_17 = arith.constant 0 : index
    %29 = vector.load %arg4[%c0_15, %c0_16, %c0_17] : memref<32x16x192xf32, #tpu.memory_space<vmem>>, vector<32x16x192xf32>
    tpu.vector_store %arg4[%c0_15, %c0_16, %c0_17], %28 {strides = array<i32>} : memref<32x16x192xf32, #tpu.memory_space<vmem>>, vector<32x16x192xf32>,
    return
  }
  func.func @transform_0(%arg0: i32) -> (i32, i32, i32) {
    %c0_i32 = arith.constant 0 : i32
    %c0_i32_0 = arith.constant 0 : i32
    %c0_i32_1 = arith.constant 0 : i32
    return %arg0, %c0_i32, %c0_i32_0 : i32, i32, i32
  }
  func.func @transform_1(%arg0: i32) -> (i32, i32, i32) {
    %c0_i32 = arith.constant 0 : i32
    %c0_i32_0 = arith.constant 0 : i32
    %c0_i32_1 = arith.constant 0 : i32
    %c0_i32_2 = arith.constant 0 : i32
    return %c0_i32, %c0_i32_0, %c0_i32_1 : i32, i32, i32
  }
  func.func @transform_2(%arg0: i32) -> (i32, i32) {
    %c0_i32 = arith.constant 0 : i32
    %c0_i32_0 = arith.constant 0 : i32
    %c0_i32_1 = arith.constant 0 : i32
    return %c0_i32, %c0_i32_0 : i32, i32
  }
  func.func @transform_3(%arg0: i32) -> (i32, i32, i32) {
    %c0_i32 = arith.constant 0 : i32
    %c0_i32_0 = arith.constant 0 : i32
    %c0_i32_1 = arith.constant 0 : i32
    return %arg0, %c0_i32, %c0_i32_0 : i32, i32, i32
  }
}

module attributes {stable_mosaic.version = 11 : i64} {
  func.func @_final_fused_kernel(%arg0: i32, %arg1: i32, %arg2: memref<256x192xf32, #tpu.memory_space<vmem>>, %arg3: memref<256x192xf32, #tpu.memory_space<vmem>>, %arg4: memref<192x256xbf16, #tpu.memory_space<vmem>>, %arg5: memref<192x256xbf16, #tpu.memory_space<vmem>>, %arg6: memref<1x256xf32, #tpu.memory_space<vmem>>, %arg7: memref<256x256xf32, #tpu.memory_space<vmem>>, %arg8: memref<256x256xf32, #tpu.memory_space<vmem>>) attributes {dimension_semantics = [#tpu.dimension_semantics<parallel>, #tpu.dimension_semantics<parallel>], iteration_bounds = array<i64: 2, 7>, scalar_prefetch = 0 : i64, scratch_operands = 0 : i64, tpu.core_type = #tpu.core_type<tc>, window_params = [{transform_indices = @transform_0, window_bounds = array<i64: 256, 192>}, {transform_indices = @transform_1, window_bounds = array<i64: 256, 192>}, {transform_indices = @transform_2, window_bounds = array<i64: 192, 256>}, {transform_indices = @transform_3, window_bounds = array<i64: 192, 256>}, {transform_indices = @transform_4, window_bounds = array<i64: 1, 256>}, {transform_indices = @transform_5, window_bounds = array<i64: 256, 256>}, {transform_indices = @transform_6, window_bounds = array<i64: 256, 256>}]} {
    %c0 = arith.constant 0 : index
    %c0_0 = arith.constant 0 : index
    %0 = vector.load %arg2[%c0, %c0_0] : memref<256x192xf32, #tpu.memory_space<vmem>>, vector<256x192xf32>
    %1 = arith.truncf %0 : vector<256x192xf32> to vector<256x192xbf16>
    %c0_1 = arith.constant 0 : index
    %c0_2 = arith.constant 0 : index
    %2 = vector.load %arg4[%c0_1, %c0_2] : memref<192x256xbf16, #tpu.memory_space<vmem>>, vector<192x256xbf16>
    %cst = arith.constant dense<0.000000e+00> : vector<256x256xf32>
    %3 = tpu.matmul %1, %2, %cst {dimension_numbers = #tpu.dot_dimension_numbers<[1], [0], [0], [1], [0, 0, 1, 1], [], []>} : vector<256x192xbf16>, vector<192x256xbf16>, vector<256x256xf32> -> vector<256x256xf32>
    %c0_3 = arith.constant 0 : index
    %c0_4 = arith.constant 0 : index
    %4 = vector.load %arg3[%c0_3, %c0_4] : memref<256x192xf32, #tpu.memory_space<vmem>>, vector<256x192xf32>
    %5 = arith.truncf %4 : vector<256x192xf32> to vector<256x192xbf16>
    %c0_5 = arith.constant 0 : index
    %c0_6 = arith.constant 0 : index
    %6 = vector.load %arg5[%c0_5, %c0_6] : memref<192x256xbf16, #tpu.memory_space<vmem>>, vector<192x256xbf16>
    %cst_7 = arith.constant dense<0.000000e+00> : vector<256x256xf32>
    %7 = tpu.matmul %5, %6, %cst_7 {dimension_numbers = #tpu.dot_dimension_numbers<[1], [0], [0], [1], [0, 0, 1, 1], [], []>} : vector<256x192xbf16>, vector<192x256xbf16>, vector<256x256xf32> -> vector<256x256xf32>
    %8 = arith.addf %3, %7 : vector<256x256xf32>
    %c0_8 = arith.constant 0 : index
    %c0_9 = arith.constant 0 : index
    %9 = vector.load %arg6[%c0_8, %c0_9] : memref<1x256xf32, #tpu.memory_space<vmem>>, vector<1x256xf32>
    %10 = vector.broadcast %9 : vector<1x256xf32> to vector<256x256xf32>
    %11 = arith.addf %8, %10 : vector<256x256xf32>
    %cst_10 = arith.constant 2.000000e-01 : f32
    %12 = vector.broadcast %cst_10 : f32 to vector<256x256xf32>
    %13 = arith.mulf %11, %12 : vector<256x256xf32>
    %c0_11 = arith.constant 0 : index
    %c0_12 = arith.constant 0 : index
    %14 = vector.load %arg7[%c0_11, %c0_12] : memref<256x256xf32, #tpu.memory_space<vmem>>, vector<256x256xf32>
    %15 = arith.addf %13, %14 : vector<256x256xf32>
    %cst_13 = arith.constant 0.000000e+00 : f32
    %16 = vector.broadcast %cst_13 : f32 to vector<256x256xf32>
    %17 = arith.maximumf %15, %16 : vector<256x256xf32>
    %c0_14 = arith.constant 0 : index
    %c0_15 = arith.constant 0 : index
    %18 = vector.load %arg8[%c0_14, %c0_15] : memref<256x256xf32, #tpu.memory_space<vmem>>, vector<256x256xf32>
    tpu.vector_store %arg8[%c0_14, %c0_15], %17 {strides = array<i32>} : memref<256x256xf32, #tpu.memory_space<vmem>>, vector<256x256xf32>,
    return
  }
  func.func @transform_0(%arg0: i32, %arg1: i32) -> (i32, i32) {
    %c0_i32 = arith.constant 0 : i32
    %c0_i32_0 = arith.constant 0 : i32
    return %arg0, %c0_i32 : i32, i32
  }
  func.func @transform_1(%arg0: i32, %arg1: i32) -> (i32, i32) {
    %c0_i32 = arith.constant 0 : i32
    %c0_i32_0 = arith.constant 0 : i32
    return %arg0, %c0_i32 : i32, i32
  }
  func.func @transform_2(%arg0: i32, %arg1: i32) -> (i32, i32) {
    %c0_i32 = arith.constant 0 : i32
    %c0_i32_0 = arith.constant 0 : i32
    return %c0_i32, %arg1 : i32, i32
  }
  func.func @transform_3(%arg0: i32, %arg1: i32) -> (i32, i32) {
    %c0_i32 = arith.constant 0 : i32
    %c0_i32_0 = arith.constant 0 : i32
    return %c0_i32, %arg1 : i32, i32
  }
  func.func @transform_4(%arg0: i32, %arg1: i32) -> (i32, i32) {
    %c0_i32 = arith.constant 0 : i32
    %c0_i32_0 = arith.constant 0 : i32
    return %c0_i32, %arg1 : i32, i32
  }
  func.func @transform_5(%arg0: i32, %arg1: i32) -> (i32, i32) {
    %c0_i32 = arith.constant 0 : i32
    return %arg0, %arg1 : i32, i32
  }
  func.func @transform_6(%arg0: i32, %arg1: i32) -> (i32, i32) {
    %c0_i32 = arith.constant 0 : i32
    return %arg0, %arg1 : i32, i32
  }
}

</mosaic_0001>

<bundles_post_ra>
// kernel: block8_forward.4
= control target key start
LH: loop header
LB: loop body
LE: loop exit
PB: predicated region body
PF: predicated region fallthrough
CT: control target
= control target key end

     0   :  { %s5713_s12 = smov 0   ;;  %s5715_s13 = smov 0   ;;  %s7398_s0 = inlined_call_operand.vmem [shape: f32[512,1792], index: 0, kind: input, shape index: {}]   ;;  %s7399_s1 = inlined_call_operand.vmem [shape: bf16[1792,384], index: 1, kind: input, shape index: {}]   ;;  %s7400_s2 = inlined_call_operand.vmem [shape: f32[1,384], index: 2, kind: input, shape index: {}]   ;;  %s7401_s3 = inlined_call_operand.vmem [shape: f32[512,384], index: 3, kind: output, shape index: {}]  }
   0x1   :  { %s5717_s14 = smov 0   ;;  %s5719_s15 = smov 0  }
   0x2   :  { %s5721_s16 = smov 0   ;;  %s5723_s17 = smov 0  }
   0x3   :  { %s5725_s18 = smov 0  }
   0x4 LB: > { %s25_s19 = sadd.s32 1, %s5681_s16  ;;  %s32_s20 = sadd.s32 1, %s5685_s17  ;;  %s5689_s18 = sphi %s5725_s18, %s13_s18   ;;  %s5685_s17 = sphi %s5723_s17, %s7448_s17   ;;  %s5681_s16 = sphi %s5721_s16, %s7447_s16   ;;  %s5677_s15 = sphi %s5719_s15, %s7446_s15   ;;  %s5673_s14 = sphi %s5717_s14, %s7445_s14   ;;  %s5669_s13 = sphi %s5715_s13, %s7444_s13   ;;  %s5665_s12 = sphi %s5713_s12, %s7443_s12  }
   0x5   : > { %p26_p0 = scmp.ge.s32.totalorder %s25_s19, 2  ;;  %p48_p1 = scmp.ne.s32.totalorder %s5669_s13, %s5665_s12 }
   0x6   : > { %p49_p2 = scmp.eq.s32.totalorder %s5689_s18, 0  ;;  %s41_s24 = sadd.s32 1, %s5669_s13 }
   0x7   : > { %s7450_s19 = smov (%p26_p0, %s25_s19), 0  ;;  %s7452_s20 = smov (!%p26_p0, %s32_s20), %s5685_s17 }
   0x8   : > { %p50_p3 = por %p49_p2, %p48_p1  ;;  %p34_p4 = scmp.ge.s32.totalorder %s7452_s20, 2 }
   0x9   : > { %s37_s21 = ssub.s32 %s5681_s16, %s7450_s19  ;;  %p4536_p6 = scmp.ge.s32.totalorder %s5689_s18, 4 }
   0xa   : > { %s7454_s20 = smov (%p34_p4, %s7452_s20), 0 }
   0xb   : > { %s36_s22 = ssub.s32 %s5685_s17, %s7454_s20  ;;  %164 = sbr.rel (%p4536_p6) target bundleno = 139 (0x8b), region = 20 }
   0xc   : > { %s38_s23 = sor.u32 %s37_s21, %s36_s22 }
   0xd   : > { %p39_p5 = scmp.eq.s32.totalorder %s38_s23, 0 }
   0xf   : > { %s5764_s25 = scalar_select %p39_p5, %s5669_s13, %s41_s24  }
  0x12   : > { %167 = sbr.rel (!%p50_p3) target bundleno = 139 (0x8b), region = 24  ;;  %s169_s26 = sand.u32 (%p50_p3), 1, %s5669_s13  }
  0x13   : > { %s173_s27 = smul.u32 (%p50_p3), 7, %s5681_s16 }
  0x14   : > { %s5332_s28 = smul.u32 (%p50_p3), 1792, %s169_s26 }
  0x15   : > { %s5333_s29 = smul.u32 (%p50_p3), 448, %s5685_s17 }
  0x16   : > { %s5778_s8 = scalar_lea.vmem (%p50_p3), [#allocation3], %s5332_s28 }
  0x17   : > { %s175_s30 = sadd.s32 (%p50_p3), %s5333_s29, %s173_s27 }
  0x18   : > { %s4539_s4 = sshll.u32 (%p50_p3), %s175_s30, 3 }
  0x19   : > { %s5773_s7 = scalar_lea.vmem %s7398_s0, %s4539_s4 }
  0x1a   : > { %v190_v0 = vld [vmem:[%s5773_s7] sm:$0xff]  ;;  %v192_v1 = vld [vmem:[%s5773_s7 + $0x8] sm:$0xff]  ;;  %v194_v2 = vld [vmem:[%s5773_s7 + $0x10] sm:$0xff] }
  0x1b   : > { %191 = vst [vmem:[%s5778_s8] sm:$0xff] %v190_v0  ;;  %193 = vst [vmem:[%s5778_s8 + $0x8] sm:$0xff] %v192_v1  ;;  %v196_v3 = vld [vmem:[%s5773_s7 + $0x18] sm:$0xff]  ;;  %v198_v4 = vld [vmem:[%s5773_s7 + $0x20] sm:$0xff] }
  0x1c   : > { %195 = vst [vmem:[%s5778_s8 + $0x10] sm:$0xff] %v194_v2  ;;  %v200_v5 = vld [vmem:[%s5773_s7 + $0x28] sm:$0xff]  ;;  %197 = vst [vmem:[%s5778_s8 + $0x18] sm:$0xff] %v196_v3  ;;  %v202_v6 = vld [vmem:[%s5773_s7 + $0x30] sm:$0xff] }
  0x1d   : > { %199 = vst [vmem:[%s5778_s8 + $0x20] sm:$0xff] %v198_v4  ;;  %201 = vst [vmem:[%s5778_s8 + $0x28] sm:$0xff] %v200_v5  ;;  %v204_v7 = vld [vmem:[%s5773_s7 + $0x70] sm:$0xff]  ;;  %v206_v8 = vld [vmem:[%s5773_s7 + $0x78] sm:$0xff] }
  0x1e   : > { %203 = vst [vmem:[%s5778_s8 + $0x30] sm:$0xff] %v202_v6  ;;  %205 = vst [vmem:[%s5778_s8 + $0x38] sm:$0xff] %v204_v7  ;;  %v208_v9 = vld [vmem:[%s5773_s7 + $0x80] sm:$0xff]  ;;  %v210_v10 = vld [vmem:[%s5773_s7 + $0x88] sm:$0xff] }
  0x1f   : > { %207 = vst [vmem:[%s5778_s8 + $0x40] sm:$0xff] %v206_v8  ;;  %v212_v11 = vld [vmem:[%s5773_s7 + $0x90] sm:$0xff]  ;;  %209 = vst [vmem:[%s5778_s8 + $0x48] sm:$0xff] %v208_v9  ;;  %v214_v12 = vld [vmem:[%s5773_s7 + $0x98] sm:$0xff] }
  0x20   : > { %211 = vst [vmem:[%s5778_s8 + $0x50] sm:$0xff] %v210_v10  ;;  %213 = vst [vmem:[%s5778_s8 + $0x58] sm:$0xff] %v212_v11  ;;  %v216_v13 = vld [vmem:[%s5773_s7 + $0xa0] sm:$0xff]  ;;  %v220_v15 = vld [vmem:[%s5773_s7 + $0xe8] sm:$0xff] }
  0x21   : > { %v218_v14 = vld [vmem:[%s5773_s7 + $0xe0] sm:$0xff]  ;;  %215 = vst [vmem:[%s5778_s8 + $0x60] sm:$0xff] %v214_v12  ;;  %217 = vst [vmem:[%s5778_s8 + $0x68] sm:$0xff] %v216_v13  ;;  %v222_v16 = vld [vmem:[%s5773_s7 + $0xf0] sm:$0xff] }
  0x22   : > { %219 = vst [vmem:[%s5778_s8 + $0x70] sm:$0xff] %v218_v14  ;;  %v224_v17 = vld [vmem:[%s5773_s7 + $0xf8] sm:$0xff]  ;;  %221 = vst [vmem:[%s5778_s8 + $0x78] sm:$0xff] %v220_v15  ;;  %v226_v18 = vld [vmem:[%s5773_s7 + $0x100] sm:$0xff] }
  0x23   : > { %223 = vst [vmem:[%s5778_s8 + $0x80] sm:$0xff] %v222_v16  ;;  %225 = vst [vmem:[%s5778_s8 + $0x88] sm:$0xff] %v224_v17  ;;  %v228_v19 = vld [vmem:[%s5773_s7 + $0x108] sm:$0xff]  ;;  %v230_v20 = vld [vmem:[%s5773_s7 + $0x110] sm:$0xff] }
  0x24   : > { %227 = vst [vmem:[%s5778_s8 + $0x90] sm:$0xff] %v226_v18  ;;  %229 = vst [vmem:[%s5778_s8 + $0x98] sm:$0xff] %v228_v19  ;;  %v232_v21 = vld [vmem:[%s5773_s7 + $0x150] sm:$0xff]  ;;  %v234_v22 = vld [vmem:[%s5773_s7 + $0x158] sm:$0xff] }
  0x25   : > { %231 = vst [vmem:[%s5778_s8 + $0xa0] sm:$0xff] %v230_v20  ;;  %v236_v23 = vld [vmem:[%s5773_s7 + $0x160] sm:$0xff]  ;;  %233 = vst [vmem:[%s5778_s8 + $0xa8] sm:$0xff] %v232_v21  ;;  %v238_v24 = vld [vmem:[%s5773_s7 + $0x168] sm:$0xff] }
  0x26   : > { %235 = vst [vmem:[%s5778_s8 + $0xb0] sm:$0xff] %v234_v22  ;;  %237 = vst [vmem:[%s5778_s8 + $0xb8] sm:$0xff] %v236_v23  ;;  %v240_v25 = vld [vmem:[%s5773_s7 + $0x170] sm:$0xff]  ;;  %v242_v26 = vld [vmem:[%s5773_s7 + $0x178] sm:$0xff] }
  0x27   : > { %239 = vst [vmem:[%s5778_s8 + $0xc0] sm:$0xff] %v238_v24  ;;  %241 = vst [vmem:[%s5778_s8 + $0xc8] sm:$0xff] %v240_v25  ;;  %v244_v27 = vld [vmem:[%s5773_s7 + $0x180] sm:$0xff]  ;;  %v248_v29 = vld [vmem:[%s5773_s7 + $0x1c8] sm:$0xff] }
  0x28   : > { %243 = vst [vmem:[%s5778_s8 + $0xd0] sm:$0xff] %v242_v26  ;;  %v246_v28 = vld [vmem:[%s5773_s7 + $0x1c0] sm:$0xff]  ;;  %245 = vst [vmem:[%s5778_s8 + $0xd8] sm:$0xff] %v244_v27  ;;  %v250_v30 = vld [vmem:[%s5773_s7 + $0x1d0] sm:$0xff] }
  0x29   : > { %247 = vst [vmem:[%s5778_s8 + $0xe0] sm:$0xff] %v246_v28  ;;  %249 = vst [vmem:[%s5778_s8 + $0xe8] sm:$0xff] %v248_v29  ;;  %v252_v31 = vld [vmem:[%s5773_s7 + $0x1d8] sm:$0xff]  ;;  %v254_v32 = vld [vmem:[%s5773_s7 + $0x1e0] sm:$0xff] }
  0x2a   : > { %251 = vst [vmem:[%s5778_s8 + $0xf0] sm:$0xff] %v250_v30  ;;  %253 = vst [vmem:[%s5778_s8 + $0xf8] sm:$0xff] %v252_v31  ;;  %v256_v33 = vld [vmem:[%s5773_s7 + $0x1e8] sm:$0xff]  ;;  %v258_v34 = vld [vmem:[%s5773_s7 + $0x1f0] sm:$0xff] }
  0x2b   : > { %255 = vst [vmem:[%s5778_s8 + $0x100] sm:$0xff] %v254_v32  ;;  %v260_v35 = vld [vmem:[%s5773_s7 + $0x230] sm:$0xff]  ;;  %257 = vst [vmem:[%s5778_s8 + $0x108] sm:$0xff] %v256_v33  ;;  %v262_v36 = vld [vmem:[%s5773_s7 + $0x238] sm:$0xff] }
  0x2c   : > { %259 = vst [vmem:[%s5778_s8 + $0x110] sm:$0xff] %v258_v34  ;;  %261 = vst [vmem:[%s5778_s8 + $0x118] sm:$0xff] %v260_v35  ;;  %v264_v37 = vld [vmem:[%s5773_s7 + $0x240] sm:$0xff]  ;;  %v266_v38 = vld [vmem:[%s5773_s7 + $0x248] sm:$0xff] }
  0x2d   : > { %263 = vst [vmem:[%s5778_s8 + $0x120] sm:$0xff] %v262_v36  ;;  %265 = vst [vmem:[%s5778_s8 + $0x128] sm:$0xff] %v264_v37  ;;  %v268_v39 = vld [vmem:[%s5773_s7 + $0x250] sm:$0xff]  ;;  %v270_v40 = vld [vmem:[%s5773_s7 + $0x258] sm:$0xff] }
  0x2e   : > { %267 = vst [vmem:[%s5778_s8 + $0x130] sm:$0xff] %v266_v38  ;;  %v272_v41 = vld [vmem:[%s5773_s7 + $0x260] sm:$0xff]  ;;  %269 = vst [vmem:[%s5778_s8 + $0x138] sm:$0xff] %v268_v39  ;;  %v276_v43 = vld [vmem:[%s5773_s7 + $0x2a8] sm:$0xff] }
  0x2f   : > { %271 = vst [vmem:[%s5778_s8 + $0x140] sm:$0xff] %v270_v40  ;;  %273 = vst [vmem:[%s5778_s8 + $0x148] sm:$0xff] %v272_v41  ;;  %v274_v42 = vld [vmem:[%s5773_s7 + $0x2a0] sm:$0xff]  ;;  %v278_v44 = vld [vmem:[%s5773_s7 + $0x2b0] sm:$0xff] }
  0x30   : > { %275 = vst [vmem:[%s5778_s8 + $0x150] sm:$0xff] %v274_v42  ;;  %277 = vst [vmem:[%s5778_s8 + $0x158] sm:$0xff] %v276_v43  ;;  %v280_v45 = vld [vmem:[%s5773_s7 + $0x2b8] sm:$0xff]  ;;  %v282_v46 = vld [vmem:[%s5773_s7 + $0x2c0] sm:$0xff] }
  0x31   : > { %279 = vst [vmem:[%s5778_s8 + $0x160] sm:$0xff] %v278_v44  ;;  %v284_v47 = vld [vmem:[%s5773_s7 + $0x2c8] sm:$0xff]  ;;  %281 = vst [vmem:[%s5778_s8 + $0x168] sm:$0xff] %v280_v45  ;;  %v286_v48 = vld [vmem:[%s5773_s7 + $0x2d0] sm:$0xff] }
  0x32   : > { %283 = vst [vmem:[%s5778_s8 + $0x170] sm:$0xff] %v282_v46  ;;  %285 = vst [vmem:[%s5778_s8 + $0x178] sm:$0xff] %v284_v47  ;;  %v288_v49 = vld [vmem:[%s5773_s7 + $0x310] sm:$0xff]  ;;  %v290_v50 = vld [vmem:[%s5773_s7 + $0x318] sm:$0xff] }
  0x33   : > { %287 = vst [vmem:[%s5778_s8 + $0x180] sm:$0xff] %v286_v48  ;;  %289 = vst [vmem:[%s5778_s8 + $0x188] sm:$0xff] %v288_v49  ;;  %v292_v51 = vld [vmem:[%s5773_s7 + $0x320] sm:$0xff]  ;;  %v294_v52 = vld [vmem:[%s5773_s7 + $0x328] sm:$0xff] }
  0x34   : > { %291 = vst [vmem:[%s5778_s8 + $0x190] sm:$0xff] %v290_v50  ;;  %v296_v53 = vld [vmem:[%s5773_s7 + $0x330] sm:$0xff]  ;;  %293 = vst [vmem:[%s5778_s8 + $0x198] sm:$0xff] %v292_v51  ;;  %v298_v54 = vld [vmem:[%s5773_s7 + $0x338] sm:$0xff] }
  0x35   : > { %295 = vst [vmem:[%s5778_s8 + $0x1a0] sm:$0xff] %v294_v52  ;;  %297 = vst [vmem:[%s5778_s8 + $0x1a8] sm:$0xff] %v296_v53  ;;  %v300_v55 = vld [vmem:[%s5773_s7 + $0x340] sm:$0xff]  ;;  %v304_v57 = vld [vmem:[%s5773_s7 + $0x388] sm:$0xff] }
  0x36   : > { %v302_v56 = vld [vmem:[%s5773_s7 + $0x380] sm:$0xff]  ;;  %299 = vst [vmem:[%s5778_s8 + $0x1b0] sm:$0xff] %v298_v54  ;;  %301 = vst [vmem:[%s5778_s8 + $0x1b8] sm:$0xff] %v300_v55  ;;  %v306_v58 = vld [vmem:[%s5773_s7 + $0x390] sm:$0xff] }
  0x37   : > { %303 = vst [vmem:[%s5778_s8 + $0x1c0] sm:$0xff] %v302_v56  ;;  %v308_v59 = vld [vmem:[%s5773_s7 + $0x398] sm:$0xff]  ;;  %305 = vst [vmem:[%s5778_s8 + $0x1c8] sm:$0xff] %v304_v57  ;;  %v310_v60 = vld [vmem:[%s5773_s7 + $0x3a0] sm:$0xff] }
  0x38   : > { %307 = vst [vmem:[%s5778_s8 + $0x1d0] sm:$0xff] %v306_v58  ;;  %309 = vst [vmem:[%s5778_s8 + $0x1d8] sm:$0xff] %v308_v59  ;;  %v312_v61 = vld [vmem:[%s5773_s7 + $0x3a8] sm:$0xff]  ;;  %v314_v62 = vld [vmem:[%s5773_s7 + $0x3b0] sm:$0xff] }
  0x39   : > { %311 = vst [vmem:[%s5778_s8 + $0x1e0] sm:$0xff] %v310_v60  ;;  %313 = vst [vmem:[%s5778_s8 + $0x1e8] sm:$0xff] %v312_v61  ;;  %v316_v63 = vld [vmem:[%s5773_s7 + $0x3f0] sm:$0xff]  ;;  %v318_v0 = vld [vmem:[%s5773_s7 + $0x3f8] sm:$0xff] }
  0x3a   : > { %315 = vst [vmem:[%s5778_s8 + $0x1f0] sm:$0xff] %v314_v62  ;;  %v320_v1 = vld [vmem:[%s5773_s7 + $0x400] sm:$0xff]  ;;  %317 = vst [vmem:[%s5778_s8 + $0x1f8] sm:$0xff] %v316_v63  ;;  %v322_v2 = vld [vmem:[%s5773_s7 + $0x408] sm:$0xff] }
  0x3b   : > { %319 = vst [vmem:[%s5778_s8 + $0x200] sm:$0xff] %v318_v0  ;;  %321 = vst [vmem:[%s5778_s8 + $0x208] sm:$0xff] %v320_v1  ;;  %v324_v3 = vld [vmem:[%s5773_s7 + $0x410] sm:$0xff]  ;;  %v326_v4 = vld [vmem:[%s5773_s7 + $0x418] sm:$0xff] }
  0x3c   : > { %323 = vst [vmem:[%s5778_s8 + $0x210] sm:$0xff] %v322_v2  ;;  %325 = vst [vmem:[%s5778_s8 + $0x218] sm:$0xff] %v324_v3  ;;  %v328_v5 = vld [vmem:[%s5773_s7 + $0x420] sm:$0xff]  ;;  %v332_v7 = vld [vmem:[%s5773_s7 + $0x468] sm:$0xff] }
  0x3d   : > { %327 = vst [vmem:[%s5778_s8 + $0x220] sm:$0xff] %v326_v4  ;;  %v330_v6 = vld [vmem:[%s5773_s7 + $0x460] sm:$0xff]  ;;  %329 = vst [vmem:[%s5778_s8 + $0x228] sm:$0xff] %v328_v5  ;;  %v334_v8 = vld [vmem:[%s5773_s7 + $0x470] sm:$0xff] }
  0x3e   : > { %331 = vst [vmem:[%s5778_s8 + $0x230] sm:$0xff] %v330_v6  ;;  %333 = vst [vmem:[%s5778_s8 + $0x238] sm:$0xff] %v332_v7  ;;  %v336_v9 = vld [vmem:[%s5773_s7 + $0x478] sm:$0xff]  ;;  %v338_v10 = vld [vmem:[%s5773_s7 + $0x480] sm:$0xff] }
  0x3f   : > { %335 = vst [vmem:[%s5778_s8 + $0x240] sm:$0xff] %v334_v8  ;;  %337 = vst [vmem:[%s5778_s8 + $0x248] sm:$0xff] %v336_v9  ;;  %v340_v11 = vld [vmem:[%s5773_s7 + $0x488] sm:$0xff]  ;;  %v342_v12 = vld [vmem:[%s5773_s7 + $0x490] sm:$0xff] }
  0x40   : > { %339 = vst [vmem:[%s5778_s8 + $0x250] sm:$0xff] %v338_v10  ;;  %v344_v13 = vld [vmem:[%s5773_s7 + $0x4d0] sm:$0xff]  ;;  %341 = vst [vmem:[%s5778_s8 + $0x258] sm:$0xff] %v340_v11  ;;  %v346_v14 = vld [vmem:[%s5773_s7 + $0x4d8] sm:$0xff] }
  0x41   : > { %343 = vst [vmem:[%s5778_s8 + $0x260] sm:$0xff] %v342_v12  ;;  %345 = vst [vmem:[%s5778_s8 + $0x268] sm:$0xff] %v344_v13  ;;  %v348_v15 = vld [vmem:[%s5773_s7 + $0x4e0] sm:$0xff]  ;;  %v350_v16 = vld [vmem:[%s5773_s7 + $0x4e8] sm:$0xff] }
  0x42   : > { %347 = vst [vmem:[%s5778_s8 + $0x270] sm:$0xff] %v346_v14  ;;  %349 = vst [vmem:[%s5778_s8 + $0x278] sm:$0xff] %v348_v15  ;;  %v352_v17 = vld [vmem:[%s5773_s7 + $0x4f0] sm:$0xff]  ;;  %v354_v18 = vld [vmem:[%s5773_s7 + $0x4f8] sm:$0xff] }
  0x43   : > { %351 = vst [vmem:[%s5778_s8 + $0x280] sm:$0xff] %v350_v16  ;;  %v356_v19 = vld [vmem:[%s5773_s7 + $0x500] sm:$0xff]  ;;  %353 = vst [vmem:[%s5778_s8 + $0x288] sm:$0xff] %v352_v17  ;;  %v360_v21 = vld [vmem:[%s5773_s7 + $0x548] sm:$0xff] }
  0x44   : > { %355 = vst [vmem:[%s5778_s8 + $0x290] sm:$0xff] %v354_v18  ;;  %357 = vst [vmem:[%s5778_s8 + $0x298] sm:$0xff] %v356_v19  ;;  %v358_v20 = vld [vmem:[%s5773_s7 + $0x540] sm:$0xff]  ;;  %v362_v22 = vld [vmem:[%s5773_s7 + $0x550] sm:$0xff] }
  0x45   : > { %359 = vst [vmem:[%s5778_s8 + $0x2a0] sm:$0xff] %v358_v20  ;;  %361 = vst [vmem:[%s5778_s8 + $0x2a8] sm:$0xff] %v360_v21  ;;  %v364_v23 = vld [vmem:[%s5773_s7 + $0x558] sm:$0xff]  ;;  %v366_v24 = vld [vmem:[%s5773_s7 + $0x560] sm:$0xff] }
  0x46   : > { %363 = vst [vmem:[%s5778_s8 + $0x2b0] sm:$0xff] %v362_v22  ;;  %v368_v25 = vld [vmem:[%s5773_s7 + $0x568] sm:$0xff]  ;;  %365 = vst [vmem:[%s5778_s8 + $0x2b8] sm:$0xff] %v364_v23  ;;  %v370_v26 = vld [vmem:[%s5773_s7 + $0x570] sm:$0xff] }
  0x47   : > { %367 = vst [vmem:[%s5778_s8 + $0x2c0] sm:$0xff] %v366_v24  ;;  %369 = vst [vmem:[%s5778_s8 + $0x2c8] sm:$0xff] %v368_v25  ;;  %v372_v27 = vld [vmem:[%s5773_s7 + $0x5b0] sm:$0xff]  ;;  %v374_v28 = vld [vmem:[%s5773_s7 + $0x5b8] sm:$0xff] }
  0x48   : > { %371 = vst [vmem:[%s5778_s8 + $0x2d0] sm:$0xff] %v370_v26  ;;  %373 = vst [vmem:[%s5778_s8 + $0x2d8] sm:$0xff] %v372_v27  ;;  %v376_v29 = vld [vmem:[%s5773_s7 + $0x5c0] sm:$0xff]  ;;  %v378_v30 = vld [vmem:[%s5773_s7 + $0x5c8] sm:$0xff] }
  0x49   : > { %375 = vst [vmem:[%s5778_s8 + $0x2e0] sm:$0xff] %v374_v28  ;;  %v380_v31 = vld [vmem:[%s5773_s7 + $0x5d0] sm:$0xff]  ;;  %377 = vst [vmem:[%s5778_s8 + $0x2e8] sm:$0xff] %v376_v29  ;;  %v382_v32 = vld [vmem:[%s5773_s7 + $0x5d8] sm:$0xff] }
  0x4a   : > { %379 = vst [vmem:[%s5778_s8 + $0x2f0] sm:$0xff] %v378_v30  ;;  %381 = vst [vmem:[%s5778_s8 + $0x2f8] sm:$0xff] %v380_v31  ;;  %v384_v33 = vld [vmem:[%s5773_s7 + $0x5e0] sm:$0xff]  ;;  %v388_v35 = vld [vmem:[%s5773_s7 + $0x628] sm:$0xff] }
  0x4b   : > { %v386_v34 = vld [vmem:[%s5773_s7 + $0x620] sm:$0xff]  ;;  %383 = vst [vmem:[%s5778_s8 + $0x300] sm:$0xff] %v382_v32  ;;  %385 = vst [vmem:[%s5778_s8 + $0x308] sm:$0xff] %v384_v33  ;;  %v390_v36 = vld [vmem:[%s5773_s7 + $0x630] sm:$0xff] }
  0x4c   : > { %387 = vst [vmem:[%s5778_s8 + $0x310] sm:$0xff] %v386_v34  ;;  %v392_v37 = vld [vmem:[%s5773_s7 + $0x638] sm:$0xff]  ;;  %389 = vst [vmem:[%s5778_s8 + $0x318] sm:$0xff] %v388_v35  ;;  %v394_v38 = vld [vmem:[%s5773_s7 + $0x640] sm:$0xff] }
  0x4d   : > { %391 = vst [vmem:[%s5778_s8 + $0x320] sm:$0xff] %v390_v36  ;;  %393 = vst [vmem:[%s5778_s8 + $0x328] sm:$0xff] %v392_v37  ;;  %v396_v39 = vld [vmem:[%s5773_s7 + $0x648] sm:$0xff]  ;;  %v398_v40 = vld [vmem:[%s5773_s7 + $0x650] sm:$0xff] }
  0x4e   : > { %395 = vst [vmem:[%s5778_s8 + $0x330] sm:$0xff] %v394_v38  ;;  %397 = vst [vmem:[%s5778_s8 + $0x338] sm:$0xff] %v396_v39  ;;  %v400_v41 = vld [vmem:[%s5773_s7 + $0x690] sm:$0xff]  ;;  %v402_v42 = vld [vmem:[%s5773_s7 + $0x698] sm:$0xff] }
  0x4f   : > { %399 = vst [vmem:[%s5778_s8 + $0x340] sm:$0xff] %v398_v40  ;;  %v404_v43 = vld [vmem:[%s5773_s7 + $0x6a0] sm:$0xff]  ;;  %401 = vst [vmem:[%s5778_s8 + $0x348] sm:$0xff] %v400_v41  ;;  %v406_v44 = vld [vmem:[%s5773_s7 + $0x6a8] sm:$0xff] }
  0x50   : > { %403 = vst [vmem:[%s5778_s8 + $0x350] sm:$0xff] %v402_v42  ;;  %405 = vst [vmem:[%s5778_s8 + $0x358] sm:$0xff] %v404_v43  ;;  %v408_v45 = vld [vmem:[%s5773_s7 + $0x6b0] sm:$0xff]  ;;  %v410_v46 = vld [vmem:[%s5773_s7 + $0x6b8] sm:$0xff] }
  0x51   : > { %407 = vst [vmem:[%s5778_s8 + $0x360] sm:$0xff] %v406_v44  ;;  %409 = vst [vmem:[%s5778_s8 + $0x368] sm:$0xff] %v408_v45  ;;  %v412_v47 = vld [vmem:[%s5773_s7 + $0x6c0] sm:$0xff]  ;;  %v416_v49 = vld [vmem:[%s5773_s7 + $0x708] sm:$0xff] }
  0x52   : > { %411 = vst [vmem:[%s5778_s8 + $0x370] sm:$0xff] %v410_v46  ;;  %v414_v48 = vld [vmem:[%s5773_s7 + $0x700] sm:$0xff]  ;;  %413 = vst [vmem:[%s5778_s8 + $0x378] sm:$0xff] %v412_v47  ;;  %v418_v50 = vld [vmem:[%s5773_s7 + $0x710] sm:$0xff] }
  0x53   : > { %415 = vst [vmem:[%s5778_s8 + $0x380] sm:$0xff] %v414_v48  ;;  %417 = vst [vmem:[%s5778_s8 + $0x388] sm:$0xff] %v416_v49  ;;  %v420_v51 = vld [vmem:[%s5773_s7 + $0x718] sm:$0xff]  ;;  %v422_v52 = vld [vmem:[%s5773_s7 + $0x720] sm:$0xff] }
  0x54   : > { %419 = vst [vmem:[%s5778_s8 + $0x390] sm:$0xff] %v418_v50  ;;  %421 = vst [vmem:[%s5778_s8 + $0x398] sm:$0xff] %v420_v51  ;;  %v424_v53 = vld [vmem:[%s5773_s7 + $0x728] sm:$0xff]  ;;  %v426_v54 = vld [vmem:[%s5773_s7 + $0x730] sm:$0xff] }
  0x55   : > { %423 = vst [vmem:[%s5778_s8 + $0x3a0] sm:$0xff] %v422_v52  ;;  %v428_v55 = vld [vmem:[%s5773_s7 + $0x770] sm:$0xff]  ;;  %425 = vst [vmem:[%s5778_s8 + $0x3a8] sm:$0xff] %v424_v53  ;;  %v430_v56 = vld [vmem:[%s5773_s7 + $0x778] sm:$0xff] }
  0x56   : > { %427 = vst [vmem:[%s5778_s8 + $0x3b0] sm:$0xff] %v426_v54  ;;  %429 = vst [vmem:[%s5778_s8 + $0x3b8] sm:$0xff] %v428_v55  ;;  %v432_v57 = vld [vmem:[%s5773_s7 + $0x780] sm:$0xff]  ;;  %v434_v58 = vld [vmem:[%s5773_s7 + $0x788] sm:$0xff] }
  0x57   : > { %431 = vst [vmem:[%s5778_s8 + $0x3c0] sm:$0xff] %v430_v56  ;;  %433 = vst [vmem:[%s5778_s8 + $0x3c8] sm:$0xff] %v432_v57  ;;  %v436_v59 = vld [vmem:[%s5773_s7 + $0x790] sm:$0xff]  ;;  %v438_v60 = vld [vmem:[%s5773_s7 + $0x798] sm:$0xff] }
  0x58   : > { %435 = vst [vmem:[%s5778_s8 + $0x3d0] sm:$0xff] %v434_v58  ;;  %v440_v61 = vld [vmem:[%s5773_s7 + $0x7a0] sm:$0xff]  ;;  %437 = vst [vmem:[%s5778_s8 + $0x3d8] sm:$0xff] %v436_v59  ;;  %v444_v63 = vld [vmem:[%s5773_s7 + $0x7e8] sm:$0xff] }
  0x59   : > { %439 = vst [vmem:[%s5778_s8 + $0x3e0] sm:$0xff] %v438_v60  ;;  %441 = vst [vmem:[%s5778_s8 + $0x3e8] sm:$0xff] %v440_v61  ;;  %v442_v62 = vld [vmem:[%s5773_s7 + $0x7e0] sm:$0xff]  ;;  %v446_v0 = vld [vmem:[%s5773_s7 + $0x7f0] sm:$0xff] }
  0x5a   : > { %443 = vst [vmem:[%s5778_s8 + $0x3f0] sm:$0xff] %v442_v62  ;;  %445 = vst [vmem:[%s5778_s8 + $0x3f8] sm:$0xff] %v444_v63  ;;  %v448_v1 = vld [vmem:[%s5773_s7 + $0x7f8] sm:$0xff]  ;;  %v450_v2 = vld [vmem:[%s5773_s7 + $0x800] sm:$0xff] }
  0x5b   : > { %447 = vst [vmem:[%s5778_s8 + $0x400] sm:$0xff] %v446_v0  ;;  %v452_v3 = vld [vmem:[%s5773_s7 + $0x808] sm:$0xff]  ;;  %449 = vst [vmem:[%s5778_s8 + $0x408] sm:$0xff] %v448_v1  ;;  %v454_v4 = vld [vmem:[%s5773_s7 + $0x810] sm:$0xff] }
  0x5c   : > { %451 = vst [vmem:[%s5778_s8 + $0x410] sm:$0xff] %v450_v2  ;;  %453 = vst [vmem:[%s5778_s8 + $0x418] sm:$0xff] %v452_v3  ;;  %v456_v5 = vld [vmem:[%s5773_s7 + $0x850] sm:$0xff]  ;;  %v458_v6 = vld [vmem:[%s5773_s7 + $0x858] sm:$0xff] }
  0x5d   : > { %455 = vst [vmem:[%s5778_s8 + $0x420] sm:$0xff] %v454_v4  ;;  %457 = vst [vmem:[%s5778_s8 + $0x428] sm:$0xff] %v456_v5  ;;  %v460_v7 = vld [vmem:[%s5773_s7 + $0x860] sm:$0xff]  ;;  %v462_v8 = vld [vmem:[%s5773_s7 + $0x868] sm:$0xff] }
  0x5e   : > { %459 = vst [vmem:[%s5778_s8 + $0x430] sm:$0xff] %v458_v6  ;;  %v464_v9 = vld [vmem:[%s5773_s7 + $0x870] sm:$0xff]  ;;  %461 = vst [vmem:[%s5778_s8 + $0x438] sm:$0xff] %v460_v7  ;;  %v466_v10 = vld [vmem:[%s5773_s7 + $0x878] sm:$0xff] }
  0x5f   : > { %463 = vst [vmem:[%s5778_s8 + $0x440] sm:$0xff] %v462_v8  ;;  %465 = vst [vmem:[%s5778_s8 + $0x448] sm:$0xff] %v464_v9  ;;  %v468_v11 = vld [vmem:[%s5773_s7 + $0x880] sm:$0xff]  ;;  %v472_v13 = vld [vmem:[%s5773_s7 + $0x8c8] sm:$0xff] }
  0x60   : > { %v470_v12 = vld [vmem:[%s5773_s7 + $0x8c0] sm:$0xff]  ;;  %467 = vst [vmem:[%s5778_s8 + $0x450] sm:$0xff] %v466_v10  ;;  %469 = vst [vmem:[%s5778_s8 + $0x458] sm:$0xff] %v468_v11  ;;  %v474_v14 = vld [vmem:[%s5773_s7 + $0x8d0] sm:$0xff] }
  0x61   : > { %471 = vst [vmem:[%s5778_s8 + $0x460] sm:$0xff] %v470_v12  ;;  %v476_v15 = vld [vmem:[%s5773_s7 + $0x8d8] sm:$0xff]  ;;  %473 = vst [vmem:[%s5778_s8 + $0x468] sm:$0xff] %v472_v13  ;;  %v478_v16 = vld [vmem:[%s5773_s7 + $0x8e0] sm:$0xff] }
  0x62   : > { %475 = vst [vmem:[%s5778_s8 + $0x470] sm:$0xff] %v474_v14  ;;  %477 = vst [vmem:[%s5778_s8 + $0x478] sm:$0xff] %v476_v15  ;;  %v480_v17 = vld [vmem:[%s5773_s7 + $0x8e8] sm:$0xff]  ;;  %v482_v18 = vld [vmem:[%s5773_s7 + $0x8f0] sm:$0xff] }
  0x63   : > { %479 = vst [vmem:[%s5778_s8 + $0x480] sm:$0xff] %v478_v16  ;;  %481 = vst [vmem:[%s5778_s8 + $0x488] sm:$0xff] %v480_v17  ;;  %v484_v19 = vld [vmem:[%s5773_s7 + $0x930] sm:$0xff]  ;;  %v486_v20 = vld [vmem:[%s5773_s7 + $0x938] sm:$0xff] }
  0x64   : > { %483 = vst [vmem:[%s5778_s8 + $0x490] sm:$0xff] %v482_v18  ;;  %v488_v21 = vld [vmem:[%s5773_s7 + $0x940] sm:$0xff]  ;;  %485 = vst [vmem:[%s5778_s8 + $0x498] sm:$0xff] %v484_v19  ;;  %v490_v22 = vld [vmem:[%s5773_s7 + $0x948] sm:$0xff] }
  0x65   : > { %487 = vst [vmem:[%s5778_s8 + $0x4a0] sm:$0xff] %v486_v20  ;;  %489 = vst [vmem:[%s5778_s8 + $0x4a8] sm:$0xff] %v488_v21  ;;  %v492_v23 = vld [vmem:[%s5773_s7 + $0x950] sm:$0xff]  ;;  %v494_v24 = vld [vmem:[%s5773_s7 + $0x958] sm:$0xff] }
  0x66   : > { %491 = vst [vmem:[%s5778_s8 + $0x4b0] sm:$0xff] %v490_v22  ;;  %493 = vst [vmem:[%s5778_s8 + $0x4b8] sm:$0xff] %v492_v23  ;;  %v496_v25 = vld [vmem:[%s5773_s7 + $0x960] sm:$0xff]  ;;  %v500_v27 = vld [vmem:[%s5773_s7 + $0x9a8] sm:$0xff] }
  0x67   : > { %495 = vst [vmem:[%s5778_s8 + $0x4c0] sm:$0xff] %v494_v24  ;;  %v498_v26 = vld [vmem:[%s5773_s7 + $0x9a0] sm:$0xff]  ;;  %497 = vst [vmem:[%s5778_s8 + $0x4c8] sm:$0xff] %v496_v25  ;;  %v502_v28 = vld [vmem:[%s5773_s7 + $0x9b0] sm:$0xff] }
  0x68   : > { %499 = vst [vmem:[%s5778_s8 + $0x4d0] sm:$0xff] %v498_v26  ;;  %501 = vst [vmem:[%s5778_s8 + $0x4d8] sm:$0xff] %v500_v27  ;;  %v504_v29 = vld [vmem:[%s5773_s7 + $0x9b8] sm:$0xff]  ;;  %v506_v30 = vld [vmem:[%s5773_s7 + $0x9c0] sm:$0xff] }
  0x69   : > { %503 = vst [vmem:[%s5778_s8 + $0x4e0] sm:$0xff] %v502_v28  ;;  %505 = vst [vmem:[%s5778_s8 + $0x4e8] sm:$0xff] %v504_v29  ;;  %v508_v31 = vld [vmem:[%s5773_s7 + $0x9c8] sm:$0xff]  ;;  %v510_v32 = vld [vmem:[%s5773_s7 + $0x9d0] sm:$0xff] }
  0x6a   : > { %507 = vst [vmem:[%s5778_s8 + $0x4f0] sm:$0xff] %v506_v30  ;;  %v512_v33 = vld [vmem:[%s5773_s7 + $0xa10] sm:$0xff]  ;;  %509 = vst [vmem:[%s5778_s8 + $0x4f8] sm:$0xff] %v508_v31  ;;  %v514_v34 = vld [vmem:[%s5773_s7 + $0xa18] sm:$0xff] }
  0x6b   : > { %511 = vst [vmem:[%s5778_s8 + $0x500] sm:$0xff] %v510_v32  ;;  %513 = vst [vmem:[%s5778_s8 + $0x508] sm:$0xff] %v512_v33  ;;  %v516_v35 = vld [vmem:[%s5773_s7 + $0xa20] sm:$0xff]  ;;  %v518_v36 = vld [vmem:[%s5773_s7 + $0xa28] sm:$0xff] }
  0x6c   : > { %515 = vst [vmem:[%s5778_s8 + $0x510] sm:$0xff] %v514_v34  ;;  %517 = vst [vmem:[%s5778_s8 + $0x518] sm:$0xff] %v516_v35  ;;  %v520_v37 = vld [vmem:[%s5773_s7 + $0xa30] sm:$0xff]  ;;  %v522_v38 = vld [vmem:[%s5773_s7 + $0xa38] sm:$0xff] }
  0x6d   : > { %519 = vst [vmem:[%s5778_s8 + $0x520] sm:$0xff] %v518_v36  ;;  %v524_v39 = vld [vmem:[%s5773_s7 + $0xa40] sm:$0xff]  ;;  %521 = vst [vmem:[%s5778_s8 + $0x528] sm:$0xff] %v520_v37  ;;  %v528_v41 = vld [vmem:[%s5773_s7 + $0xa88] sm:$0xff] }
  0x6e   : > { %523 = vst [vmem:[%s5778_s8 + $0x530] sm:$0xff] %v522_v38  ;;  %525 = vst [vmem:[%s5778_s8 + $0x538] sm:$0xff] %v524_v39  ;;  %v526_v40 = vld [vmem:[%s5773_s7 + $0xa80] sm:$0xff]  ;;  %v530_v42 = vld [vmem:[%s5773_s7 + $0xa90] sm:$0xff] }
  0x6f   : > { %527 = vst [vmem:[%s5778_s8 + $0x540] sm:$0xff] %v526_v40  ;;  %529 = vst [vmem:[%s5778_s8 + $0x548] sm:$0xff] %v528_v41  ;;  %v532_v43 = vld [vmem:[%s5773_s7 + $0xa98] sm:$0xff]  ;;  %v534_v44 = vld [vmem:[%s5773_s7 + $0xaa0] sm:$0xff] }
  0x70   : > { %531 = vst [vmem:[%s5778_s8 + $0x550] sm:$0xff] %v530_v42  ;;  %v536_v45 = vld [vmem:[%s5773_s7 + $0xaa8] sm:$0xff]  ;;  %533 = vst [vmem:[%s5778_s8 + $0x558] sm:$0xff] %v532_v43  ;;  %v538_v46 = vld [vmem:[%s5773_s7 + $0xab0] sm:$0xff] }
  0x71   : > { %535 = vst [vmem:[%s5778_s8 + $0x560] sm:$0xff] %v534_v44  ;;  %537 = vst [vmem:[%s5778_s8 + $0x568] sm:$0xff] %v536_v45  ;;  %v540_v47 = vld [vmem:[%s5773_s7 + $0xaf0] sm:$0xff]  ;;  %v542_v48 = vld [vmem:[%s5773_s7 + $0xaf8] sm:$0xff] }
  0x72   : > { %539 = vst [vmem:[%s5778_s8 + $0x570] sm:$0xff] %v538_v46  ;;  %541 = vst [vmem:[%s5778_s8 + $0x578] sm:$0xff] %v540_v47  ;;  %v544_v49 = vld [vmem:[%s5773_s7 + $0xb00] sm:$0xff]  ;;  %v546_v50 = vld [vmem:[%s5773_s7 + $0xb08] sm:$0xff] }
  0x73   : > { %543 = vst [vmem:[%s5778_s8 + $0x580] sm:$0xff] %v542_v48  ;;  %v548_v51 = vld [vmem:[%s5773_s7 + $0xb10] sm:$0xff]  ;;  %545 = vst [vmem:[%s5778_s8 + $0x588] sm:$0xff] %v544_v49  ;;  %v550_v52 = vld [vmem:[%s5773_s7 + $0xb18] sm:$0xff] }
  0x74   : > { %547 = vst [vmem:[%s5778_s8 + $0x590] sm:$0xff] %v546_v50  ;;  %549 = vst [vmem:[%s5778_s8 + $0x598] sm:$0xff] %v548_v51  ;;  %v552_v53 = vld [vmem:[%s5773_s7 + $0xb20] sm:$0xff]  ;;  %v556_v55 = vld [vmem:[%s5773_s7 + $0xb68] sm:$0xff] }
  0x75   : > { %v554_v54 = vld [vmem:[%s5773_s7 + $0xb60] sm:$0xff]  ;;  %551 = vst [vmem:[%s5778_s8 + $0x5a0] sm:$0xff] %v550_v52  ;;  %553 = vst [vmem:[%s5778_s8 + $0x5a8] sm:$0xff] %v552_v53  ;;  %v558_v56 = vld [vmem:[%s5773_s7 + $0xb70] sm:$0xff] }
  0x76   : > { %555 = vst [vmem:[%s5778_s8 + $0x5b0] sm:$0xff] %v554_v54  ;;  %v560_v57 = vld [vmem:[%s5773_s7 + $0xb78] sm:$0xff]  ;;  %557 = vst [vmem:[%s5778_s8 + $0x5b8] sm:$0xff] %v556_v55  ;;  %v562_v58 = vld [vmem:[%s5773_s7 + $0xb80] sm:$0xff] }
  0x77   : > { %559 = vst [vmem:[%s5778_s8 + $0x5c0] sm:$0xff] %v558_v56  ;;  %561 = vst [vmem:[%s5778_s8 + $0x5c8] sm:$0xff] %v560_v57  ;;  %v564_v59 = vld [vmem:[%s5773_s7 + $0xb88] sm:$0xff]  ;;  %v566_v60 = vld [vmem:[%s5773_s7 + $0xb90] sm:$0xff] }
  0x78   : > { %563 = vst [vmem:[%s5778_s8 + $0x5d0] sm:$0xff] %v562_v58  ;;  %565 = vst [vmem:[%s5778_s8 + $0x5d8] sm:$0xff] %v564_v59  ;;  %v568_v61 = vld [vmem:[%s5773_s7 + $0xbd0] sm:$0xff]  ;;  %v570_v62 = vld [vmem:[%s5773_s7 + $0xbd8] sm:$0xff] }
  0x79   : > { %567 = vst [vmem:[%s5778_s8 + $0x5e0] sm:$0xff] %v566_v60  ;;  %v572_v63 = vld [vmem:[%s5773_s7 + $0xbe0] sm:$0xff]  ;;  %569 = vst [vmem:[%s5778_s8 + $0x5e8] sm:$0xff] %v568_v61  ;;  %v574_v0 = vld [vmem:[%s5773_s7 + $0xbe8] sm:$0xff] }
  0x7a   : > { %571 = vst [vmem:[%s5778_s8 + $0x5f0] sm:$0xff] %v570_v62  ;;  %573 = vst [vmem:[%s5778_s8 + $0x5f8] sm:$0xff] %v572_v63  ;;  %v576_v1 = vld [vmem:[%s5773_s7 + $0xbf0] sm:$0xff]  ;;  %v578_v2 = vld [vmem:[%s5773_s7 + $0xbf8] sm:$0xff] }
  0x7b   : > { %575 = vst [vmem:[%s5778_s8 + $0x600] sm:$0xff] %v574_v0  ;;  %577 = vst [vmem:[%s5778_s8 + $0x608] sm:$0xff] %v576_v1  ;;  %v580_v3 = vld [vmem:[%s5773_s7 + $0xc00] sm:$0xff]  ;;  %v584_v5 = vld [vmem:[%s5773_s7 + $0xc48] sm:$0xff] }
  0x7c   : > { %579 = vst [vmem:[%s5778_s8 + $0x610] sm:$0xff] %v578_v2  ;;  %v582_v4 = vld [vmem:[%s5773_s7 + $0xc40] sm:$0xff]  ;;  %581 = vst [vmem:[%s5778_s8 + $0x618] sm:$0xff] %v580_v3  ;;  %v586_v6 = vld [vmem:[%s5773_s7 + $0xc50] sm:$0xff] }
  0x7d   : > { %583 = vst [vmem:[%s5778_s8 + $0x620] sm:$0xff] %v582_v4  ;;  %585 = vst [vmem:[%s5778_s8 + $0x628] sm:$0xff] %v584_v5  ;;  %v588_v7 = vld [vmem:[%s5773_s7 + $0xc58] sm:$0xff]  ;;  %v590_v8 = vld [vmem:[%s5773_s7 + $0xc60] sm:$0xff] }
  0x7e   : > { %587 = vst [vmem:[%s5778_s8 + $0x630] sm:$0xff] %v586_v6  ;;  %589 = vst [vmem:[%s5778_s8 + $0x638] sm:$0xff] %v588_v7  ;;  %v592_v9 = vld [vmem:[%s5773_s7 + $0xc68] sm:$0xff]  ;;  %v594_v10 = vld [vmem:[%s5773_s7 + $0xc70] sm:$0xff] }
  0x7f   : > { %591 = vst [vmem:[%s5778_s8 + $0x640] sm:$0xff] %v590_v8  ;;  %v596_v11 = vld [vmem:[%s5773_s7 + $0xcb0] sm:$0xff]  ;;  %593 = vst [vmem:[%s5778_s8 + $0x648] sm:$0xff] %v592_v9  ;;  %v598_v12 = vld [vmem:[%s5773_s7 + $0xcb8] sm:$0xff] }
  0x80   : > { %595 = vst [vmem:[%s5778_s8 + $0x650] sm:$0xff] %v594_v10  ;;  %597 = vst [vmem:[%s5778_s8 + $0x658] sm:$0xff] %v596_v11  ;;  %v600_v13 = vld [vmem:[%s5773_s7 + $0xcc0] sm:$0xff]  ;;  %v602_v14 = vld [vmem:[%s5773_s7 + $0xcc8] sm:$0xff] }
  0x81   : > { %599 = vst [vmem:[%s5778_s8 + $0x660] sm:$0xff] %v598_v12  ;;  %601 = vst [vmem:[%s5778_s8 + $0x668] sm:$0xff] %v600_v13  ;;  %v604_v15 = vld [vmem:[%s5773_s7 + $0xcd0] sm:$0xff]  ;;  %v606_v16 = vld [vmem:[%s5773_s7 + $0xcd8] sm:$0xff] }
  0x82   : > { %603 = vst [vmem:[%s5778_s8 + $0x670] sm:$0xff] %v602_v14  ;;  %v608_v17 = vld [vmem:[%s5773_s7 + $0xce0] sm:$0xff]  ;;  %605 = vst [vmem:[%s5778_s8 + $0x678] sm:$0xff] %v604_v15  ;;  %v612_v19 = vld [vmem:[%s5773_s7 + $0xd28] sm:$0xff] }
  0x83   : > { %607 = vst [vmem:[%s5778_s8 + $0x680] sm:$0xff] %v606_v16  ;;  %609 = vst [vmem:[%s5778_s8 + $0x688] sm:$0xff] %v608_v17  ;;  %v610_v18 = vld [vmem:[%s5773_s7 + $0xd20] sm:$0xff]  ;;  %v614_v20 = vld [vmem:[%s5773_s7 + $0xd30] sm:$0xff] }
  0x84   : > { %611 = vst [vmem:[%s5778_s8 + $0x690] sm:$0xff] %v610_v18  ;;  %613 = vst [vmem:[%s5778_s8 + $0x698] sm:$0xff] %v612_v19  ;;  %v616_v21 = vld [vmem:[%s5773_s7 + $0xd38] sm:$0xff]  ;;  %v618_v22 = vld [vmem:[%s5773_s7 + $0xd40] sm:$0xff] }
  0x85   : > { %615 = vst [vmem:[%s5778_s8 + $0x6a0] sm:$0xff] %v614_v20  ;;  %v620_v23 = vld [vmem:[%s5773_s7 + $0xd48] sm:$0xff]  ;;  %617 = vst [vmem:[%s5778_s8 + $0x6a8] sm:$0xff] %v616_v21  ;;  %v622_v24 = vld [vmem:[%s5773_s7 + $0xd50] sm:$0xff] }
  0x86   : > { %619 = vst [vmem:[%s5778_s8 + $0x6b0] sm:$0xff] %v618_v22  ;;  %621 = vst [vmem:[%s5778_s8 + $0x6b8] sm:$0xff] %v620_v23  ;;  %v624_v25 = vld [vmem:[%s5773_s7 + $0xd90] sm:$0xff]  ;;  %v626_v26 = vld [vmem:[%s5773_s7 + $0xd98] sm:$0xff] }
  0x87   : > { %623 = vst [vmem:[%s5778_s8 + $0x6c0] sm:$0xff] %v622_v24  ;;  %625 = vst [vmem:[%s5778_s8 + $0x6c8] sm:$0xff] %v624_v25  ;;  %v628_v27 = vld [vmem:[%s5773_s7 + $0xda0] sm:$0xff]  ;;  %v630_v28 = vld [vmem:[%s5773_s7 + $0xda8] sm:$0xff] }
  0x88   : > { %627 = vst [vmem:[%s5778_s8 + $0x6d0] sm:$0xff] %v626_v26  ;;  %v632_v29 = vld [vmem:[%s5773_s7 + $0xdb0] sm:$0xff]  ;;  %629 = vst [vmem:[%s5778_s8 + $0x6d8] sm:$0xff] %v628_v27  ;;  %v634_v30 = vld [vmem:[%s5773_s7 + $0xdb8] sm:$0xff] }
  0x89   : > { %631 = vst [vmem:[%s5778_s8 + $0x6e0] sm:$0xff] %v630_v28  ;;  %633 = vst [vmem:[%s5778_s8 + $0x6e8] sm:$0xff] %v632_v29  ;;  %v636_v31 = vld [vmem:[%s5773_s7 + $0xdc0] sm:$0xff] }
  0x8a   : > { %635 = vst [vmem:[%s5778_s8 + $0x6f0] sm:$0xff] %v634_v30  ;;  %637 = vst [vmem:[%s5778_s8 + $0x6f8] sm:$0xff] %v636_v31 }
  0x8b PF: > { %p4540_p7 = scmp.ge.s32.totalorder %s5689_s18, 1  ;;  %p657_p8 = scmp.lt.s32.totalorder %s5689_s18, 5 }
  0x8d   : > { %p658_p9 = pnand %p4540_p7, %p657_p8 }
  0x8f   : > { %661 = sbr.rel (%p658_p9) target bundleno = 1001 (0x3e9), region = 51 }
  0x96   : > { %s664_s9 = sand.u32 1, %s5665_s12   ;;  %s708_s10 = smul.u32 112, %s5673_s14 }
  0x97   : > { %s5334_s11 = smul.u32 1792, %s664_s9  ;;  %s4542_s21 = sshll.u32 %s5677_s15, 5 }
  0x98   : > { %p710_p10 = scmp.lt.s32.totalorder %s708_s10, 223  ;;  %p727_p11 = scmp.lt.s32.totalorder %s4542_s21, 63 }
  0x99   : > { %s6240_s12 = scalar_lea.vmem [#allocation3], %s5334_s11  ;;  %p4544_p12 = scmp.ne.s32.totalorder %s5673_s14, 0 }
  0x9a   : > { %s7456_s10 = smov (!%p710_p10, %s708_s10), 223  ;;  %s7458_s21 = smov (!%p727_p11, %s4542_s21), 63 }
  0x9b   : > { %s5335_s22 = smul.u32 12, %s7456_s10  ;;  %v5691_v32 = vmov (!%p4544_p12), 0.0  }
  0x9c   : > { %s5336_s23 = smul.u32 24, %s7458_s21  ;;  %742 = vst [vmem:[#allocation2] sm:$0xff] (!%p4544_p12), %v5691_v32  ;;  %743 = vst [vmem:[#allocation2 + $0x8] sm:$0xff] (!%p4544_p12), %v5691_v32 }
  0x9d   : > { %s6233_s27 = scalar_lea.vmem %s7399_s1, %s5335_s22  ;;  %741 = sbr.rel (%p4544_p12) target bundleno = 204 (0xcc), region = 59  ;;  %744 = vst [vmem:[#allocation2 + $0x10] sm:$0xff] (!%p4544_p12), %v5691_v32  ;;  %745 = vst [vmem:[#allocation2 + $0x18] sm:$0xff] (!%p4544_p12), %v5691_v32 }
  0x9e   : > { %s6238_s30 = scalar_lea.vmem %s7401_s3, %s5336_s23  ;;  %746 = vst [vmem:[#allocation2 + $0x20] sm:$0xff] (!%p4544_p12), %v5691_v32  ;;  %747 = vst [vmem:[#allocation2 + $0x28] sm:$0xff] (!%p4544_p12), %v5691_v32 }
  0x9f   : > { %748 = vst [vmem:[#allocation2 + $0x30] sm:$0xff] (!%p4544_p12), %v5691_v32  ;;  %749 = vst [vmem:[#allocation2 + $0x38] sm:$0xff] (!%p4544_p12), %v5691_v32 }
  0xa0   : > { %750 = vst [vmem:[#allocation2 + $0x40] sm:$0xff] (!%p4544_p12), %v5691_v32  ;;  %751 = vst [vmem:[#allocation2 + $0x48] sm:$0xff] (!%p4544_p12), %v5691_v32 }
  0xa1   : > { %752 = vst [vmem:[#allocation2 + $0x50] sm:$0xff] (!%p4544_p12), %v5691_v32  ;;  %753 = vst [vmem:[#allocation2 + $0x58] sm:$0xff] (!%p4544_p12), %v5691_v32 }
  0xa2   : > { %754 = vst [vmem:[#allocation2 + $0x60] sm:$0xff] (!%p4544_p12), %v5691_v32  ;;  %755 = vst [vmem:[#allocation2 + $0x68] sm:$0xff] (!%p4544_p12), %v5691_v32 }
  0xa3   : > { %756 = vst [vmem:[#allocation2 + $0x70] sm:$0xff] (!%p4544_p12), %v5691_v32  ;;  %757 = vst [vmem:[#allocation2 + $0x78] sm:$0xff] (!%p4544_p12), %v5691_v32 }
  0xa4   : > { %758 = vst [vmem:[#allocation2 + $0x80] sm:$0xff] %v5691_v32  ;;  %759 = vst [vmem:[#allocation2 + $0x88] sm:$0xff] %v5691_v32 }
  0xa5   : > { %760 = vst [vmem:[#allocation2 + $0x90] sm:$0xff] %v5691_v32  ;;  %761 = vst [vmem:[#allocation2 + $0x98] sm:$0xff] %v5691_v32 }
  0xa6   : > { %762 = vst [vmem:[#allocation2 + $0xa0] sm:$0xff] %v5691_v32  ;;  %763 = vst [vmem:[#allocation2 + $0xa8] sm:$0xff] %v5691_v32 }
  0xa7   : > { %764 = vst [vmem:[#allocation2 + $0xb0] sm:$0xff] %v5691_v32  ;;  %765 = vst [vmem:[#allocation2 + $0xb8] sm:$0xff] %v5691_v32 }
  0xa8   : > { %766 = vst [vmem:[#allocation2 + $0xc0] sm:$0xff] %v5691_v32  ;;  %767 = vst [vmem:[#allocation2 + $0xc8] sm:$0xff] %v5691_v32 }
  0xa9   : > { %768 = vst [vmem:[#allocation2 + $0xd0] sm:$0xff] %v5691_v32  ;;  %769 = vst [vmem:[#allocation2 + $0xd8] sm:$0xff] %v5691_v32 }
  0xaa   : > { %770 = vst [vmem:[#allocation2 + $0xe0] sm:$0xff] %v5691_v32  ;;  %771 = vst [vmem:[#allocation2 + $0xe8] sm:$0xff] %v5691_v32 }
  0xab   : > { %772 = vst [vmem:[#allocation2 + $0xf0] sm:$0xff] %v5691_v32  ;;  %773 = vst [vmem:[#allocation2 + $0xf8] sm:$0xff] %v5691_v32 }
  0xac   : > { %774 = vst [vmem:[#allocation2 + $0x100] sm:$0xff] %v5691_v32  ;;  %775 = vst [vmem:[#allocation2 + $0x108] sm:$0xff] %v5691_v32 }
  0xad   : > { %776 = vst [vmem:[#allocation2 + $0x110] sm:$0xff] %v5691_v32  ;;  %777 = vst [vmem:[#allocation2 + $0x118] sm:$0xff] %v5691_v32 }
  0xae   : > { %778 = vst [vmem:[#allocation2 + $0x120] sm:$0xff] %v5691_v32  ;;  %779 = vst [vmem:[#allocation2 + $0x128] sm:$0xff] %v5691_v32 }
  0xaf   : > { %780 = vst [vmem:[#allocation2 + $0x130] sm:$0xff] %v5691_v32  ;;  %781 = vst [vmem:[#allocation2 + $0x138] sm:$0xff] %v5691_v32 }
  0xb0   : > { %782 = vst [vmem:[#allocation2 + $0x140] sm:$0xff] %v5691_v32  ;;  %783 = vst [vmem:[#allocation2 + $0x148] sm:$0xff] %v5691_v32 }
  0xb1   : > { %784 = vst [vmem:[#allocation2 + $0x150] sm:$0xff] %v5691_v32  ;;  %785 = vst [vmem:[#allocation2 + $0x158] sm:$0xff] %v5691_v32 }
  0xb2   : > { %786 = vst [vmem:[#allocation2 + $0x160] sm:$0xff] %v5691_v32  ;;  %787 = vst [vmem:[#allocation2 + $0x168] sm:$0xff] %v5691_v32 }
  0xb3   : > { %788 = vst [vmem:[#allocation2 + $0x170] sm:$0xff] %v5691_v32  ;;  %789 = vst [vmem:[#allocation2 + $0x178] sm:$0xff] %v5691_v32 }
  0xb4   : > { %790 = vst [vmem:[#allocation2 + $0x180] sm:$0xff] %v5691_v32  ;;  %791 = vst [vmem:[#allocation2 + $0x188] sm:$0xff] %v5691_v32 }
  0xb5   : > { %792 = vst [vmem:[#allocation2 + $0x190] sm:$0xff] %v5691_v32  ;;  %793 = vst [vmem:[#allocation2 + $0x198] sm:$0xff] %v5691_v32 }
  0xb6   : > { %794 = vst [vmem:[#allocation2 + $0x1a0] sm:$0xff] %v5691_v32  ;;  %795 = vst [vmem:[#allocation2 + $0x1a8] sm:$0xff] %v5691_v32 }
  0xb7   : > { %796 = vst [vmem:[#allocation2 + $0x1b0] sm:$0xff] %v5691_v32  ;;  %797 = vst [vmem:[#allocation2 + $0x1b8] sm:$0xff] %v5691_v32 }
  0xb8   : > { %798 = vst [vmem:[#allocation2 + $0x1c0] sm:$0xff] %v5691_v32  ;;  %799 = vst [vmem:[#allocation2 + $0x1c8] sm:$0xff] %v5691_v32 }
  0xb9   : > { %800 = vst [vmem:[#allocation2 + $0x1d0] sm:$0xff] %v5691_v32  ;;  %801 = vst [vmem:[#allocation2 + $0x1d8] sm:$0xff] %v5691_v32 }
  0xba   : > { %802 = vst [vmem:[#allocation2 + $0x1e0] sm:$0xff] %v5691_v32  ;;  %803 = vst [vmem:[#allocation2 + $0x1e8] sm:$0xff] %v5691_v32 }
  0xbb   : > { %804 = vst [vmem:[#allocation2 + $0x1f0] sm:$0xff] %v5691_v32  ;;  %805 = vst [vmem:[#allocation2 + $0x1f8] sm:$0xff] %v5691_v32 }
  0xbc   : > { %806 = vst [vmem:[#allocation2 + $0x200] sm:$0xff] %v5691_v32  ;;  %807 = vst [vmem:[#allocation2 + $0x208] sm:$0xff] %v5691_v32 }
  0xbd   : > { %808 = vst [vmem:[#allocation2 + $0x210] sm:$0xff] %v5691_v32  ;;  %809 = vst [vmem:[#allocation2 + $0x218] sm:$0xff] %v5691_v32 }
  0xbe   : > { %810 = vst [vmem:[#allocation2 + $0x220] sm:$0xff] %v5691_v32  ;;  %811 = vst [vmem:[#allocation2 + $0x228] sm:$0xff] %v5691_v32 }
  0xbf   : > { %812 = vst [vmem:[#allocation2 + $0x230] sm:$0xff] %v5691_v32  ;;  %813 = vst [vmem:[#allocation2 + $0x238] sm:$0xff] %v5691_v32 }
  0xc0   : > { %814 = vst [vmem:[#allocation2 + $0x240] sm:$0xff] %v5691_v32  ;;  %815 = vst [vmem:[#allocation2 + $0x248] sm:$0xff] %v5691_v32 }
  0xc1   : > { %816 = vst [vmem:[#allocation2 + $0x250] sm:$0xff] %v5691_v32  ;;  %817 = vst [vmem:[#allocation2 + $0x258] sm:$0xff] %v5691_v32 }
  0xc2   : > { %818 = vst [vmem:[#allocation2 + $0x260] sm:$0xff] %v5691_v32  ;;  %819 = vst [vmem:[#allocation2 + $0x268] sm:$0xff] %v5691_v32 }
  0xc3   : > { %820 = vst [vmem:[#allocation2 + $0x270] sm:$0xff] %v5691_v32  ;;  %821 = vst [vmem:[#allocation2 + $0x278] sm:$0xff] %v5691_v32 }
  0xc4   : > { %822 = vst [vmem:[#allocation2 + $0x280] sm:$0xff] %v5691_v32  ;;  %823 = vst [vmem:[#allocation2 + $0x288] sm:$0xff] %v5691_v32 }
  0xc5   : > { %824 = vst [vmem:[#allocation2 + $0x290] sm:$0xff] %v5691_v32  ;;  %825 = vst [vmem:[#allocation2 + $0x298] sm:$0xff] %v5691_v32 }
  0xc6   : > { %826 = vst [vmem:[#allocation2 + $0x2a0] sm:$0xff] %v5691_v32  ;;  %827 = vst [vmem:[#allocation2 + $0x2a8] sm:$0xff] %v5691_v32 }
  0xc7   : > { %828 = vst [vmem:[#allocation2 + $0x2b0] sm:$0xff] %v5691_v32  ;;  %829 = vst [vmem:[#allocation2 + $0x2b8] sm:$0xff] %v5691_v32 }
  0xc8   : > { %830 = vst [vmem:[#allocation2 + $0x2c0] sm:$0xff] %v5691_v32  ;;  %831 = vst [vmem:[#allocation2 + $0x2c8] sm:$0xff] %v5691_v32 }
  0xc9   : > { %832 = vst [vmem:[#allocation2 + $0x2d0] sm:$0xff] %v5691_v32  ;;  %833 = vst [vmem:[#allocation2 + $0x2d8] sm:$0xff] %v5691_v32 }
  0xca   : > { %834 = vst [vmem:[#allocation2 + $0x2e0] sm:$0xff] %v5691_v32  ;;  %835 = vst [vmem:[#allocation2 + $0x2e8] sm:$0xff] %v5691_v32 }
  0xcb   : > { %836 = vst [vmem:[#allocation2 + $0x2f0] sm:$0xff] %v5691_v32  ;;  %837 = vst [vmem:[#allocation2 + $0x2f8] sm:$0xff] %v5691_v32 }
  0xcc PF: > { %v5395_v33 = vld [vmem:[%s6233_s27 + $0x4] ss:$12 sps:$4 sm:$0xff]   ;;  %v7402_v35 = vmov 0   ;;  %v5399_v36 = vld [vmem:[%s6233_s27] ss:$12 sps:$4 sm:$0xff]   ;;  %v1101_v15 = vld [vmem:[%s6240_s12 + $0x538] sm:$0xff] }
  0xcd   : > { %v5397_v34 = vld [vmem:[%s6233_s27 + $0x484] ss:$12 sps:$4 sm:$0xff]   ;;  %3101 = vmatprep.mubr.bf16.mxu1 %v7402_v35  ;;  %2390 = vmatprep.subr.bf16.mxu0 %v5395_v33  ;;  %v5400_v37 = vld [vmem:[%s6233_s27 + $0x480] ss:$12 sps:$4 sm:$0xff]   ;;  %v5401_v38 = vld [vmem:[%s6233_s27 + $0x1c] ss:$12 sps:$4 sm:$0xff]  }
  0xce   : > { %5124 = vmatprep.subr.bf16.mxu1 %v5397_v34  ;;  %2391 = vmatpush1.bf16.msra.mxu0 %v5399_v36  ;;  %v5403_v39 = vld [vmem:[%s6233_s27 + $0x49c] ss:$12 sps:$4 sm:$0xff]   ;;  %v5405_v40 = vld [vmem:[%s6233_s27 + $0x18] ss:$12 sps:$4 sm:$0xff]   ;;  %v5407_v42 = vld [vmem:[%s6233_s27 + $0x34] ss:$12 sps:$4 sm:$0xff]  }
  0xcf   : > { %5132 = vmatpush1.bf16.msra.mxu1 %v5400_v37  ;;  %2392 = vmatprep.subr.bf16.mxu0 %v5401_v38  ;;  %v5406_v41 = vld [vmem:[%s6233_s27 + $0x498] ss:$12 sps:$4 sm:$0xff]   ;;  %v5409_v43 = vld [vmem:[%s6233_s27 + $0x4b4] ss:$12 sps:$4 sm:$0xff]   ;;  %v5411_v44 = vld [vmem:[%s6233_s27 + $0x30] ss:$12 sps:$4 sm:$0xff]  }
  0xd0   : > { %5125 = vmatprep.subr.bf16.mxu1 %v5403_v39  ;;  %v5412_v45 = vld [vmem:[%s6233_s27 + $0x4b0] ss:$12 sps:$4 sm:$0xff]   ;;  %v5413_v46 = vld [vmem:[%s6233_s27 + $0x4c] ss:$12 sps:$4 sm:$0xff]   ;;  %v5417_v48 = vld [vmem:[%s6233_s27 + $0x48] ss:$12 sps:$4 sm:$0xff]  }
  0xd1   : > { %v5415_v47 = vld [vmem:[%s6233_s27 + $0x4cc] ss:$12 sps:$4 sm:$0xff]   ;;  %v5418_v49 = vld [vmem:[%s6233_s27 + $0x4c8] ss:$12 sps:$4 sm:$0xff]   ;;  %v5419_v50 = vld [vmem:[%s6233_s27 + $0x64] ss:$12 sps:$4 sm:$0xff]  }
  0xd2   : > { %2393 = vmatpush1.bf16.msra.mxu0 %v5405_v40  ;;  %v5421_v51 = vld [vmem:[%s6233_s27 + $0x4e4] ss:$12 sps:$4 sm:$0xff]   ;;  %v5423_v52 = vld [vmem:[%s6233_s27 + $0x60] ss:$12 sps:$4 sm:$0xff]   ;;  %v5425_v54 = vld [vmem:[%s6233_s27 + $0x7c] ss:$12 sps:$4 sm:$0xff]  }
  0xd3   : > { %5133 = vmatpush1.bf16.msra.mxu1 %v5406_v41  ;;  %2394 = vmatprep.subr.bf16.mxu0 %v5407_v42  ;;  %v5424_v53 = vld [vmem:[%s6233_s27 + $0x4e0] ss:$12 sps:$4 sm:$0xff]   ;;  %v5427_v55 = vld [vmem:[%s6233_s27 + $0x4fc] ss:$12 sps:$4 sm:$0xff]   ;;  %v5429_v56 = vld [vmem:[%s6233_s27 + $0x78] ss:$12 sps:$4 sm:$0xff]  }
  0xd4   : > { %5126 = vmatprep.subr.bf16.mxu1 %v5409_v43  ;;  %v5430_v57 = vld [vmem:[%s6233_s27 + $0x4f8] ss:$12 sps:$4 sm:$0xff]   ;;  %v5431_v58 = vld [vmem:[%s6233_s27 + $0x94] ss:$12 sps:$4 sm:$0xff]   ;;  %v5435_v60 = vld [vmem:[%s6233_s27 + $0x90] ss:$12 sps:$4 sm:$0xff]  }
  0xd5   : > { %v5433_v59 = vld [vmem:[%s6233_s27 + $0x514] ss:$12 sps:$4 sm:$0xff]   ;;  %v5436_v61 = vld [vmem:[%s6233_s27 + $0x510] ss:$12 sps:$4 sm:$0xff]   ;;  %v5437_v62 = vld [vmem:[%s6233_s27 + $0xac] ss:$12 sps:$4 sm:$0xff]  }
  0xd6   : > { %2395 = vmatpush1.bf16.msra.mxu0 %v5411_v44  ;;  %v5439_v63 = vld [vmem:[%s6233_s27 + $0x52c] ss:$12 sps:$4 sm:$0xff]   ;;  %v5441_v0 = vld [vmem:[%s6233_s27 + $0xa8] ss:$12 sps:$4 sm:$0xff]   ;;  %v5443_v4 = vld [vmem:[%s6233_s27 + $0xc4] ss:$12 sps:$4 sm:$0xff]  }
  0xd7   : > { %5134 = vmatpush1.bf16.msra.mxu1 %v5412_v45  ;;  %2396 = vmatprep.subr.bf16.mxu0 %v5413_v46  ;;  %v5442_v1 = vld [vmem:[%s6233_s27 + $0x528] ss:$12 sps:$4 sm:$0xff]   ;;  %v5446_v7 = vld [vmem:[%s6233_s27 + $0xc0] ss:$12 sps:$4 sm:$0xff]   ;;  %v5450_v11 = vld [vmem:[%s6233_s27 + $0xd8] ss:$12 sps:$4 sm:$0xff]  }
  0xd8   : > { %5127 = vmatprep.subr.bf16.mxu1 %v5415_v47  ;;  %v1080_v2 = vld [vmem:[%s6240_s12 + $0x490] sm:$0xff]  ;;  %v1087_v3 = vld [vmem:[%s6240_s12 + $0x4c8] sm:$0xff]  ;;  %v1094_v14 = vld [vmem:[%s6240_s12 + $0x500] sm:$0xff]  ;;  %p4713_p13 = scmp.ne.s32.totalorder %s5673_s14, 1 }
  0xd9   : > { %v5445_v5 = vld [vmem:[%s6233_s27 + $0xc8] ss:$12 sps:$4 sm:$0xff]   ;;  %v6376_v6 = vpack.c.bf16 %v1087_v3, %v1080_v2  ;;  %v5451_v10 = vld [vmem:[%s6233_s27 + $0xe0] ss:$12 sps:$4 sm:$0xff]   ;;  %v5458_v16 = vld [vmem:[%s6233_s27 + $0xf8] ss:$12 sps:$4 sm:$0xff]   ;;  %v6390_v17 = vpack.c.bf16 %v1101_v15, %v1094_v14 }
  0xda   : > { %2397 = vmatpush1.bf16.msra.mxu0 %v5417_v48  ;;  %v5447_v8 = vld [vmem:[%s6233_s27 + $0x8] ss:$12 sps:$4 sm:$0xff]   ;;  %v5452_v12 = vld [vmem:[%s6233_s27 + $0x20] ss:$12 sps:$4 sm:$0xff]   ;;  %v5455_v18 = vld [vmem:[%s6233_s27 + $0xf0] ss:$12 sps:$4 sm:$0xff]  }
  0xdb   : > { %5135 = vmatpush1.bf16.msra.mxu1 %v5418_v49  ;;  %2398 = vmatprep.subr.bf16.mxu0 %v5419_v50  ;;  %v5448_v9 = vld [vmem:[%s6233_s27 + $0xdc] ss:$12 sps:$4 sm:$0xff]   ;;  %v5453_v13 = vld [vmem:[%s6233_s27 + $0xf4] ss:$12 sps:$4 sm:$0xff]   ;;  %v5460_v19 = vld [vmem:[%s6233_s27 + $0x38] ss:$12 sps:$4 sm:$0xff]  }
  0xdc   : > { %5128 = vmatprep.subr.bf16.mxu1 %v5421_v51  ;;  %v5456_v20 = vld [vmem:[%s6233_s27 + $0x10c] ss:$12 sps:$4 sm:$0xff]   ;;  %v5459_v21 = vld [vmem:[%s6233_s27 + $0x108] ss:$12 sps:$4 sm:$0xff]   ;;  %v5464_v22 = vld [vmem:[%s6233_s27 + $0x110] ss:$12 sps:$4 sm:$0xff]  }
  0xdd   : > { %v5461_v23 = vld [vmem:[%s6233_s27 + $0x124] ss:$12 sps:$4 sm:$0xff]   ;;  %v1115_v25 = vld [vmem:[%s6240_s12 + $0x5a8] sm:$0xff]  ;;  %v1129_v39 = vld [vmem:[%s6240_s12 + $0x618] sm:$0xff] }
  0xde   : > { %2399 = vmatpush1.bf16.msra.mxu0 %v5423_v52  ;;  %v1108_v24 = vld [vmem:[%s6240_s12 + $0x570] sm:$0xff]  ;;  %v935_v28 = vld [vmem:[%s6240_s12 + $0x8] sm:$0xff]  ;;  %v942_v29 = vld [vmem:[%s6240_s12 + $0x40] sm:$0xff] }
  0xdf   : > { %5136 = vmatpush1.bf16.msra.mxu1 %v5424_v53  ;;  %2400 = vmatprep.subr.bf16.mxu0 %v5425_v54  ;;  %v5465_v26 = vld [vmem:[%s6233_s27 + $0x50] ss:$12 sps:$4 sm:$0xff]   ;;  %v5471_v27 = vld [vmem:[%s6233_s27 + $0x128] ss:$12 sps:$4 sm:$0xff]   ;;  %v6406_v30 = vpack.c.bf16 %v1115_v25, %v1108_v24  ;;  %v6408_v31 = vpack.c.bf16 %v942_v29, %v935_v28  ;;  %v5463_v32 = vld [vmem:[%s6233_s27 + $0x120] ss:$12 sps:$4 sm:$0xff]  }
  0xe0   : > { %5129 = vmatprep.subr.bf16.mxu1 %v5427_v55  ;;  %v5466_v33 = vld [vmem:[%s6233_s27 + $0x13c] ss:$12 sps:$4 sm:$0xff]   ;;  %v5477_v36 = vld [vmem:[%s6233_s27 + $0x140] ss:$12 sps:$4 sm:$0xff]   ;;  %v5468_v37 = vld [vmem:[%s6233_s27 + $0x138] ss:$12 sps:$4 sm:$0xff]  }
  0xe1   : > { %v5473_v34 = vld [vmem:[%s6233_s27 + $0x68] ss:$12 sps:$4 sm:$0xff]   ;;  %2422 = vmatprep.mubr.bf16.mxu0 %v6408_v31  ;;  %v1122_v38 = vld [vmem:[%s6240_s12 + $0x5e0] sm:$0xff]  ;;  %v5472_v44 = vld [vmem:[%s6233_s27 + $0x150] ss:$12 sps:$4 sm:$0xff]  }
  0xe2   : > { %2401 = vmatpush1.bf16.msra.mxu0 %v5429_v56  ;;  %v5469_v40 = vld [vmem:[%s6233_s27 + $0x154] ss:$12 sps:$4 sm:$0xff]   ;;  %v5482_v42 = vld [vmem:[%s6233_s27 + $0x158] ss:$12 sps:$4 sm:$0xff]   ;;  %v6423_v43 = vpack.c.bf16 %v1129_v39, %v1122_v38  ;;  %v1143_v51 = vld [vmem:[%s6240_s12 + $0x688] sm:$0xff] }
  0xe3   : > { %5137 = vmatpush1.bf16.msra.mxu1 %v5430_v57  ;;  %2402 = vmatprep.subr.bf16.mxu0 %v5431_v58  ;;  %v5478_v41 = vld [vmem:[%s6233_s27 + $0x80] ss:$12 sps:$4 sm:$0xff]   ;;  %v5483_v46 = vld [vmem:[%s6233_s27 + $0x98] ss:$12 sps:$4 sm:$0xff]   ;;  %v5476_v47 = vld [vmem:[%s6233_s27 + $0x168] ss:$12 sps:$4 sm:$0xff]  }
  0xe4   : > { %5130 = vmatprep.subr.bf16.mxu1 %v5433_v59  ;;  %v5474_v45 = vld [vmem:[%s6233_s27 + $0x16c] ss:$12 sps:$4 sm:$0xff]   ;;  %v934_v48 = vld [vmem:[%s6240_s12] sm:$0xff]  ;;  %v1136_v50 = vld [vmem:[%s6240_s12 + $0x650] sm:$0xff] }
  0xe5   : > { %v941_v49 = vld [vmem:[%s6240_s12 + $0x38] sm:$0xff]  ;;  %v5481_v53 = vld [vmem:[%s6233_s27 + $0x184] ss:$12 sps:$4 sm:$0xff]   ;;  %v5489_v57 = vld [vmem:[%s6233_s27 + $0x248] ss:$12 sps:$4 sm:$0xff]   ;;  %v6441_v59 = vpack.c.bf16 %v1143_v51, %v1136_v50 }
  0xe6   : > { %2403 = vmatpush1.bf16.msra.mxu0 %v5435_v60  ;;  %v5487_v52 = vld [vmem:[%s6233_s27 + $0x170] ss:$12 sps:$4 sm:$0xff]   ;;  %v1158_v58 = vpack.c.bf16 %v941_v49, %v934_v48  ;;  %v5479_v60 = vld [vmem:[%s6233_s27 + $0x180] ss:$12 sps:$4 sm:$0xff]   ;;  %v5484_v3 = vld [vmem:[%s6233_s27 + $0x198] ss:$12 sps:$4 sm:$0xff]  }
  0xe7   : > { %5138 = vmatpush1.bf16.msra.mxu1 %v5436_v61  ;;  %2404 = vmatprep.subr.bf16.mxu0 %v5437_v62  ;;  %v949_v54 = vld [vmem:[%s6240_s12 + $0x78] sm:$0xff]  ;;  %v956_v55 = vld [vmem:[%s6240_s12 + $0xb0] sm:$0xff]  ;;  %v5499_v25 = vld [vmem:[%s6233_s27 + $0x1e0] ss:$12 sps:$4 sm:$0xff]  }
  0xe8   : > { %5131 = vmatprep.subr.bf16.mxu1 %v5439_v63  ;;  %v5488_v56 = vld [vmem:[%s6233_s27 + $0xb0] ss:$12 sps:$4 sm:$0xff]   ;;  %v1166_v61 = vpack.c.bf16 %v956_v55, %v949_v54  ;;  %v991_v28 = vld [vmem:[%s6240_s12 + $0x1c8] sm:$0xff]  ;;  %v998_v29 = vld [vmem:[%s6240_s12 + $0x200] sm:$0xff] }
  0xe9   : > { %v5486_v62 = vld [vmem:[%s6233_s27 + $0x19c] ss:$12 sps:$4 sm:$0xff]   ;;  %v948_v63 = vld [vmem:[%s6240_s12 + $0x70] sm:$0xff]  ;;  %v5515_v54 = vld [vmem:[%s6233_s27 + $0x240] ss:$12 sps:$4 sm:$0xff]  }
  0xea   : > { %2405 = vmatpush1.bf16.msra.mxu0 %v5441_v0  ;;  %v955_v0 = vld [vmem:[%s6240_s12 + $0xa8] sm:$0xff]  ;;  %v1157_v2 = vld [vmem:[%s6240_s12 + $0x6f8] sm:$0xff]  ;;  %v976_v24 = vld [vmem:[%s6240_s12 + $0x150] sm:$0xff] }
  0xeb   : > { %5139 = vmatpush1.bf16.msra.mxu1 %v5442_v1  ;;  %2406 = vmatprep.subr.bf16.mxu0 %v5443_v4  ;;  %v1150_v1 = vld [vmem:[%s6240_s12 + $0x6c0] sm:$0xff]  ;;  %v963_v4 = vld [vmem:[%s6240_s12 + $0xe8] sm:$0xff]  ;;  %v969_v14 = vld [vmem:[%s6240_s12 + $0x118] sm:$0xff] }
  0xec   : > { %4716 = vmatprep.subr.bf16.mxu1 %v5445_v5  ;;  %v970_v5 = vld [vmem:[%s6240_s12 + $0x120] sm:$0xff]  ;;  %v977_v15 = vld [vmem:[%s6240_s12 + $0x158] sm:$0xff]  ;;  %v5510_v48 = vld [vmem:[%s6233_s27 + $0x228] ss:$12 sps:$4 sm:$0xff]  }
  0xed   : > { %v5507_v38 = vld [vmem:[%s6233_s27 + $0x210] ss:$12 sps:$4 sm:$0xff]   ;;  %v5509_v39 = vld [vmem:[%s6233_s27 + $0x214] ss:$12 sps:$4 sm:$0xff]  }
  0xee   : > { %3102 = vmatmul.mubr.bf16.vlgmr.msra.gmra.mrb[0].mxu1 %v6376_v6  ;;  %2407 = vmatpush1.bf16.msra.mxu0 %v5446_v7  ;;  %v5493_v7 = vld [vmem:[%s6233_s27 + $0x1b4] ss:$12 sps:$4 sm:$0xff]  }
  0xef   : > { %4717 = vmatpush3.bf16.msra.mxu1 %v5447_v8  ;;  %2408 = vmatprep.subr.bf16.mxu0 %v5448_v9  ;;  %v1165_v8 = vpack.c.bf16 %v955_v0, %v948_v63  ;;  %v6455_v9 = vpack.c.bf16 %v1157_v2, %v1150_v1  ;;  %v5521_v49 = vld [vmem:[%s6233_s27 + $0x2a8] ss:$12 sps:$4 sm:$0xff]   ;;  %v5529_v55 = vld [vmem:[%s6233_s27 + $0x2c0] ss:$12 sps:$4 sm:$0xff]   ;;  %v5518_v63 = vld [vmem:[%s6233_s27 + $0x258] ss:$12 sps:$4 sm:$0xff]  }
  0xf0   : > { %4718 = vmatprep.subr.bf16.mxu1 %v5451_v10  ;;  %3111 = vmatprep.mubr.bf16.mxu1 %v7402_v35  ;;  %v1173_v10 = vpack.c.bf16 %v970_v5, %v963_v4  ;;  %v5537_v1 = vld [vmem:[%s6233_s27 + $0x2d8] ss:$12 sps:$4 sm:$0xff]   ;;  %v5523_v5 = vld [vmem:[%s6233_s27 + $0x270] ss:$12 sps:$4 sm:$0xff]  }
  0xf1   : > { %v5538_v4 = vld [vmem:[%s6233_s27 + $0x218] ss:$12 sps:$4 sm:$0xff]  }
  0xf2   : > { %2409 = vmatpush1.bf16.msra.mxu0 %v5450_v11  ;;  %v5491_v11 = vld [vmem:[%s6233_s27 + $0x1b0] ss:$12 sps:$4 sm:$0xff]  }
  0xf3   : > { %4719 = vmatpush3.bf16.msra.mxu1 %v5452_v12  ;;  %2410 = vmatprep.subr.bf16.mxu0 %v5453_v13  ;;  %v5496_v12 = vld [vmem:[%s6233_s27 + $0x1cc] ss:$12 sps:$4 sm:$0xff]   ;;  %v962_v13 = vld [vmem:[%s6240_s12 + $0xe0] sm:$0xff] }
  0xf4   : > { %4720 = vmatprep.subr.bf16.mxu1 %v5458_v16  ;;  %v984_v16 = vld [vmem:[%s6240_s12 + $0x190] sm:$0xff] }
  0xf6   : > { %3112 = vmatmul.mubr.bf16.gmra.mrb[4].mxu1 %v6390_v17  ;;  %2411 = vmatpush1.bf16.msra.mxu0 %v5455_v18  ;;  %v5494_v18 = vld [vmem:[%s6233_s27 + $0x1c8] ss:$12 sps:$4 sm:$0xff]  }
  0xf7   : > { %4721 = vmatpush3.bf16.msra.mxu1 %v5460_v19  ;;  %2412 = vmatprep.subr.bf16.mxu0 %v5456_v20  ;;  %v5501_v19 = vld [vmem:[%s6233_s27 + $0x1e4] ss:$12 sps:$4 sm:$0xff]   ;;  %v1172_v20 = vpack.c.bf16 %v969_v14, %v962_v13  ;;  %v5526_v13 = vld [vmem:[%s6233_s27 + $0x288] ss:$12 sps:$4 sm:$0xff]  }
  0xf8   : > { %3121 = vmatprep.mubr.bf16.mxu1 %v7402_v35  ;;  %4722 = vmatprep.subr.bf16.mxu1 %v5464_v22  ;;  %v1180_v22 = vpack.c.bf16 %v984_v16, %v977_v15  ;;  %v5545_v14 = vld [vmem:[%s6233_s27 + $0x2f0] ss:$12 sps:$4 sm:$0xff]  }
  0xf9   : > { %v5546_v16 = vld [vmem:[%s6233_s27 + $0x230] ss:$12 sps:$4 sm:$0xff]  }
  0xfa   : > { %2413 = vmatpush1.bf16.msra.mxu0 %v5459_v21  ;;  %v5490_v21 = vld [vmem:[%s6233_s27 + $0x188] ss:$12 sps:$4 sm:$0xff]  }
  0xfb   : > { %4723 = vmatpush3.bf16.msra.mxu1 %v5465_v26  ;;  %2414 = vmatprep.subr.bf16.mxu0 %v5461_v23  ;;  %v5497_v23 = vld [vmem:[%s6233_s27 + $0x260] ss:$12 sps:$4 sm:$0xff]  }
  0xfc   : > { %4724 = vmatprep.subr.bf16.mxu1 %v5471_v27  ;;  %v983_v26 = vld [vmem:[%s6240_s12 + $0x188] sm:$0xff] }
  0xfd   : > { %v5504_v27 = vld [vmem:[%s6233_s27 + $0x1fc] ss:$12 sps:$4 sm:$0xff]  }
  0xfe   : > { %3122 = vmatmul.mubr.bf16.gmra.mrb[8].mxu1 %v6406_v30  ;;  %2415 = vmatpush1.bf16.msra.mxu0 %v5463_v32  ;;  %v5505_v32 = vld [vmem:[%s6233_s27 + $0x278] ss:$12 sps:$4 sm:$0xff]  }
  0xff   : > { %3131 = vmatprep.mubr.bf16.mxu1 %v7402_v35  ;;  %2416 = vmatprep.subr.bf16.mxu0 %v5466_v33  ;;  %v5502_v33 = vld [vmem:[%s6233_s27 + $0x1f8] ss:$12 sps:$4 sm:$0xff]  }
 0x100   : > { %4725 = vmatpush3.bf16.msra.mxu1 %v5473_v34  ;;  %v1179_v34 = vpack.c.bf16 %v983_v26, %v976_v24  ;;  %v1047_v24 = vld [vmem:[%s6240_s12 + $0x388] sm:$0xff]  ;;  %v5534_v26 = vld [vmem:[%s6233_s27 + $0x2b8] ss:$12 sps:$4 sm:$0xff]  }
 0x101   : > { %4726 = vmatprep.subr.bf16.mxu1 %v5477_v36  ;;  %v5506_v36 = vld [vmem:[%s6233_s27 + $0x1b8] ss:$12 sps:$4 sm:$0xff]  }
 0x102   : > { %2417 = vmatpush1.bf16.msra.mxu0 %v5468_v37  ;;  %v1187_v37 = vpack.c.bf16 %v998_v29, %v991_v28 }
 0x103   : > { %2418 = vmatprep.subr.bf16.mxu0 %v5469_v40  ;;  %v5513_v40 = vld [vmem:[%s6233_s27 + $0x290] ss:$12 sps:$4 sm:$0xff]  }
 0x104   : > { %4727 = vmatpush3.bf16.msra.mxu1 %v5478_v41  ;;  %v990_v41 = vld [vmem:[%s6240_s12 + $0x1c0] sm:$0xff] }
 0x105   : > { %4728 = vmatprep.subr.bf16.mxu1 %v5482_v42  ;;  %v5512_v42 = vld [vmem:[%s6233_s27 + $0x22c] ss:$12 sps:$4 sm:$0xff]  }
 0x106   : > { %3132 = vmatmul.mubr.bf16.gmra.mrb[12].mxu1 %v6423_v43  ;;  %2419 = vmatpush1.bf16.msra.mxu0 %v5472_v44  ;;  %v997_v44 = vld [vmem:[%s6240_s12 + $0x1f8] sm:$0xff] }
 0x107   : > { %3141 = vmatprep.mubr.bf16.mxu1 %v7402_v35  ;;  %2420 = vmatprep.subr.bf16.mxu0 %v5474_v45  ;;  %v1005_v45 = vld [vmem:[%s6240_s12 + $0x238] sm:$0xff]  ;;  %v1186_v50 = vpack.c.bf16 %v997_v44, %v990_v41  ;;  %v1060_v44 = vld [vmem:[%s6240_s12 + $0x3f0] sm:$0xff] }
 0x108   : > { %4729 = vmatpush3.bf16.msra.mxu1 %v5483_v46  ;;  %v1012_v46 = vld [vmem:[%s6240_s12 + $0x270] sm:$0xff] }
 0x109   : > { %4730 = vmatprep.subr.bf16.mxu1 %v5487_v52  ;;  %v1194_v51 = vpack.c.bf16 %v1012_v46, %v1005_v45  ;;  %v5517_v52 = vld [vmem:[%s6233_s27 + $0x244] ss:$12 sps:$4 sm:$0xff]   ;;  %v1067_v45 = vld [vmem:[%s6240_s12 + $0x428] sm:$0xff] }
 0x10a   : > { %2421 = vmatpush1.bf16.msra.mxu0 %v5476_v47  ;;  %v5514_v47 = vld [vmem:[%s6233_s27 + $0x1d0] ss:$12 sps:$4 sm:$0xff]   ;;  %v1075_v46 = vld [vmem:[%s6240_s12 + $0x468] sm:$0xff] }
 0x10b   : > { %2583 = vmatprep.subr.bf16.mxu0 %v5481_v53  ;;  %v5522_v53 = vld [vmem:[%s6233_s27 + $0x1e8] ss:$12 sps:$4 sm:$0xff]  }
 0x10c   : > { %4731 = vmatpush3.bf16.msra.mxu1 %v5488_v56  ;;  %v1004_v56 = vld [vmem:[%s6240_s12 + $0x230] sm:$0xff] }
 0x10d   : > { %4828 = vmatprep.subr.bf16.mxu1 %v5489_v57  ;;  %2423 = vmatmul.mubr.bf16.vlgmr.msra.gmra.mrb[0].mxu0 %v1158_v58  ;;  %v5520_v57 = vld [vmem:[%s6233_s27 + $0x25c] ss:$12 sps:$4 sm:$0xff]  }
 0x10e   : > { %3142 = vmatmul.mubr.bf16.gmra.mrb[16].mxu1 %v6441_v59  ;;  %2584 = vmatpush1.bf16.msra.mxu0 %v5479_v60  ;;  %v1019_v60 = vld [vmem:[%s6240_s12 + $0x2a8] sm:$0xff] }
 0x10f   : > { %2432 = vmatprep.mubr.bf16.mxu0 %v1166_v61  ;;  %3151 = vmatprep.mubr.bf16.mxu1 %v7402_v35 }
 0x110   : > { %2585 = vmatprep.subr.bf16.mxu0 %v5486_v62  ;;  %v5530_v62 = vld [vmem:[%s6233_s27 + $0x200] ss:$12 sps:$4 sm:$0xff]  }
 0x112   : > { %2586 = vmatpush1.bf16.msra.mxu0 %v5484_v3  ;;  %v5525_v3 = vld [vmem:[%s6233_s27 + $0x274] ss:$12 sps:$4 sm:$0xff]  }
 0x113   : > { %2587 = vmatprep.subr.bf16.mxu0 %v5493_v7  ;;  %v5528_v7 = vld [vmem:[%s6233_s27 + $0x28c] ss:$12 sps:$4 sm:$0xff]  }
 0x115   : > { %2433 = vmatmul.mubr.bf16.gmra.mrb[4].mxu0 %v1165_v8 }
 0x116   : > { %3152 = vmatmul.mubr.bf16.gmra.mrb[20].mxu1 %v6455_v9  ;;  %2442 = vmatprep.mubr.bf16.mxu0 %v1173_v10 }
 0x117   : > { %3194 = vmatprep.mubr.bf16.mxu1 %v6408_v31  ;;  %2588 = vmatpush1.bf16.msra.mxu0 %v5491_v11  ;;  %v5498_v31 = vld [vmem:[%s6233_s27 + $0x1a0] ss:$12 sps:$4 sm:$0xff]   ;;  %v1033_v11 = vld [vmem:[%s6240_s12 + $0x318] sm:$0xff] }
 0x118   : > { %2589 = vmatprep.subr.bf16.mxu0 %v5496_v12  ;;  %v1040_v12 = vld [vmem:[%s6240_s12 + $0x350] sm:$0xff] }
 0x11b   : > { %2590 = vmatpush1.bf16.msra.mxu0 %v5494_v18  ;;  %v1208_v18 = vpack.c.bf16 %v1040_v12, %v1033_v11 }
 0x11c   : > { %2591 = vmatprep.subr.bf16.mxu0 %v5501_v19  ;;  %v5533_v19 = vld [vmem:[%s6233_s27 + $0x2a4] ss:$12 sps:$4 sm:$0xff]  }
 0x11d   : > { %2443 = vmatmul.mubr.bf16.gmra.mrb[8].mxu0 %v1172_v20 }
 0x11e   : > { %3195 = vmatmul.mubr.bf16.vlgmr.msra.gmra.mrb[24].mxu1 %v1158_v58  ;;  %2452 = vmatprep.mubr.bf16.mxu0 %v1180_v22  ;;  %v1011_v58 = vld [vmem:[%s6240_s12 + $0x268] sm:$0xff] }
 0x11f   : > { %4829 = vmatpush3.bf16.msra.mxu1 %v5490_v21  ;;  %3202 = vmatprep.mubr.bf16.mxu1 %v1166_v61  ;;  %v1026_v61 = vld [vmem:[%s6240_s12 + $0x2e0] sm:$0xff]  ;;  %v1193_v0 = vpack.c.bf16 %v1011_v58, %v1004_v56  ;;  %v1032_v21 = vld [vmem:[%s6240_s12 + $0x310] sm:$0xff]  ;;  %v1103_v58 = vld [vmem:[%s6240_s12 + $0x548] sm:$0xff] }
 0x120   : > { %4830 = vmatprep.subr.bf16.mxu1 %v5497_v23  ;;  %2592 = vmatpush1.bf16.msra.mxu0 %v5499_v25  ;;  %v1201_v2 = vpack.c.bf16 %v1026_v61, %v1019_v60  ;;  %v1039_v23 = vld [vmem:[%s6240_s12 + $0x348] sm:$0xff]  ;;  %v1054_v25 = vld [vmem:[%s6240_s12 + $0x3c0] sm:$0xff]  ;;  %v1088_v56 = vld [vmem:[%s6240_s12 + $0x4d0] sm:$0xff] }
 0x121   : > { %2593 = vmatprep.subr.bf16.mxu0 %v5504_v27  ;;  %v5553_v27 = vld [vmem:[%s6233_s27 + $0x3c8] ss:$12 sps:$4 sm:$0xff]   ;;  %v1207_v28 = vpack.c.bf16 %v1039_v23, %v1032_v21  ;;  %v1215_v29 = vpack.c.bf16 %v1054_v25, %v1047_v24  ;;  %v1110_v60 = vld [vmem:[%s6240_s12 + $0x580] sm:$0xff] }
 0x122   : > { %v1151_v21 = vld [vmem:[%s6240_s12 + $0x6c8] sm:$0xff]  ;;  %v944_v23 = vld [vmem:[%s6240_s12 + $0x50] sm:$0xff] }
 0x123   : > { %4831 = vmatpush3.bf16.msra.mxu1 %v5498_v31  ;;  %v5541_v31 = vld [vmem:[%s6233_s27 + $0x2d4] ss:$12 sps:$4 sm:$0xff]  }
 0x124   : > { %4832 = vmatprep.subr.bf16.mxu1 %v5505_v32  ;;  %2594 = vmatpush1.bf16.msra.mxu0 %v5502_v33  ;;  %v5539_v32 = vld [vmem:[%s6233_s27 + $0x2d0] ss:$12 sps:$4 sm:$0xff]   ;;  %v1046_v33 = vld [vmem:[%s6240_s12 + $0x380] sm:$0xff] }
 0x125   : > { %2453 = vmatmul.mubr.bf16.gmra.mrb[12].mxu0 %v1179_v34  ;;  %2595 = vmatprep.subr.bf16.mxu0 %v5509_v39  ;;  %v5542_v39 = vld [vmem:[%s6233_s27 + $0x2e8] ss:$12 sps:$4 sm:$0xff]  }
 0x126   : > { %3203 = vmatmul.mubr.bf16.gmra.mrb[28].mxu1 %v1165_v8  ;;  %2462 = vmatprep.mubr.bf16.mxu0 %v1187_v37  ;;  %v1018_v8 = vld [vmem:[%s6240_s12 + $0x2a0] sm:$0xff] }
 0x127   : > { %3210 = vmatprep.mubr.bf16.mxu1 %v1173_v10  ;;  %4833 = vmatpush3.bf16.msra.mxu1 %v5506_v36  ;;  %v1025_v10 = vld [vmem:[%s6240_s12 + $0x2d8] sm:$0xff] }
 0x128   : > { %2596 = vmatpush1.bf16.msra.mxu0 %v5507_v38  ;;  %4834 = vmatprep.subr.bf16.mxu1 %v5513_v40  ;;  %v1200_v15 = vpack.c.bf16 %v1025_v10, %v1018_v8  ;;  %v1053_v36 = vld [vmem:[%s6240_s12 + $0x3b8] sm:$0xff]  ;;  %v1068_v38 = vld [vmem:[%s6240_s12 + $0x430] sm:$0xff]  ;;  %v1131_v8 = vld [vmem:[%s6240_s12 + $0x628] sm:$0xff] }
 0x129   : > { %2597 = vmatprep.subr.bf16.mxu0 %v5512_v42  ;;  %v1214_v40 = vpack.c.bf16 %v1053_v36, %v1046_v33  ;;  %v5549_v42 = vld [vmem:[%s6233_s27 + $0x304] ss:$12 sps:$4 sm:$0xff]  }
 0x12a   : > { %v1138_v10 = vld [vmem:[%s6240_s12 + $0x660] sm:$0xff] }
 0x12b   : > { %4835 = vmatpush3.bf16.msra.mxu1 %v5514_v47  ;;  %v1082_v47 = vld [vmem:[%s6240_s12 + $0x4a0] sm:$0xff]  ;;  %v1257_v12 = vpack.c.bf16 %v1138_v10, %v1131_v8  ;;  %v5571_v8 = vld [vmem:[%s6233_s27 + $0x390] ss:$12 sps:$4 sm:$0xff]  }
 0x12c   : > { %2598 = vmatpush1.bf16.msra.mxu0 %v5510_v48  ;;  %4836 = vmatprep.subr.bf16.mxu1 %v5521_v49  ;;  %v1221_v48 = vpack.c.bf16 %v1067_v45, %v1060_v44  ;;  %v1229_v49 = vpack.c.bf16 %v1082_v47, %v1075_v46  ;;  %v950_v36 = vld [vmem:[%s6240_s12 + $0x80] sm:$0xff]  ;;  %v5555_v45 = vld [vmem:[%s6233_s27 + $0x330] ss:$12 sps:$4 sm:$0xff]   ;;  %v5560_v46 = vld [vmem:[%s6233_s27 + $0x34c] ss:$12 sps:$4 sm:$0xff]  }
 0x12d   : > { %2463 = vmatmul.mubr.bf16.gmra.mrb[16].mxu0 %v1186_v50  ;;  %2599 = vmatprep.subr.bf16.mxu0 %v5517_v52  ;;  %v1089_v52 = vld [vmem:[%s6240_s12 + $0x4d8] sm:$0xff]  ;;  %v964_v47 = vld [vmem:[%s6240_s12 + $0xf0] sm:$0xff] }
 0x12e   : > { %3211 = vmatmul.mubr.bf16.gmra.mrb[32].mxu1 %v1172_v20  ;;  %2472 = vmatprep.mubr.bf16.mxu0 %v1194_v51  ;;  %v5531_v20 = vld [vmem:[%s6233_s27 + $0x2a0] ss:$12 sps:$4 sm:$0xff]   ;;  %v5577_v10 = vld [vmem:[%s6233_s27 + $0x410] ss:$12 sps:$4 sm:$0xff]  }
 0x12f   : > { %3218 = vmatprep.mubr.bf16.mxu1 %v1180_v22  ;;  %4837 = vmatpush3.bf16.msra.mxu1 %v5522_v53  ;;  %v5536_v22 = vld [vmem:[%s6233_s27 + $0x2bc] ss:$12 sps:$4 sm:$0xff]   ;;  %v1096_v53 = vld [vmem:[%s6240_s12 + $0x510] sm:$0xff] }
 0x130   : > { %2600 = vmatpush1.bf16.msra.mxu0 %v5515_v54  ;;  %4838 = vmatprep.subr.bf16.mxu1 %v5529_v55  ;;  %v1236_v55 = vpack.c.bf16 %v1096_v53, %v1089_v52  ;;  %v5565_v52 = vld [vmem:[%s6233_s27 + $0x364] ss:$12 sps:$4 sm:$0xff]  }
 0x131   : > { %2601 = vmatprep.subr.bf16.mxu0 %v5520_v57  ;;  %v1095_v57 = vld [vmem:[%s6240_s12 + $0x508] sm:$0xff] }
 0x132   : > { %v1235_v61 = vpack.c.bf16 %v1095_v57, %v1088_v56  ;;  %v5561_v56 = vld [vmem:[%s6233_s27 + $0x3e0] ss:$12 sps:$4 sm:$0xff]  }
 0x133   : > { %4839 = vmatpush3.bf16.msra.mxu1 %v5530_v62  ;;  %v1243_v62 = vpack.c.bf16 %v1110_v60, %v1103_v58  ;;  %v5563_v57 = vld [vmem:[%s6233_s27 + $0x360] ss:$12 sps:$4 sm:$0xff]   ;;  %v5568_v58 = vld [vmem:[%s6233_s27 + $0x37c] ss:$12 sps:$4 sm:$0xff]  }
 0x134   : > { %2602 = vmatpush1.bf16.msra.mxu0 %v5518_v63  ;;  %4840 = vmatprep.subr.bf16.mxu1 %v5537_v1  ;;  %v1102_v63 = vld [vmem:[%s6240_s12 + $0x540] sm:$0xff]  ;;  %v1117_v1 = vld [vmem:[%s6240_s12 + $0x5b8] sm:$0xff] }
 0x135   : > { %2473 = vmatmul.mubr.bf16.gmra.mrb[20].mxu0 %v1193_v0  ;;  %2603 = vmatprep.subr.bf16.mxu0 %v5525_v3  ;;  %v978_v60 = vld [vmem:[%s6240_s12 + $0x160] sm:$0xff] }
 0x136   : > { %3219 = vmatmul.mubr.bf16.gmra.mrb[36].mxu1 %v1179_v34  ;;  %2482 = vmatprep.mubr.bf16.mxu0 %v1201_v2  ;;  %v5544_v34 = vld [vmem:[%s6233_s27 + $0x2ec] ss:$12 sps:$4 sm:$0xff]  }
 0x137   : > { %3226 = vmatprep.mubr.bf16.mxu1 %v1187_v37  ;;  %4841 = vmatpush3.bf16.msra.mxu1 %v5538_v4  ;;  %v1061_v37 = vld [vmem:[%s6240_s12 + $0x3f8] sm:$0xff] }
 0x138   : > { %2604 = vmatpush1.bf16.msra.mxu0 %v5523_v5  ;;  %4842 = vmatprep.subr.bf16.mxu1 %v5545_v14  ;;  %v1222_v41 = vpack.c.bf16 %v1068_v38, %v1061_v37  ;;  %v1116_v5 = vld [vmem:[%s6240_s12 + $0x5b0] sm:$0xff]  ;;  %v1137_v14 = vld [vmem:[%s6240_s12 + $0x658] sm:$0xff] }
 0x139   : > { %2605 = vmatprep.subr.bf16.mxu0 %v5528_v7  ;;  %v1123_v7 = vld [vmem:[%s6240_s12 + $0x5e8] sm:$0xff]  ;;  %v957_v37 = vld [vmem:[%s6240_s12 + $0xb8] sm:$0xff] }
 0x13a   : > { %v1249_v11 = vpack.c.bf16 %v1123_v7, %v1116_v5  ;;  %v5550_v38 = vld [vmem:[%s6233_s27 + $0x318] ss:$12 sps:$4 sm:$0xff]   ;;  %v5573_v7 = vld [vmem:[%s6233_s27 + $0x394] ss:$12 sps:$4 sm:$0xff]  }
 0x13b   : > { %4843 = vmatpush3.bf16.msra.mxu1 %v5546_v16  ;;  %v1152_v16 = vld [vmem:[%s6240_s12 + $0x6d0] sm:$0xff]  ;;  %v5570_v5 = vld [vmem:[%s6233_s27 + $0x338] ss:$12 sps:$4 sm:$0xff]  }
 0x13c   : > { %2606 = vmatpush1.bf16.msra.mxu0 %v5526_v13  ;;  %4940 = vmatprep.subr.bf16.mxu1 %v5553_v27  ;;  %v1130_v13 = vld [vmem:[%s6240_s12 + $0x620] sm:$0xff]  ;;  %v943_v27 = vld [vmem:[%s6240_s12 + $0x48] sm:$0xff] }
 0x13d   : > { %2483 = vmatmul.mubr.bf16.gmra.mrb[24].mxu0 %v1200_v15  ;;  %2607 = vmatprep.subr.bf16.mxu0 %v5533_v19 }
 0x13e   : > { %3227 = vmatmul.mubr.bf16.gmra.mrb[40].mxu1 %v1186_v50  ;;  %2492 = vmatprep.mubr.bf16.mxu0 %v1208_v18  ;;  %v1074_v50 = vld [vmem:[%s6240_s12 + $0x460] sm:$0xff] }
 0x13f   : > { %3234 = vmatprep.mubr.bf16.mxu1 %v1194_v51  ;;  %v1081_v51 = vld [vmem:[%s6240_s12 + $0x498] sm:$0xff] }
 0x140   : > { %2608 = vmatpush1.bf16.msra.mxu0 %v5531_v20  ;;  %v1228_v54 = vpack.c.bf16 %v1081_v51, %v1074_v50  ;;  %v1144_v20 = vld [vmem:[%s6240_s12 + $0x690] sm:$0xff]  ;;  %v986_v50 = vld [vmem:[%s6240_s12 + $0x1a0] sm:$0xff] }
 0x141   : > { %2609 = vmatprep.subr.bf16.mxu0 %v5536_v22  ;;  %v937_v22 = vld [vmem:[%s6240_s12 + $0x18] sm:$0xff]  ;;  %v1263_v24 = vpack.c.bf16 %v1151_v21, %v1144_v20  ;;  %v5558_v51 = vld [vmem:[%s6233_s27 + $0x348] ss:$12 sps:$4 sm:$0xff]  }
 0x142   : > { %v1161_v25 = vpack.c.bf16 %v944_v23, %v937_v22  ;;  %v5581_v22 = vld [vmem:[%s6233_s27 + $0x3c4] ss:$12 sps:$4 sm:$0xff]   ;;  %v5586_v23 = vld [vmem:[%s6233_s27 + $0x368] ss:$12 sps:$4 sm:$0xff]  }
 0x144   : > { %2610 = vmatpush1.bf16.msra.mxu0 %v5534_v26  ;;  %v936_v26 = vld [vmem:[%s6240_s12 + $0x10] sm:$0xff] }
 0x145   : > { %2493 = vmatmul.mubr.bf16.gmra.mrb[28].mxu0 %v1207_v28  ;;  %2611 = vmatprep.subr.bf16.mxu0 %v5541_v31  ;;  %v1160_v31 = vpack.c.bf16 %v943_v27, %v936_v26  ;;  %v5584_v26 = vld [vmem:[%s6233_s27 + $0x3dc] ss:$12 sps:$4 sm:$0xff]   ;;  %v1006_v27 = vld [vmem:[%s6240_s12 + $0x240] sm:$0xff] }
 0x146   : > { %3235 = vmatmul.mubr.bf16.gmra.mrb[44].mxu1 %v1193_v0  ;;  %2502 = vmatprep.mubr.bf16.mxu0 %v1215_v29  ;;  %v1109_v0 = vld [vmem:[%s6240_s12 + $0x578] sm:$0xff] }
 0x147   : > { %3242 = vmatprep.mubr.bf16.mxu1 %v1201_v2  ;;  %v1124_v2 = vld [vmem:[%s6240_s12 + $0x5f0] sm:$0xff]  ;;  %v1242_v3 = vpack.c.bf16 %v1109_v0, %v1102_v63  ;;  %v993_v63 = vld [vmem:[%s6240_s12 + $0x1d8] sm:$0xff] }
 0x148   : > { %2612 = vmatpush1.bf16.msra.mxu0 %v5539_v32  ;;  %v1250_v4 = vpack.c.bf16 %v1124_v2, %v1117_v1  ;;  %v5547_v32 = vld [vmem:[%s6233_s27 + $0x300] ss:$12 sps:$4 sm:$0xff]   ;;  %v1000_v0 = vld [vmem:[%s6240_s12 + $0x210] sm:$0xff]  ;;  %v5569_v1 = vld [vmem:[%s6233_s27 + $0x3f8] ss:$12 sps:$4 sm:$0xff]  }
 0x149   : > { %2613 = vmatprep.subr.bf16.mxu0 %v5544_v34  ;;  %v5552_v34 = vld [vmem:[%s6233_s27 + $0x31c] ss:$12 sps:$4 sm:$0xff]   ;;  %v5566_v2 = vld [vmem:[%s6233_s27 + $0x378] ss:$12 sps:$4 sm:$0xff]  }
 0x14c   : > { %2614 = vmatpush1.bf16.msra.mxu0 %v5542_v39  ;;  %v965_v39 = vld [vmem:[%s6240_s12 + $0xf8] sm:$0xff] }
 0x14d   : > { %2503 = vmatmul.mubr.bf16.gmra.mrb[32].mxu0 %v1214_v40  ;;  %2776 = vmatprep.subr.bf16.mxu0 %v5549_v42  ;;  %v1167_v42 = vpack.c.bf16 %v957_v37, %v950_v36 }
 0x14e   : > { %3243 = vmatmul.mubr.bf16.gmra.mrb[48].mxu1 %v1200_v15  ;;  %2512 = vmatprep.mubr.bf16.mxu0 %v1222_v41  ;;  %v1145_v15 = vld [vmem:[%s6240_s12 + $0x698] sm:$0xff] }
 0x14f   : > { %3250 = vmatprep.mubr.bf16.mxu1 %v1208_v18  ;;  %v1256_v18 = vpack.c.bf16 %v1137_v14, %v1130_v13  ;;  %v1264_v19 = vpack.c.bf16 %v1152_v16, %v1145_v15  ;;  %v999_v13 = vld [vmem:[%s6240_s12 + $0x208] sm:$0xff]  ;;  %v1014_v15 = vld [vmem:[%s6240_s12 + $0x280] sm:$0xff]  ;;  %v5578_v16 = vld [vmem:[%s6233_s27 + $0x350] ss:$12 sps:$4 sm:$0xff]  }
 0x150   : > { %v1007_v14 = vld [vmem:[%s6240_s12 + $0x248] sm:$0xff] }
 0x151   : > { %v1196_v21 = vpack.c.bf16 %v1014_v15, %v1007_v14  ;;  %v5606_v14 = vld [vmem:[%s6233_s27 + $0x468] ss:$12 sps:$4 sm:$0xff]  }
 0x155   : > { %2513 = vmatmul.mubr.bf16.gmra.mrb[36].mxu0 %v1221_v48 }
 0x156   : > { %3251 = vmatmul.mubr.bf16.gmra.mrb[52].mxu1 %v1207_v28  ;;  %2522 = vmatprep.mubr.bf16.mxu0 %v1229_v49  ;;  %v951_v28 = vld [vmem:[%s6240_s12 + $0x88] sm:$0xff] }
 0x157   : > { %3258 = vmatprep.mubr.bf16.mxu1 %v1215_v29  ;;  %v958_v29 = vld [vmem:[%s6240_s12 + $0xc0] sm:$0xff] }
 0x158   : > { %v1168_v33 = vpack.c.bf16 %v958_v29, %v951_v28  ;;  %v1013_v28 = vld [vmem:[%s6240_s12 + $0x278] sm:$0xff] }
 0x159   : > { %v1021_v29 = vld [vmem:[%s6240_s12 + $0x2b8] sm:$0xff]  ;;  %v1195_v36 = vpack.c.bf16 %v1013_v28, %v1006_v27 }
 0x15d   : > { %2523 = vmatmul.mubr.bf16.gmra.mrb[40].mxu0 %v1228_v54 }
 0x15e   : > { %3259 = vmatmul.mubr.bf16.gmra.mrb[56].mxu1 %v1214_v40  ;;  %2532 = vmatprep.mubr.bf16.mxu0 %v1236_v55  ;;  %v972_v40 = vld [vmem:[%s6240_s12 + $0x130] sm:$0xff] }
 0x15f   : > { %3266 = vmatprep.mubr.bf16.mxu1 %v1222_v41  ;;  %v5557_v41 = vld [vmem:[%s6233_s27 + $0x334] ss:$12 sps:$4 sm:$0xff]   ;;  %v1175_v44 = vpack.c.bf16 %v972_v40, %v965_v39  ;;  %v5602_v39 = vld [vmem:[%s6233_s27 + $0x398] ss:$12 sps:$4 sm:$0xff]   ;;  %v5587_v40 = vld [vmem:[%s6233_s27 + $0x3f0] ss:$12 sps:$4 sm:$0xff]  }
 0x165   : > { %2533 = vmatmul.mubr.bf16.gmra.mrb[44].mxu0 %v1235_v61 }
 0x166   : > { %3267 = vmatmul.mubr.bf16.gmra.mrb[60].mxu1 %v1221_v48  ;;  %2542 = vmatprep.mubr.bf16.mxu0 %v1243_v62  ;;  %v971_v48 = vld [vmem:[%s6240_s12 + $0x128] sm:$0xff] }
 0x167   : > { %3274 = vmatprep.mubr.bf16.mxu1 %v1229_v49  ;;  %v979_v49 = vld [vmem:[%s6240_s12 + $0x168] sm:$0xff]  ;;  %v1174_v53 = vpack.c.bf16 %v971_v48, %v964_v47  ;;  %v1042_v47 = vld [vmem:[%s6240_s12 + $0x360] sm:$0xff]  ;;  %v5610_v48 = vld [vmem:[%s6233_s27 + $0x3b0] ss:$12 sps:$4 sm:$0xff]  }
 0x16d   : > { %2543 = vmatmul.mubr.bf16.gmra.mrb[48].mxu0 %v1242_v3 }
 0x16e   : > { %3275 = vmatmul.mubr.bf16.gmra.mrb[64].mxu1 %v1228_v54  ;;  %2552 = vmatprep.mubr.bf16.mxu0 %v1250_v4  ;;  %v5554_v54 = vld [vmem:[%s6233_s27 + $0x308] ss:$12 sps:$4 sm:$0xff]  }
 0x16f   : > { %3282 = vmatprep.mubr.bf16.mxu1 %v1236_v55  ;;  %v1182_v55 = vpack.c.bf16 %v986_v50, %v979_v49  ;;  %v5590_v49 = vld [vmem:[%s6233_s27 + $0x408] ss:$12 sps:$4 sm:$0xff]  }
 0x170   : > { %v6630_v50 = vld [vmem:[%s6233_s27 + $0x488] ss:$12 sps:$4 sm:$0xff]  }
 0x175   : > { %2553 = vmatmul.mubr.bf16.gmra.mrb[52].mxu0 %v1249_v11 }
 0x176   : > { %3283 = vmatmul.mubr.bf16.gmra.mrb[68].mxu1 %v1235_v61  ;;  %2562 = vmatprep.mubr.bf16.mxu0 %v1257_v12  ;;  %v985_v61 = vld [vmem:[%s6240_s12 + $0x198] sm:$0xff] }
 0x177   : > { %3290 = vmatprep.mubr.bf16.mxu1 %v1243_v62  ;;  %v5562_v62 = vld [vmem:[%s6233_s27 + $0x320] ss:$12 sps:$4 sm:$0xff]  }
 0x17d   : > { %2563 = vmatmul.mubr.bf16.gmra.mrb[56].mxu0 %v1256_v18 }
 0x17e   : > { %3291 = vmatmul.mubr.bf16.gmra.mrb[72].mxu1 %v1242_v3  ;;  %2572 = vmatprep.mubr.bf16.mxu0 %v1264_v19  ;;  %v1181_v3 = vpack.c.bf16 %v985_v61, %v978_v60  ;;  %v1056_v60 = vld [vmem:[%s6240_s12 + $0x3d0] sm:$0xff] }
 0x17f   : > { %3298 = vmatprep.mubr.bf16.mxu1 %v1250_v4  ;;  %v6590_v4 = vpack.c.bf16 %v1000_v0, %v993_v63 }
 0x185   : > { %2573 = vmatmul.mubr.bf16.gmra.mrb[60].mxu0 %v1263_v24 }
 0x186   : > { %3299 = vmatmul.mubr.bf16.gmra.mrb[76].mxu1 %v1249_v11  ;;  %2615 = vmatprep.mubr.bf16.mxu0 %v1161_v25  ;;  %v5576_v11 = vld [vmem:[%s6233_s27 + $0x3ac] ss:$12 sps:$4 sm:$0xff]  }
 0x187   : > { %3306 = vmatprep.mubr.bf16.mxu1 %v1257_v12  ;;  %v992_v12 = vld [vmem:[%s6240_s12 + $0x1d0] sm:$0xff] }
 0x188   : > { %v1188_v20 = vpack.c.bf16 %v999_v13, %v992_v12  ;;  %v1070_v12 = vld [vmem:[%s6240_s12 + $0x440] sm:$0xff] }
 0x18d   : > { %2616 = vmatmul.mubr.bf16.vlgmr.msra.gmra.mrb[0].mxu0 %v1160_v31 }
 0x18e   : > { %3307 = vmatmul.mubr.bf16.gmra.mrb[80].mxu1 %v1256_v18  ;;  %2777 = vmatpush1.bf16.msra.mxu0 %v5547_v32  ;;  %v5574_v18 = vld [vmem:[%s6233_s27 + $0x3a8] ss:$12 sps:$4 sm:$0xff]   ;;  %v5594_v32 = vld [vmem:[%s6233_s27 + $0x380] ss:$12 sps:$4 sm:$0xff]  }
 0x18f   : > { %2625 = vmatprep.mubr.bf16.mxu0 %v1168_v33  ;;  %3314 = vmatprep.mubr.bf16.mxu1 %v1264_v19  ;;  %v5585_v19 = vld [vmem:[%s6233_s27 + $0x428] ss:$12 sps:$4 sm:$0xff]  }
 0x190   : > { %2778 = vmatprep.subr.bf16.mxu0 %v5552_v34  ;;  %v5601_v34 = vld [vmem:[%s6233_s27 + $0x458] ss:$12 sps:$4 sm:$0xff]  }
 0x192   : > { %2779 = vmatpush1.bf16.msra.mxu0 %v5550_v38  ;;  %v5589_v38 = vld [vmem:[%s6233_s27 + $0x3f4] ss:$12 sps:$4 sm:$0xff]  }
 0x193   : > { %2780 = vmatprep.subr.bf16.mxu0 %v5557_v41  ;;  %v5609_v41 = vld [vmem:[%s6233_s27 + $0x470] ss:$12 sps:$4 sm:$0xff]  }
 0x195   : > { %2626 = vmatmul.mubr.bf16.gmra.mrb[4].mxu0 %v1167_v42 }
 0x196   : > { %3315 = vmatmul.mubr.bf16.gmra.mrb[84].mxu1 %v1263_v24  ;;  %2635 = vmatprep.mubr.bf16.mxu0 %v1175_v44  ;;  %v5579_v24 = vld [vmem:[%s6233_s27 + $0x3c0] ss:$12 sps:$4 sm:$0xff]  }
 0x197   : > { %3355 = vmatprep.mubr.bf16.mxu1 %v1161_v25  ;;  %2781 = vmatpush1.bf16.msra.mxu0 %v5555_v45  ;;  %v5593_v25 = vld [vmem:[%s6233_s27 + $0x440] ss:$12 sps:$4 sm:$0xff]  }
 0x198   : > { %2782 = vmatprep.subr.bf16.mxu0 %v5560_v46  ;;  %v1027_v45 = vld [vmem:[%s6240_s12 + $0x2e8] sm:$0xff] }
 0x199   : > { %v1035_v46 = vld [vmem:[%s6240_s12 + $0x328] sm:$0xff] }
 0x19b   : > { %2783 = vmatpush1.bf16.msra.mxu0 %v5558_v51 }
 0x19c   : > { %2784 = vmatprep.subr.bf16.mxu0 %v5565_v52  ;;  %v1210_v52 = vpack.c.bf16 %v1042_v47, %v1035_v46  ;;  %v1097_v46 = vld [vmem:[%s6240_s12 + $0x518] sm:$0xff] }
 0x19d   : > { %2636 = vmatmul.mubr.bf16.gmra.mrb[8].mxu0 %v1174_v53  ;;  %v1105_v47 = vld [vmem:[%s6240_s12 + $0x558] sm:$0xff] }
 0x19e   : > { %3356 = vmatmul.mubr.bf16.vlgmr.msra.gmra.mrb[88].mxu1 %v1160_v31  ;;  %2645 = vmatprep.mubr.bf16.mxu0 %v1182_v55  ;;  %v1028_v31 = vld [vmem:[%s6240_s12 + $0x2f0] sm:$0xff] }
 0x19f   : > { %4941 = vmatpush3.bf16.msra.mxu1 %v5554_v54  ;;  %3363 = vmatprep.mubr.bf16.mxu1 %v1168_v33  ;;  %v5582_v33 = vld [vmem:[%s6233_s27 + $0x3d8] ss:$12 sps:$4 sm:$0xff]   ;;  %v1203_v37 = vpack.c.bf16 %v1028_v31, %v1021_v29  ;;  %v5595_v54 = vld [vmem:[%s6233_s27 + $0x420] ss:$12 sps:$4 sm:$0xff]  }
 0x1a0   : > { %4942 = vmatprep.subr.bf16.mxu1 %v5561_v56  ;;  %2785 = vmatpush1.bf16.msra.mxu0 %v5563_v57  ;;  %v1034_v56 = vld [vmem:[%s6240_s12 + $0x320] sm:$0xff]  ;;  %v1041_v57 = vld [vmem:[%s6240_s12 + $0x358] sm:$0xff] }
 0x1a1   : > { %2786 = vmatprep.subr.bf16.mxu0 %v5568_v58  ;;  %v1049_v58 = vld [vmem:[%s6240_s12 + $0x398] sm:$0xff]  ;;  %v1209_v0 = vpack.c.bf16 %v1041_v57, %v1034_v56  ;;  %v1104_v56 = vld [vmem:[%s6240_s12 + $0x550] sm:$0xff]  ;;  %v1111_v57 = vld [vmem:[%s6240_s12 + $0x588] sm:$0xff] }
 0x1a3   : > { %4943 = vmatpush3.bf16.msra.mxu1 %v5562_v62  ;;  %v5598_v62 = vld [vmem:[%s6233_s27 + $0x438] ss:$12 sps:$4 sm:$0xff]  }
 0x1a4   : > { %4944 = vmatprep.subr.bf16.mxu1 %v5569_v1  ;;  %2787 = vmatpush1.bf16.msra.mxu0 %v5566_v2  ;;  %v1217_v2 = vpack.c.bf16 %v1056_v60, %v1049_v58  ;;  %v1119_v58 = vld [vmem:[%s6240_s12 + $0x5c8] sm:$0xff]  ;;  %v1126_v60 = vld [vmem:[%s6240_s12 + $0x600] sm:$0xff] }
 0x1a5   : > { %2646 = vmatmul.mubr.bf16.gmra.mrb[12].mxu0 %v1181_v3  ;;  %2788 = vmatprep.subr.bf16.mxu0 %v5573_v7  ;;  %v5608_v7 = vld [vmem:[%s6233_s27 + $0x46c] ss:$12 sps:$4 sm:$0xff]  }
 0x1a6   : > { %3364 = vmatmul.mubr.bf16.gmra.mrb[92].mxu1 %v1167_v42  ;;  %2655 = vmatprep.mubr.bf16.mxu0 %v6590_v4  ;;  %v5592_v42 = vld [vmem:[%s6233_s27 + $0x40c] ss:$12 sps:$4 sm:$0xff]  }
 0x1a7   : > { %3371 = vmatprep.mubr.bf16.mxu1 %v1175_v44  ;;  %4945 = vmatpush3.bf16.msra.mxu1 %v5570_v5  ;;  %v1020_v44 = vld [vmem:[%s6240_s12 + $0x2b0] sm:$0xff] }
 0x1a8   : > { %2789 = vmatpush1.bf16.msra.mxu0 %v5571_v8  ;;  %4946 = vmatprep.subr.bf16.mxu1 %v5577_v10  ;;  %v1202_v51 = vpack.c.bf16 %v1027_v45, %v1020_v44  ;;  %v5603_v5 = vld [vmem:[%s6233_s27 + $0x450] ss:$12 sps:$4 sm:$0xff]   ;;  %v1055_v10 = vld [vmem:[%s6240_s12 + $0x3c8] sm:$0xff]  ;;  %v1090_v45 = vld [vmem:[%s6240_s12 + $0x4e0] sm:$0xff] }
 0x1a9   : > { %2790 = vmatprep.subr.bf16.mxu0 %v5576_v11  ;;  %v1048_v8 = vld [vmem:[%s6240_s12 + $0x390] sm:$0xff]  ;;  %v1063_v11 = vld [vmem:[%s6240_s12 + $0x408] sm:$0xff] }
 0x1ab   : > { %4947 = vmatpush3.bf16.msra.mxu1 %v5578_v16  ;;  %v1216_v16 = vpack.c.bf16 %v1055_v10, %v1048_v8  ;;  %v1118_v8 = vld [vmem:[%s6240_s12 + $0x5c0] sm:$0xff]  ;;  %v1125_v10 = vld [vmem:[%s6240_s12 + $0x5f8] sm:$0xff] }
 0x1ac   : > { %2791 = vmatpush1.bf16.msra.mxu0 %v5574_v18  ;;  %4948 = vmatprep.subr.bf16.mxu1 %v5585_v19  ;;  %v1224_v19 = vpack.c.bf16 %v1070_v12, %v1063_v11  ;;  %v1133_v11 = vld [vmem:[%s6240_s12 + $0x638] sm:$0xff]  ;;  %v1140_v12 = vld [vmem:[%s6240_s12 + $0x670] sm:$0xff] }
 0x1ad   : > { %2656 = vmatmul.mubr.bf16.gmra.mrb[16].mxu0 %v1188_v20  ;;  %2792 = vmatprep.subr.bf16.mxu0 %v5581_v22  ;;  %v1069_v22 = vld [vmem:[%s6240_s12 + $0x438] sm:$0xff] }
 0x1ae   : > { %3372 = vmatmul.mubr.bf16.gmra.mrb[96].mxu1 %v1174_v53  ;;  %2665 = vmatprep.mubr.bf16.mxu0 %v1196_v21  ;;  %v5597_v53 = vld [vmem:[%s6233_s27 + $0x424] ss:$12 sps:$4 sm:$0xff]  }
 0x1af   : > { %3379 = vmatprep.mubr.bf16.mxu1 %v1182_v55  ;;  %4949 = vmatpush3.bf16.msra.mxu1 %v5586_v23  ;;  %v5600_v55 = vld [vmem:[%s6233_s27 + $0x43c] ss:$12 sps:$4 sm:$0xff]  }
 0x1b0   : > { %2793 = vmatpush1.bf16.msra.mxu0 %v5579_v24  ;;  %4950 = vmatprep.subr.bf16.mxu1 %v5593_v25  ;;  %v1077_v23 = vld [vmem:[%s6240_s12 + $0x478] sm:$0xff]  ;;  %v1084_v24 = vld [vmem:[%s6240_s12 + $0x4b0] sm:$0xff] }
 0x1b1   : > { %2794 = vmatprep.subr.bf16.mxu0 %v5584_v26  ;;  %v5619_v25 = vld [vmem:[%s6233_s27 + $0x484] ss:$12 sps:$4 sm:$0xff]   ;;  %v1231_v31 = vpack.c.bf16 %v1084_v24, %v1077_v23  ;;  %v1259_v23 = vpack.c.bf16 %v1140_v12, %v1133_v11 }
 0x1b3   : > { %4951 = vmatpush3.bf16.msra.mxu1 %v5594_v32 }
 0x1b4   : > { %2795 = vmatpush1.bf16.msra.mxu0 %v5582_v33  ;;  %4952 = vmatprep.subr.bf16.mxu1 %v5601_v34  ;;  %v1076_v33 = vld [vmem:[%s6240_s12 + $0x470] sm:$0xff]  ;;  %v1083_v34 = vld [vmem:[%s6240_s12 + $0x4a8] sm:$0xff] }
 0x1b5   : > { %2666 = vmatmul.mubr.bf16.gmra.mrb[20].mxu0 %v1195_v36  ;;  %2796 = vmatprep.subr.bf16.mxu0 %v5589_v38 }
 0x1b6   : > { %3380 = vmatmul.mubr.bf16.gmra.mrb[100].mxu1 %v1181_v3  ;;  %2675 = vmatprep.mubr.bf16.mxu0 %v1203_v37 }
 0x1b7   : > { %3387 = vmatprep.mubr.bf16.mxu1 %v6590_v4  ;;  %4953 = vmatpush3.bf16.msra.mxu1 %v5602_v39  ;;  %v5605_v4 = vld [vmem:[%s6233_s27 + $0x454] ss:$12 sps:$4 sm:$0xff]  }
 0x1b8   : > { %2797 = vmatpush1.bf16.msra.mxu0 %v5587_v40  ;;  %4954 = vmatprep.subr.bf16.mxu1 %v5609_v41  ;;  %v1230_v40 = vpack.c.bf16 %v1083_v34, %v1076_v33  ;;  %v1147_v33 = vld [vmem:[%s6240_s12 + $0x6a8] sm:$0xff]  ;;  %v1154_v34 = vld [vmem:[%s6240_s12 + $0x6e0] sm:$0xff] }
 0x1b9   : > { %2798 = vmatprep.subr.bf16.mxu0 %v5592_v42 }
 0x1bb   : > { %4955 = vmatpush3.bf16.msra.mxu1 %v5610_v48  ;;  %v1112_v48 = vld [vmem:[%s6240_s12 + $0x590] sm:$0xff] }
 0x1bc   : > { %2799 = vmatpush1.bf16.msra.mxu0 %v5590_v49  ;;  %5076 = vmatprep.subr.bf16.mxu1 %v6630_v50 }
 0x1bd   : > { %2676 = vmatmul.mubr.bf16.gmra.mrb[24].mxu0 %v1202_v51  ;;  %2800 = vmatprep.subr.bf16.mxu0 %v5597_v53 }
 0x1be   : > { %3388 = vmatmul.mubr.bf16.gmra.mrb[104].mxu1 %v1188_v20  ;;  %2685 = vmatprep.mubr.bf16.mxu0 %v1210_v52 }
 0x1bf   : > { %3395 = vmatprep.mubr.bf16.mxu1 %v1196_v21  ;;  %v1062_v21 = vld [vmem:[%s6240_s12 + $0x400] sm:$0xff] }
 0x1c0   : > { %2801 = vmatpush1.bf16.msra.mxu0 %v5595_v54  ;;  %v1223_v28 = vpack.c.bf16 %v1069_v22, %v1062_v21  ;;  %v1245_v54 = vpack.c.bf16 %v1112_v48, %v1105_v47 }
 0x1c1   : > { %v6640_v61 = vpop.f32.mrb[0].mxu1  ;;  %2802 = vmatprep.subr.bf16.mxu0 %v5600_v55 }
 0x1c2   : > { %v6643_v63 = vpop.f32.mrb[1].mxu1 }
 0x1c3   : > { %v6645_v1 = vpop.f32.mrb[2].mxu1 }
 0x1c4   : > { %v6647_v3 = vpop.f32.mrb[3].mxu1  ;;  %2803 = vmatpush1.bf16.msra.mxu0 %v5598_v62 }
 0x1c5   : > { %2686 = vmatmul.mubr.bf16.gmra.mrb[28].mxu0 %v1209_v0  ;;  %2804 = vmatprep.subr.bf16.mxu0 %v5605_v4 }
 0x1c6   : > { %3396 = vmatmul.mubr.bf16.gmra.mrb[108].mxu1 %v1195_v36  ;;  %2695 = vmatprep.mubr.bf16.mxu0 %v1217_v2  ;;  %v1091_v36 = vld [vmem:[%s6240_s12 + $0x4e8] sm:$0xff] }
 0x1c7   : > { %3403 = vmatprep.mubr.bf16.mxu1 %v1203_v37  ;;  %v1098_v37 = vld [vmem:[%s6240_s12 + $0x520] sm:$0xff] }
 0x1c8   : > { %2805 = vmatpush1.bf16.msra.mxu0 %v5603_v5  ;;  %v1238_v42 = vpack.c.bf16 %v1098_v37, %v1091_v36  ;;  %v1252_v5 = vpack.c.bf16 %v1126_v60, %v1119_v58 }
 0x1c9   : > { %v6656_v13 = vpop.f32.mrb[4].mxu1  ;;  %2806 = vmatprep.subr.bf16.mxu0 %v5608_v7 }
 0x1ca   : > { %v6659_v15 = vpop.f32.mrb[5].mxu1 }
 0x1cb   : > { %7404 = vst [vmem:[#allocation4_spill] sm:$0xff] %v6659_v15  ;;  %v6661_v18 = vpop.f32.mrb[6].mxu1  ;;  %v1149_v15 = vld [vmem:[%s6240_s12 + $0x6b8] sm:$0xff] }
 0x1cc   : > { %7405 = vst [vmem:[#allocation5_spill] sm:$0xff] %v6661_v18  ;;  %v6663_v20 = vpop.f32.mrb[7].mxu1  ;;  %2807 = vmatpush1.bf16.msra.mxu0 %v5606_v14  ;;  %v1141_v18 = vld [vmem:[%s6240_s12 + $0x678] sm:$0xff] }
 0x1cd   : > { %7406 = vst [vmem:[#allocation6_spill] sm:$0xff] %v6663_v20  ;;  %2696 = vmatmul.mubr.bf16.gmra.mrb[32].mxu0 %v1216_v16  ;;  %2969 = vmatprep.subr.bf16.mxu0 %v5619_v25 }
 0x1ce   : > { %3404 = vmatmul.mubr.bf16.gmra.mrb[112].mxu1 %v1202_v51  ;;  %2705 = vmatprep.mubr.bf16.mxu0 %v1224_v19 }
 0x1cf   : > { %3411 = vmatprep.mubr.bf16.mxu1 %v1210_v52  ;;  %v1237_v52 = vpack.c.bf16 %v1097_v46, %v1090_v45  ;;  %v1266_v46 = vpack.c.bf16 %v1154_v34, %v1147_v33 }
 0x1d1   : > { %v6670_v26 = vpop.f32.mrb[8].mxu1 }
 0x1d2   : > { %7407 = vst [vmem:[#allocation7_spill] sm:$0xff] %v6670_v26  ;;  %v6672_v27 = vpop.f32.mrb[9].mxu1  ;;  %v1142_v26 = vld [vmem:[%s6240_s12 + $0x680] sm:$0xff] }
 0x1d3   : > { %7408 = vst [vmem:[#allocation8_spill] sm:$0xff] %v6672_v27  ;;  %v6674_v29 = vpop.f32.mrb[10].mxu1  ;;  %v1135_v27 = vld [vmem:[%s6240_s12 + $0x648] sm:$0xff] }
 0x1d4   : > { %7409 = vst [vmem:[#allocation9_spill] sm:$0xff] %v6674_v29  ;;  %v6676_v32 = vpop.f32.mrb[11].mxu1  ;;  %v1128_v29 = vld [vmem:[%s6240_s12 + $0x610] sm:$0xff] }
 0x1d5   : > { %7410 = vst [vmem:[#allocation10_spill] sm:$0xff] %v6676_v32  ;;  %2706 = vmatmul.mubr.bf16.gmra.mrb[36].mxu0 %v1223_v28  ;;  %v1121_v32 = vld [vmem:[%s6240_s12 + $0x5d8] sm:$0xff] }
 0x1d6   : > { %3412 = vmatmul.mubr.bf16.gmra.mrb[116].mxu1 %v1209_v0  ;;  %2715 = vmatprep.mubr.bf16.mxu0 %v1231_v31 }
 0x1d7   : > { %3419 = vmatprep.mubr.bf16.mxu1 %v1217_v2  ;;  %v1244_v2 = vpack.c.bf16 %v1111_v57, %v1104_v56  ;;  %v939_v56 = vld [vmem:[%s6240_s12 + $0x28] sm:$0xff]  ;;  %v946_v57 = vld [vmem:[%s6240_s12 + $0x60] sm:$0xff] }
 0x1d8   : > { %v1163_v12 = vpack.c.bf16 %v946_v57, %v939_v56  ;;  %v974_v56 = vld [vmem:[%s6240_s12 + $0x140] sm:$0xff]  ;;  %v5621_v57 = vld [vmem:[%s6233_s27 + $0x49c] ss:$12 sps:$4 sm:$0xff]  }
 0x1d9   : > { %v6682_v38 = vpop.f32.mrb[12].mxu1 }
 0x1da   : > { %7411 = vst [vmem:[#allocation11_spill] sm:$0xff] %v6682_v38  ;;  %v6684_v39 = vpop.f32.mrb[13].mxu1  ;;  %v1114_v38 = vld [vmem:[%s6240_s12 + $0x5a0] sm:$0xff] }
 0x1db   : > { %7412 = vst [vmem:[#allocation12_spill] sm:$0xff] %v6684_v39  ;;  %v6686_v41 = vpop.f32.mrb[14].mxu1  ;;  %v1107_v39 = vld [vmem:[%s6240_s12 + $0x568] sm:$0xff] }
 0x1dc   : > { %7413 = vst [vmem:[#allocation13_spill] sm:$0xff] %v6686_v41  ;;  %v6688_v44 = vpop.f32.mrb[15].mxu1  ;;  %v1100_v41 = vld [vmem:[%s6240_s12 + $0x530] sm:$0xff] }
 0x1dd   : > { %7414 = vst [vmem:[#allocation14_spill] sm:$0xff] %v6688_v44  ;;  %2716 = vmatmul.mubr.bf16.gmra.mrb[40].mxu0 %v1230_v40  ;;  %v1093_v44 = vld [vmem:[%s6240_s12 + $0x4f8] sm:$0xff] }
 0x1de   : > { %3420 = vmatmul.mubr.bf16.gmra.mrb[120].mxu1 %v1216_v16  ;;  %2725 = vmatprep.mubr.bf16.mxu0 %v1238_v42 }
 0x1df   : > { %3427 = vmatprep.mubr.bf16.mxu1 %v1224_v19  ;;  %v1251_v19 = vpack.c.bf16 %v1125_v10, %v1118_v8 }
 0x1e1   : > { %v6694_v49 = vpop.f32.mrb[16].mxu1 }
 0x1e2   : > { %7415 = vst [vmem:[#allocation15_spill] sm:$0xff] %v6694_v49  ;;  %v6696_v51 = vpop.f32.mrb[17].mxu1  ;;  %v1086_v49 = vld [vmem:[%s6240_s12 + $0x4c0] sm:$0xff] }
 0x1e3   : > { %7416 = vst [vmem:[#allocation16_spill] sm:$0xff] %v6696_v51  ;;  %v6698_v53 = vpop.f32.mrb[18].mxu1  ;;  %v1079_v51 = vld [vmem:[%s6240_s12 + $0x488] sm:$0xff] }
 0x1e4   : > { %7417 = vst [vmem:[#allocation17_spill] sm:$0xff] %v6698_v53  ;;  %v6700_v55 = vpop.f32.mrb[19].mxu1  ;;  %v1072_v53 = vld [vmem:[%s6240_s12 + $0x450] sm:$0xff] }
 0x1e5   : > { %7418 = vst [vmem:[#allocation18_spill] sm:$0xff] %v6700_v55  ;;  %2726 = vmatmul.mubr.bf16.gmra.mrb[44].mxu0 %v1237_v52  ;;  %v1058_v55 = vld [vmem:[%s6240_s12 + $0x3e0] sm:$0xff] }
 0x1e6   : > { %3428 = vmatmul.mubr.bf16.gmra.mrb[124].mxu1 %v1223_v28  ;;  %2735 = vmatprep.mubr.bf16.mxu0 %v1245_v54  ;;  %v1132_v28 = vld [vmem:[%s6240_s12 + $0x630] sm:$0xff] }
 0x1e7   : > { %3435 = vmatprep.mubr.bf16.mxu1 %v1231_v31  ;;  %v1139_v31 = vld [vmem:[%s6240_s12 + $0x668] sm:$0xff] }
 0x1e9   : > { %v6706_v62 = vpop.f32.mrb[20].mxu1 }
 0x1ea   : > { %7419 = vst [vmem:[#allocation19_spill] sm:$0xff] %v6706_v62  ;;  %v6708_v0 = vpop.f32.mrb[21].mxu1  ;;  %v1037_v62 = vld [vmem:[%s6240_s12 + $0x338] sm:$0xff] }
 0x1eb   : > { %7420 = vst [vmem:[#allocation20_spill] sm:$0xff] %v6708_v0  ;;  %v6710_v4 = vpop.f32.mrb[22].mxu1  ;;  %v1029_v0 = vld [vmem:[%s6240_s12 + $0x2f8] sm:$0xff] }
 0x1ec   : > { %7421 = vst [vmem:[#allocation21_spill] sm:$0xff] %v6710_v4  ;;  %v6712_v7 = vpop.f32.mrb[23].mxu1  ;;  %v5618_v4 = vld [vmem:[%s6233_s27 + $0x530] ss:$12 sps:$4 sm:$0xff]  }
 0x1ed   : > { %7422 = vst [vmem:[#allocation22_spill] sm:$0xff] %v6712_v7  ;;  %2736 = vmatmul.mubr.bf16.gmra.mrb[48].mxu0 %v1244_v2  ;;  %v5616_v7 = vld [vmem:[%s6233_s27 + $0x500] ss:$12 sps:$4 sm:$0xff]  }
 0x1ee   : > { %3436 = vmatmul.mubr.bf16.gmra.mrb[128].mxu1 %v1230_v40  ;;  %2745 = vmatprep.mubr.bf16.mxu0 %v1252_v5  ;;  %v1258_v40 = vpack.c.bf16 %v1139_v31, %v1132_v28 }
 0x1ef   : > { %3443 = vmatprep.mubr.bf16.mxu1 %v1238_v42 }
 0x1f1   : > { %v4732_v14 = vpop.f32.mrb[24].mxu1 }
 0x1f2   : > { %v4733_v16 = vpop.f32.mrb[25].mxu1 }
 0x1f3   : > { %v6718_v21 = vadd.f32 %v4733_v16, %v4732_v14  ;;  %v4735_v22 = vpop.f32.mrb[26].mxu1 }
 0x1f4   : > { %v4736_v24 = vpop.f32.mrb[27].mxu1 }
 0x1f5   : > { %v6720_v25 = vadd.f32 %v4736_v24, %v4735_v22  ;;  %2746 = vmatmul.mubr.bf16.gmra.mrb[52].mxu0 %v1251_v19  ;;  %v953_v22 = vld [vmem:[%s6240_s12 + $0x98] sm:$0xff]  ;;  %v960_v24 = vld [vmem:[%s6240_s12 + $0xd0] sm:$0xff] }
 0x1f6   : > { %3444 = vmatmul.mubr.bf16.gmra.mrb[132].mxu1 %v1237_v52  ;;  %2755 = vmatprep.mubr.bf16.mxu0 %v1259_v23  ;;  %v1146_v52 = vld [vmem:[%s6240_s12 + $0x6a0] sm:$0xff] }
 0x1f7   : > { %3451 = vmatprep.mubr.bf16.mxu1 %v1245_v54  ;;  %v1153_v54 = vld [vmem:[%s6240_s12 + $0x6d8] sm:$0xff] }
 0x1f8   : > { %v1265_v8 = vpack.c.bf16 %v1153_v54, %v1146_v52  ;;  %v959_v52 = vld [vmem:[%s6240_s12 + $0xc8] sm:$0xff] }
 0x1f9   : > { %v4738_v36 = vpop.f32.mrb[28].mxu1  ;;  %v967_v54 = vld [vmem:[%s6240_s12 + $0x108] sm:$0xff] }
 0x1fa   : > { %v4739_v37 = vpop.f32.mrb[29].mxu1 }
 0x1fb   : > { %v6726_v42 = vadd.f32 %v4739_v37, %v4738_v36  ;;  %v4741_v45 = vpop.f32.mrb[30].mxu1  ;;  %v1170_v37 = vpack.c.bf16 %v960_v24, %v953_v22  ;;  %v5623_v22 = vld [vmem:[%s6233_s27 + $0x4b4] ss:$12 sps:$4 sm:$0xff]  }
 0x1fc   : > { %v4742_v47 = vpop.f32.mrb[31].mxu1 }
 0x1fd   : > { %v6728_v48 = vadd.f32 %v4742_v47, %v4741_v45  ;;  %2756 = vmatmul.mubr.bf16.gmra.mrb[56].mxu0 %v1258_v40  ;;  %v952_v47 = vld [vmem:[%s6240_s12 + $0x90] sm:$0xff] }
 0x1fe   : > { %3452 = vmatmul.mubr.bf16.gmra.mrb[136].mxu1 %v1244_v2  ;;  %2765 = vmatprep.mubr.bf16.mxu0 %v1266_v46  ;;  %v938_v2 = vld [vmem:[%s6240_s12 + $0x20] sm:$0xff] }
 0x1ff   : > { %3459 = vmatprep.mubr.bf16.mxu1 %v1252_v5  ;;  %v945_v5 = vld [vmem:[%s6240_s12 + $0x58] sm:$0xff] }
 0x200   : > { %v1162_v33 = vpack.c.bf16 %v945_v5, %v938_v2  ;;  %v1177_v2 = vpack.c.bf16 %v974_v56, %v967_v54  ;;  %v5622_v5 = vld [vmem:[%s6233_s27 + $0x498] ss:$12 sps:$4 sm:$0xff]  }
 0x201   : > { %v4744_v58 = vpop.f32.mrb[32].mxu1 }
 0x202   : > { %v4745_v60 = vpop.f32.mrb[33].mxu1 }
 0x203   : > { %v6734_v10 = vadd.f32 %v4745_v60, %v4744_v58  ;;  %v4747_v11 = vpop.f32.mrb[34].mxu1 }
 0x204   : > { %v4748_v14 = vpop.f32.mrb[35].mxu1 }
 0x205   : > { %v6736_v16 = vadd.f32 %v4748_v14, %v4747_v11  ;;  %2766 = vmatmul.mubr.bf16.gmra.mrb[60].mxu0 %v1265_v8  ;;  %v6752_v11 = vpack.c.bf16 %v959_v52, %v952_v47  ;;  %v5625_v52 = vld [vmem:[%s6233_s27 + $0x4cc] ss:$12 sps:$4 sm:$0xff]  }
 0x206   : > { %3460 = vmatmul.mubr.bf16.gmra.mrb[140].mxu1 %v1251_v19  ;;  %2808 = vmatprep.mubr.bf16.mxu0 %v1163_v12 }
 0x207   : > { %3467 = vmatprep.mubr.bf16.mxu1 %v1259_v23  ;;  %v5620_v23 = vld [vmem:[%s6233_s27 + $0x480] ss:$12 sps:$4 sm:$0xff]  }
 0x209   : > { %v4750_v28 = vpop.f32.mrb[36].mxu1 }
 0x20a   : > { %v4751_v31 = vpop.f32.mrb[37].mxu1 }
 0x20b   : > { %v6742_v34 = vadd.f32 %v4751_v31, %v4750_v28  ;;  %v4753_v36 = vpop.f32.mrb[38].mxu1  ;;  %v966_v28 = vld [vmem:[%s6240_s12 + $0x100] sm:$0xff]  ;;  %v973_v31 = vld [vmem:[%s6240_s12 + $0x138] sm:$0xff] }
 0x20c   : > { %v4754_v19 = vpop.f32.mrb[39].mxu1  ;;  %v6767_v56 = vpack.c.bf16 %v973_v31, %v966_v28  ;;  %v987_v28 = vld [vmem:[%s6240_s12 + $0x1a8] sm:$0xff] }
 0x20d   : > { %v6744_v45 = vadd.f32 %v4754_v19, %v4753_v36  ;;  %2809 = vmatmul.mubr.bf16.vlgmr.msra.gmra.mrb[0].mxu0 %v1162_v33  ;;  %v981_v36 = vld [vmem:[%s6240_s12 + $0x178] sm:$0xff]  ;;  %v988_v19 = vld [vmem:[%s6240_s12 + $0x1b0] sm:$0xff]  ;;  %v995_v31 = vld [vmem:[%s6240_s12 + $0x1e8] sm:$0xff] }
 0x20e   : > { %3468 = vmatmul.mubr.bf16.gmra.mrb[144].mxu1 %v1258_v40  ;;  %2970 = vmatpush1.bf16.msra.mxu0 %v5620_v23  ;;  %v5624_v23 = vld [vmem:[%s6233_s27 + $0x4b0] ss:$12 sps:$4 sm:$0xff]  }
 0x20f   : > { %2818 = vmatprep.mubr.bf16.mxu0 %v1170_v37  ;;  %3475 = vmatprep.mubr.bf16.mxu1 %v1266_v46 }
 0x210   : > { %2971 = vmatprep.subr.bf16.mxu0 %v5621_v57  ;;  %v6771_v57 = vpack.c.bf16 %v988_v19, %v981_v36  ;;  %v1002_v36 = vld [vmem:[%s6240_s12 + $0x220] sm:$0xff] }
 0x211   : > { %v4756_v58 = vpop.f32.mrb[40].mxu1  ;;  %v5613_v19 = vld [vmem:[%s6233_s27 + $0x4b8] ss:$12 sps:$4 sm:$0xff]  }
 0x212   : > { %v4757_v60 = vpop.f32.mrb[41].mxu1  ;;  %2972 = vmatpush1.bf16.msra.mxu0 %v5622_v5 }
 0x213   : > { %v6754_v40 = vadd.f32 %v4757_v60, %v4756_v58  ;;  %v4759_v14 = vpop.f32.mrb[42].mxu1  ;;  %2973 = vmatprep.subr.bf16.mxu0 %v5623_v22  ;;  %v5612_v60 = vld [vmem:[%s6233_s27 + $0x4a0] ss:$12 sps:$4 sm:$0xff]   ;;  %v980_v22 = vld [vmem:[%s6240_s12 + $0x170] sm:$0xff] }
 0x214   : > { %v4760_v46 = vpop.f32.mrb[43].mxu1 }
 0x215   : > { %v6758_v24 = vadd.f32 %v4760_v46, %v4759_v14  ;;  %2819 = vmatmul.mubr.bf16.gmra.mrb[4].mxu0 %v6752_v11  ;;  %v5626_v14 = vld [vmem:[%s6233_s27 + $0x4c8] ss:$12 sps:$4 sm:$0xff]   ;;  %v5627_v46 = vld [vmem:[%s6233_s27 + $0x4e4] ss:$12 sps:$4 sm:$0xff]  }
 0x216   : > { %3476 = vmatmul.mubr.bf16.gmra.mrb[148].mxu1 %v1265_v8  ;;  %2828 = vmatprep.mubr.bf16.mxu0 %v1177_v2 }
 0x217   : > { %3516 = vmatprep.mubr.bf16.mxu1 %v1163_v12  ;;  %2974 = vmatpush1.bf16.msra.mxu0 %v5624_v23 }
 0x218   : > { %2975 = vmatprep.subr.bf16.mxu0 %v5625_v52 }
 0x219   : > { %v4762_v47 = vpop.f32.mrb[44].mxu1 }
 0x21a   : > { %v4763_v54 = vpop.f32.mrb[45].mxu1 }
 0x21b   : > { %v6769_v8 = vadd.f32 %v4763_v54, %v4762_v47  ;;  %v4765_v12 = vpop.f32.mrb[46].mxu1  ;;  %2976 = vmatpush1.bf16.msra.mxu0 %v5626_v14  ;;  %v5628_v47 = vld [vmem:[%s6233_s27 + $0x4e0] ss:$12 sps:$4 sm:$0xff]   ;;  %v6787_v54 = vpack.c.bf16 %v987_v28, %v980_v22  ;;  %v5630_v22 = vld [vmem:[%s6233_s27 + $0x4f8] ss:$12 sps:$4 sm:$0xff]  }
 0x21c   : > { %v4766_v58 = vpop.f32.mrb[47].mxu1  ;;  %2977 = vmatprep.subr.bf16.mxu0 %v5627_v46  ;;  %v5614_v46 = vld [vmem:[%s6233_s27 + $0x4d0] ss:$12 sps:$4 sm:$0xff]   ;;  %v994_v28 = vld [vmem:[%s6240_s12 + $0x1e0] sm:$0xff] }
 0x21d   : > { %v6775_v5 = vadd.f32 %v4766_v58, %v4765_v12  ;;  %2829 = vmatmul.mubr.bf16.gmra.mrb[8].mxu0 %v6767_v56  ;;  %v1191_v12 = vpack.c.bf16 %v1002_v36, %v995_v31  ;;  %v1001_v31 = vld [vmem:[%s6240_s12 + $0x218] sm:$0xff]  ;;  %v1016_v36 = vld [vmem:[%s6240_s12 + $0x290] sm:$0xff] }
 0x21e   : > { %3517 = vmatmul.mubr.bf16.vlgmr.msra.gmra.mrb[152].mxu1 %v1162_v33  ;;  %2838 = vmatprep.mubr.bf16.mxu0 %v6771_v57  ;;  %v5629_v33 = vld [vmem:[%s6233_s27 + $0x4fc] ss:$12 sps:$4 sm:$0xff]  }
 0x21f   : > { %5077 = vmatpush3.bf16.msra.mxu1 %v6630_v50  ;;  %3524 = vmatprep.mubr.bf16.mxu1 %v1170_v37 }
 0x220   : > { %5078 = vmatprep.subr.bf16.mxu1 %v5612_v60  ;;  %2978 = vmatpush1.bf16.msra.mxu0 %v5628_v47 }
 0x221   : > { %v4768_v23 = vpop.f32.mrb[48].mxu1  ;;  %2979 = vmatprep.subr.bf16.mxu0 %v5629_v33  ;;  %v5632_v33 = vld [vmem:[%s6233_s27 + $0x510] ss:$12 sps:$4 sm:$0xff]  }
 0x222   : > { %v4769_v52 = vpop.f32.mrb[49].mxu1 }
 0x223   : > { %v6790_v50 = vadd.f32 %v4769_v52, %v4768_v23  ;;  %v4771_v37 = vpop.f32.mrb[50].mxu1  ;;  %5079 = vmatpush3.bf16.msra.mxu1 %v5612_v60  ;;  %v1009_v60 = vld [vmem:[%s6240_s12 + $0x258] sm:$0xff]  ;;  %v5631_v23 = vld [vmem:[%s6233_s27 + $0x514] ss:$12 sps:$4 sm:$0xff]  }
 0x224   : > { %v4772_v58 = vpop.f32.mrb[51].mxu1  ;;  %5080 = vmatprep.subr.bf16.mxu1 %v5613_v19  ;;  %2980 = vmatpush1.bf16.msra.mxu0 %v5630_v22  ;;  %v5615_v52 = vld [vmem:[%s6233_s27 + $0x4e8] ss:$12 sps:$4 sm:$0xff]  }
 0x225   : > { %v6792_v14 = vadd.f32 %v4772_v58, %v4771_v37  ;;  %2839 = vmatmul.mubr.bf16.gmra.mrb[12].mxu0 %v6787_v54  ;;  %2981 = vmatprep.subr.bf16.mxu0 %v5631_v23  ;;  %v1190_v58 = vpack.c.bf16 %v1001_v31, %v994_v28  ;;  %v1008_v28 = vld [vmem:[%s6240_s12 + $0x250] sm:$0xff]  ;;  %v1015_v31 = vld [vmem:[%s6240_s12 + $0x288] sm:$0xff] }
 0x226   : > { %3525 = vmatmul.mubr.bf16.gmra.mrb[156].mxu1 %v6752_v11  ;;  %2848 = vmatprep.mubr.bf16.mxu0 %v1191_v12  ;;  %v5633_v11 = vld [vmem:[%s6233_s27 + $0x52c] ss:$12 sps:$4 sm:$0xff]  }
 0x227   : > { %3532 = vmatprep.mubr.bf16.mxu1 %v1177_v2  ;;  %5081 = vmatpush3.bf16.msra.mxu1 %v5613_v19  ;;  %v1198_v19 = vpack.c.bf16 %v1016_v36, %v1009_v60  ;;  %v1030_v60 = vld [vmem:[%s6240_s12 + $0x300] sm:$0xff] }
 0x228   : > { %5082 = vmatprep.subr.bf16.mxu1 %v5614_v46  ;;  %2982 = vmatpush1.bf16.msra.mxu0 %v5632_v33  ;;  %v5634_v33 = vld [vmem:[%s6233_s27 + $0x528] ss:$12 sps:$4 sm:$0xff]   ;;  %v5617_v36 = vld [vmem:[%s6233_s27 + $0x518] ss:$12 sps:$4 sm:$0xff]  }
 0x229   : > { %v4774_v47 = vpop.f32.mrb[52].mxu1  ;;  %2983 = vmatprep.subr.bf16.mxu0 %v5633_v11  ;;  %v1197_v11 = vpack.c.bf16 %v1015_v31, %v1008_v28  ;;  %v1044_v28 = vld [vmem:[%s6240_s12 + $0x370] sm:$0xff] }
 0x22a   : > { %v4775_v37 = vpop.f32.mrb[53].mxu1 }
 0x22b   : > { %v6806_v2 = vadd.f32 %v4775_v37, %v4774_v47  ;;  %v4777_v22 = vpop.f32.mrb[54].mxu1  ;;  %5083 = vmatpush3.bf16.msra.mxu1 %v5614_v46  ;;  %v1023_v47 = vld [vmem:[%s6240_s12 + $0x2c8] sm:$0xff] }
 0x22c   : > { %v4778_v23 = vpop.f32.mrb[55].mxu1  ;;  %5084 = vmatprep.subr.bf16.mxu1 %v5615_v52  ;;  %2984 = vmatpush1.bf16.msra.mxu0 %v5634_v33 }
 0x22d   : > { %v6808_v35 = vadd.f32 %v4778_v23, %v4777_v22  ;;  %2849 = vmatmul.mubr.bf16.gmra.mrb[16].mxu0 %v1190_v58  ;;  %v1205_v23 = vpack.c.bf16 %v1030_v60, %v1023_v47 }
 0x22e   : > { %3533 = vmatmul.mubr.bf16.gmra.mrb[160].mxu1 %v6767_v56  ;;  %2858 = vmatprep.mubr.bf16.mxu0 %v1198_v19 }
 0x22f   : > { %3540 = vmatprep.mubr.bf16.mxu1 %v6771_v57  ;;  %5085 = vmatpush3.bf16.msra.mxu1 %v5615_v52  ;;  %v1022_v52 = vld [vmem:[%s6240_s12 + $0x2c0] sm:$0xff] }
 0x230   : > { %5086 = vmatprep.subr.bf16.mxu1 %v5616_v7  ;;  %v1204_v47 = vpack.c.bf16 %v1029_v0, %v1022_v52 }
 0x231   : > { %v4780_v46 = vpop.f32.mrb[56].mxu1 }
 0x232   : > { %v4781_v37 = vpop.f32.mrb[57].mxu1 }
 0x233   : > { %v6819_v22 = vadd.f32 %v4781_v37, %v4780_v46  ;;  %v4783_v56 = vpop.f32.mrb[58].mxu1  ;;  %5087 = vmatpush3.bf16.msra.mxu1 %v5616_v7  ;;  %v1212_v37 = vpack.c.bf16 %v1044_v28, %v1037_v62 }
 0x234   : > { %v4784_v57 = vpop.f32.mrb[59].mxu1  ;;  %5088 = vmatprep.subr.bf16.mxu1 %v5617_v36 }
 0x235   : > { %v6821_v33 = vadd.f32 %v4784_v57, %v4783_v56  ;;  %2859 = vmatmul.mubr.bf16.gmra.mrb[20].mxu0 %v1197_v11  ;;  %v1043_v56 = vld [vmem:[%s6240_s12 + $0x368] sm:$0xff] }
 0x236   : > { %3541 = vmatmul.mubr.bf16.gmra.mrb[164].mxu1 %v6787_v54  ;;  %2868 = vmatprep.mubr.bf16.mxu0 %v1205_v23  ;;  %v1051_v57 = vld [vmem:[%s6240_s12 + $0x3a8] sm:$0xff] }
 0x237   : > { %3548 = vmatprep.mubr.bf16.mxu1 %v1191_v12  ;;  %5089 = vmatpush3.bf16.msra.mxu1 %v5617_v36  ;;  %v1036_v36 = vld [vmem:[%s6240_s12 + $0x330] sm:$0xff]  ;;  %v1219_v28 = vpack.c.bf16 %v1058_v55, %v1051_v57 }
 0x238   : > { %5090 = vmatprep.subr.bf16.mxu1 %v5618_v4 }
 0x239   : > { %v4786_v31 = vpop.f32.mrb[60].mxu1 }
 0x23a   : > { %v4787_v7 = vpop.f32.mrb[61].mxu1 }
 0x23b   : > { %v6829_v60 = vadd.f32 %v4787_v7, %v4786_v31  ;;  %v4789_v46 = vpop.f32.mrb[62].mxu1  ;;  %5091 = vmatpush3.bf16.msra.mxu1 %v5618_v4  ;;  %v1211_v31 = vpack.c.bf16 %v1043_v56, %v1036_v36 }
 0x23c   : > { %v4790_v54 = vpop.f32.mrb[63].mxu1 }
 0x23d   : > { %v6831_v12 = vadd.f32 %v4790_v54, %v4789_v46  ;;  %2869 = vmatmul.mubr.bf16.gmra.mrb[24].mxu0 %v1204_v47  ;;  %v1065_v54 = vld [vmem:[%s6240_s12 + $0x418] sm:$0xff] }
 0x23e   : > { %3549 = vmatmul.mubr.bf16.gmra.mrb[168].mxu1 %v1190_v58  ;;  %2878 = vmatprep.mubr.bf16.mxu0 %v1212_v37  ;;  %v1050_v58 = vld [vmem:[%s6240_s12 + $0x3a0] sm:$0xff]  ;;  %v1226_v57 = vpack.c.bf16 %v1072_v53, %v1065_v54  ;;  %v1233_v54 = vpack.c.bf16 %v1086_v49, %v1079_v51  ;;  %v1240_v51 = vpack.c.bf16 %v1100_v41, %v1093_v44 }
 0x23f   : > { %3556 = vmatprep.mubr.bf16.mxu1 %v1198_v19  ;;  %v1057_v19 = vld [vmem:[%s6240_s12 + $0x3d8] sm:$0xff]  ;;  %v1247_v44 = vpack.c.bf16 %v1114_v38, %v1107_v39  ;;  %v1254_v39 = vpack.c.bf16 %v1128_v29, %v1121_v32  ;;  %v1261_v32 = vpack.c.bf16 %v1142_v26, %v1135_v27 }
 0x241   : > { %v4792_v0 = vpop.f32.mrb[64].mxu1 }
 0x242   : > { %v4793_v52 = vpop.f32.mrb[65].mxu1 }
 0x243   : > { %v6837_v62 = vadd.f32 %v4793_v52, %v4792_v0  ;;  %v4795_v4 = vpop.f32.mrb[66].mxu1  ;;  %v1218_v0 = vpack.c.bf16 %v1057_v19, %v1050_v58 }
 0x244   : > { %v4796_v7 = vpop.f32.mrb[67].mxu1 }
 0x245   : > { %v6839_v46 = vadd.f32 %v4796_v7, %v4795_v4  ;;  %2879 = vmatmul.mubr.bf16.gmra.mrb[28].mxu0 %v1211_v31 }
 0x246   : > { %3557 = vmatmul.mubr.bf16.gmra.mrb[172].mxu1 %v1197_v11  ;;  %2888 = vmatprep.mubr.bf16.mxu0 %v1219_v28  ;;  %v1064_v11 = vld [vmem:[%s6240_s12 + $0x410] sm:$0xff] }
 0x247   : > { %3564 = vmatprep.mubr.bf16.mxu1 %v1205_v23  ;;  %v1071_v23 = vld [vmem:[%s6240_s12 + $0x448] sm:$0xff] }
 0x249   : > { %v4798_v36 = vpop.f32.mrb[68].mxu1 }
 0x24a   : > { %v4799_v56 = vpop.f32.mrb[69].mxu1 }
 0x24b   : > { %v6845_v52 = vadd.f32 %v4799_v56, %v4798_v36  ;;  %v4801_v55 = vpop.f32.mrb[70].mxu1  ;;  %v1225_v36 = vpack.c.bf16 %v1071_v23, %v1064_v11 }
 0x24c   : > { %v4802_v4 = vpop.f32.mrb[71].mxu1 }
 0x24d   : > { %v6847_v7 = vadd.f32 %v4802_v4, %v4801_v55  ;;  %2889 = vmatmul.mubr.bf16.gmra.mrb[32].mxu0 %v1218_v0 }
 0x24e   : > { %3565 = vmatmul.mubr.bf16.gmra.mrb[176].mxu1 %v1204_v47  ;;  %2898 = vmatprep.mubr.bf16.mxu0 %v1226_v57  ;;  %v1078_v47 = vld [vmem:[%s6240_s12 + $0x480] sm:$0xff] }
 0x24f   : > { %3572 = vmatprep.mubr.bf16.mxu1 %v1212_v37  ;;  %v1085_v37 = vld [vmem:[%s6240_s12 + $0x4b8] sm:$0xff] }
 0x251   : > { %v4804_v58 = vpop.f32.mrb[72].mxu1 }
 0x252   : > { %v4805_v19 = vpop.f32.mrb[73].mxu1 }
 0x253   : > { %v6853_v56 = vadd.f32 %v4805_v19, %v4804_v58  ;;  %v4807_v53 = vpop.f32.mrb[74].mxu1  ;;  %v1232_v58 = vpack.c.bf16 %v1085_v37, %v1078_v47 }
 0x254   : > { %v4808_v55 = vpop.f32.mrb[75].mxu1 }
 0x255   : > { %v6855_v4 = vadd.f32 %v4808_v55, %v4807_v53  ;;  %2899 = vmatmul.mubr.bf16.gmra.mrb[36].mxu0 %v1225_v36 }
 0x256   : > { %3573 = vmatmul.mubr.bf16.gmra.mrb[180].mxu1 %v1211_v31  ;;  %2908 = vmatprep.mubr.bf16.mxu0 %v1233_v54  ;;  %v1092_v31 = vld [vmem:[%s6240_s12 + $0x4f0] sm:$0xff] }
 0x257   : > { %3580 = vmatprep.mubr.bf16.mxu1 %v1219_v28  ;;  %v1099_v28 = vld [vmem:[%s6240_s12 + $0x528] sm:$0xff] }
 0x259   : > { %v4810_v11 = vpop.f32.mrb[76].mxu1 }
 0x25a   : > { %v4811_v23 = vpop.f32.mrb[77].mxu1 }
 0x25b   : > { %v6861_v19 = vadd.f32 %v4811_v23, %v4810_v11  ;;  %v4813_v49 = vpop.f32.mrb[78].mxu1  ;;  %v1239_v11 = vpack.c.bf16 %v1099_v28, %v1092_v31 }
 0x25c   : > { %v4814_v53 = vpop.f32.mrb[79].mxu1 }
 0x25d   : > { %v6863_v55 = vadd.f32 %v4814_v53, %v4813_v49  ;;  %2909 = vmatmul.mubr.bf16.gmra.mrb[40].mxu0 %v1232_v58 }
 0x25e   : > { %3581 = vmatmul.mubr.bf16.gmra.mrb[184].mxu1 %v1218_v0  ;;  %2918 = vmatprep.mubr.bf16.mxu0 %v1240_v51  ;;  %v1106_v0 = vld [vmem:[%s6240_s12 + $0x560] sm:$0xff] }
 0x25f   : > { %3588 = vmatprep.mubr.bf16.mxu1 %v1226_v57  ;;  %v1113_v57 = vld [vmem:[%s6240_s12 + $0x598] sm:$0xff] }
 0x261   : > { %v4816_v47 = vpop.f32.mrb[80].mxu1 }
 0x262   : > { %v4817_v37 = vpop.f32.mrb[81].mxu1 }
 0x263   : > { %v6869_v23 = vadd.f32 %v4817_v37, %v4816_v47  ;;  %v4819_v41 = vpop.f32.mrb[82].mxu1  ;;  %v1246_v47 = vpack.c.bf16 %v1113_v57, %v1106_v0 }
 0x264   : > { %v4820_v49 = vpop.f32.mrb[83].mxu1 }
 0x265   : > { %v6871_v53 = vadd.f32 %v4820_v49, %v4819_v41  ;;  %2919 = vmatmul.mubr.bf16.gmra.mrb[44].mxu0 %v1239_v11 }
 0x266   : > { %3589 = vmatmul.mubr.bf16.gmra.mrb[188].mxu1 %v1225_v36  ;;  %2928 = vmatprep.mubr.bf16.mxu0 %v1247_v44  ;;  %v1120_v36 = vld [vmem:[%s6240_s12 + $0x5d0] sm:$0xff] }
 0x267   : > { %3596 = vmatprep.mubr.bf16.mxu1 %v1233_v54  ;;  %v1127_v54 = vld [vmem:[%s6240_s12 + $0x608] sm:$0xff] }
 0x268   : > { %v1253_v57 = vpack.c.bf16 %v1127_v54, %v1120_v36  ;;  %v1156_v36 = vld [vmem:[%s6240_s12 + $0x6f0] sm:$0xff] }
 0x269   : > { %v4822_v31 = vpop.f32.mrb[84].mxu1 }
 0x26a   : > { %v4823_v28 = vpop.f32.mrb[85].mxu1 }
 0x26b   : > { %v6877_v37 = vadd.f32 %v4823_v28, %v4822_v31  ;;  %v4825_v38 = vpop.f32.mrb[86].mxu1 }
 0x26c   : > { %v4826_v41 = vpop.f32.mrb[87].mxu1 }
 0x26d   : > { %v6879_v49 = vadd.f32 %v4826_v41, %v4825_v38  ;;  %2929 = vmatmul.mubr.bf16.gmra.mrb[48].mxu0 %v1246_v47  ;;  %v1134_v41 = vld [vmem:[%s6240_s12 + $0x640] sm:$0xff] }
 0x26e   : > { %3597 = vmatmul.mubr.bf16.gmra.mrb[192].mxu1 %v1232_v58  ;;  %2938 = vmatprep.mubr.bf16.mxu0 %v1254_v39  ;;  %v1260_v27 = vpack.c.bf16 %v1141_v18, %v1134_v41 }
 0x26f   : > { %3604 = vmatprep.mubr.bf16.mxu1 %v1240_v51 }
 0x271   : > { %v4844_v20 = vpop.f32.mrb[88].mxu1 }
 0x272   : > { %v4845_v0 = vpop.f32.mrb[89].mxu1 }
 0x273   : > { %v4846_v31 = vadd.f32 %v4845_v0, %v4844_v20  ;;  %v4847_v29 = vpop.f32.mrb[90].mxu1  ;;  %v1268_v0 = vpack.c.bf16 %v1156_v36, %v1149_v15 }
 0x274   : > { %v4848_v28 = vpop.f32.mrb[91].mxu1 }
 0x275   : > { %v6886_v38 = vadd.f32 %v4846_v31, %v6718_v21  ;;  %v4849_v58 = vadd.f32 %v4848_v28, %v4847_v29  ;;  %2939 = vmatmul.mubr.bf16.gmra.mrb[52].mxu0 %v1253_v57  ;;  %v1148_v29 = vld [vmem:[%s6240_s12 + $0x6b0] sm:$0xff]  ;;  %v1155_v28 = vld [vmem:[%s6240_s12 + $0x6e8] sm:$0xff] }
 0x276   : > { %3605 = vmatmul.mubr.bf16.gmra.mrb[196].mxu1 %v1239_v11  ;;  %2948 = vmatprep.mubr.bf16.mxu0 %v1261_v32  ;;  %v1267_v41 = vpack.c.bf16 %v1155_v28, %v1148_v29 }
 0x277   : > { %v6889_v51 = vadd.f32 %v4849_v58, %v6720_v25  ;;  %3612 = vmatprep.mubr.bf16.mxu1 %v1247_v44 }
 0x279   : > { %v4850_v20 = vpop.f32.mrb[92].mxu1 }
 0x27a   : > { %v4851_v26 = vpop.f32.mrb[93].mxu1 }
 0x27b   : > { %v4852_v54 = vadd.f32 %v4851_v26, %v4850_v20  ;;  %v4853_v21 = vpop.f32.mrb[94].mxu1 }
 0x27c   : > { %v4854_v31 = vpop.f32.mrb[95].mxu1 }
 0x27d   : > { %v6896_v11 = vadd.f32 %v4852_v54, %v6726_v42  ;;  %v4855_v25 = vadd.f32 %v4854_v31, %v4853_v21  ;;  %2949 = vmatmul.mubr.bf16.gmra.mrb[56].mxu0 %v1260_v27  ;;  %v947_v54 = vld [vmem:[%s6240_s12 + $0x68] sm:$0xff] }
 0x27e   : > { %3613 = vmatmul.mubr.bf16.gmra.mrb[200].mxu1 %v1246_v47  ;;  %2958 = vmatprep.mubr.bf16.mxu0 %v1268_v0  ;;  %v7423_v47 = vmov 0  }
 0x27f   : > { %v6899_v44 = vadd.f32 %v4855_v25, %v6728_v48  ;;  %3620 = vmatprep.mubr.bf16.mxu1 %v1254_v39  ;;  %v940_v39 = vld [vmem:[%s6240_s12 + $0x30] sm:$0xff] }
 0x280   : > { %v1164_v25 = vpack.c.bf16 %v947_v54, %v940_v39 }
 0x281   : > { %v4856_v18 = vpop.f32.mrb[96].mxu1 }
 0x282   : > { %v4857_v58 = vpop.f32.mrb[97].mxu1 }
 0x283   : > { %v4858_v15 = vadd.f32 %v4857_v58, %v4856_v18  ;;  %v4859_v36 = vpop.f32.mrb[98].mxu1  ;;  %v961_v58 = vld [vmem:[%s6240_s12 + $0xd8] sm:$0xff] }
 0x284   : > { %v4860_v20 = vpop.f32.mrb[99].mxu1 }
 0x285   : > { %v6904_v42 = vadd.f32 %v4858_v15, %v6734_v10  ;;  %v4861_v26 = vadd.f32 %v4860_v20, %v4859_v36  ;;  %2959 = vmatmul.mubr.bf16.gmra.mrb[60].mxu0 %v1267_v41 }
 0x286   : > { %3621 = vmatmul.mubr.bf16.gmra.mrb[204].mxu1 %v1253_v57  ;;  %3001 = vmatprep.mubr.bf16.mxu0 %v7423_v47 }
 0x287   : > { %v6907_v48 = vadd.f32 %v4861_v26, %v6736_v16  ;;  %3628 = vmatprep.mubr.bf16.mxu1 %v1261_v32  ;;  %v954_v32 = vld [vmem:[%s6240_s12 + $0xa0] sm:$0xff] }
 0x288   : > { %v1171_v20 = vpack.c.bf16 %v961_v58, %v954_v32  ;;  %v982_v32 = vld [vmem:[%s6240_s12 + $0x180] sm:$0xff]  ;;  %v989_v58 = vld [vmem:[%s6240_s12 + $0x1b8] sm:$0xff] }
 0x289   : > { %v4862_v21 = vpop.f32.mrb[100].mxu1 }
 0x28a   : > { %v4863_v31 = vpop.f32.mrb[101].mxu1 }
 0x28b   : > { %v4864_v29 = vadd.f32 %v4863_v31, %v4862_v21  ;;  %v4865_v28 = vpop.f32.mrb[102].mxu1  ;;  %v975_v21 = vld [vmem:[%s6240_s12 + $0x148] sm:$0xff] }
 0x28c   : > { %v4866_v10 = vpop.f32.mrb[103].mxu1 }
 0x28d   : > { %v6913_v18 = vadd.f32 %v4864_v29, %v6742_v34  ;;  %v4867_v57 = vadd.f32 %v4866_v10, %v4865_v28  ;;  %3002 = vmatmul.mubr.bf16.vlgmr.msra.gmra.mrb[0].mxu0 %v1164_v25 }
 0x28e   : > { %3629 = vmatmul.mubr.bf16.gmra.mrb[208].mxu1 %v1260_v27  ;;  %3011 = vmatprep.mubr.bf16.mxu0 %v7423_v47 }
 0x28f   : > { %v6916_v16 = vadd.f32 %v4867_v57, %v6744_v45  ;;  %3636 = vmatprep.mubr.bf16.mxu1 %v1268_v0  ;;  %v968_v0 = vld [vmem:[%s6240_s12 + $0x110] sm:$0xff] }
 0x290   : > { %v1178_v28 = vpack.c.bf16 %v975_v21, %v968_v0 }
 0x291   : > { %v4868_v15 = vpop.f32.mrb[104].mxu1 }
 0x292   : > { %v4869_v36 = vpop.f32.mrb[105].mxu1 }
 0x293   : > { %v4870_v26 = vadd.f32 %v4869_v36, %v4868_v15  ;;  %v4871_v39 = vpop.f32.mrb[106].mxu1  ;;  %v996_v15 = vld [vmem:[%s6240_s12 + $0x1f0] sm:$0xff]  ;;  %v1003_v36 = vld [vmem:[%s6240_s12 + $0x228] sm:$0xff] }
 0x294   : > { %v4872_v34 = vpop.f32.mrb[107].mxu1 }
 0x295   : > { %v6922_v54 = vadd.f32 %v4870_v26, %v6754_v40  ;;  %v4873_v27 = vadd.f32 %v4872_v34, %v4871_v39  ;;  %3012 = vmatmul.mubr.bf16.gmra.mrb[4].mxu0 %v1171_v20 }
 0x296   : > { %3637 = vmatmul.mubr.bf16.gmra.mrb[212].mxu1 %v1267_v41  ;;  %3021 = vmatprep.mubr.bf16.mxu0 %v7423_v47 }
 0x297   : > { %v6925_v45 = vadd.f32 %v4873_v27, %v6758_v24  ;;  %5092 = vmatprep.mubr.bf16.mxu1 %v1164_v25 }
 0x299   : > { %v4874_v31 = vpop.f32.mrb[108].mxu1 }
 0x29a   : > { %v4875_v29 = vpop.f32.mrb[109].mxu1 }
 0x29b   : > { %v4876_v40 = vadd.f32 %v4875_v29, %v4874_v31  ;;  %v4877_v10 = vpop.f32.mrb[110].mxu1  ;;  %v1010_v29 = vld [vmem:[%s6240_s12 + $0x260] sm:$0xff] }
 0x29c   : > { %v4878_v57 = vpop.f32.mrb[111].mxu1 }
 0x29d   : > { %v6931_v41 = vadd.f32 %v4876_v40, %v6769_v8  ;;  %v4879_v24 = vadd.f32 %v4878_v57, %v4877_v10  ;;  %3022 = vmatmul.mubr.bf16.gmra.mrb[8].mxu0 %v1178_v28  ;;  %v1185_v8 = vpack.c.bf16 %v989_v58, %v982_v32  ;;  %v1024_v40 = vld [vmem:[%s6240_s12 + $0x2d0] sm:$0xff]  ;;  %v1031_v10 = vld [vmem:[%s6240_s12 + $0x308] sm:$0xff] }
 0x29e   : > { %5093 = vmatmul.mubr.bf16.vlgmr.msra.gmra.mrb[216].mxu1 %v1171_v20  ;;  %3031 = vmatprep.mubr.bf16.mxu0 %v7423_v47  ;;  %v1192_v20 = vpack.c.bf16 %v1003_v36, %v996_v15  ;;  %v1206_v15 = vpack.c.bf16 %v1031_v10, %v1024_v40 }
 0x29f   : > { %v6934_v25 = vadd.f32 %v4879_v24, %v6775_v5  ;;  %5096 = vmatprep.mubr.bf16.mxu1 %v1178_v28  ;;  %v1017_v28 = vld [vmem:[%s6240_s12 + $0x298] sm:$0xff] }
 0x2a1   : > { %v4880_v26 = vpop.f32.mrb[112].mxu1 }
 0x2a2   : > { %v4881_v39 = vpop.f32.mrb[113].mxu1 }
 0x2a3   : > { %v4882_v34 = vadd.f32 %v4881_v39, %v4880_v26  ;;  %v4883_v27 = vpop.f32.mrb[114].mxu1 }
 0x2a4   : > { %v4884_v0 = vpop.f32.mrb[115].mxu1 }
 0x2a5   : > { %v6942_v5 = vadd.f32 %v4882_v34, %v6790_v50  ;;  %v4885_v21 = vadd.f32 %v4884_v0, %v4883_v27  ;;  %3032 = vmatmul.mubr.bf16.gmra.mrb[12].mxu0 %v1185_v8  ;;  %v1199_v50 = vpack.c.bf16 %v1017_v28, %v1010_v29  ;;  %v1045_v34 = vld [vmem:[%s6240_s12 + $0x378] sm:$0xff]  ;;  %v1052_v27 = vld [vmem:[%s6240_s12 + $0x3b0] sm:$0xff]  ;;  %v1059_v0 = vld [vmem:[%s6240_s12 + $0x3e8] sm:$0xff] }
 0x2a6   : > { %5097 = vmatmul.mubr.bf16.gmra.mrb[220].mxu1 %v1185_v8  ;;  %3041 = vmatprep.mubr.bf16.mxu0 %v7423_v47  ;;  %v1038_v8 = vld [vmem:[%s6240_s12 + $0x340] sm:$0xff]  ;;  %v1220_v10 = vpack.c.bf16 %v1059_v0, %v1052_v27 }
 0x2a7   : > { %v6945_v31 = vadd.f32 %v4885_v21, %v6792_v14  ;;  %5100 = vmatprep.mubr.bf16.mxu1 %v1192_v20  ;;  %v1213_v28 = vpack.c.bf16 %v1045_v34, %v1038_v8 }
 0x2a9   : > { %v4886_v57 = vpop.f32.mrb[116].mxu1 }
 0x2aa   : > { %v4887_v24 = vpop.f32.mrb[117].mxu1 }
 0x2ab   : > { %v4888_v32 = vadd.f32 %v4887_v24, %v4886_v57  ;;  %v4889_v58 = vpop.f32.mrb[118].mxu1 }
 0x2ac   : > { %v4890_v36 = vpop.f32.mrb[119].mxu1 }
 0x2ad   : > { %v6953_v14 = vadd.f32 %v4888_v32, %v6806_v2  ;;  %v4891_v26 = vadd.f32 %v4890_v36, %v4889_v58  ;;  %3042 = vmatmul.mubr.bf16.gmra.mrb[16].mxu0 %v1192_v20  ;;  %v1066_v32 = vld [vmem:[%s6240_s12 + $0x420] sm:$0xff]  ;;  %v1073_v58 = vld [vmem:[%s6240_s12 + $0x458] sm:$0xff] }
 0x2ae   : > { %5101 = vmatmul.mubr.bf16.gmra.mrb[224].mxu1 %v1199_v50  ;;  %3051 = vmatprep.mubr.bf16.mxu0 %v7423_v47  ;;  %v1227_v8 = vpack.c.bf16 %v1073_v58, %v1066_v32 }
 0x2af   : > { %v6956_v39 = vadd.f32 %v4891_v26, %v6808_v35  ;;  %5104 = vmatprep.mubr.bf16.mxu1 %v1206_v15 }
 0x2b1   : > { %v4892_v21 = vpop.f32.mrb[120].mxu1 }
 0x2b2   : > { %v4893_v29 = vpop.f32.mrb[121].mxu1 }
 0x2b3   : > { %v4894_v2 = vadd.f32 %v4893_v29, %v4892_v21  ;;  %v4895_v40 = vpop.f32.mrb[122].mxu1 }
 0x2b4   : > { %v4896_v20 = vpop.f32.mrb[123].mxu1 }
 0x2b5   : > { %v6964_v57 = vadd.f32 %v4894_v2, %v6819_v22  ;;  %v4897_v35 = vadd.f32 %v4896_v20, %v4895_v40  ;;  %3052 = vmatmul.mubr.bf16.gmra.mrb[20].mxu0 %v1199_v50 }
 0x2b6   : > { %5105 = vmatmul.mubr.bf16.gmra.mrb[228].mxu1 %v1213_v28  ;;  %3061 = vmatprep.mubr.bf16.mxu0 %v7423_v47 }
 0x2b7   : > { %v6967_v24 = vadd.f32 %v4897_v35, %v6821_v33  ;;  %5108 = vmatprep.mubr.bf16.mxu1 %v1220_v10 }
 0x2b9   : > { %v4898_v36 = vpop.f32.mrb[124].mxu1 }
 0x2ba   : > { %v4899_v26 = vpop.f32.mrb[125].mxu1 }
 0x2bb   : > { %v4900_v34 = vadd.f32 %v4899_v26, %v4898_v36  ;;  %v4901_v27 = vpop.f32.mrb[126].mxu1 }
 0x2bc   : > { %v4902_v0 = vpop.f32.mrb[127].mxu1 }
 0x2bd   : > { %v6973_v22 = vadd.f32 %v4900_v34, %v6829_v60  ;;  %v4903_v21 = vadd.f32 %v4902_v0, %v4901_v27  ;;  %3062 = vmatmul.mubr.bf16.gmra.mrb[24].mxu0 %v1206_v15 }
 0x2be   : > { %5109 = vmatmul.mubr.bf16.gmra.mrb[232].mxu1 %v1227_v8  ;;  %3071 = vmatprep.mubr.bf16.mxu0 %v7423_v47 }
 0x2bf   : > { %v6976_v33 = vadd.f32 %v4903_v21, %v6831_v12  ;;  %5112 = vmatprep.mubr.bf16.mxu1 %v6376_v6 }
 0x2c1   : > { %v4904_v50 = vpop.f32.mrb[128].mxu1 }
 0x2c2   : > { %v4905_v29 = vpop.f32.mrb[129].mxu1 }
 0x2c3   : > { %v4906_v2 = vadd.f32 %v4905_v29, %v4904_v50  ;;  %v4907_v40 = vpop.f32.mrb[130].mxu1 }
 0x2c4   : > { %v4908_v20 = vpop.f32.mrb[131].mxu1 }
 0x2c5   : > { %v6981_v35 = vadd.f32 %v4906_v2, %v6837_v62  ;;  %v4909_v60 = vadd.f32 %v4908_v20, %v4907_v40  ;;  %3072 = vmatmul.mubr.bf16.gmra.mrb[28].mxu0 %v1213_v28 }
 0x2c6   : > { %5113 = vmatmul.mubr.bf16.gmra.mrb[236].mxu1 %v6390_v17  ;;  %3081 = vmatprep.mubr.bf16.mxu0 %v7423_v47 }
 0x2c7   : > { %v6985_v15 = vadd.f32 %v4909_v60, %v6839_v46  ;;  %5116 = vmatprep.mubr.bf16.mxu1 %v6406_v30 }
 0x2c9   : > { %v4910_v6 = vpop.f32.mrb[132].mxu1 }
 0x2ca   : > { %v4911_v12 = vpop.f32.mrb[133].mxu1 }
 0x2cb   : > { %v4912_v32 = vadd.f32 %v4911_v12, %v4910_v6  ;;  %v4913_v58 = vpop.f32.mrb[134].mxu1 }
 0x2cc   : > { %v4914_v36 = vpop.f32.mrb[135].mxu1 }
 0x2cd   : > { %v6990_v26 = vadd.f32 %v4912_v32, %v6845_v52  ;;  %v4915_v62 = vadd.f32 %v4914_v36, %v4913_v58  ;;  %3082 = vmatmul.mubr.bf16.gmra.mrb[32].mxu0 %v1220_v10 }
 0x2ce   : > { %5117 = vmatmul.mubr.bf16.gmra.mrb[240].mxu1 %v6423_v43  ;;  %3091 = vmatprep.mubr.bf16.mxu0 %v7423_v47 }
 0x2cf   : > { %v6994_v17 = vadd.f32 %v4915_v62, %v6847_v7  ;;  %5120 = vmatprep.mubr.bf16.mxu1 %v6441_v59 }
 0x2d1   : > { %v4916_v30 = vpop.f32.mrb[136].mxu1 }
 0x2d2   : > { %v4917_v46 = vpop.f32.mrb[137].mxu1 }
 0x2d3   : > { %v4918_v28 = vadd.f32 %v4917_v46, %v4916_v30  ;;  %v4919_v34 = vpop.f32.mrb[138].mxu1 }
 0x2d4   : > { %v4920_v27 = vpop.f32.mrb[139].mxu1 }
 0x2d5   : > { %v6999_v0 = vadd.f32 %v4918_v28, %v6853_v56  ;;  %v4921_v52 = vadd.f32 %v4920_v27, %v4919_v34  ;;  %3092 = vmatmul.mubr.bf16.gmra.mrb[36].mxu0 %v1227_v8 }
 0x2d6   : > { %5121 = vmatmul.mubr.bf16.gmra.mrb[244].mxu1 %v6455_v9 }
 0x2d7   : > { %v7003_v43 = vadd.f32 %v4921_v52, %v6855_v4 }
 0x2d9   : > { %v4922_v7 = vpop.f32.mrb[140].mxu1 }
 0x2da   : > { %v4923_v10 = vpop.f32.mrb[141].mxu1 }
 0x2db   : > { %v4924_v47 = vadd.f32 %v4923_v10, %v4922_v7  ;;  %v4925_v21 = vpop.f32.mrb[142].mxu1 }
 0x2dc   : > { %v4926_v59 = vpop.f32.mrb[143].mxu1 }
 0x2dd   : > { %v7006_v50 = vadd.f32 %v4924_v47, %v6861_v19  ;;  %v4927_v29 = vadd.f32 %v4926_v59, %v4925_v21 }
 0x2df   : > { %v7009_v2 = vadd.f32 %v4927_v29, %v6863_v55 }
 0x2e1   : > { %v4928_v56 = vpop.f32.mrb[144].mxu1 }
 0x2e2   : > { %v4929_v40 = vpop.f32.mrb[145].mxu1 }
 0x2e3   : > { %v4930_v8 = vadd.f32 %v4929_v40, %v4928_v56  ;;  %v4931_v20 = vpop.f32.mrb[146].mxu1 }
 0x2e4   : > { %v4932_v9 = vpop.f32.mrb[147].mxu1 }
 0x2e5   : > { %v7012_v4 = vadd.f32 %v4930_v8, %v6869_v23  ;;  %v4933_v60 = vadd.f32 %v4932_v9, %v4931_v20 }
 0x2e7   : > { %v7015_v6 = vadd.f32 %v4933_v60, %v6871_v53 }
 0x2e9   : > { %v4934_v12 = vpop.f32.mrb[148].mxu1 }
 0x2ea   : > { %v4935_v32 = vpop.f32.mrb[149].mxu1 }
 0x2eb   : > { %v4936_v19 = vadd.f32 %v4935_v32, %v4934_v12  ;;  %v4937_v58 = vpop.f32.mrb[150].mxu1 }
 0x2ec   : > { %v4938_v36 = vpop.f32.mrb[151].mxu1 }
 0x2ed   : > { %v7018_v55 = vadd.f32 %v4936_v19, %v6877_v37  ;;  %v4939_v62 = vadd.f32 %v4938_v36, %v4937_v58 }
 0x2ef   : > { %v7021_v30 = vadd.f32 %v4939_v62, %v6879_v49 }
 0x2f1   : > { %v4956_v46 = vpop.f32.mrb[152].mxu1 }
 0x2f2   : > { %v4957_v28 = vpop.f32.mrb[153].mxu1 }
 0x2f3   : > { %v4958_v23 = vadd.f32 %v4957_v28, %v4956_v46  ;;  %v4959_v34 = vpop.f32.mrb[154].mxu1 }
 0x2f4   : > { %v4960_v27 = vpop.f32.mrb[155].mxu1 }
 0x2f5   : > { %v4961_v52 = vadd.f32 %v4960_v27, %v4959_v34  ;;  %v7024_v53 = vadd.f32 %v4958_v23, %v6886_v38 }
 0x2f7   : > { %v7027_v7 = vadd.f32 %v4961_v52, %v6889_v51 }
 0x2f9   : > { %v4962_v10 = vpop.f32.mrb[156].mxu1 }
 0x2fa   : > { %v4963_v47 = vpop.f32.mrb[157].mxu1 }
 0x2fb   : > { %v4964_v37 = vadd.f32 %v4963_v47, %v4962_v10  ;;  %v4965_v21 = vpop.f32.mrb[158].mxu1 }
 0x2fc   : > { %v4966_v59 = vpop.f32.mrb[159].mxu1 }
 0x2fd   : > { %v4967_v29 = vadd.f32 %v4966_v59, %v4965_v21  ;;  %v7030_v49 = vadd.f32 %v4964_v37, %v6896_v11 }
 0x2ff   : > { %v7033_v56 = vadd.f32 %v4967_v29, %v6899_v44 }
 0x301   : > { %v4968_v40 = vpop.f32.mrb[160].mxu1 }
 0x302   : > { %v4969_v8 = vpop.f32.mrb[161].mxu1 }
 0x303   : > { %v4970_v20 = vadd.f32 %v4969_v8, %v4968_v40  ;;  %v4971_v38 = vpop.f32.mrb[162].mxu1 }
 0x304   : > { %v4972_v9 = vpop.f32.mrb[163].mxu1 }
 0x305   : > { %v4973_v60 = vadd.f32 %v4972_v9, %v4971_v38  ;;  %v7036_v51 = vadd.f32 %v4970_v20, %v6904_v42 }
 0x307   : > { %v7039_v12 = vadd.f32 %v4973_v60, %v6907_v48 }
 0x309   : > { %v4974_v32 = vpop.f32.mrb[164].mxu1 }
 0x30a   : > { %v4975_v19 = vpop.f32.mrb[165].mxu1 }
 0x30b   : > { %v4976_v58 = vadd.f32 %v4975_v19, %v4974_v32  ;;  %v4977_v11 = vpop.f32.mrb[166].mxu1 }
 0x30c   : > { %v4978_v36 = vpop.f32.mrb[167].mxu1 }
 0x30d   : > { %v4979_v62 = vadd.f32 %v4978_v36, %v4977_v11  ;;  %v7042_v44 = vadd.f32 %v4976_v58, %v6913_v18 }
 0x30f   : > { %v7045_v46 = vadd.f32 %v4979_v62, %v6916_v16 }
 0x311   : > { %v4980_v28 = vpop.f32.mrb[168].mxu1 }
 0x312   : > { %v4981_v23 = vpop.f32.mrb[169].mxu1 }
 0x313   : > { %v4982_v34 = vadd.f32 %v4981_v23, %v4980_v28  ;;  %v4983_v42 = vpop.f32.mrb[170].mxu1  ;;  %v898_v23 = vld [vmem:[#allocation2 + $0x1e0] sm:$0xff] }
 0x314   : > { %v4984_v27 = vpop.f32.mrb[171].mxu1 }
 0x315   : > { %v4985_v52 = vadd.f32 %v4984_v27, %v4983_v42  ;;  %v7048_v48 = vadd.f32 %v4982_v34, %v6922_v54  ;;  %v899_v27 = vld [vmem:[#allocation2 + $0x1e8] sm:$0xff] }
 0x317   : > { %v7051_v10 = vadd.f32 %v4985_v52, %v6925_v45 }
 0x319   : > { %v4986_v47 = vpop.f32.mrb[172].mxu1 }
 0x31a   : > { %v4987_v37 = vpop.f32.mrb[173].mxu1 }
 0x31b   : > { %v4988_v21 = vadd.f32 %v4987_v37, %v4986_v47  ;;  %v4989_v18 = vpop.f32.mrb[174].mxu1 }
 0x31c   : > { %v4990_v59 = vpop.f32.mrb[175].mxu1 }
 0x31d   : > { %v4991_v29 = vadd.f32 %v4990_v59, %v4989_v18  ;;  %v7054_v16 = vadd.f32 %v4988_v21, %v6931_v41  ;;  %v901_v21 = vld [vmem:[#allocation2 + $0x1f8] sm:$0xff] }
 0x31f   : > { %v7057_v40 = vadd.f32 %v4991_v29, %v6934_v25 }
 0x321   : > { %v4992_v8 = vpop.f32.mrb[176].mxu1 }
 0x322   : > { %v4993_v20 = vpop.f32.mrb[177].mxu1 }
 0x323   : > { %v4994_v38 = vadd.f32 %v4993_v20, %v4992_v8  ;;  %v4995_v54 = vpop.f32.mrb[178].mxu1  ;;  %v902_v8 = vld [vmem:[#allocation2 + $0x200] sm:$0xff] }
 0x324   : > { %v4996_v9 = vpop.f32.mrb[179].mxu1 }
 0x325   : > { %v4997_v60 = vadd.f32 %v4996_v9, %v4995_v54  ;;  %v7060_v45 = vadd.f32 %v4994_v38, %v6942_v5 }
 0x327   : > { %v7063_v32 = vadd.f32 %v4997_v60, %v6945_v31 }
 0x329   : > { %v4998_v19 = vpop.f32.mrb[180].mxu1 }
 0x32a   : > { %v4999_v58 = vpop.f32.mrb[181].mxu1 }
 0x32b   : > { %v5000_v11 = vadd.f32 %v4999_v58, %v4998_v19  ;;  %v5001_v41 = vpop.f32.mrb[182].mxu1 }
 0x32c   : > { %v5002_v36 = vpop.f32.mrb[183].mxu1 }
 0x32d   : > { %v5003_v62 = vadd.f32 %v5002_v36, %v5001_v41  ;;  %v7066_v25 = vadd.f32 %v5000_v11, %v6953_v14  ;;  %v905_v36 = vld [vmem:[#allocation2 + $0x218] sm:$0xff] }
 0x32f   : > { %v7069_v28 = vadd.f32 %v5003_v62, %v6956_v39 }
 0x330   : > { %v2910_v34 = vpop.f32.mrb[40].mxu0 }
 0x331   : > { %v5004_v42 = vpop.f32.mrb[184].mxu1  ;;  %v5140_v5 = vadd.f32 %v6640_v61, %v2910_v34  ;;  %v2912_v31 = vpop.f32.mrb[41].mxu0 }
 0x332   : > { %v5005_v52 = vpop.f32.mrb[185].mxu1  ;;  %v5141_v47 = vadd.f32 %v6643_v63, %v2912_v31  ;;  %v2914_v18 = vpop.f32.mrb[42].mxu0 }
 0x333   : > { %v5006_v37 = vadd.f32 %v5005_v52, %v5004_v42  ;;  %v5007_v59 = vpop.f32.mrb[186].mxu1  ;;  %v3866_v29 = vadd.f32 %v5140_v5, %v898_v23  ;;  %v5142_v14 = vadd.f32 %v6645_v1, %v2914_v18  ;;  %v2916_v39 = vpop.f32.mrb[43].mxu0  ;;  %v904_v1 = vld [vmem:[#allocation2 + $0x210] sm:$0xff]  ;;  %v7424_v23 = vld [vmem:[#allocation4_spill] sm:$0xff]  ;;  %v907_v42 = vld [vmem:[#allocation2 + $0x228] sm:$0xff] }
 0x334   : > { %v5008_v20 = vpop.f32.mrb[187].mxu1  ;;  %v3867_v38 = vadd.f32 %v5141_v47, %v899_v27  ;;  %v5143_v54 = vadd.f32 %v6647_v3, %v2916_v39  ;;  %v7425_v52 = vld [vmem:[#allocation5_spill] sm:$0xff]  ;;  %v908_v47 = vld [vmem:[#allocation2 + $0x230] sm:$0xff] }
 0x335   : > { %v5009_v9 = vadd.f32 %v5008_v20, %v5007_v59  ;;  %v7076_v61 = vadd.f32 %v5006_v37, %v6964_v57  ;;  %3962 = vst [vmem:[#allocation2 + $0x1e0] sm:$0xff] %v3866_v29  ;;  %v3869_v60 = vadd.f32 %v5142_v14, %v901_v21  ;;  %v7426_v59 = vld [vmem:[#allocation6_spill] sm:$0xff] }
 0x336   : > { %3963 = vst [vmem:[#allocation2 + $0x1e8] sm:$0xff] %v3867_v38  ;;  %v3870_v63 = vadd.f32 %v5143_v54, %v902_v8  ;;  %v910_v38 = vld [vmem:[#allocation2 + $0x240] sm:$0xff] }
 0x337   : > { %v7079_v19 = vadd.f32 %v5009_v9, %v6967_v24  ;;  %3965 = vst [vmem:[#allocation2 + $0x1f8] sm:$0xff] %v3869_v60  ;;  %v7427_v60 = vld [vmem:[#allocation7_spill] sm:$0xff] }
 0x338   : > { %3966 = vst [vmem:[#allocation2 + $0x200] sm:$0xff] %v3870_v63  ;;  %v2920_v58 = vpop.f32.mrb[44].mxu0 }
 0x339   : > { %v5010_v11 = vpop.f32.mrb[188].mxu1  ;;  %v5144_v41 = vadd.f32 %v6656_v13, %v2920_v58  ;;  %v2922_v3 = vpop.f32.mrb[45].mxu0 }
 0x33a   : > { %v5011_v62 = vpop.f32.mrb[189].mxu1  ;;  %v5145_v57 = vadd.f32 %v7424_v23, %v2922_v3  ;;  %v2924_v5 = vpop.f32.mrb[46].mxu0  ;;  %v913_v3 = vld [vmem:[#allocation2 + $0x258] sm:$0xff] }
 0x33b   : > { %v5012_v34 = vadd.f32 %v5011_v62, %v5010_v11  ;;  %v5013_v27 = vpop.f32.mrb[190].mxu1  ;;  %v3872_v31 = vadd.f32 %v5144_v41, %v904_v1  ;;  %v5146_v24 = vadd.f32 %v7425_v52, %v2924_v5  ;;  %v2926_v37 = vpop.f32.mrb[47].mxu0  ;;  %v911_v1 = vld [vmem:[#allocation2 + $0x248] sm:$0xff]  ;;  %v7428_v41 = vld [vmem:[#allocation8_spill] sm:$0xff]  ;;  %v7430_v52 = vld [vmem:[#allocation10_spill] sm:$0xff] }
 0x33c   : > { %v5014_v21 = vpop.f32.mrb[191].mxu1  ;;  %v3873_v18 = vadd.f32 %v5145_v57, %v905_v36  ;;  %v5147_v29 = vadd.f32 %v7426_v59, %v2926_v37 }
 0x33d   : > { %v5015_v14 = vadd.f32 %v5014_v21, %v5013_v27  ;;  %v7086_v13 = vadd.f32 %v5012_v34, %v6973_v22  ;;  %3968 = vst [vmem:[#allocation2 + $0x210] sm:$0xff] %v3872_v31  ;;  %v3875_v8 = vadd.f32 %v5146_v24, %v907_v42  ;;  %v7429_v34 = vld [vmem:[#allocation9_spill] sm:$0xff]  ;;  %v914_v42 = vld [vmem:[#allocation2 + $0x260] sm:$0xff] }
 0x33e   : > { %3969 = vst [vmem:[#allocation2 + $0x218] sm:$0xff] %v3873_v18  ;;  %v3876_v39 = vadd.f32 %v5147_v29, %v908_v47  ;;  %v916_v29 = vld [vmem:[#allocation2 + $0x270] sm:$0xff] }
 0x33f   : > { %v7089_v20 = vadd.f32 %v5015_v14, %v6976_v33  ;;  %3971 = vst [vmem:[#allocation2 + $0x228] sm:$0xff] %v3875_v8 }
 0x340   : > { %3972 = vst [vmem:[#allocation2 + $0x230] sm:$0xff] %v3876_v39  ;;  %v2930_v54 = vpop.f32.mrb[48].mxu0  ;;  %v7431_v39 = vld [vmem:[#allocation11_spill] sm:$0xff] }
 0x341   : > { %v5016_v9 = vpop.f32.mrb[192].mxu1  ;;  %v5148_v63 = vadd.f32 %v7427_v60, %v2930_v54  ;;  %v2932_v58 = vpop.f32.mrb[49].mxu0  ;;  %v917_v54 = vld [vmem:[#allocation2 + $0x278] sm:$0xff] }
 0x342   : > { %v5017_v11 = vpop.f32.mrb[193].mxu1  ;;  %v5149_v22 = vadd.f32 %v7428_v41, %v2932_v58  ;;  %v2934_v62 = vpop.f32.mrb[50].mxu0  ;;  %v919_v58 = vld [vmem:[#allocation2 + $0x288] sm:$0xff] }
 0x343   : > { %v5018_v36 = vadd.f32 %v5017_v11, %v5016_v9  ;;  %v5019_v23 = vpop.f32.mrb[194].mxu1  ;;  %v3878_v57 = vadd.f32 %v5148_v63, %v910_v38  ;;  %v5150_v33 = vadd.f32 %v7429_v34, %v2934_v62  ;;  %v2936_v5 = vpop.f32.mrb[51].mxu0  ;;  %v7432_v63 = vld [vmem:[#allocation12_spill] sm:$0xff]  ;;  %v7434_v34 = vld [vmem:[#allocation14_spill] sm:$0xff] }
 0x344   : > { %v5020_v27 = vpop.f32.mrb[195].mxu1  ;;  %v3879_v31 = vadd.f32 %v5149_v22, %v911_v1  ;;  %v5151_v24 = vadd.f32 %v7430_v52, %v2936_v5 }
 0x345   : > { %v5021_v47 = vadd.f32 %v5020_v27, %v5019_v23  ;;  %v7096_v37 = vadd.f32 %v5018_v36, %v6981_v35  ;;  %3974 = vst [vmem:[#allocation2 + $0x240] sm:$0xff] %v3878_v57  ;;  %v3881_v21 = vadd.f32 %v5150_v33, %v913_v3  ;;  %v7433_v36 = vld [vmem:[#allocation13_spill] sm:$0xff]  ;;  %v920_v3 = vld [vmem:[#allocation2 + $0x290] sm:$0xff] }
 0x346   : > { %3975 = vst [vmem:[#allocation2 + $0x248] sm:$0xff] %v3879_v31  ;;  %v3882_v18 = vadd.f32 %v5151_v24, %v914_v42  ;;  %v922_v24 = vld [vmem:[#allocation2 + $0x2a0] sm:$0xff] }
 0x347   : > { %v7099_v59 = vadd.f32 %v5021_v47, %v6985_v15  ;;  %3977 = vst [vmem:[#allocation2 + $0x258] sm:$0xff] %v3881_v21 }
 0x348   : > { %3978 = vst [vmem:[#allocation2 + $0x260] sm:$0xff] %v3882_v18  ;;  %v2940_v14 = vpop.f32.mrb[52].mxu0  ;;  %v7435_v18 = vld [vmem:[#allocation15_spill] sm:$0xff] }
 0x349   : > { %v5022_v8 = vpop.f32.mrb[196].mxu1  ;;  %v5152_v38 = vadd.f32 %v7431_v39, %v2940_v14  ;;  %v2942_v9 = vpop.f32.mrb[53].mxu0  ;;  %v923_v14 = vld [vmem:[#allocation2 + $0x2a8] sm:$0xff] }
 0x34a   : > { %v5023_v60 = vpop.f32.mrb[197].mxu1  ;;  %v5153_v35 = vadd.f32 %v7432_v63, %v2942_v9  ;;  %v2944_v11 = vpop.f32.mrb[54].mxu0  ;;  %v925_v9 = vld [vmem:[#allocation2 + $0x2b8] sm:$0xff] }
 0x34b   : > { %v5024_v1 = vadd.f32 %v5023_v60, %v5022_v8  ;;  %v5025_v41 = vpop.f32.mrb[198].mxu1  ;;  %v3884_v22 = vadd.f32 %v5152_v38, %v916_v29  ;;  %v5154_v15 = vadd.f32 %v7433_v36, %v2944_v11  ;;  %v2946_v62 = vpop.f32.mrb[55].mxu0  ;;  %v7436_v38 = vld [vmem:[#allocation16_spill] sm:$0xff]  ;;  %v7438_v36 = vld [vmem:[#allocation18_spill] sm:$0xff] }
 0x34c   : > { %v5026_v23 = vpop.f32.mrb[199].mxu1  ;;  %v3885_v57 = vadd.f32 %v5153_v35, %v917_v54  ;;  %v5155_v33 = vadd.f32 %v7434_v34, %v2946_v62 }
 0x34d   : > { %v5027_v42 = vadd.f32 %v5026_v23, %v5025_v41  ;;  %v7106_v5 = vadd.f32 %v5024_v1, %v6990_v26  ;;  %3980 = vst [vmem:[#allocation2 + $0x270] sm:$0xff] %v3884_v22  ;;  %v3887_v27 = vadd.f32 %v5154_v15, %v919_v58  ;;  %v7437_v1 = vld [vmem:[#allocation17_spill] sm:$0xff]  ;;  %v926_v58 = vld [vmem:[#allocation2 + $0x2c0] sm:$0xff] }
 0x34e   : > { %3981 = vst [vmem:[#allocation2 + $0x278] sm:$0xff] %v3885_v57  ;;  %v3888_v31 = vadd.f32 %v5155_v33, %v920_v3  ;;  %v928_v33 = vld [vmem:[#allocation2 + $0x2d0] sm:$0xff] }
 0x34f   : > { %v7109_v52 = vadd.f32 %v5027_v42, %v6994_v17  ;;  %3983 = vst [vmem:[#allocation2 + $0x288] sm:$0xff] %v3887_v27 }
 0x350   : > { %3984 = vst [vmem:[#allocation2 + $0x290] sm:$0xff] %v3888_v31  ;;  %v2950_v47 = vpop.f32.mrb[56].mxu0  ;;  %v7439_v31 = vld [vmem:[#allocation19_spill] sm:$0xff] }
 0x351   : > { %v5028_v21 = vpop.f32.mrb[200].mxu1  ;;  %v5156_v29 = vadd.f32 %v7435_v18, %v2950_v47  ;;  %v2952_v8 = vpop.f32.mrb[57].mxu0  ;;  %v929_v47 = vld [vmem:[#allocation2 + $0x2d8] sm:$0xff] }
 0x352   : > { %v5029_v39 = vpop.f32.mrb[201].mxu1  ;;  %v5157_v26 = vadd.f32 %v7436_v38, %v2952_v8  ;;  %v2954_v60 = vpop.f32.mrb[58].mxu0  ;;  %v931_v8 = vld [vmem:[#allocation2 + $0x2e8] sm:$0xff] }
 0x353   : > { %v5030_v54 = vadd.f32 %v5029_v39, %v5028_v21  ;;  %v5031_v63 = vpop.f32.mrb[202].mxu1  ;;  %v3890_v35 = vadd.f32 %v5156_v29, %v922_v24  ;;  %v5158_v17 = vadd.f32 %v7437_v1, %v2954_v60  ;;  %v2956_v11 = vpop.f32.mrb[59].mxu0  ;;  %v7440_v29 = vld [vmem:[#allocation20_spill] sm:$0xff]  ;;  %v7442_v1 = vld [vmem:[#allocation22_spill] sm:$0xff] }
 0x354   : > { %v5032_v41 = vpop.f32.mrb[203].mxu1  ;;  %v3891_v22 = vadd.f32 %v5157_v26, %v923_v14  ;;  %v5159_v15 = vadd.f32 %v7438_v36, %v2956_v11  ;;  %v838_v36 = vld [vmem:[#allocation2] sm:$0xff] }
 0x355   : > { %v5033_v3 = vadd.f32 %v5032_v41, %v5031_v63  ;;  %v7116_v62 = vadd.f32 %v5030_v54, %v6999_v0  ;;  %3986 = vst [vmem:[#allocation2 + $0x2a0] sm:$0xff] %v3890_v35  ;;  %v3893_v23 = vadd.f32 %v5158_v17, %v925_v9  ;;  %v7441_v54 = vld [vmem:[#allocation21_spill] sm:$0xff]  ;;  %v932_v9 = vld [vmem:[#allocation2 + $0x2f0] sm:$0xff] }
 0x356   : > { %3987 = vst [vmem:[#allocation2 + $0x2a8] sm:$0xff] %v3891_v22  ;;  %v3894_v57 = vadd.f32 %v5159_v15, %v926_v58 }
 0x357   : > { %v7119_v34 = vadd.f32 %v5033_v3, %v7003_v43  ;;  %3989 = vst [vmem:[#allocation2 + $0x2b8] sm:$0xff] %v3893_v23  ;;  %v839_v3 = vld [vmem:[#allocation2 + $0x8] sm:$0xff] }
 0x358   : > { %3990 = vst [vmem:[#allocation2 + $0x2c0] sm:$0xff] %v3894_v57  ;;  %v2960_v42 = vpop.f32.mrb[60].mxu0 }
 0x359   : > { %v5034_v27 = vpop.f32.mrb[204].mxu1  ;;  %v5160_v24 = vadd.f32 %v7439_v31, %v2960_v42  ;;  %v2962_v21 = vpop.f32.mrb[61].mxu0 }
 0x35a   : > { %v5035_v18 = vpop.f32.mrb[205].mxu1  ;;  %v5161_v0 = vadd.f32 %v7440_v29, %v2962_v21  ;;  %v2964_v39 = vpop.f32.mrb[62].mxu0 }
 0x35b   : > { %v5036_v14 = vadd.f32 %v5035_v18, %v5034_v27  ;;  %v5037_v38 = vpop.f32.mrb[206].mxu1  ;;  %v3896_v26 = vadd.f32 %v5160_v24, %v928_v33  ;;  %v5162_v43 = vadd.f32 %v7441_v54, %v2964_v39  ;;  %v2966_v60 = vpop.f32.mrb[63].mxu0  ;;  %v841_v33 = vld [vmem:[#allocation2 + $0x18] sm:$0xff]  ;;  %v842_v24 = vld [vmem:[#allocation2 + $0x20] sm:$0xff] }
 0x35c   : > { %v5038_v63 = vpop.f32.mrb[207].mxu1  ;;  %v3897_v35 = vadd.f32 %v5161_v0, %v929_v47  ;;  %v5163_v17 = vadd.f32 %v7442_v1, %v2966_v60  ;;  %v845_v54 = vld [vmem:[#allocation2 + $0x38] sm:$0xff]  ;;  %v847_v60 = vld [vmem:[#allocation2 + $0x48] sm:$0xff] }
 0x35d   : > { %v5039_v58 = vadd.f32 %v5038_v63, %v5037_v38  ;;  %v7126_v11 = vadd.f32 %v5036_v14, %v7006_v50  ;;  %3992 = vst [vmem:[#allocation2 + $0x2d0] sm:$0xff] %v3896_v26  ;;  %v3899_v41 = vadd.f32 %v5162_v43, %v931_v8  ;;  %v844_v38 = vld [vmem:[#allocation2 + $0x30] sm:$0xff] }
 0x35e   : > { %3993 = vst [vmem:[#allocation2 + $0x2d8] sm:$0xff] %v3897_v35  ;;  %v3900_v22 = vadd.f32 %v5163_v17, %v932_v9  ;;  %v848_v17 = vld [vmem:[#allocation2 + $0x50] sm:$0xff] }
 0x35f   : > { %v7129_v15 = vadd.f32 %v5039_v58, %v7009_v2  ;;  %3995 = vst [vmem:[#allocation2 + $0x2e8] sm:$0xff] %v3899_v41 }
 0x360   : > { %3996 = vst [vmem:[#allocation2 + $0x2f0] sm:$0xff] %v3900_v22  ;;  %v3003_v23 = vpop.f32.mrb[0].mxu0 }
 0x361   : > { %v5040_v57 = vpop.f32.mrb[208].mxu1  ;;  %v3806_v42 = vadd.f32 %v3003_v23, %v838_v36  ;;  %v3005_v27 = vpop.f32.mrb[1].mxu0 }
 0x362   : > { %v5041_v31 = vpop.f32.mrb[209].mxu1  ;;  %v3807_v50 = vadd.f32 %v3005_v27, %v839_v3  ;;  %v3007_v21 = vpop.f32.mrb[2].mxu0 }
 0x363   : > { %v5042_v47 = vadd.f32 %v5041_v31, %v5040_v57  ;;  %v5043_v18 = vpop.f32.mrb[210].mxu1  ;;  %3902 = vst [vmem:[#allocation2] sm:$0xff] %v3806_v42  ;;  %v3809_v29 = vadd.f32 %v3007_v21, %v841_v33  ;;  %v3009_v0 = vpop.f32.mrb[3].mxu0  ;;  %v850_v42 = vld [vmem:[#allocation2 + $0x60] sm:$0xff]  ;;  %v851_v31 = vld [vmem:[#allocation2 + $0x68] sm:$0xff]  ;;  %v853_v21 = vld [vmem:[#allocation2 + $0x78] sm:$0xff] }
 0x364   : > { %v5044_v14 = vpop.f32.mrb[211].mxu1  ;;  %3903 = vst [vmem:[#allocation2 + $0x8] sm:$0xff] %v3807_v50  ;;  %v3810_v2 = vadd.f32 %v3009_v0, %v842_v24  ;;  %v846_v50 = vld [vmem:[#allocation2 + $0x40] sm:$0xff] }
 0x365   : > { %v5045_v8 = vadd.f32 %v5044_v14, %v5043_v18  ;;  %v7132_v39 = vadd.f32 %v5042_v47, %v7012_v4  ;;  %3905 = vst [vmem:[#allocation2 + $0x18] sm:$0xff] %v3809_v29  ;;  %v840_v14 = vld [vmem:[#allocation2 + $0x10] sm:$0xff] }
 0x366   : > { %3906 = vst [vmem:[#allocation2 + $0x20] sm:$0xff] %v3810_v2 }
 0x367   : > { %v7135_v26 = vadd.f32 %v5045_v8, %v7015_v6  ;;  %v854_v8 = vld [vmem:[#allocation2 + $0x80] sm:$0xff] }
 0x368   : > { %v3013_v43 = vpop.f32.mrb[4].mxu0 }
 0x369   : > { %v5046_v9 = vpop.f32.mrb[212].mxu1  ;;  %v3812_v63 = vadd.f32 %v3013_v43, %v844_v38  ;;  %v3015_v35 = vpop.f32.mrb[5].mxu0  ;;  %v849_v43 = vld [vmem:[#allocation2 + $0x58] sm:$0xff] }
 0x36a   : > { %v5047_v1 = vpop.f32.mrb[213].mxu1  ;;  %v3813_v58 = vadd.f32 %v3015_v35, %v845_v54  ;;  %v3017_v22 = vpop.f32.mrb[6].mxu0 }
 0x36b   : > { %v5048_v41 = vadd.f32 %v5047_v1, %v5046_v9  ;;  %v5049_v36 = vpop.f32.mrb[214].mxu1  ;;  %3908 = vst [vmem:[#allocation2 + $0x30] sm:$0xff] %v3812_v63  ;;  %v3815_v4 = vadd.f32 %v3017_v22, %v847_v60  ;;  %v3019_v3 = vpop.f32.mrb[7].mxu0  ;;  %v843_v1 = vld [vmem:[#allocation2 + $0x28] sm:$0xff] }
 0x36c   : > { %v5050_v23 = vpop.f32.mrb[215].mxu1  ;;  %3909 = vst [vmem:[#allocation2 + $0x38] sm:$0xff] %v3813_v58  ;;  %v3816_v57 = vadd.f32 %v3019_v3, %v848_v17 }
 0x36d   : > { %v5051_v6 = vadd.f32 %v5050_v23, %v5049_v36  ;;  %v7138_v33 = vadd.f32 %v5048_v41, %v7018_v55  ;;  %3911 = vst [vmem:[#allocation2 + $0x48] sm:$0xff] %v3815_v4  ;;  %v856_v36 = vld [vmem:[#allocation2 + $0x90] sm:$0xff]  ;;  %v857_v4 = vld [vmem:[#allocation2 + $0x98] sm:$0xff] }
 0x36e   : > { %3912 = vst [vmem:[#allocation2 + $0x50] sm:$0xff] %v3816_v57  ;;  %v859_v57 = vld [vmem:[#allocation2 + $0xa8] sm:$0xff] }
 0x36f   : > { %v7141_v27 = vadd.f32 %v5051_v6, %v7021_v30 }
 0x370   : > { %v3023_v24 = vpop.f32.mrb[8].mxu0 }
 0x371   : > { %v5094_v47 = vpop.f32.mrb[216].mxu1  ;;  %v3818_v18 = vadd.f32 %v3023_v24, %v850_v42  ;;  %v3025_v0 = vpop.f32.mrb[9].mxu0  ;;  %v852_v24 = vld [vmem:[#allocation2 + $0x70] sm:$0xff] }
 0x372   : > { %v3688_v29 = vadd.f32 %v5094_v47, %v7030_v49  ;;  %v3679_v2 = vpop.f32.mrb[217].mxu1  ;;  %v3819_v55 = vadd.f32 %v3025_v0, %v851_v31  ;;  %v3027_v54 = vpop.f32.mrb[10].mxu0 }
 0x373   : > { %v3680_v38 = vadd.f32 %v3679_v2, %v7024_v53  ;;  %v5095_v9 = vpop.f32.mrb[218].mxu1  ;;  %3914 = vst [vmem:[#allocation2 + $0x60] sm:$0xff] %v3818_v18  ;;  %v3821_v60 = vadd.f32 %v3027_v54, %v853_v21  ;;  %v3029_v35 = vpop.f32.mrb[11].mxu0 }
 0x374   : > { %v3814_v30 = vadd.f32 %v3688_v29, %v846_v50  ;;  %v3691_v63 = vadd.f32 %v5095_v9, %v7033_v56  ;;  %v3682_v17 = vpop.f32.mrb[219].mxu1  ;;  %3915 = vst [vmem:[#allocation2 + $0x68] sm:$0xff] %v3819_v55  ;;  %v3822_v58 = vadd.f32 %v3029_v35, %v854_v8  ;;  %v858_v56 = vld [vmem:[#allocation2 + $0xa0] sm:$0xff]  ;;  %v860_v50 = vld [vmem:[#allocation2 + $0xb0] sm:$0xff]  ;;  %v861_v29 = vld [vmem:[#allocation2 + $0xb8] sm:$0xff] }
 0x375   : > { %v3808_v49 = vadd.f32 %v3680_v38, %v840_v14  ;;  %v3683_v41 = vadd.f32 %v3682_v17, %v7027_v7  ;;  %3917 = vst [vmem:[#allocation2 + $0x78] sm:$0xff] %v3821_v60  ;;  %v855_v38 = vld [vmem:[#allocation2 + $0x88] sm:$0xff]  ;;  %v862_v60 = vld [vmem:[#allocation2 + $0xc0] sm:$0xff]  ;;  %v865_v17 = vld [vmem:[#allocation2 + $0xd8] sm:$0xff] }
 0x376   : > { %3910 = vst [vmem:[#allocation2 + $0x40] sm:$0xff] %v3814_v30  ;;  %v3817_v22 = vadd.f32 %v3691_v63, %v849_v43  ;;  %3918 = vst [vmem:[#allocation2 + $0x80] sm:$0xff] %v3822_v58  ;;  %v863_v63 = vld [vmem:[#allocation2 + $0xc8] sm:$0xff] }
 0x377   : > { %3904 = vst [vmem:[#allocation2 + $0x10] sm:$0xff] %v3808_v49  ;;  %v3811_v53 = vadd.f32 %v3683_v41, %v843_v1 }
 0x378   : > { %3913 = vst [vmem:[#allocation2 + $0x58] sm:$0xff] %v3817_v22  ;;  %v3033_v3 = vpop.f32.mrb[12].mxu0  ;;  %v864_v22 = vld [vmem:[#allocation2 + $0xd0] sm:$0xff] }
 0x379   : > { %3907 = vst [vmem:[#allocation2 + $0x28] sm:$0xff] %v3811_v53  ;;  %v5098_v23 = vpop.f32.mrb[220].mxu1  ;;  %v3824_v6 = vadd.f32 %v3033_v3, %v856_v36  ;;  %v3035_v31 = vpop.f32.mrb[13].mxu0  ;;  %v866_v53 = vld [vmem:[#allocation2 + $0xe0] sm:$0xff] }
 0x37a   : > { %v3704_v42 = vadd.f32 %v5098_v23, %v7042_v44  ;;  %v3695_v7 = vpop.f32.mrb[221].mxu1  ;;  %v3825_v47 = vadd.f32 %v3035_v31, %v857_v4  ;;  %v3037_v18 = vpop.f32.mrb[14].mxu0 }
 0x37b   : > { %v3696_v21 = vadd.f32 %v3695_v7, %v7036_v51  ;;  %v5099_v0 = vpop.f32.mrb[222].mxu1  ;;  %3920 = vst [vmem:[#allocation2 + $0x90] sm:$0xff] %v3824_v6  ;;  %v3827_v2 = vadd.f32 %v3037_v18, %v859_v57  ;;  %v3039_v55 = vpop.f32.mrb[15].mxu0  ;;  %v868_v18 = vld [vmem:[#allocation2 + $0xf0] sm:$0xff] }
 0x37c   : > { %v3826_v14 = vadd.f32 %v3704_v42, %v858_v56  ;;  %v3707_v8 = vadd.f32 %v5099_v0, %v7045_v46  ;;  %v3698_v54 = vpop.f32.mrb[223].mxu1  ;;  %3921 = vst [vmem:[#allocation2 + $0x98] sm:$0xff] %v3825_v47  ;;  %v3828_v43 = vadd.f32 %v3039_v55, %v860_v50  ;;  %v870_v46 = vld [vmem:[#allocation2 + $0x100] sm:$0xff]  ;;  %v873_v56 = vld [vmem:[#allocation2 + $0x118] sm:$0xff] }
 0x37d   : > { %v3820_v44 = vadd.f32 %v3696_v21, %v852_v24  ;;  %v3699_v9 = vadd.f32 %v3698_v54, %v7039_v12  ;;  %3923 = vst [vmem:[#allocation2 + $0xa8] sm:$0xff] %v3827_v2  ;;  %v867_v24 = vld [vmem:[#allocation2 + $0xe8] sm:$0xff]  ;;  %v876_v54 = vld [vmem:[#allocation2 + $0x130] sm:$0xff] }
 0x37e   : > { %3922 = vst [vmem:[#allocation2 + $0xa0] sm:$0xff] %v3826_v14  ;;  %v3829_v30 = vadd.f32 %v3707_v8, %v861_v29  ;;  %3924 = vst [vmem:[#allocation2 + $0xb0] sm:$0xff] %v3828_v43  ;;  %v869_v29 = vld [vmem:[#allocation2 + $0xf8] sm:$0xff]  ;;  %v871_v2 = vld [vmem:[#allocation2 + $0x108] sm:$0xff] }
 0x37f   : > { %3916 = vst [vmem:[#allocation2 + $0x70] sm:$0xff] %v3820_v44  ;;  %v3823_v51 = vadd.f32 %v3699_v9, %v855_v38  ;;  %v872_v44 = vld [vmem:[#allocation2 + $0x110] sm:$0xff] }
 0x380   : > { %3925 = vst [vmem:[#allocation2 + $0xb8] sm:$0xff] %v3829_v30  ;;  %v3043_v35 = vpop.f32.mrb[16].mxu0 }
 0x381   : > { %3919 = vst [vmem:[#allocation2 + $0x88] sm:$0xff] %v3823_v51  ;;  %v5102_v1 = vpop.f32.mrb[224].mxu1  ;;  %v3830_v49 = vadd.f32 %v3043_v35, %v862_v60  ;;  %v3045_v41 = vpop.f32.mrb[17].mxu0  ;;  %v885_v51 = vld [vmem:[#allocation2 + $0x178] sm:$0xff] }
 0x382   : > { %v3720_v58 = vadd.f32 %v5102_v1, %v7054_v16  ;;  %v3711_v12 = vpop.f32.mrb[225].mxu1  ;;  %v3831_v36 = vadd.f32 %v3045_v41, %v863_v63  ;;  %v3047_v3 = vpop.f32.mrb[18].mxu0 }
 0x383   : > { %v3712_v4 = vadd.f32 %v3711_v12, %v7048_v48  ;;  %v5103_v23 = vpop.f32.mrb[226].mxu1  ;;  %3926 = vst [vmem:[#allocation2 + $0xc0] sm:$0xff] %v3830_v49  ;;  %v3833_v6 = vadd.f32 %v3047_v3, %v865_v17  ;;  %v3049_v31 = vpop.f32.mrb[19].mxu0  ;;  %v879_v17 = vld [vmem:[#allocation2 + $0x148] sm:$0xff]  ;;  %v874_v12 = vld [vmem:[#allocation2 + $0x120] sm:$0xff]  ;;  %v877_v3 = vld [vmem:[#allocation2 + $0x138] sm:$0xff] }
 0x384   : > { %v3838_v57 = vadd.f32 %v3720_v58, %v870_v46  ;;  %v3723_v42 = vadd.f32 %v5103_v23, %v7057_v40  ;;  %v3714_v7 = vpop.f32.mrb[227].mxu1  ;;  %3927 = vst [vmem:[#allocation2 + $0xc8] sm:$0xff] %v3831_v36  ;;  %v3834_v50 = vadd.f32 %v3049_v31, %v866_v53  ;;  %v882_v40 = vld [vmem:[#allocation2 + $0x160] sm:$0xff]  ;;  %v875_v53 = vld [vmem:[#allocation2 + $0x128] sm:$0xff] }
 0x385   : > { %v3832_v16 = vadd.f32 %v3712_v4, %v864_v22  ;;  %v3715_v47 = vadd.f32 %v3714_v7, %v7051_v10  ;;  %3929 = vst [vmem:[#allocation2 + $0xd8] sm:$0xff] %v3833_v6  ;;  %v888_v6 = vld [vmem:[#allocation2 + $0x190] sm:$0xff] }
 0x386   : > { %3934 = vst [vmem:[#allocation2 + $0x100] sm:$0xff] %v3838_v57  ;;  %v3841_v21 = vadd.f32 %v3723_v42, %v873_v56  ;;  %3930 = vst [vmem:[#allocation2 + $0xe0] sm:$0xff] %v3834_v50  ;;  %v878_v42 = vld [vmem:[#allocation2 + $0x140] sm:$0xff] }
 0x387   : > { %3928 = vst [vmem:[#allocation2 + $0xd0] sm:$0xff] %v3832_v16  ;;  %v3835_v48 = vadd.f32 %v3715_v47, %v867_v24  ;;  %v897_v16 = vld [vmem:[#allocation2 + $0x1d8] sm:$0xff] }
 0x388   : > { %3937 = vst [vmem:[#allocation2 + $0x118] sm:$0xff] %v3841_v21  ;;  %v3053_v0 = vpop.f32.mrb[20].mxu0 }
 0x389   : > { %3931 = vst [vmem:[#allocation2 + $0xe8] sm:$0xff] %v3835_v48  ;;  %v5106_v14 = vpop.f32.mrb[228].mxu1  ;;  %v3836_v8 = vadd.f32 %v3053_v0, %v868_v18  ;;  %v3055_v38 = vpop.f32.mrb[21].mxu0 }
 0x38a   : > { %v3736_v55 = vadd.f32 %v5106_v14, %v7066_v25  ;;  %v3727_v10 = vpop.f32.mrb[229].mxu1  ;;  %v3837_v43 = vadd.f32 %v3055_v38, %v869_v29  ;;  %v3057_v30 = vpop.f32.mrb[22].mxu0  ;;  %v891_v29 = vld [vmem:[#allocation2 + $0x1a8] sm:$0xff] }
 0x38b   : > { %v3728_v9 = vadd.f32 %v3727_v10, %v7060_v45  ;;  %v5107_v60 = vpop.f32.mrb[230].mxu1  ;;  %3932 = vst [vmem:[#allocation2 + $0xf0] sm:$0xff] %v3836_v8  ;;  %v3839_v35 = vadd.f32 %v3057_v30, %v871_v2  ;;  %v3059_v1 = vpop.f32.mrb[23].mxu0  ;;  %v880_v8 = vld [vmem:[#allocation2 + $0x150] sm:$0xff]  ;;  %v883_v10 = vld [vmem:[#allocation2 + $0x168] sm:$0xff] }
 0x38c   : > { %v3850_v63 = vadd.f32 %v3736_v55, %v882_v40  ;;  %v3739_v46 = vadd.f32 %v5107_v60, %v7069_v28  ;;  %v3730_v49 = vpop.f32.mrb[231].mxu1  ;;  %3933 = vst [vmem:[#allocation2 + $0xf8] sm:$0xff] %v3837_v43  ;;  %v3840_v58 = vadd.f32 %v3059_v1, %v872_v44  ;;  %v894_v28 = vld [vmem:[#allocation2 + $0x1c0] sm:$0xff]  ;;  %v881_v55 = vld [vmem:[#allocation2 + $0x158] sm:$0xff]  ;;  %v900_v30 = vld [vmem:[#allocation2 + $0x1f0] sm:$0xff] }
 0x38d   : > { %v3844_v25 = vadd.f32 %v3728_v9, %v876_v54  ;;  %v3731_v41 = vadd.f32 %v3730_v49, %v7063_v32  ;;  %3935 = vst [vmem:[#allocation2 + $0x108] sm:$0xff] %v3839_v35 }
 0x38e   : > { %3946 = vst [vmem:[#allocation2 + $0x160] sm:$0xff] %v3850_v63  ;;  %v3853_v22 = vadd.f32 %v3739_v46, %v885_v51  ;;  %3936 = vst [vmem:[#allocation2 + $0x110] sm:$0xff] %v3840_v58  ;;  %v884_v51 = vld [vmem:[#allocation2 + $0x170] sm:$0xff]  ;;  %v909_v46 = vld [vmem:[#allocation2 + $0x238] sm:$0xff] }
 0x38f   : > { %3940 = vst [vmem:[#allocation2 + $0x130] sm:$0xff] %v3844_v25  ;;  %v3847_v45 = vadd.f32 %v3731_v41, %v879_v17  ;;  %v903_v41 = vld [vmem:[#allocation2 + $0x208] sm:$0xff] }
 0x390   : > { %3949 = vst [vmem:[#allocation2 + $0x178] sm:$0xff] %v3853_v22  ;;  %v3063_v36 = vpop.f32.mrb[24].mxu0 }
 0x391   : > { %3943 = vst [vmem:[#allocation2 + $0x148] sm:$0xff] %v3847_v45  ;;  %v5110_v4 = vpop.f32.mrb[232].mxu1  ;;  %v3842_v56 = vadd.f32 %v3063_v36, %v874_v12  ;;  %v3065_v57 = vpop.f32.mrb[25].mxu0  ;;  %v886_v36 = vld [vmem:[#allocation2 + $0x180] sm:$0xff] }
 0x392   : > { %v3752_v23 = vadd.f32 %v5110_v4, %v7086_v13  ;;  %v3743_v32 = vpop.f32.mrb[233].mxu1  ;;  %v3843_v31 = vadd.f32 %v3065_v57, %v875_v53  ;;  %v3067_v7 = vpop.f32.mrb[26].mxu0 }
 0x393   : > { %v3744_v24 = vadd.f32 %v3743_v32, %v7076_v61  ;;  %v5111_v50 = vpop.f32.mrb[234].mxu1  ;;  %3938 = vst [vmem:[#allocation2 + $0x120] sm:$0xff] %v3842_v56  ;;  %v3845_v21 = vadd.f32 %v3067_v7, %v877_v3  ;;  %v3069_v18 = vpop.f32.mrb[27].mxu0  ;;  %v889_v56 = vld [vmem:[#allocation2 + $0x198] sm:$0xff]  ;;  %v912_v32 = vld [vmem:[#allocation2 + $0x250] sm:$0xff] }
 0x394   : > { %v3862_v47 = vadd.f32 %v3752_v23, %v894_v28  ;;  %v3755_v48 = vadd.f32 %v5111_v50, %v7089_v20  ;;  %v3746_v0 = vpop.f32.mrb[235].mxu1  ;;  %3939 = vst [vmem:[#allocation2 + $0x128] sm:$0xff] %v3843_v31  ;;  %v3846_v40 = vadd.f32 %v3069_v18, %v878_v42  ;;  %v906_v20 = vld [vmem:[#allocation2 + $0x220] sm:$0xff]  ;;  %v887_v28 = vld [vmem:[#allocation2 + $0x188] sm:$0xff] }
 0x395   : > { %v3856_v13 = vadd.f32 %v3744_v24, %v888_v6  ;;  %v3747_v14 = vadd.f32 %v3746_v0, %v7079_v19  ;;  %3941 = vst [vmem:[#allocation2 + $0x138] sm:$0xff] %v3845_v21  ;;  %v890_v42 = vld [vmem:[#allocation2 + $0x1a0] sm:$0xff] }
 0x396   : > { %3958 = vst [vmem:[#allocation2 + $0x1c0] sm:$0xff] %v3862_v47  ;;  %v3865_v2 = vadd.f32 %v3755_v48, %v897_v16  ;;  %3942 = vst [vmem:[#allocation2 + $0x140] sm:$0xff] %v3846_v40  ;;  %v921_v16 = vld [vmem:[#allocation2 + $0x298] sm:$0xff] }
 0x397   : > { %3952 = vst [vmem:[#allocation2 + $0x190] sm:$0xff] %v3856_v13  ;;  %v3859_v61 = vadd.f32 %v3747_v14, %v891_v29  ;;  %v915_v29 = vld [vmem:[#allocation2 + $0x268] sm:$0xff] }
 0x398   : > { %3961 = vst [vmem:[#allocation2 + $0x1d8] sm:$0xff] %v3865_v2  ;;  %v3073_v38 = vpop.f32.mrb[28].mxu0  ;;  %v892_v2 = vld [vmem:[#allocation2 + $0x1b0] sm:$0xff] }
 0x399   : > { %3955 = vst [vmem:[#allocation2 + $0x1a8] sm:$0xff] %v3859_v61  ;;  %v5114_v54 = vpop.f32.mrb[236].mxu1  ;;  %v3848_v44 = vadd.f32 %v3073_v38, %v880_v8  ;;  %v3075_v9 = vpop.f32.mrb[29].mxu0  ;;  %v893_v61 = vld [vmem:[#allocation2 + $0x1b8] sm:$0xff]  ;;  %v895_v38 = vld [vmem:[#allocation2 + $0x1c8] sm:$0xff] }
 0x39a   : > { %v3768_v43 = vadd.f32 %v5114_v54, %v7106_v5  ;;  %v3759_v19 = vpop.f32.mrb[237].mxu1  ;;  %v3849_v60 = vadd.f32 %v3075_v9, %v881_v55  ;;  %v3077_v35 = vpop.f32.mrb[30].mxu0 }
 0x39b   : > { %v3760_v63 = vadd.f32 %v3759_v19, %v7096_v37  ;;  %v5115_v1 = vpop.f32.mrb[238].mxu1  ;;  %3944 = vst [vmem:[#allocation2 + $0x150] sm:$0xff] %v3848_v44  ;;  %v3851_v49 = vadd.f32 %v3077_v35, %v883_v10  ;;  %v3079_v58 = vpop.f32.mrb[31].mxu0  ;;  %v924_v44 = vld [vmem:[#allocation2 + $0x2b0] sm:$0xff] }
 0x39c   : > { %v3874_v17 = vadd.f32 %v3768_v43, %v906_v20  ;;  %v3771_v25 = vadd.f32 %v5115_v1, %v7109_v52  ;;  %v3762_v22 = vpop.f32.mrb[239].mxu1  ;;  %3945 = vst [vmem:[#allocation2 + $0x158] sm:$0xff] %v3849_v60  ;;  %v3852_v45 = vadd.f32 %v3079_v58, %v884_v51  ;;  %v918_v52 = vld [vmem:[#allocation2 + $0x280] sm:$0xff]  ;;  %v896_v43 = vld [vmem:[#allocation2 + $0x1d0] sm:$0xff]  ;;  %v933_v51 = vld [vmem:[#allocation2 + $0x2f8] sm:$0xff] }
 0x39d   : > { %v3868_v5 = vadd.f32 %v3760_v63, %v900_v30  ;;  %v3763_v12 = vadd.f32 %v3762_v22, %v7099_v59  ;;  %3947 = vst [vmem:[#allocation2 + $0x168] sm:$0xff] %v3851_v49 }
 0x39e   : > { %3970 = vst [vmem:[#allocation2 + $0x220] sm:$0xff] %v3874_v17  ;;  %v3877_v53 = vadd.f32 %v3771_v25, %v909_v46  ;;  %3948 = vst [vmem:[#allocation2 + $0x170] sm:$0xff] %v3852_v45  ;;  %v927_v17 = vld [vmem:[#allocation2 + $0x2c8] sm:$0xff]  ;;  %v4002_v45 = vld [vmem:[#allocation2] sm:$0xff] (!%p4713_p13) }
 0x39f   : > { %3964 = vst [vmem:[#allocation2 + $0x1f0] sm:$0xff] %v3868_v5  ;;  %v3871_v37 = vadd.f32 %v3763_v12, %v903_v41  ;;  %v4098_v5 = vld [vmem:[%s7400_s2] sm:$0x7] (!%p4713_p13) }
 0x3a0   : > { %3973 = vst [vmem:[#allocation2 + $0x238] sm:$0xff] %v3877_v53  ;;  %v3083_v4 = vpop.f32.mrb[32].mxu0 }
 0x3a1   : > { %3967 = vst [vmem:[#allocation2 + $0x208] sm:$0xff] %v3871_v37  ;;  %v5118_v3 = vpop.f32.mrb[240].mxu1  ;;  %v3854_v23 = vadd.f32 %v3083_v4, %v886_v36  ;;  %v3085_v6 = vpop.f32.mrb[33].mxu0  ;;  %v4004_v36 = vld [vmem:[#allocation2 + $0x10] sm:$0xff] (!%p4713_p13)  ;;  %v4006_v4 = vld [vmem:[#allocation2 + $0x20] sm:$0xff] (!%p4713_p13) }
 0x3a2   : > { %v3784_v57 = vadd.f32 %v5118_v3, %v7126_v11  ;;  %v3775_v59 = vpop.f32.mrb[241].mxu1  ;;  %v3855_v31 = vadd.f32 %v3085_v6, %v887_v28  ;;  %v3087_v7 = vpop.f32.mrb[34].mxu0  ;;  %v4005_v28 = vld [vmem:[#allocation2 + $0x18] sm:$0xff] (!%p4713_p13) }
 0x3a3   : > { %v3776_v24 = vadd.f32 %v3775_v59, %v7116_v62  ;;  %v5119_v50 = vpop.f32.mrb[242].mxu1  ;;  %3950 = vst [vmem:[#allocation2 + $0x180] sm:$0xff] %v3854_v23  ;;  %v3857_v21 = vadd.f32 %v3087_v7, %v889_v56  ;;  %v3089_v18 = vpop.f32.mrb[35].mxu0  ;;  %v4007_v23 = vld [vmem:[#allocation2 + $0x28] sm:$0xff] (!%p4713_p13)  ;;  %v4009_v6 = vld [vmem:[#allocation2 + $0x38] sm:$0xff] (!%p4713_p13) }
 0x3a4   : > { %v3886_v47 = vadd.f32 %v3784_v57, %v918_v52  ;;  %v3787_v48 = vadd.f32 %v5119_v50, %v7129_v15  ;;  %v3778_v0 = vpop.f32.mrb[243].mxu1  ;;  %3951 = vst [vmem:[#allocation2 + $0x188] sm:$0xff] %v3855_v31  ;;  %v3858_v13 = vadd.f32 %v3089_v18, %v890_v42  ;;  %v930_v15 = vld [vmem:[#allocation2 + $0x2e0] sm:$0xff]  ;;  %v4008_v57 = vld [vmem:[#allocation2 + $0x30] sm:$0xff] (!%p4713_p13)  ;;  %v4011_v7 = vld [vmem:[#allocation2 + $0x48] sm:$0xff] (!%p4713_p13) }
 0x3a5   : > { %v3880_v11 = vadd.f32 %v3776_v24, %v912_v32  ;;  %v3779_v40 = vadd.f32 %v3778_v0, %v7119_v34  ;;  %3953 = vst [vmem:[#allocation2 + $0x198] sm:$0xff] %v3857_v21  ;;  %v4010_v24 = vld [vmem:[#allocation2 + $0x40] sm:$0xff] (!%p4713_p13)  ;;  %v4013_v18 = vld [vmem:[#allocation2 + $0x58] sm:$0xff] (!%p4713_p13)  ;;  %v4015_v0 = vld [vmem:[#allocation2 + $0x68] sm:$0xff] (!%p4713_p13) }
 0x3a6   : > { %3982 = vst [vmem:[#allocation2 + $0x280] sm:$0xff] %v3886_v47  ;;  %v3889_v14 = vadd.f32 %v3787_v48, %v921_v16  ;;  %3954 = vst [vmem:[#allocation2 + $0x1a0] sm:$0xff] %v3858_v13  ;;  %v4012_v16 = vld [vmem:[#allocation2 + $0x50] sm:$0xff] (!%p4713_p13) }
 0x3a7   : > { %3976 = vst [vmem:[#allocation2 + $0x250] sm:$0xff] %v3880_v11  ;;  %v3883_v62 = vadd.f32 %v3779_v40, %v915_v29  ;;  %v4014_v29 = vld [vmem:[#allocation2 + $0x60] sm:$0xff] (!%p4713_p13) }
 0x3a8   : > { %3985 = vst [vmem:[#allocation2 + $0x298] sm:$0xff] %v3889_v14  ;;  %v3093_v8 = vpop.f32.mrb[36].mxu0 }
 0x3a9   : > { %3979 = vst [vmem:[#allocation2 + $0x268] sm:$0xff] %v3883_v62  ;;  %v5122_v55 = vpop.f32.mrb[244].mxu1  ;;  %v3860_v20 = vadd.f32 %v3093_v8, %v892_v2  ;;  %v3095_v10 = vpop.f32.mrb[37].mxu0  ;;  %v4016_v62 = vld [vmem:[#allocation2 + $0x70] sm:$0xff] (!%p4713_p13)  ;;  %v4017_v2 = vld [vmem:[#allocation2 + $0x78] sm:$0xff] (!%p4713_p13) }
 0x3aa   : > { %v3800_v54 = vadd.f32 %v5122_v55, %v7138_v33  ;;  %v3791_v34 = vpop.f32.mrb[245].mxu1  ;;  %v3861_v9 = vadd.f32 %v3095_v10, %v893_v61  ;;  %v3097_v19 = vpop.f32.mrb[38].mxu0 }
 0x3ab   : > { %v3792_v30 = vadd.f32 %v3791_v34, %v7132_v39  ;;  %v5123_v60 = vpop.f32.mrb[246].mxu1  ;;  %3956 = vst [vmem:[#allocation2 + $0x1b0] sm:$0xff] %v3860_v20  ;;  %v3863_v35 = vadd.f32 %v3097_v19, %v895_v38  ;;  %v3099_v1 = vpop.f32.mrb[39].mxu0  ;;  %4001 = sbr.rel (%p4713_p13) target bundleno = 1001 (0x3e9), region = 63  ;;  %v4019_v34 = vld [vmem:[#allocation2 + $0x88] sm:$0xff] (!%p4713_p13) }
 0x3ac   : > { %v3898_v63 = vadd.f32 %v3800_v54, %v930_v15  ;;  %v3803_v46 = vadd.f32 %v5123_v60, %v7141_v27  ;;  %v3794_v49 = vpop.f32.mrb[247].mxu1  ;;  %3957 = vst [vmem:[#allocation2 + $0x1b8] sm:$0xff] %v3861_v9  ;;  %v3864_v25 = vadd.f32 %v3099_v1, %v896_v43  ;;  %v4100_v27 = vlaneseq (!%p4713_p13)  ;;  %v4020_v43 = vld [vmem:[#allocation2 + $0x90] sm:$0xff] (!%p4713_p13)  ;;  %v4021_v60 = vld [vmem:[#allocation2 + $0x98] sm:$0xff] (!%p4713_p13) }
 0x3ad   : > { %v3892_v33 = vadd.f32 %v3792_v30, %v924_v44  ;;  %v3795_v58 = vadd.f32 %v3794_v49, %v7135_v26  ;;  %3959 = vst [vmem:[#allocation2 + $0x1c8] sm:$0xff] %v3863_v35  ;;  %v4003_v26 = vld [vmem:[#allocation2 + $0x8] sm:$0xff] (!%p4713_p13)  ;;  %v4018_v44 = vld [vmem:[#allocation2 + $0x80] sm:$0xff] (!%p4713_p13) }
 0x3ae   : > { %3994 = vst [vmem:[#allocation2 + $0x2e0] sm:$0xff] %v3898_v63  ;;  %v3901_v41 = vadd.f32 %v3803_v46, %v933_v51  ;;  %3960 = vst [vmem:[#allocation2 + $0x1d0] sm:$0xff] %v3864_v25  ;;  %v4101_v22 = vshrl.u32 (!%p4713_p13), %v4100_v27, 7  ;;  %v4022_v63 = vld [vmem:[#allocation2 + $0xa0] sm:$0xff] (!%p4713_p13)  ;;  %v4023_v35 = vld [vmem:[#allocation2 + $0xa8] sm:$0xff] (!%p4713_p13) }
 0x3af   : > { %3988 = vst [vmem:[#allocation2 + $0x2b0] sm:$0xff] %v3892_v33  ;;  %v3895_v39 = vadd.f32 %v3795_v58, %v927_v17  ;;  %v4024_v33 = vld [vmem:[#allocation2 + $0xb0] sm:$0xff] (!%p4713_p13)  ;;  %v4025_v25 = vld [vmem:[#allocation2 + $0xb8] sm:$0xff] (!%p4713_p13) }
 0x3b0   : > { %3997 = vst [vmem:[#allocation2 + $0x2f8] sm:$0xff] %v3901_v41  ;;  %v4102_v12 = vsub.s32 (!%p4713_p13), 0, %v4101_v22  ;;  %v4106_v53 = vsub.s32 (!%p4713_p13), 1, %v4101_v22  ;;  %v4110_v37 = vsub.s32 (!%p4713_p13), 2, %v4101_v22 }
 0x3b1   : > { %3991 = vst [vmem:[#allocation2 + $0x2c8] sm:$0xff] %v3895_v39 }
 0x3b2   : > { %v7179_v52 = vrot.slane %v4098_v5, %v4102_v12  ;;  %v7181_v3 = vrot.slane %v4098_v5, %v4106_v53  ;;  %v7183_v56 = vrot.slane %v4098_v5, %v4110_v37  ;;  %v4027_v53 = vld [vmem:[#allocation2 + $0xc8] sm:$0xff]  ;;  %v4028_v37 = vld [vmem:[#allocation2 + $0xd0] sm:$0xff] }
 0x3b4   : > { %v4115_v32 = vadd.f32 %v7179_v52, %v4002_v45  ;;  %v4116_v59 = vadd.f32 %v7181_v3, %v4003_v26  ;;  %v4117_v42 = vadd.f32 %v7183_v56, %v4004_v36  ;;  %v4118_v31 = vadd.f32 %v7179_v52, %v4005_v28  ;;  %v4026_v26 = vld [vmem:[#allocation2 + $0xc0] sm:$0xff] }
 0x3b5   : > { %v4119_v50 = vadd.f32 %v7181_v3, %v4006_v4  ;;  %v4120_v47 = vadd.f32 %v7183_v56, %v4007_v23  ;;  %v4121_v21 = vadd.f32 %v7179_v52, %v4008_v57  ;;  %v4122_v48 = vadd.f32 %v7181_v3, %v4009_v6  ;;  %v4029_v57 = vld [vmem:[#allocation2 + $0xd8] sm:$0xff]  ;;  %v4030_v6 = vld [vmem:[#allocation2 + $0xe0] sm:$0xff] }
 0x3b6   : > { %v4211_v11 = vmax.f32 %v4115_v32, 0.0  ;;  %v4212_v13 = vmax.f32 %v4116_v59, 0.0  ;;  %v4213_v40 = vmax.f32 %v4117_v42, 0.0  ;;  %v4214_v14 = vmax.f32 %v4118_v31, 0.0  ;;  %v4031_v32 = vld [vmem:[#allocation2 + $0xe8] sm:$0xff] }
 0x3b7   : > { %v4215_v61 = vmax.f32 %v4119_v50, 0.0  ;;  %v4216_v8 = vmax.f32 %v4120_v47, 0.0  ;;  %v4217_v15 = vmax.f32 %v4121_v21, 0.0  ;;  %v4218_v55 = vmax.f32 %v4122_v48, 0.0 }
 0x3b8   : > { %4307 = vst [vmem:[%s6238_s30] sm:$0xff] %v4211_v11  ;;  %4308 = vst [vmem:[%s6238_s30 + $0x8] sm:$0xff] %v4212_v13  ;;  %v4123_v38 = vadd.f32 %v7183_v56, %v4010_v24  ;;  %v4124_v20 = vadd.f32 %v7179_v52, %v4011_v7  ;;  %v4125_v54 = vadd.f32 %v7181_v3, %v4012_v16  ;;  %v4032_v7 = vld [vmem:[#allocation2 + $0xf0] sm:$0xff]  ;;  %v4033_v16 = vld [vmem:[#allocation2 + $0xf8] sm:$0xff] }
 0x3b9   : > { %4309 = vst [vmem:[%s6238_s30 + $0x10] sm:$0xff] %v4213_v40  ;;  %4310 = vst [vmem:[%s6238_s30 + $0x18] sm:$0xff] %v4214_v14  ;;  %v4126_v10 = vadd.f32 %v7183_v56, %v4013_v18  ;;  %v4127_v9 = vadd.f32 %v7179_v52, %v4014_v29  ;;  %v4128_v30 = vadd.f32 %v7181_v3, %v4015_v0  ;;  %v4034_v13 = vld [vmem:[#allocation2 + $0x100] sm:$0xff]  ;;  %v4035_v40 = vld [vmem:[#allocation2 + $0x108] sm:$0xff] }
 0x3ba   : > { %4311 = vst [vmem:[%s6238_s30 + $0x20] sm:$0xff] %v4215_v61  ;;  %4312 = vst [vmem:[%s6238_s30 + $0x28] sm:$0xff] %v4216_v8  ;;  %v4129_v19 = vadd.f32 %v7183_v56, %v4016_v62  ;;  %v4130_v51 = vadd.f32 %v7179_v52, %v4017_v2  ;;  %v4219_v46 = vmax.f32 %v4123_v38, 0.0  ;;  %v4220_v1 = vmax.f32 %v4124_v20, 0.0  ;;  %v4036_v14 = vld [vmem:[#allocation2 + $0x110] sm:$0xff]  ;;  %v4039_v38 = vld [vmem:[#allocation2 + $0x128] sm:$0xff] }
 0x3bb   : > { %4313 = vst [vmem:[%s6238_s30 + $0x30] sm:$0xff] %v4217_v15  ;;  %4314 = vst [vmem:[%s6238_s30 + $0x38] sm:$0xff] %v4218_v55  ;;  %v4221_v17 = vmax.f32 %v4125_v54, 0.0  ;;  %v4222_v49 = vmax.f32 %v4126_v10, 0.0  ;;  %v4223_v58 = vmax.f32 %v4127_v9, 0.0  ;;  %v4224_v41 = vmax.f32 %v4128_v30, 0.0 }
 0x3bc   : > { %v4225_v39 = vmax.f32 %v4129_v19, 0.0  ;;  %v4226_v27 = vmax.f32 %v4130_v51, 0.0  ;;  %4315 = vst [vmem:[%s6238_s30 + $0x40] sm:$0xff] %v4219_v46  ;;  %4316 = vst [vmem:[%s6238_s30 + $0x48] sm:$0xff] %v4220_v1  ;;  %v4131_v22 = vadd.f32 %v7181_v3, %v4018_v44  ;;  %v4132_v5 = vadd.f32 %v7183_v56, %v4019_v34  ;;  %v4037_v15 = vld [vmem:[#allocation2 + $0x118] sm:$0xff]  ;;  %v4038_v55 = vld [vmem:[#allocation2 + $0x120] sm:$0xff] }
 0x3bd   : > { %4317 = vst [vmem:[%s6238_s30 + $0x50] sm:$0xff] %v4221_v17  ;;  %4318 = vst [vmem:[%s6238_s30 + $0x58] sm:$0xff] %v4222_v49  ;;  %v4133_v45 = vadd.f32 %v7179_v52, %v4020_v43  ;;  %v4134_v12 = vadd.f32 %v7181_v3, %v4021_v60  ;;  %v4135_v36 = vadd.f32 %v7183_v56, %v4022_v63  ;;  %v4040_v34 = vld [vmem:[#allocation2 + $0x130] sm:$0xff]  ;;  %v4041_v43 = vld [vmem:[#allocation2 + $0x138] sm:$0xff] }
 0x3be   : > { %4319 = vst [vmem:[%s6238_s30 + $0x60] sm:$0xff] %v4223_v58  ;;  %4320 = vst [vmem:[%s6238_s30 + $0x68] sm:$0xff] %v4224_v41  ;;  %v4136_v28 = vadd.f32 %v7179_v52, %v4023_v35  ;;  %v4137_v4 = vadd.f32 %v7181_v3, %v4024_v33  ;;  %v4138_v23 = vadd.f32 %v7183_v56, %v4025_v25  ;;  %v4227_v59 = vmax.f32 %v4131_v22, 0.0  ;;  %v4042_v1 = vld [vmem:[#allocation2 + $0x140] sm:$0xff]  ;;  %v4043_v17 = vld [vmem:[#allocation2 + $0x148] sm:$0xff] }
 0x3bf   : > { %4321 = vst [vmem:[%s6238_s30 + $0x70] sm:$0xff] %v4225_v39  ;;  %4322 = vst [vmem:[%s6238_s30 + $0x78] sm:$0xff] %v4226_v27  ;;  %v4228_v42 = vmax.f32 %v4132_v5, 0.0  ;;  %v4229_v31 = vmax.f32 %v4133_v45, 0.0  ;;  %v4230_v24 = vmax.f32 %v4134_v12, 0.0  ;;  %v4231_v50 = vmax.f32 %v4135_v36, 0.0 }
 0x3c0   : > { %v4232_v47 = vmax.f32 %v4136_v28, 0.0  ;;  %v4233_v21 = vmax.f32 %v4137_v4, 0.0  ;;  %v4234_v48 = vmax.f32 %v4138_v23, 0.0  ;;  %4323 = vst [vmem:[%s6238_s30 + $0x80] sm:$0xff] %v4227_v59  ;;  %v4139_v18 = vadd.f32 %v7179_v52, %v4026_v26  ;;  %v4044_v49 = vld [vmem:[#allocation2 + $0x150] sm:$0xff]  ;;  %v4045_v39 = vld [vmem:[#allocation2 + $0x158] sm:$0xff] }
 0x3c1   : > { %4324 = vst [vmem:[%s6238_s30 + $0x88] sm:$0xff] %v4228_v42  ;;  %4325 = vst [vmem:[%s6238_s30 + $0x90] sm:$0xff] %v4229_v31  ;;  %v4140_v29 = vadd.f32 %v7181_v3, %v4027_v53  ;;  %v4141_v0 = vadd.f32 %v7183_v56, %v4028_v37  ;;  %v4142_v11 = vadd.f32 %v7179_v52, %v4029_v57  ;;  %v4046_v27 = vld [vmem:[#allocation2 + $0x160] sm:$0xff]  ;;  %v4047_v22 = vld [vmem:[#allocation2 + $0x168] sm:$0xff] }
 0x3c2   : > { %4326 = vst [vmem:[%s6238_s30 + $0x98] sm:$0xff] %v4230_v24  ;;  %4327 = vst [vmem:[%s6238_s30 + $0xa0] sm:$0xff] %v4231_v50  ;;  %v4143_v62 = vadd.f32 %v7181_v3, %v4030_v6  ;;  %v4144_v2 = vadd.f32 %v7183_v56, %v4031_v32  ;;  %v4145_v61 = vadd.f32 %v7179_v52, %v4032_v7  ;;  %v4235_v20 = vmax.f32 %v4139_v18, 0.0  ;;  %v4048_v53 = vld [vmem:[#allocation2 + $0x170] sm:$0xff]  ;;  %v4049_v37 = vld [vmem:[#allocation2 + $0x178] sm:$0xff] }
 0x3c3   : > { %4328 = vst [vmem:[%s6238_s30 + $0xa8] sm:$0xff] %v4232_v47  ;;  %4329 = vst [vmem:[%s6238_s30 + $0xb0] sm:$0xff] %v4233_v21  ;;  %v4146_v8 = vadd.f32 %v7181_v3, %v4033_v16  ;;  %v4236_v54 = vmax.f32 %v4140_v29, 0.0  ;;  %v4237_v10 = vmax.f32 %v4141_v0, 0.0  ;;  %v4238_v44 = vmax.f32 %v4142_v11, 0.0  ;;  %v4050_v42 = vld [vmem:[#allocation2 + $0x180] sm:$0xff] }
 0x3c4   : > { %4330 = vst [vmem:[%s6238_s30 + $0xb8] sm:$0xff] %v4234_v48  ;;  %v4239_v9 = vmax.f32 %v4143_v62, 0.0  ;;  %v4240_v30 = vmax.f32 %v4144_v2, 0.0  ;;  %v4241_v19 = vmax.f32 %v4145_v61, 0.0  ;;  %4331 = vst [vmem:[%s6238_s30 + $0xc0] sm:$0xff] %v4235_v20  ;;  %v4147_v60 = vadd.f32 %v7183_v56, %v4034_v13  ;;  %v4051_v31 = vld [vmem:[#allocation2 + $0x188] sm:$0xff] }
 0x3c5   : > { %v4242_v51 = vmax.f32 %v4146_v8, 0.0  ;;  %4332 = vst [vmem:[%s6238_s30 + $0xc8] sm:$0xff] %v4236_v54  ;;  %4333 = vst [vmem:[%s6238_s30 + $0xd0] sm:$0xff] %v4237_v10  ;;  %v4148_v63 = vadd.f32 %v7179_v52, %v4035_v40  ;;  %v4149_v35 = vadd.f32 %v7181_v3, %v4036_v14  ;;  %v4150_v46 = vadd.f32 %v7183_v56, %v4037_v15  ;;  %v4052_v24 = vld [vmem:[#allocation2 + $0x190] sm:$0xff]  ;;  %v4053_v21 = vld [vmem:[#allocation2 + $0x198] sm:$0xff] }
 0x3c6   : > { %4334 = vst [vmem:[%s6238_s30 + $0xd8] sm:$0xff] %v4238_v44  ;;  %4335 = vst [vmem:[%s6238_s30 + $0xe0] sm:$0xff] %v4239_v9  ;;  %v4151_v33 = vadd.f32 %v7179_v52, %v4038_v55  ;;  %v4152_v25 = vadd.f32 %v7181_v3, %v4039_v38  ;;  %v4153_v58 = vadd.f32 %v7183_v56, %v4040_v34  ;;  %v4243_v5 = vmax.f32 %v4147_v60, 0.0  ;;  %v4054_v48 = vld [vmem:[#allocation2 + $0x1a0] sm:$0xff]  ;;  %v4055_v18 = vld [vmem:[#allocation2 + $0x1a8] sm:$0xff] }
 0x3c7   : > { %4336 = vst [vmem:[%s6238_s30 + $0xe8] sm:$0xff] %v4240_v30  ;;  %4337 = vst [vmem:[%s6238_s30 + $0xf0] sm:$0xff] %v4241_v19  ;;  %v4154_v41 = vadd.f32 %v7179_v52, %v4041_v43  ;;  %v4244_v45 = vmax.f32 %v4148_v63, 0.0  ;;  %v4245_v12 = vmax.f32 %v4149_v35, 0.0  ;;  %v4246_v26 = vmax.f32 %v4150_v46, 0.0  ;;  %v4056_v40 = vld [vmem:[#allocation2 + $0x1b0] sm:$0xff] }
 0x3c8   : > { %4338 = vst [vmem:[%s6238_s30 + $0xf8] sm:$0xff] %v4242_v51  ;;  %v4247_v36 = vmax.f32 %v4151_v33, 0.0  ;;  %v4248_v28 = vmax.f32 %v4152_v25, 0.0  ;;  %v4249_v4 = vmax.f32 %v4153_v58, 0.0  ;;  %4339 = vst [vmem:[%s6238_s30 + $0x100] sm:$0xff] %v4243_v5  ;;  %v4155_v57 = vadd.f32 %v7181_v3, %v4042_v1  ;;  %v4057_v14 = vld [vmem:[#allocation2 + $0x1b8] sm:$0xff] }
 0x3c9   : > { %v4250_v23 = vmax.f32 %v4154_v41, 0.0  ;;  %4340 = vst [vmem:[%s6238_s30 + $0x108] sm:$0xff] %v4244_v45  ;;  %4341 = vst [vmem:[%s6238_s30 + $0x110] sm:$0xff] %v4245_v12  ;;  %v4156_v6 = vadd.f32 %v7183_v56, %v4043_v17  ;;  %v4157_v32 = vadd.f32 %v7179_v52, %v4044_v49  ;;  %v4158_v59 = vadd.f32 %v7181_v3, %v4045_v39  ;;  %v4058_v54 = vld [vmem:[#allocation2 + $0x1c0] sm:$0xff]  ;;  %v4059_v10 = vld [vmem:[#allocation2 + $0x1c8] sm:$0xff] }
 0x3ca   : > { %4342 = vst [vmem:[%s6238_s30 + $0x118] sm:$0xff] %v4246_v26  ;;  %4343 = vst [vmem:[%s6238_s30 + $0x120] sm:$0xff] %v4247_v36  ;;  %v4159_v7 = vadd.f32 %v7183_v56, %v4046_v27  ;;  %v4160_v16 = vadd.f32 %v7179_v52, %v4047_v22  ;;  %v4161_v50 = vadd.f32 %v7181_v3, %v4048_v53  ;;  %v4251_v29 = vmax.f32 %v4155_v57, 0.0  ;;  %v4060_v44 = vld [vmem:[#allocation2 + $0x1d0] sm:$0xff]  ;;  %v4061_v19 = vld [vmem:[#allocation2 + $0x1d8] sm:$0xff] }
 0x3cb   : > { %4344 = vst [vmem:[%s6238_s30 + $0x128] sm:$0xff] %v4248_v28  ;;  %4345 = vst [vmem:[%s6238_s30 + $0x130] sm:$0xff] %v4249_v4  ;;  %v4162_v47 = vadd.f32 %v7183_v56, %v4049_v37  ;;  %v4252_v0 = vmax.f32 %v4156_v6, 0.0  ;;  %v4253_v11 = vmax.f32 %v4157_v32, 0.0  ;;  %v4254_v13 = vmax.f32 %v4158_v59, 0.0  ;;  %v4062_v51 = vld [vmem:[#allocation2 + $0x1e0] sm:$0xff] }
 0x3cc   : > { %4346 = vst [vmem:[%s6238_s30 + $0x138] sm:$0xff] %v4250_v23  ;;  %v4255_v62 = vmax.f32 %v4159_v7, 0.0  ;;  %v4256_v2 = vmax.f32 %v4160_v16, 0.0  ;;  %v4257_v61 = vmax.f32 %v4161_v50, 0.0  ;;  %4347 = vst [vmem:[%s6238_s30 + $0x140] sm:$0xff] %v4251_v29  ;;  %v4163_v15 = vadd.f32 %v7179_v52, %v4050_v42  ;;  %v4063_v60 = vld [vmem:[#allocation2 + $0x1e8] sm:$0xff] }
 0x3cd   : > { %v4258_v8 = vmax.f32 %v4162_v47, 0.0  ;;  %4348 = vst [vmem:[%s6238_s30 + $0x148] sm:$0xff] %v4252_v0  ;;  %4349 = vst [vmem:[%s6238_s30 + $0x150] sm:$0xff] %v4253_v11  ;;  %v4164_v55 = vadd.f32 %v7181_v3, %v4051_v31  ;;  %v4165_v38 = vadd.f32 %v7183_v56, %v4052_v24  ;;  %v4166_v20 = vadd.f32 %v7179_v52, %v4053_v21  ;;  %v4064_v17 = vld [vmem:[#allocation2 + $0x1f0] sm:$0xff]  ;;  %v4065_v49 = vld [vmem:[#allocation2 + $0x1f8] sm:$0xff] }
 0x3ce   : > { %4350 = vst [vmem:[%s6238_s30 + $0x158] sm:$0xff] %v4254_v13  ;;  %4351 = vst [vmem:[%s6238_s30 + $0x160] sm:$0xff] %v4255_v62  ;;  %v4167_v34 = vadd.f32 %v7181_v3, %v4054_v48  ;;  %v4168_v43 = vadd.f32 %v7183_v56, %v4055_v18  ;;  %v4169_v9 = vadd.f32 %v7179_v52, %v4056_v40  ;;  %v4259_v63 = vmax.f32 %v4163_v15, 0.0  ;;  %v4066_v45 = vld [vmem:[#allocation2 + $0x200] sm:$0xff]  ;;  %v4067_v12 = vld [vmem:[#allocation2 + $0x208] sm:$0xff] }
 0x3cf   : > { %4352 = vst [vmem:[%s6238_s30 + $0x168] sm:$0xff] %v4256_v2  ;;  %4353 = vst [vmem:[%s6238_s30 + $0x170] sm:$0xff] %v4257_v61  ;;  %v4170_v30 = vadd.f32 %v7181_v3, %v4057_v14  ;;  %v4260_v35 = vmax.f32 %v4164_v55, 0.0  ;;  %v4261_v46 = vmax.f32 %v4165_v38, 0.0  ;;  %v4262_v1 = vmax.f32 %v4166_v20, 0.0  ;;  %v4068_v26 = vld [vmem:[#allocation2 + $0x210] sm:$0xff] }
 0x3d0   : > { %4354 = vst [vmem:[%s6238_s30 + $0x178] sm:$0xff] %v4258_v8  ;;  %v4263_v33 = vmax.f32 %v4167_v34, 0.0  ;;  %v4264_v25 = vmax.f32 %v4168_v43, 0.0  ;;  %v4265_v58 = vmax.f32 %v4169_v9, 0.0  ;;  %4355 = vst [vmem:[%s6238_s30 + $0x180] sm:$0xff] %v4259_v63  ;;  %v4171_v39 = vadd.f32 %v7183_v56, %v4058_v54  ;;  %v4069_v4 = vld [vmem:[#allocation2 + $0x218] sm:$0xff] }
 0x3d1   : > { %v4266_v41 = vmax.f32 %v4170_v30, 0.0  ;;  %4356 = vst [vmem:[%s6238_s30 + $0x188] sm:$0xff] %v4260_v35  ;;  %4357 = vst [vmem:[%s6238_s30 + $0x190] sm:$0xff] %v4261_v46  ;;  %v4172_v27 = vadd.f32 %v7179_v52, %v4059_v10  ;;  %v4173_v22 = vadd.f32 %v7181_v3, %v4060_v44  ;;  %v4174_v5 = vadd.f32 %v7183_v56, %v4061_v19  ;;  %v4070_v23 = vld [vmem:[#allocation2 + $0x220] sm:$0xff]  ;;  %v4071_v57 = vld [vmem:[#allocation2 + $0x228] sm:$0xff] }
 0x3d2   : > { %4358 = vst [vmem:[%s6238_s30 + $0x198] sm:$0xff] %v4262_v1  ;;  %4359 = vst [vmem:[%s6238_s30 + $0x1a0] sm:$0xff] %v4263_v33  ;;  %v4175_v53 = vadd.f32 %v7179_v52, %v4062_v51  ;;  %v4176_v37 = vadd.f32 %v7181_v3, %v4063_v60  ;;  %v4177_v36 = vadd.f32 %v7183_v56, %v4064_v17  ;;  %v4267_v6 = vmax.f32 %v4171_v39, 0.0  ;;  %v4072_v31 = vld [vmem:[#allocation2 + $0x230] sm:$0xff]  ;;  %v4073_v24 = vld [vmem:[#allocation2 + $0x238] sm:$0xff] }
 0x3d3   : > { %4360 = vst [vmem:[%s6238_s30 + $0x1a8] sm:$0xff] %v4264_v25  ;;  %4361 = vst [vmem:[%s6238_s30 + $0x1b0] sm:$0xff] %v4265_v58  ;;  %v4178_v28 = vadd.f32 %v7179_v52, %v4065_v49  ;;  %v4268_v32 = vmax.f32 %v4172_v27, 0.0  ;;  %v4269_v59 = vmax.f32 %v4173_v22, 0.0  ;;  %v4270_v42 = vmax.f32 %v4174_v5, 0.0  ;;  %v4074_v0 = vld [vmem:[#allocation2 + $0x240] sm:$0xff] }
 0x3d4   : > { %4362 = vst [vmem:[%s6238_s30 + $0x1b8] sm:$0xff] %v4266_v41  ;;  %v4271_v7 = vmax.f32 %v4175_v53, 0.0  ;;  %v4272_v16 = vmax.f32 %v4176_v37, 0.0  ;;  %v4273_v50 = vmax.f32 %v4177_v36, 0.0  ;;  %4363 = vst [vmem:[%s6238_s30 + $0x1c0] sm:$0xff] %v4267_v6  ;;  %v4179_v21 = vadd.f32 %v7181_v3, %v4066_v45  ;;  %v4075_v11 = vld [vmem:[#allocation2 + $0x248] sm:$0xff] }
 0x3d5   : > { %v4274_v47 = vmax.f32 %v4178_v28, 0.0  ;;  %4364 = vst [vmem:[%s6238_s30 + $0x1c8] sm:$0xff] %v4268_v32  ;;  %4365 = vst [vmem:[%s6238_s30 + $0x1d0] sm:$0xff] %v4269_v59  ;;  %v4180_v48 = vadd.f32 %v7183_v56, %v4067_v12  ;;  %v4181_v18 = vadd.f32 %v7179_v52, %v4068_v26  ;;  %v4182_v29 = vadd.f32 %v7181_v3, %v4069_v4  ;;  %v4076_v13 = vld [vmem:[#allocation2 + $0x250] sm:$0xff]  ;;  %v4077_v61 = vld [vmem:[#allocation2 + $0x258] sm:$0xff] }
 0x3d6   : > { %4366 = vst [vmem:[%s6238_s30 + $0x1d8] sm:$0xff] %v4270_v42  ;;  %4367 = vst [vmem:[%s6238_s30 + $0x1e0] sm:$0xff] %v4271_v7  ;;  %v4183_v40 = vadd.f32 %v7183_v56, %v4070_v23  ;;  %v4184_v14 = vadd.f32 %v7179_v52, %v4071_v57  ;;  %v4185_v62 = vadd.f32 %v7181_v3, %v4072_v31  ;;  %v4078_v8 = vld [vmem:[#allocation2 + $0x260] sm:$0xff]  ;;  %v4079_v15 = vld [vmem:[#allocation2 + $0x268] sm:$0xff]  ;;  %v4275_v55 = vmax.f32 %v4179_v21, 0.0 }
 0x3d7   : > { %4368 = vst [vmem:[%s6238_s30 + $0x1e8] sm:$0xff] %v4272_v16  ;;  %4369 = vst [vmem:[%s6238_s30 + $0x1f0] sm:$0xff] %v4273_v50  ;;  %v4186_v2 = vadd.f32 %v7183_v56, %v4073_v24  ;;  %v4276_v38 = vmax.f32 %v4180_v48, 0.0  ;;  %v4277_v20 = vmax.f32 %v4181_v18, 0.0  ;;  %v4278_v54 = vmax.f32 %v4182_v29, 0.0  ;;  %v4080_v10 = vld [vmem:[#allocation2 + $0x270] sm:$0xff] }
 0x3d8   : > { %4370 = vst [vmem:[%s6238_s30 + $0x1f8] sm:$0xff] %v4274_v47  ;;  %v4081_v44 = vld [vmem:[#allocation2 + $0x278] sm:$0xff]  ;;  %v4279_v34 = vmax.f32 %v4183_v40, 0.0  ;;  %v4280_v43 = vmax.f32 %v4184_v14, 0.0  ;;  %v4281_v9 = vmax.f32 %v4185_v62, 0.0  ;;  %4371 = vst [vmem:[%s6238_s30 + $0x200] sm:$0xff] %v4275_v55  ;;  %v4187_v19 = vadd.f32 %v7179_v52, %v4074_v0 }
 0x3d9   : > { %v4282_v30 = vmax.f32 %v4186_v2, 0.0  ;;  %4372 = vst [vmem:[%s6238_s30 + $0x208] sm:$0xff] %v4276_v38  ;;  %4373 = vst [vmem:[%s6238_s30 + $0x210] sm:$0xff] %v4277_v20  ;;  %v4188_v51 = vadd.f32 %v7181_v3, %v4075_v11  ;;  %v4189_v60 = vadd.f32 %v7183_v56, %v4076_v13  ;;  %v4190_v63 = vadd.f32 %v7179_v52, %v4077_v61  ;;  %v4082_v35 = vld [vmem:[#allocation2 + $0x280] sm:$0xff]  ;;  %v4083_v46 = vld [vmem:[#allocation2 + $0x288] sm:$0xff] }
 0x3da   : > { %4374 = vst [vmem:[%s6238_s30 + $0x218] sm:$0xff] %v4278_v54  ;;  %v4084_v1 = vld [vmem:[#allocation2 + $0x290] sm:$0xff]  ;;  %4375 = vst [vmem:[%s6238_s30 + $0x220] sm:$0xff] %v4279_v34  ;;  %v4191_v17 = vadd.f32 %v7181_v3, %v4078_v8  ;;  %v4192_v49 = vadd.f32 %v7183_v56, %v4079_v15  ;;  %v4193_v33 = vadd.f32 %v7179_v52, %v4080_v10  ;;  %v4085_v58 = vld [vmem:[#allocation2 + $0x298] sm:$0xff]  ;;  %v4283_v27 = vmax.f32 %v4187_v19, 0.0 }
 0x3db   : > { %4376 = vst [vmem:[%s6238_s30 + $0x228] sm:$0xff] %v4280_v43  ;;  %4377 = vst [vmem:[%s6238_s30 + $0x230] sm:$0xff] %v4281_v9  ;;  %v4194_v25 = vadd.f32 %v7181_v3, %v4081_v44  ;;  %v4086_v41 = vld [vmem:[#allocation2 + $0x2a0] sm:$0xff]  ;;  %v4087_v39 = vld [vmem:[#allocation2 + $0x2a8] sm:$0xff]  ;;  %v4284_v22 = vmax.f32 %v4188_v51, 0.0  ;;  %v4285_v5 = vmax.f32 %v4189_v60, 0.0  ;;  %v4195_v4 = vadd.f32 %v7183_v56, %v4082_v35 }
 0x3dc   : > { %4378 = vst [vmem:[%s6238_s30 + $0x238] sm:$0xff] %v4282_v30  ;;  %v4286_v45 = vmax.f32 %v4190_v63, 0.0  ;;  %v4088_v12 = vld [vmem:[#allocation2 + $0x2b0] sm:$0xff]  ;;  %v4089_v26 = vld [vmem:[#allocation2 + $0x2b8] sm:$0xff]  ;;  %v4287_v53 = vmax.f32 %v4191_v17, 0.0  ;;  %v4288_v37 = vmax.f32 %v4192_v49, 0.0  ;;  %v4196_v23 = vadd.f32 %v7179_v52, %v4083_v46 }
 0x3dd   : > { %v4289_v36 = vmax.f32 %v4193_v33, 0.0  ;;  %v4290_v28 = vmax.f32 %v4194_v25, 0.0  ;;  %4379 = vst [vmem:[%s6238_s30 + $0x240] sm:$0xff] %v4283_v27  ;;  %4380 = vst [vmem:[%s6238_s30 + $0x248] sm:$0xff] %v4284_v22  ;;  %v4197_v57 = vadd.f32 %v7181_v3, %v4084_v1  ;;  %v4198_v6 = vadd.f32 %v7183_v56, %v4085_v58  ;;  %v4090_v32 = vld [vmem:[#allocation2 + $0x2c0] sm:$0xff]  ;;  %v4091_v59 = vld [vmem:[#allocation2 + $0x2c8] sm:$0xff] }
 0x3de   : > { %4381 = vst [vmem:[%s6238_s30 + $0x250] sm:$0xff] %v4285_v5  ;;  %4382 = vst [vmem:[%s6238_s30 + $0x258] sm:$0xff] %v4286_v45  ;;  %v4092_v42 = vld [vmem:[#allocation2 + $0x2d0] sm:$0xff]  ;;  %v4199_v31 = vadd.f32 %v7179_v52, %v4086_v41  ;;  %v4200_v24 = vadd.f32 %v7181_v3, %v4087_v39  ;;  %v4201_v7 = vadd.f32 %v7183_v56, %v4088_v12  ;;  %v4093_v50 = vld [vmem:[#allocation2 + $0x2d8] sm:$0xff]  ;;  %v4291_v48 = vmax.f32 %v4195_v4, 0.0 }
 0x3df   : > { %4383 = vst [vmem:[%s6238_s30 + $0x260] sm:$0xff] %v4287_v53  ;;  %4384 = vst [vmem:[%s6238_s30 + $0x268] sm:$0xff] %v4288_v37  ;;  %v4202_v16 = vadd.f32 %v7179_v52, %v4089_v26  ;;  %v4094_v47 = vld [vmem:[#allocation2 + $0x2e0] sm:$0xff]  ;;  %v4095_v21 = vld [vmem:[#allocation2 + $0x2e8] sm:$0xff]  ;;  %v4292_v18 = vmax.f32 %v4196_v23, 0.0  ;;  %v4293_v29 = vmax.f32 %v4197_v57, 0.0  ;;  %v4203_v61 = vadd.f32 %v7181_v3, %v4090_v32 }
 0x3e0   : > { %4385 = vst [vmem:[%s6238_s30 + $0x270] sm:$0xff] %v4289_v36  ;;  %4386 = vst [vmem:[%s6238_s30 + $0x278] sm:$0xff] %v4290_v28  ;;  %v4294_v0 = vmax.f32 %v4198_v6, 0.0  ;;  %v4096_v11 = vld [vmem:[#allocation2 + $0x2f0] sm:$0xff]  ;;  %v4097_v13 = vld [vmem:[#allocation2 + $0x2f8] sm:$0xff]  ;;  %v4295_v40 = vmax.f32 %v4199_v31, 0.0  ;;  %v4204_v8 = vadd.f32 %v7183_v56, %v4091_v59  ;;  %v4205_v15 = vadd.f32 %v7179_v52, %v4092_v42 }
 0x3e1   : > { %v4296_v14 = vmax.f32 %v4200_v24, 0.0  ;;  %v4297_v62 = vmax.f32 %v4201_v7, 0.0  ;;  %v4298_v2 = vmax.f32 %v4202_v16, 0.0  ;;  %4387 = vst [vmem:[%s6238_s30 + $0x280] sm:$0xff] %v4291_v48  ;;  %4388 = vst [vmem:[%s6238_s30 + $0x288] sm:$0xff] %v4292_v18  ;;  %v4206_v55 = vadd.f32 %v7181_v3, %v4093_v50 }
 0x3e2   : > { %4389 = vst [vmem:[%s6238_s30 + $0x290] sm:$0xff] %v4293_v29  ;;  %4390 = vst [vmem:[%s6238_s30 + $0x298] sm:$0xff] %v4294_v0  ;;  %v4207_v38 = vadd.f32 %v7183_v56, %v4094_v47  ;;  %v4208_v20 = vadd.f32 %v7179_v52, %v4095_v21  ;;  %v4209_v54 = vadd.f32 %v7181_v3, %v4096_v11  ;;  %v4299_v44 = vmax.f32 %v4203_v61, 0.0 }
 0x3e3   : > { %4391 = vst [vmem:[%s6238_s30 + $0x2a0] sm:$0xff] %v4295_v40  ;;  %4392 = vst [vmem:[%s6238_s30 + $0x2a8] sm:$0xff] %v4296_v14  ;;  %v4210_v10 = vadd.f32 %v7183_v56, %v4097_v13  ;;  %v4300_v34 = vmax.f32 %v4204_v8, 0.0  ;;  %v4301_v43 = vmax.f32 %v4205_v15, 0.0  ;;  %v4302_v9 = vmax.f32 %v4206_v55, 0.0 }
 0x3e4   : > { %4393 = vst [vmem:[%s6238_s30 + $0x2b0] sm:$0xff] %v4297_v62  ;;  %4394 = vst [vmem:[%s6238_s30 + $0x2b8] sm:$0xff] %v4298_v2  ;;  %v4303_v30 = vmax.f32 %v4207_v38, 0.0  ;;  %v4304_v19 = vmax.f32 %v4208_v20, 0.0  ;;  %v4305_v51 = vmax.f32 %v4209_v54, 0.0 }
 0x3e5   : > { %v4306_v60 = vmax.f32 %v4210_v10, 0.0  ;;  %4395 = vst [vmem:[%s6238_s30 + $0x2c0] sm:$0xff] %v4299_v44  ;;  %4396 = vst [vmem:[%s6238_s30 + $0x2c8] sm:$0xff] %v4300_v34 }
 0x3e6   : > { %4397 = vst [vmem:[%s6238_s30 + $0x2d0] sm:$0xff] %v4301_v43  ;;  %4398 = vst [vmem:[%s6238_s30 + $0x2d8] sm:$0xff] %v4302_v9 }
 0x3e7   : > { %4399 = vst [vmem:[%s6238_s30 + $0x2e0] sm:$0xff] %v4303_v30  ;;  %4400 = vst [vmem:[%s6238_s30 + $0x2e8] sm:$0xff] %v4304_v19 }
 0x3e8   : > { %4401 = vst [vmem:[%s6238_s30 + $0x2f0] sm:$0xff] %v4305_v51  ;;  %4402 = vst [vmem:[%s6238_s30 + $0x2f8] sm:$0xff] %v4306_v60 }
 0x3e9 PF: > { %s13_s18 = sadd.s32 1, %s5689_s18   ;;  %s7443_s12 = smov %s5669_s13 }
 0x3ea   : > { %p10_p0 = scmp.ge.s32.totalorder %s13_s18, 6   ;;  %s7444_s13 = smov %s5764_s25 }
 0x3eb   : > { %s7445_s14 = smov %s5681_s16  ;;  %s7446_s15 = smov %s5685_s17 }
 0x3ec   : > { %s7447_s16 = smov %s7450_s19  ;;  %s7448_s17 = smov %s7454_s20 }
 0x3ed   :  { %12 = sbr.rel (!%p10_p0) target bundleno = 4 (0x4), region = 104 }

// kernel: block8_forward.5
= control target key start
LH: loop header
LB: loop body
LE: loop exit
PB: predicated region body
PF: predicated region fallthrough
CT: control target
= control target key end

     0   :  { %vm487_vm0 = vcmask 1046528   ;;  %vm1145_vm1 = vcmask 523264   ;;  %vm2164_vm2 = vcmask 1045504   ;;  %s7391_s1 = inlined_call_operand.vmem [shape: bf16[3,192,192], index: 1, kind: input, shape index: {}]   ;;  %s7392_s0 = inlined_call_operand.vmem [shape: f32[32,18,192], index: 0, kind: input, shape index: {}]   ;;  %s7393_s2 = inlined_call_operand.vmem [shape: f32[1,192], index: 2, kind: input, shape index: {}]   ;;  %s7394_s3 = inlined_call_operand.vmem [shape: f32[32,16,192], index: 3, kind: output, shape index: {}]  }
   0x1   :  { %v4295_v0 = vld [vmem:[%s7391_s1 + $0xc4] ss:$8 sps:$4 sm:$0xff]   ;;  %v4299_v2 = vld [vmem:[%s7391_s1 + $0xc0] ss:$8 sps:$4 sm:$0xff]   ;;  %v4301_v4 = vld [vmem:[%s7391_s1 + $0xd4] ss:$8 sps:$4 sm:$0xff]  }
   0x2   :  { %v4471_v1 = vld [vmem:[%s7391_s1 + $0x4] ss:$8 sps:$4 sm:$0xff]   ;;  %1242 = vmatprep.subr.bf16.mxu1 %v4295_v0  ;;  %v4479_v3 = vld [vmem:[%s7391_s1] ss:$8 sps:$4 sm:$0xff]   ;;  %v4489_v5 = vld [vmem:[%s7391_s1 + $0x14] ss:$8 sps:$4 sm:$0xff]  }
   0x3   :  { %1811 = vmatprep.subr.bf16.mxu0 %v4471_v1  ;;  %1243 = vmatpush1.bf16.msra.mxu1 %v4299_v2  ;;  %v4305_v6 = vld [vmem:[%s7391_s1 + $0xd0] ss:$8 sps:$4 sm:$0xff]   ;;  %v4307_v8 = vld [vmem:[%s7391_s1 + $0xe4] ss:$8 sps:$4 sm:$0xff]   ;;  %v4311_v10 = vld [vmem:[%s7391_s1 + $0xe0] ss:$8 sps:$4 sm:$0xff]  }
   0x4   :  { %1812 = vmatpush1.bf16.msra.mxu0 %v4479_v3  ;;  %1244 = vmatprep.subr.bf16.mxu1 %v4301_v4  ;;  %v4497_v7 = vld [vmem:[%s7391_s1 + $0x10] ss:$8 sps:$4 sm:$0xff]   ;;  %v4506_v9 = vld [vmem:[%s7391_s1 + $0x24] ss:$8 sps:$4 sm:$0xff]   ;;  %v4514_v11 = vld [vmem:[%s7391_s1 + $0x20] ss:$8 sps:$4 sm:$0xff]  }
   0x5   :  { %1813 = vmatprep.subr.bf16.mxu0 %v4489_v5  ;;  %v4313_v12 = vld [vmem:[%s7391_s1 + $0xf4] ss:$8 sps:$4 sm:$0xff]   ;;  %v4317_v14 = vld [vmem:[%s7391_s1 + $0xf0] ss:$8 sps:$4 sm:$0xff]   ;;  %v4319_v16 = vld [vmem:[%s7391_s1 + $0x104] ss:$8 sps:$4 sm:$0xff]  }
   0x6   :  { %v4524_v13 = vld [vmem:[%s7391_s1 + $0x34] ss:$8 sps:$4 sm:$0xff]   ;;  %v4533_v15 = vld [vmem:[%s7391_s1 + $0x30] ss:$8 sps:$4 sm:$0xff]   ;;  %v4542_v17 = vld [vmem:[%s7391_s1 + $0x44] ss:$8 sps:$4 sm:$0xff]  }
   0x7   :  { %1245 = vmatpush1.bf16.msra.mxu1 %v4305_v6  ;;  %v4323_v18 = vld [vmem:[%s7391_s1 + $0x100] ss:$8 sps:$4 sm:$0xff]   ;;  %v4325_v20 = vld [vmem:[%s7391_s1 + $0x114] ss:$8 sps:$4 sm:$0xff]   ;;  %v4329_v22 = vld [vmem:[%s7391_s1 + $0x110] ss:$8 sps:$4 sm:$0xff]  }
   0x8   :  { %1814 = vmatpush1.bf16.msra.mxu0 %v4497_v7  ;;  %1246 = vmatprep.subr.bf16.mxu1 %v4307_v8  ;;  %v4550_v19 = vld [vmem:[%s7391_s1 + $0x40] ss:$8 sps:$4 sm:$0xff]   ;;  %v4560_v21 = vld [vmem:[%s7391_s1 + $0x54] ss:$8 sps:$4 sm:$0xff]   ;;  %v4569_v23 = vld [vmem:[%s7391_s1 + $0x50] ss:$8 sps:$4 sm:$0xff]  }
   0x9   :  { %1815 = vmatprep.subr.bf16.mxu0 %v4506_v9  ;;  %v4331_v24 = vld [vmem:[%s7391_s1 + $0x124] ss:$8 sps:$4 sm:$0xff]   ;;  %v4335_v26 = vld [vmem:[%s7391_s1 + $0x120] ss:$8 sps:$4 sm:$0xff]   ;;  %v4337_v28 = vld [vmem:[%s7391_s1 + $0x134] ss:$8 sps:$4 sm:$0xff]  }
   0xa   :  { %v4578_v25 = vld [vmem:[%s7391_s1 + $0x64] ss:$8 sps:$4 sm:$0xff]   ;;  %v4586_v27 = vld [vmem:[%s7391_s1 + $0x60] ss:$8 sps:$4 sm:$0xff]   ;;  %v4596_v29 = vld [vmem:[%s7391_s1 + $0x74] ss:$8 sps:$4 sm:$0xff]  }
   0xb   :  { %1247 = vmatpush1.bf16.msra.mxu1 %v4311_v10  ;;  %v4341_v30 = vld [vmem:[%s7391_s1 + $0x130] ss:$8 sps:$4 sm:$0xff]   ;;  %v4343_v32 = vld [vmem:[%s7391_s1 + $0x144] ss:$8 sps:$4 sm:$0xff]   ;;  %v4347_v34 = vld [vmem:[%s7391_s1 + $0x140] ss:$8 sps:$4 sm:$0xff]  }
   0xc   :  { %1816 = vmatpush1.bf16.msra.mxu0 %v4514_v11  ;;  %1248 = vmatprep.subr.bf16.mxu1 %v4313_v12  ;;  %v4605_v31 = vld [vmem:[%s7391_s1 + $0x70] ss:$8 sps:$4 sm:$0xff]   ;;  %v4614_v33 = vld [vmem:[%s7391_s1 + $0x84] ss:$8 sps:$4 sm:$0xff]   ;;  %v4622_v35 = vld [vmem:[%s7391_s1 + $0x80] ss:$8 sps:$4 sm:$0xff]  }
   0xd   :  { %1817 = vmatprep.subr.bf16.mxu0 %v4524_v13  ;;  %v4349_v36 = vld [vmem:[%s7391_s1 + $0x154] ss:$8 sps:$4 sm:$0xff]   ;;  %v4631_v37 = vld [vmem:[%s7392_s0 + $0x8] sm:$0xff]  ;;  %v4353_v45 = vld [vmem:[%s7391_s1 + $0x150] ss:$8 sps:$4 sm:$0xff]  }
   0xe   :  { %v4636_v38 = vld [vmem:[%s7392_s0 + $0x18] sm:$0xff]  ;;  %v4641_v39 = vld [vmem:[%s7392_s0 + $0x28] sm:$0x3]  ;;  %v491_v41 = vrot.slane %v4631_v37, 1  ;;  %v4355_v49 = vld [vmem:[%s7391_s1 + $0x164] ss:$8 sps:$4 sm:$0xff]  }
   0xf   :  { %1249 = vmatpush1.bf16.msra.mxu1 %v4317_v14  ;;  %v4647_v40 = vld [vmem:[%s7391_s1 + $0x94] ss:$8 sps:$4 sm:$0xff]   ;;  %v492_v42 = vrot.slane %v4636_v38, 1  ;;  %v496_v43 = vrot.slane %v4641_v39, 1  ;;  %v208_v44 = vpack.c.bf16 %v4636_v38, %v4631_v37  ;;  %v4663_v48 = vld [vmem:[%s7391_s1 + $0x90] ss:$8 sps:$4 sm:$0xff]  }
  0x10   :  { %1818 = vmatpush1.bf16.msra.mxu0 %v4533_v15  ;;  %1250 = vmatprep.subr.bf16.mxu1 %v4319_v16  ;;  %v4671_v50 = vld [vmem:[%s7391_s1 + $0xa4] ss:$8 sps:$4 sm:$0xff]   ;;  %v4682_v53 = vld [vmem:[%s7392_s0 + $0x10] sm:$0xff]  ;;  %v4687_v54 = vld [vmem:[%s7392_s0 + $0x20] sm:$0x3] }
  0x11   :  { %1819 = vmatprep.subr.bf16.mxu0 %v4542_v17  ;;  %v493_v46 = vsel %vm487_vm0, %v491_v41, %v492_v42  ;;  %v497_v47 = vsel %vm487_vm0, %v492_v42, %v496_v43  ;;  %v4677_v52 = vld [vmem:[%s7392_s0] sm:$0xff]  ;;  %3903 = vmatprep.mubr.msk.bf16.mxu0 %vm1145_vm1, %v208_v44  ;;  %v4697_v56 = vld [vmem:[%s7392_s0 + $0x38] sm:$0xff]  ;;  %v4702_v57 = vld [vmem:[%s7392_s0 + $0x48] sm:$0xff]  ;;  %v489_v61 = vrot.slane %v4682_v53, 1  ;;  %v494_v62 = vrot.slane %v4687_v54, 1 }
  0x12   :  { %v937_v51 = vpack.c.bf16 %v497_v47, %v493_v46  ;;  %v4359_v55 = vld [vmem:[%s7391_s1 + $0x160] ss:$8 sps:$4 sm:$0xff]   ;;  %v4707_v58 = vld [vmem:[%s7392_s0 + $0x58] sm:$0x3]  ;;  %v488_v60 = vrot.slane %v4677_v52, 1  ;;  %v501_v2 = vrot.slane %v4697_v56, 1  ;;  %v210_v42 = vpack.c.bf16 %v4702_v57, %v4697_v56 }
  0x13   :  { %1251 = vmatpush1.bf16.msra.mxu1 %v4323_v18  ;;  %v4713_v59 = vld [vmem:[%s7391_s1 + $0xa0] ss:$8 sps:$4 sm:$0xff]   ;;  %v4361_v63 = vld [vmem:[%s7391_s1 + $0x174] ss:$8 sps:$4 sm:$0xff]   ;;  %v502_v4 = vrot.slane %v4702_v57, 1  ;;  %v506_v6 = vrot.slane %v4707_v58, 1  ;;  %v495_v14 = vsel %vm487_vm0, %v489_v61, %v494_v62 }
  0x14   :  { %1820 = vmatpush1.bf16.msra.mxu0 %v4550_v19  ;;  %1252 = vmatprep.subr.bf16.mxu1 %v4325_v20  ;;  %v4725_v0 = vld [vmem:[%s7391_s1 + $0xb4] ss:$8 sps:$4 sm:$0xff]   ;;  %v4365_v8 = vld [vmem:[%s7391_s1 + $0x170] ss:$8 sps:$4 sm:$0xff]   ;;  %v490_v12 = vsel %vm487_vm0, %v488_v60, %v489_v61  ;;  %v4369_v16 = vld [vmem:[%s7391_s1 + $0x184] ss:$8 sps:$4 sm:$0xff]  }
  0x15   :  { %1821 = vmatprep.subr.bf16.mxu0 %v4560_v21  ;;  %3847 = vmatprep.mubr.msk.bf16.mxu1 %vm1145_vm1, %v937_v51  ;;  %v4737_v10 = vld [vmem:[%s7391_s1 + $0xb0] ss:$8 sps:$4 sm:$0xff]   ;;  %v4753_v20 = vld [vmem:[%s7392_s0 + $0x40] sm:$0xff] }
  0x16   :  { %v4748_v18 = vld [vmem:[%s7392_s0 + $0x30] sm:$0xff]  ;;  %v4367_v41 = vld [vmem:[%s7391_s1 + $0x180] ss:$8 sps:$4 sm:$0xff]   ;;  %v499_v44 = vrot.slane %v4753_v20, 1 }
  0x17   :  { %1253 = vmatpush1.bf16.msra.mxu1 %v4329_v22  ;;  %v4758_v22 = vld [vmem:[%s7392_s0 + $0x50] sm:$0x3]  ;;  %v498_v43 = vrot.slane %v4748_v18, 1  ;;  %v4804_v62 = vld [vmem:[%s7392_s0 + $0x60] sm:$0xff] }
  0x18   :  { %1822 = vmatpush1.bf16.msra.mxu0 %v4569_v23  ;;  %1254 = vmatprep.subr.bf16.mxu1 %v4331_v24  ;;  %v503_v24 = vsel %vm487_vm0, %v501_v2, %v502_v4  ;;  %v4370_v61 = vld [vmem:[%s7391_s1 + $0x190] ss:$8 sps:$4 sm:$0xff]  }
  0x19   :  { %1823 = vmatprep.subr.bf16.mxu0 %v4578_v25  ;;  %v500_v60 = vsel %vm487_vm0, %v498_v43, %v499_v44 }
  0x1b   :  { %1255 = vmatpush1.bf16.msra.mxu1 %v4335_v26  ;;  %v507_v26 = vsel %vm487_vm0, %v502_v4, %v506_v6  ;;  %v4818_v4 = vld [vmem:[%s7392_s0 + $0x80] sm:$0x3]  ;;  %v4375_v6 = vld [vmem:[%s7391_s1 + $0x1a4] ss:$8 sps:$4 sm:$0xff]  }
  0x1c   :  { %1824 = vmatpush1.bf16.msra.mxu0 %v4586_v27  ;;  %1256 = vmatprep.subr.bf16.mxu1 %v4337_v28  ;;  %v4765_v28 = vld [vmem:[%s7392_s0 + $0x68] sm:$0xff]  ;;  %v939_v46 = vpack.c.bf16 %v507_v26, %v503_v24  ;;  %v209_v24 = vpack.c.bf16 %v4753_v20, %v4748_v18 }
  0x1d   :  { %1825 = vmatprep.subr.bf16.mxu0 %v4596_v29  ;;  %v511_v47 = vrot.slane %v4765_v28, 1 }
  0x1f   :  { %1257 = vmatpush1.bf16.msra.mxu1 %v4341_v30  ;;  %v4770_v30 = vld [vmem:[%s7392_s0 + $0x78] sm:$0xff] }
  0x20   :  { %1826 = vmatpush1.bf16.msra.mxu0 %v4605_v31  ;;  %1258 = vmatprep.subr.bf16.mxu1 %v4343_v32  ;;  %v4775_v32 = vld [vmem:[%s7392_s0 + $0x88] sm:$0x3]  ;;  %v212_v26 = vpack.c.bf16 %v4770_v30, %v4765_v28 }
  0x21   :  { %1827 = vmatprep.subr.bf16.mxu0 %v4614_v33  ;;  %v516_v51 = vrot.slane %v4775_v32, 1 }
  0x23   :  { %1259 = vmatpush1.bf16.msra.mxu1 %v4347_v34  ;;  %v936_v34 = vpack.c.bf16 %v495_v14, %v490_v12  ;;  %v4832_v12 = vld [vmem:[%s7392_s0 + $0xa8] sm:$0xff]  ;;  %v4837_v14 = vld [vmem:[%s7392_s0 + $0xb8] sm:$0x3] }
  0x24   :  { %1828 = vmatpush1.bf16.msra.mxu0 %v4622_v35  ;;  %1260 = vmatprep.subr.bf16.mxu1 %v4349_v36  ;;  %v207_v36 = vpack.c.bf16 %v4682_v53, %v4677_v52 }
  0x25   :  { %1829 = vmatprep.subr.bf16.mxu0 %v4647_v40 }
  0x27   :  { %1261 = vmatpush1.bf16.msra.mxu1 %v4353_v45  ;;  %v504_v45 = vrot.slane %v4758_v22, 1 }
  0x28   :  { %1830 = vmatpush1.bf16.msra.mxu0 %v4663_v48  ;;  %1262 = vmatprep.subr.bf16.mxu1 %v4355_v49  ;;  %v512_v49 = vrot.slane %v4770_v30, 1 }
  0x29   :  { %1831 = vmatprep.subr.bf16.mxu0 %v4671_v50 }
  0x2a   :  { %v517_v2 = vsel %vm487_vm0, %v512_v49, %v516_v51 }
  0x2b   :  { %1263 = vmatpush1.bf16.msra.mxu1 %v4359_v55  ;;  %v4372_v55 = vld [vmem:[%s7391_s1 + $0x194] ss:$8 sps:$4 sm:$0xff]  }
  0x2c   :  { %1832 = vmatpush1.bf16.msra.mxu0 %v4713_v59  ;;  %1264 = vmatprep.subr.bf16.mxu1 %v4361_v63  ;;  %v4809_v63 = vld [vmem:[%s7392_s0 + $0x70] sm:$0xff] }
  0x2d   :  { %1833 = vmatprep.subr.bf16.mxu0 %v4725_v0 }
  0x2f   :  { %1265 = vmatpush1.bf16.msra.mxu1 %v4365_v8  ;;  %v4826_v8 = vld [vmem:[%s7392_s0 + $0x98] sm:$0xff] }
  0x30   :  { %1834 = vmatpush1.bf16.msra.mxu0 %v4737_v10  ;;  %4015 = vmatprep.subr.bf16.mxu1 %v4471_v1  ;;  %v505_v1 = vsel %vm487_vm0, %v499_v44, %v504_v45  ;;  %v521_v43 = vrot.slane %v4826_v8, 1  ;;  %v522_v44 = vrot.slane %v4832_v12, 1  ;;  %v526_v45 = vrot.slane %v4837_v14, 1 }
  0x31   :  { %2918 = vmatprep.subr.bf16.mxu0 %v4369_v16  ;;  %v938_v16 = vpack.c.bf16 %v505_v1, %v500_v60  ;;  %v4876_v60 = vld [vmem:[%s7392_s0 + $0xb0] sm:$0x3]  ;;  %v4881_v1 = vld [vmem:[%s7392_s0 + $0xc8] sm:$0xff] }
  0x32   :  { %1275 = vmatmul.mubr.bf16.vlgmr.msra.gmra.mrb[0].mxu1 %v936_v34  ;;  %v523_v51 = vsel %vm487_vm0, %v521_v43, %v522_v44  ;;  %v4379_v43 = vld [vmem:[%s7391_s1 + $0x1c0] ss:$8 sps:$4 sm:$0xff]  }
  0x33   :  { %1844 = vmatmul.mubr.bf16.vlgmr.msra.gmra.mrb[0].mxu0 %v207_v36  ;;  %4027 = vmatpush1.bf16.msra.mxu1 %v4479_v3  ;;  %v513_v3 = vsel %vm487_vm0, %v511_v47, %v512_v49  ;;  %v509_v36 = vrot.slane %v4809_v63, 1 }
  0x34   :  { %2919 = vmatpush1.bf16.msra.mxu0 %v4367_v41  ;;  %3848 = vmatprep.mubr.msk.bf16.mxu1 %vm1145_vm1, %v939_v46  ;;  %v941_v34 = vpack.c.bf16 %v517_v2, %v513_v3  ;;  %v514_v41 = vrot.slane %v4818_v4, 1  ;;  %v4378_v46 = vld [vmem:[%s7391_s1 + $0x1b4] ss:$8 sps:$4 sm:$0xff]   ;;  %v4895_v2 = vld [vmem:[%s7392_s0 + $0xe8] sm:$0x3] }
  0x35   :  { %3904 = vmatprep.mubr.msk.bf16.mxu0 %vm1145_vm1, %v210_v42  ;;  %2920 = vmatprep.subr.bf16.mxu0 %v4372_v55  ;;  %v4373_v42 = vld [vmem:[%s7391_s1 + $0x1a0] ss:$8 sps:$4 sm:$0xff]   ;;  %v527_v55 = vsel %vm487_vm0, %v522_v44, %v526_v45  ;;  %v4890_v3 = vld [vmem:[%s7392_s0 + $0xd8] sm:$0xff] }
  0x36   :  { %4016 = vmatprep.subr.bf16.mxu1 %v4489_v5  ;;  %v508_v5 = vrot.slane %v4804_v62, 1  ;;  %v515_v49 = vsel %vm487_vm0, %v509_v36, %v514_v41  ;;  %v531_v41 = vrot.slane %v4881_v1, 1  ;;  %v4384_v44 = vld [vmem:[%s7391_s1 + $0x1d4] ss:$8 sps:$4 sm:$0xff]  }
  0x37   :  { %4028 = vmatpush1.bf16.msra.mxu1 %v4497_v7  ;;  %v4860_v7 = vld [vmem:[%s7392_s0 + $0x90] sm:$0xff] }
  0x38   :  { %2921 = vmatpush1.bf16.msra.mxu0 %v4370_v61  ;;  %4017 = vmatprep.subr.bf16.mxu1 %v4506_v9  ;;  %v510_v47 = vsel %vm487_vm0, %v508_v5, %v509_v36  ;;  %v4869_v9 = vld [vmem:[%s7392_s0 + $0xa0] sm:$0xff]  ;;  %v4376_v61 = vld [vmem:[%s7391_s1 + $0x1b0] ss:$8 sps:$4 sm:$0xff]   ;;  %v524_v36 = vrot.slane %v4876_v60, 1 }
  0x39   :  { %2922 = vmatprep.subr.bf16.mxu0 %v4375_v6  ;;  %v4381_v6 = vld [vmem:[%s7391_s1 + $0x1c4] ss:$8 sps:$4 sm:$0xff]   ;;  %v519_v5 = vrot.slane %v4869_v9, 1 }
  0x3a   :  { %1285 = vmatmul.mubr.bf16.gmra.mrb[4].mxu1 %v938_v16  ;;  %v940_v16 = vpack.c.bf16 %v515_v49, %v510_v47  ;;  %v4931_v47 = vld [vmem:[%s7392_s0 + $0xd0] sm:$0xff] }
  0x3b   :  { %1854 = vmatmul.mubr.bf16.gmra.mrb[4].mxu0 %v209_v24  ;;  %3849 = vmatprep.mubr.msk.bf16.mxu1 %vm1145_vm1, %v941_v34  ;;  %v214_v24 = vpack.c.bf16 %v4832_v12, %v4826_v8  ;;  %v518_v34 = vrot.slane %v4860_v7, 1 }
  0x3c   :  { %3905 = vmatprep.mubr.msk.bf16.mxu0 %vm1145_vm1, %v212_v26  ;;  %2923 = vmatpush1.bf16.msra.mxu0 %v4373_v42  ;;  %v943_v26 = vpack.c.bf16 %v527_v55, %v523_v51  ;;  %v532_v42 = vrot.slane %v4890_v3, 1  ;;  %v4938_v51 = vld [vmem:[%s7392_s0 + $0xe0] sm:$0x3]  ;;  %v4943_v55 = vld [vmem:[%s7392_s0 + $0xf8] sm:$0xff] }
  0x3d   :  { %4029 = vmatpush1.bf16.msra.mxu1 %v4514_v11  ;;  %2924 = vmatprep.subr.bf16.mxu0 %v4378_v46  ;;  %v211_v11 = vpack.c.bf16 %v4809_v63, %v4804_v62  ;;  %v520_v45 = vsel %vm487_vm0, %v518_v34, %v519_v5  ;;  %v525_v46 = vsel %vm487_vm0, %v519_v5, %v524_v36  ;;  %v529_v36 = vrot.slane %v4931_v47, 1 }
  0x3e   :  { %4018 = vmatprep.subr.bf16.mxu1 %v4524_v13  ;;  %v536_v13 = vrot.slane %v4895_v2, 1  ;;  %7487 = vst [vmem:[#allocation2_spill] sm:$0xff] %v4938_v51  ;;  %7488 = vst [vmem:[#allocation3_spill] sm:$0xff] %v4943_v55 }
  0x40   :  { %2925 = vmatpush1.bf16.msra.mxu0 %v4376_v61  ;;  %v537_v49 = vsel %vm487_vm0, %v532_v42, %v536_v13  ;;  %v4382_v61 = vld [vmem:[%s7391_s1 + $0x1d0] ss:$8 sps:$4 sm:$0xff]  }
  0x41   :  { %4030 = vmatpush1.bf16.msra.mxu1 %v4533_v15  ;;  %2926 = vmatprep.subr.bf16.mxu0 %v4381_v6  ;;  %v4926_v15 = vld [vmem:[%s7392_s0 + $0xc0] sm:$0xff]  ;;  %v4952_v6 = vld [vmem:[%s7392_s0 + $0x108] sm:$0xff] }
  0x42   :  { %4019 = vmatprep.subr.bf16.mxu1 %v4542_v17  ;;  %1295 = vmatmul.mubr.bf16.gmra.mrb[8].mxu1 %v940_v16  ;;  %v533_v17 = vsel %vm487_vm0, %v531_v41, %v532_v42  ;;  %7489 = vst [vmem:[#allocation4_spill] sm:$0xff] %v4952_v6  ;;  %v4957_v16 = vld [vmem:[%s7392_s0 + $0x118] sm:$0x3]  ;;  %v528_v5 = vrot.slane %v4926_v15, 1  ;;  %v534_v41 = vrot.slane %v4938_v51, 1  ;;  %v541_v42 = vrot.slane %v4943_v55, 1 }
  0x43   :  { %1864 = vmatmul.mubr.bf16.gmra.mrb[8].mxu0 %v211_v11  ;;  %3850 = vmatprep.mubr.msk.bf16.mxu1 %vm1145_vm1, %v943_v26  ;;  %7490 = vst [vmem:[#allocation5_spill] sm:$0xff] %v4957_v16  ;;  %v4387_v11 = vld [vmem:[%s7391_s1 + $0x1e4] ss:$8 sps:$4 sm:$0xff]   ;;  %v216_v26 = vpack.c.bf16 %v4890_v3, %v4881_v1  ;;  %v945_v34 = vpack.c.bf16 %v537_v49, %v533_v17  ;;  %v542_v13 = vrot.slane %v4952_v6, 1 }
  0x44   :  { %3906 = vmatprep.mubr.msk.bf16.mxu0 %vm1145_vm1, %v214_v24  ;;  %2927 = vmatpush1.bf16.msra.mxu0 %v4379_v43  ;;  %v942_v24 = vpack.c.bf16 %v525_v46, %v520_v45  ;;  %v4385_v43 = vld [vmem:[%s7391_s1 + $0x1e0] ss:$8 sps:$4 sm:$0xff]   ;;  %v4983_v45 = vld [vmem:[%s7392_s0 + $0xf0] sm:$0xff]  ;;  %v530_v46 = vsel %vm487_vm0, %v528_v5, %v529_v36  ;;  %v535_v17 = vsel %vm487_vm0, %v529_v36, %v534_v41  ;;  %v4393_v5 = vld [vmem:[%s7391_s1 + $0x204] ss:$8 sps:$4 sm:$0xff]  }
  0x45   :  { %4031 = vmatpush1.bf16.msra.mxu1 %v4550_v19  ;;  %2928 = vmatprep.subr.bf16.mxu0 %v4384_v44  ;;  %v213_v19 = vpack.c.bf16 %v4869_v9, %v4860_v7  ;;  %v4390_v44 = vld [vmem:[%s7391_s1 + $0x1f4] ss:$8 sps:$4 sm:$0xff]   ;;  %v4992_v49 = vld [vmem:[%s7392_s0 + $0x100] sm:$0xff]  ;;  %v944_v36 = vpack.c.bf16 %v535_v17, %v530_v46  ;;  %v218_v41 = vpack.c.bf16 %v4952_v6, %v4943_v55 }
  0x46   :  { %4020 = vmatprep.subr.bf16.mxu1 %v4560_v21  ;;  %v546_v21 = vrot.slane %v4957_v16, 1  ;;  %v5038_v17 = vld [vmem:[%s7392_s0 + $0x120] sm:$0xff] }
  0x48   :  { %2929 = vmatpush1.bf16.msra.mxu0 %v4382_v61  ;;  %v547_v61 = vsel %vm487_vm0, %v542_v13, %v546_v21  ;;  %v539_v21 = vrot.slane %v4992_v49, 1 }
  0x49   :  { %2930 = vmatprep.subr.bf16.mxu0 %v4387_v11  ;;  %4032 = vmatpush1.bf16.msra.mxu1 %v4569_v23  ;;  %v543_v23 = vsel %vm487_vm0, %v541_v42, %v542_v13  ;;  %v4999_v11 = vld [vmem:[%s7392_s0 + $0x110] sm:$0x3]  ;;  %v538_v13 = vrot.slane %v4983_v45, 1 }
  0x4a   :  { %1305 = vmatmul.mubr.bf16.gmra.mrb[12].mxu1 %v942_v24  ;;  %7491 = vst [vmem:[#allocation6_spill] sm:$0xff] %v4999_v11  ;;  %v5004_v24 = vld [vmem:[%s7392_s0 + $0x128] sm:$0xff]  ;;  %4021 = vmatprep.subr.bf16.mxu1 %v4578_v25  ;;  %v215_v25 = vpack.c.bf16 %v4931_v47, %v4926_v15  ;;  %v947_v42 = vpack.c.bf16 %v547_v61, %v543_v23  ;;  %v5046_v23 = vld [vmem:[%s7392_s0 + $0x130] sm:$0xff]  ;;  %v5051_v61 = vld [vmem:[%s7392_s0 + $0x140] sm:$0x3] }
  0x4b   :  { %1874 = vmatmul.mubr.bf16.gmra.mrb[12].mxu0 %v213_v19  ;;  %3851 = vmatprep.mubr.msk.bf16.mxu1 %vm1145_vm1, %v945_v34  ;;  %v4388_v19 = vld [vmem:[%s7391_s1 + $0x1f0] ss:$8 sps:$4 sm:$0xff]   ;;  %v5018_v34 = vld [vmem:[%s7392_s0 + $0x148] sm:$0x3]  ;;  %7493 = vst [vmem:[#allocation8_spill] sm:$0xff] %v5051_v61  ;;  %v549_v55 = vrot.slane %v5046_v23, 1 }
  0x4c   :  { %3907 = vmatprep.mubr.msk.bf16.mxu0 %vm1145_vm1, %v216_v26  ;;  %2931 = vmatpush1.bf16.msra.mxu0 %v4385_v43  ;;  %v5013_v26 = vld [vmem:[%s7392_s0 + $0x138] sm:$0xff]  ;;  %7492 = vst [vmem:[#allocation7_spill] sm:$0xff] %v5018_v34  ;;  %v544_v43 = vrot.slane %v4999_v11, 1  ;;  %v556_v46 = vrot.slane %v5018_v34, 1  ;;  %v5065_v11 = vld [vmem:[%s7392_s0 + $0x168] sm:$0xff]  ;;  %v554_v51 = vrot.slane %v5051_v61, 1 }
  0x4d   :  { %2932 = vmatprep.subr.bf16.mxu0 %v4390_v44  ;;  %4033 = vmatpush1.bf16.msra.mxu1 %v4586_v27  ;;  %v551_v44 = vrot.slane %v5004_v24, 1  ;;  %v552_v27 = vrot.slane %v5013_v26, 1  ;;  %v4396_v34 = vld [vmem:[%s7391_s1 + $0x214] ss:$8 sps:$4 sm:$0xff]   ;;  %v2165_v61 = vrot.slane %v4677_v52, 2 }
  0x4e   :  { %4022 = vmatprep.subr.bf16.mxu1 %v4596_v29  ;;  %v4391_v29 = vld [vmem:[%s7391_s1 + $0x200] ss:$8 sps:$4 sm:$0xff]   ;;  %v5113_v52 = vld [vmem:[%s7392_s0 + $0x150] sm:$0xff] }
  0x4f   :  { %v553_v16 = vsel %vm487_vm0, %v551_v44, %v552_v27  ;;  %v557_v6 = vsel %vm487_vm0, %v552_v27, %v556_v46  ;;  %v2168_v44 = vrot.slane %v4631_v37, 2  ;;  %v2169_v27 = vrot.slane %v4636_v38, 2 }
  0x50   :  { %2933 = vmatpush1.bf16.msra.mxu0 %v4388_v19  ;;  %v5060_v19 = vld [vmem:[%s7392_s0 + $0x158] sm:$0xff]  ;;  %v555_v38 = vsel %vm487_vm0, %v549_v55, %v554_v51 }
  0x51   :  { %2934 = vmatprep.subr.bf16.mxu0 %v4393_v5  ;;  %4034 = vmatpush1.bf16.msra.mxu1 %v4605_v31  ;;  %v5070_v5 = vld [vmem:[%s7392_s0 + $0x178] sm:$0x3]  ;;  %v540_v31 = vsel %vm487_vm0, %v538_v13, %v539_v21  ;;  %v562_v13 = vrot.slane %v5065_v11, 1  ;;  %v5125_v51 = vsel %vm2164_vm2, %v2168_v44, %v2169_v27  ;;  %v222_v44 = vpack.c.bf16 %v5065_v11, %v5060_v19 }
  0x52   :  { %1315 = vmatmul.mubr.bf16.gmra.mrb[16].mxu1 %v944_v36  ;;  %7494 = vst [vmem:[#allocation9_spill] sm:$0xff] %v5070_v5  ;;  %v545_v36 = vsel %vm487_vm0, %v539_v21, %v544_v43  ;;  %4023 = vmatprep.subr.bf16.mxu1 %v4614_v33  ;;  %v566_v21 = vrot.slane %v5070_v5, 1  ;;  %v4399_v43 = vld [vmem:[%s7391_s1 + $0x224] ss:$8 sps:$4 sm:$0xff]   ;;  %v217_v33 = vpack.c.bf16 %v4992_v49, %v4983_v45 }
  0x53   :  { %1884 = vmatmul.mubr.bf16.gmra.mrb[16].mxu0 %v215_v25  ;;  %3852 = vmatprep.mubr.msk.bf16.mxu1 %vm1145_vm1, %v947_v42  ;;  %v548_v25 = vrot.slane %v5038_v17, 1  ;;  %v4394_v42 = vld [vmem:[%s7391_s1 + $0x210] ss:$8 sps:$4 sm:$0xff]   ;;  %v946_v46 = vpack.c.bf16 %v545_v36, %v540_v31  ;;  %v949_v5 = vpack.c.bf16 %v557_v6, %v553_v16  ;;  %v4397_v31 = vld [vmem:[%s7391_s1 + $0x220] ss:$8 sps:$4 sm:$0xff]   ;;  %v219_v16 = vpack.c.bf16 %v5046_v23, %v5038_v17 }
  0x54   :  { %3908 = vmatprep.mubr.msk.bf16.mxu0 %vm1145_vm1, %v218_v41  ;;  %2935 = vmatpush1.bf16.msra.mxu0 %v4391_v29  ;;  %v561_v41 = vrot.slane %v5060_v19, 1  ;;  %v2173_v29 = vrot.slane %v4641_v39, 2  ;;  %v567_v6 = vsel %vm487_vm0, %v562_v13, %v566_v21  ;;  %v5139_v36 = vld [vmem:[%s7392_s0 + $0x188] sm:$0xff] }
  0x55   :  { %2936 = vmatprep.subr.bf16.mxu0 %v4396_v34  ;;  %4035 = vmatpush1.bf16.msra.mxu1 %v4622_v35  ;;  %v220_v34 = vpack.c.bf16 %v5013_v26, %v5004_v24  ;;  %v2166_v35 = vrot.slane %v4682_v53, 2  ;;  %v550_v37 = vsel %vm487_vm0, %v548_v25, %v549_v55  ;;  %v4402_v53 = vld [vmem:[%s7391_s1 + $0x234] ss:$8 sps:$4 sm:$0xff]  }
  0x56   :  { %4024 = vmatprep.subr.bf16.mxu1 %v4647_v40  ;;  %v2171_v40 = vrot.slane %v4687_v54, 2  ;;  %v563_v39 = vsel %vm487_vm0, %v561_v41, %v562_v13  ;;  %v5122_v54 = vld [vmem:[%s7392_s0 + $0x160] sm:$0xff]  ;;  %v948_v55 = vpack.c.bf16 %v555_v38, %v550_v37  ;;  %v5150_v41 = vld [vmem:[%s7392_s0 + $0x1a8] sm:$0x3]  ;;  %v4400_v13 = vld [vmem:[%s7391_s1 + $0x230] ss:$8 sps:$4 sm:$0xff]   ;;  %v5156_v21 = vsel %vm2164_vm2, %v2169_v27, %v2173_v29 }
  0x57   :  { %v951_v25 = vpack.c.bf16 %v567_v6, %v563_v39  ;;  %v576_v37 = vrot.slane %v5150_v41, 1  ;;  %v2178_v38 = vrot.slane %v4697_v56, 2  ;;  %v2175_v6 = vrot.slane %v4748_v18, 2 }
  0x58   :  { %2937 = vmatpush1.bf16.msra.mxu0 %v4394_v42  ;;  %v558_v42 = vrot.slane %v5113_v52, 1 }
  0x59   :  { %2938 = vmatprep.subr.bf16.mxu0 %v4399_v43  ;;  %4036 = vmatpush1.bf16.msra.mxu1 %v4663_v48  ;;  %v5134_v48 = vld [vmem:[%s7392_s0 + $0x170] sm:$0x3]  ;;  %v5159_v43 = vsel %vm2164_vm2, %v2165_v61, %v2166_v35  ;;  %v571_v61 = vrot.slane %v5139_v36, 1 }
  0x5a   :  { %1325 = vmatmul.mubr.bf16.gmra.mrb[20].mxu1 %v946_v46  ;;  %4025 = vmatprep.subr.bf16.mxu1 %v4671_v50  ;;  %v559_v46 = vrot.slane %v5122_v54, 1  ;;  %v564_v27 = vrot.slane %v5134_v48, 1 }
  0x5b   :  { %1894 = vmatmul.mubr.bf16.gmra.mrb[20].mxu0 %v217_v33  ;;  %3853 = vmatprep.mubr.msk.bf16.mxu1 %vm1145_vm1, %v949_v5  ;;  %v5144_v5 = vld [vmem:[%s7392_s0 + $0x198] sm:$0xff] }
  0x5c   :  { %3909 = vmatprep.mubr.msk.bf16.mxu0 %vm1145_vm1, %v220_v34  ;;  %2939 = vmatpush1.bf16.msra.mxu0 %v4397_v31  ;;  %v5168_v34 = vsel %vm2164_vm2, %v2166_v35, %v2171_v40  ;;  %v572_v50 = vrot.slane %v5144_v5, 1  ;;  %v2179_v35 = vrot.slane %v4702_v57, 2  ;;  %v2183_v31 = vrot.slane %v4707_v58, 2  ;;  %v5186_v40 = vld [vmem:[%s7392_s0 + $0x180] sm:$0xff]  ;;  %v5199_v57 = vld [vmem:[%s7392_s0 + $0x190] sm:$0xff] }
  0x5d   :  { %2940 = vmatprep.subr.bf16.mxu0 %v4402_v53  ;;  %4037 = vmatpush1.bf16.msra.mxu1 %v4713_v59  ;;  %v221_v59 = vpack.c.bf16 %v5122_v54, %v5113_v52  ;;  %v560_v56 = vsel %vm487_vm0, %v558_v42, %v559_v46  ;;  %v2176_v53 = vrot.slane %v4753_v20, 2  ;;  %v5213_v42 = vld [vmem:[%s7392_s0 + $0x1a0] sm:$0x3]  ;;  %v224_v18 = vpack.c.bf16 %v5144_v5, %v5139_v36 }
  0x5e   :  { %4026 = vmatprep.subr.bf16.mxu1 %v4725_v0  ;;  %v5189_v39 = vsel %vm2164_vm2, %v2178_v38, %v2179_v35  ;;  %v5192_v0 = vsel %vm2164_vm2, %v2179_v35, %v2183_v31  ;;  %7495 = vst [vmem:[#allocation10_spill] sm:$0xff] %v5213_v42  ;;  %v568_v20 = vrot.slane %v5186_v40, 1  ;;  %v2193_v38 = vrot.slane %v4775_v32, 2  ;;  %v5335_v32 = vld [vmem:[%s7392_s0 + $0x1e0] sm:$0xff] }
  0x5f   :  { %7505 = vst [vmem:[#allocation20_spill] sm:$0xff] %v5335_v32 }
  0x60   :  { %2941 = vmatpush1.bf16.msra.mxu0 %v4400_v13  ;;  %v2181_v13 = vrot.slane %v4758_v22, 2  ;;  %v2188_v22 = vrot.slane %v4765_v28, 2 }
  0x61   :  { %4038 = vmatpush1.bf16.msra.mxu1 %v4737_v10  ;;  %v565_v10 = vsel %vm487_vm0, %v559_v46, %v564_v27  ;;  %v5230_v46 = vsel %vm2164_vm2, %v2175_v6, %v2176_v53  ;;  %v569_v27 = vrot.slane %v5199_v57, 1  ;;  %v574_v6 = vrot.slane %v5213_v42, 1 }
  0x62   :  { %1335 = vmatmul.mubr.bf16.gmra.mrb[24].mxu1 %v948_v55  ;;  %v573_v55 = vsel %vm487_vm0, %v571_v61, %v572_v50  ;;  %v5237_v61 = vld [vmem:[%s7392_s0 + $0x1d8] sm:$0x3]  ;;  %v950_v35 = vpack.c.bf16 %v565_v10, %v560_v56  ;;  %v2185_v56 = vrot.slane %v4804_v62, 2  ;;  %v2186_v10 = vrot.slane %v4809_v63, 2 }
  0x63   :  { %1904 = vmatmul.mubr.bf16.gmra.mrb[24].mxu0 %v219_v16  ;;  %3854 = vmatprep.mubr.msk.bf16.mxu1 %vm1145_vm1, %v951_v25  ;;  %v577_v16 = vsel %vm487_vm0, %v572_v50, %v576_v37  ;;  %v5222_v25 = vld [vmem:[%s7392_s0 + $0x1b8] sm:$0xff]  ;;  %7498 = vst [vmem:[#allocation13_spill] sm:$0xff] %v5237_v61  ;;  %v5240_v50 = vsel %vm2164_vm2, %v2176_v53, %v2181_v13  ;;  %v2189_v37 = vrot.slane %v4770_v30, 2  ;;  %v586_v30 = vrot.slane %v5237_v61, 1 }
  0x64   :  { %3910 = vmatprep.mubr.msk.bf16.mxu0 %vm1145_vm1, %v222_v44  ;;  %7496 = vst [vmem:[#allocation11_spill] sm:$0xff] %v5222_v25  ;;  %v5227_v44 = vld [vmem:[%s7392_s0 + $0x1c8] sm:$0xff]  ;;  %v953_v31 = vpack.c.bf16 %v577_v16, %v573_v55  ;;  %v581_v58 = vrot.slane %v5222_v25, 1  ;;  %v2191_v55 = vrot.slane %v4818_v4, 2  ;;  %v570_v16 = vsel %vm487_vm0, %v568_v20, %v569_v27 }
  0x65   :  { %7497 = vst [vmem:[#allocation12_spill] sm:$0xff] %v5227_v44  ;;  %v582_v29 = vrot.slane %v5227_v44, 1  ;;  %v5250_v33 = vsel %vm2164_vm2, %v2188_v22, %v2189_v37  ;;  %v5253_v53 = vsel %vm2164_vm2, %v2189_v37, %v2193_v38  ;;  %v5263_v13 = vsel %vm2164_vm2, %v2185_v56, %v2186_v10 }
  0x66   :  { %v2198_v22 = vrot.slane %v4826_v8, 2  ;;  %v575_v37 = vsel %vm487_vm0, %v569_v27, %v574_v6  ;;  %v5270_v62 = vsel %vm2164_vm2, %v2186_v10, %v2191_v55  ;;  %v2199_v63 = vrot.slane %v4832_v12, 2  ;;  %v5279_v8 = vld [vmem:[%s7392_s0 + $0x1b0] sm:$0xff]  ;;  %v5306_v27 = vld [vmem:[%s7392_s0 + $0x208] sm:$0x3] }
  0x67   :  { %v2203_v4 = vrot.slane %v4837_v14, 2  ;;  %v587_v20 = vsel %vm487_vm0, %v582_v29, %v586_v30  ;;  %7499 = vst [vmem:[#allocation14_spill] sm:$0xff] %v5279_v8  ;;  %v5289_v12 = vld [vmem:[%s7392_s0 + $0x1d0] sm:$0x3]  ;;  %7504 = vst [vmem:[#allocation19_spill] sm:$0xff] %v5306_v27  ;;  %v223_v6 = vpack.c.bf16 %v5199_v57, %v5186_v40  ;;  %v226_v30 = vpack.c.bf16 %v5227_v44, %v5222_v25 }
  0x68   :  { %7501 = vst [vmem:[#allocation16_spill] sm:$0xff] %v5289_v12  ;;  %v5309_v38 = vsel %vm2164_vm2, %v2198_v22, %v2199_v63  ;;  %v578_v55 = vrot.slane %v5279_v8, 1  ;;  %v584_v22 = vrot.slane %v5289_v12, 1 }
  0x6a   :  { %1345 = vmatmul.mubr.bf16.gmra.mrb[28].mxu1 %v950_v35  ;;  %v5312_v35 = vsel %vm2164_vm2, %v2199_v63, %v2203_v4 }
  0x6b   :  { %1914 = vmatmul.mubr.bf16.gmra.mrb[28].mxu0 %v221_v59  ;;  %3855 = vmatprep.mubr.msk.bf16.mxu1 %vm1145_vm1, %v953_v31  ;;  %v583_v59 = vsel %vm487_vm0, %v581_v58, %v582_v29  ;;  %v5296_v29 = vld [vmem:[%s7392_s0 + $0x1e8] sm:$0xff]  ;;  %v5301_v58 = vld [vmem:[%s7392_s0 + $0x1f8] sm:$0xff]  ;;  %v952_v31 = vpack.c.bf16 %v575_v37, %v570_v16  ;;  %v596_v37 = vrot.slane %v5306_v27, 1 }
  0x6c   :  { %3911 = vmatprep.mubr.msk.bf16.mxu0 %vm1145_vm1, %v224_v18  ;;  %v5284_v18 = vld [vmem:[%s7392_s0 + $0x1c0] sm:$0xff]  ;;  %7502 = vst [vmem:[#allocation17_spill] sm:$0xff] %v5296_v29  ;;  %7503 = vst [vmem:[#allocation18_spill] sm:$0xff] %v5301_v58  ;;  %v955_v10 = vpack.c.bf16 %v587_v20, %v583_v59  ;;  %v591_v63 = vrot.slane %v5296_v29, 1  ;;  %v592_v16 = vrot.slane %v5301_v58, 1 }
  0x6d   :  { %7500 = vst [vmem:[#allocation15_spill] sm:$0xff] %v5284_v18  ;;  %v579_v14 = vrot.slane %v5284_v18, 1 }
  0x6e   :  { %v593_v20 = vsel %vm487_vm0, %v591_v63, %v592_v16  ;;  %v597_v56 = vsel %vm487_vm0, %v592_v16, %v596_v37  ;;  %v228_v63 = vpack.c.bf16 %v5301_v58, %v5296_v29  ;;  %v588_v37 = vrot.slane %v5335_v32, 1 }
  0x6f   :  { %v580_v4 = vsel %vm487_vm0, %v578_v55, %v579_v14  ;;  %v585_v59 = vsel %vm487_vm0, %v579_v14, %v584_v22  ;;  %v5350_v14 = vld [vmem:[%s7392_s0 + $0x218] sm:$0xff]  ;;  %v225_v22 = vpack.c.bf16 %v5284_v18, %v5279_v8  ;;  %v957_v16 = vpack.c.bf16 %v597_v56, %v593_v20 }
  0x70   :  { %7508 = vst [vmem:[#allocation23_spill] sm:$0xff] %v5350_v14  ;;  %v954_v55 = vpack.c.bf16 %v585_v59, %v580_v4  ;;  %v601_v12 = vrot.slane %v5350_v14, 1 }
  0x72   :  { %1355 = vmatmul.mubr.bf16.gmra.mrb[32].mxu1 %v952_v31  ;;  %v5340_v31 = vld [vmem:[%s7392_s0 + $0x1f0] sm:$0xff] }
  0x73   :  { %1924 = vmatmul.mubr.bf16.gmra.mrb[32].mxu0 %v223_v6  ;;  %3856 = vmatprep.mubr.msk.bf16.mxu1 %vm1145_vm1, %v955_v10  ;;  %7506 = vst [vmem:[#allocation21_spill] sm:$0xff] %v5340_v31  ;;  %v5345_v6 = vld [vmem:[%s7392_s0 + $0x200] sm:$0x3]  ;;  %v5360_v10 = vld [vmem:[%s7392_s0 + $0x238] sm:$0x3]  ;;  %v589_v28 = vrot.slane %v5340_v31, 1 }
  0x74   :  { %3912 = vmatprep.mubr.msk.bf16.mxu0 %vm1145_vm1, %v226_v30  ;;  %7507 = vst [vmem:[#allocation22_spill] sm:$0xff] %v5345_v6  ;;  %v5355_v30 = vld [vmem:[%s7392_s0 + $0x228] sm:$0xff]  ;;  %7510 = vst [vmem:[#allocation25_spill] sm:$0xff] %v5360_v10  ;;  %v594_v27 = vrot.slane %v5345_v6, 1  ;;  %v606_v44 = vrot.slane %v5360_v10, 1  ;;  %v5381_v6 = vld [vmem:[%s7392_s0 + $0x210] sm:$0xff] }
  0x75   :  { %7509 = vst [vmem:[#allocation24_spill] sm:$0xff] %v5355_v30  ;;  %v602_v61 = vrot.slane %v5355_v30, 1  ;;  %v590_v56 = vsel %vm487_vm0, %v588_v37, %v589_v28  ;;  %7511 = vst [vmem:[#allocation26_spill] sm:$0xff] %v5381_v6  ;;  %v598_v37 = vrot.slane %v5381_v6, 1 }
  0x76   :  { %v595_v4 = vsel %vm487_vm0, %v589_v28, %v594_v27  ;;  %v5396_v28 = vld [vmem:[%s7392_s0 + $0x248] sm:$0xff]  ;;  %v227_v27 = vpack.c.bf16 %v5340_v31, %v5335_v32 }
  0x77   :  { %v603_v59 = vsel %vm487_vm0, %v601_v12, %v602_v61  ;;  %v607_v20 = vsel %vm487_vm0, %v602_v61, %v606_v44  ;;  %7514 = vst [vmem:[#allocation29_spill] sm:$0xff] %v5396_v28  ;;  %v5401_v44 = vld [vmem:[%s7392_s0 + $0x258] sm:$0xff]  ;;  %v5406_v61 = vld [vmem:[%s7392_s0 + $0x268] sm:$0x3]  ;;  %v956_v12 = vpack.c.bf16 %v595_v4, %v590_v56  ;;  %v611_v29 = vrot.slane %v5396_v28, 1 }
  0x78   :  { %7515 = vst [vmem:[#allocation30_spill] sm:$0xff] %v5401_v44  ;;  %7516 = vst [vmem:[#allocation31_spill] sm:$0xff] %v5406_v61  ;;  %v612_v18 = vrot.slane %v5401_v44, 1  ;;  %v616_v8 = vrot.slane %v5406_v61, 1 }
  0x7a   :  { %1365 = vmatmul.mubr.bf16.gmra.mrb[36].mxu1 %v954_v55  ;;  %v5386_v55 = vld [vmem:[%s7392_s0 + $0x220] sm:$0xff] }
  0x7b   :  { %1934 = vmatmul.mubr.bf16.gmra.mrb[36].mxu0 %v225_v22  ;;  %3857 = vmatprep.mubr.msk.bf16.mxu1 %vm1145_vm1, %v957_v16  ;;  %7512 = vst [vmem:[#allocation27_spill] sm:$0xff] %v5386_v55  ;;  %v5391_v22 = vld [vmem:[%s7392_s0 + $0x230] sm:$0x3]  ;;  %v959_v16 = vpack.c.bf16 %v607_v20, %v603_v59  ;;  %v599_v10 = vrot.slane %v5386_v55, 1  ;;  %v613_v59 = vsel %vm487_vm0, %v611_v29, %v612_v18  ;;  %v5442_v29 = vld [vmem:[%s7392_s0 + $0x278] sm:$0xff] }
  0x7c   :  { %3913 = vmatprep.mubr.msk.bf16.mxu0 %vm1145_vm1, %v228_v63  ;;  %7513 = vst [vmem:[#allocation28_spill] sm:$0xff] %v5391_v22  ;;  %v230_v63 = vpack.c.bf16 %v5355_v30, %v5350_v14  ;;  %v604_v58 = vrot.slane %v5391_v22, 1  ;;  %v617_v20 = vsel %vm487_vm0, %v612_v18, %v616_v8  ;;  %v5427_v22 = vld [vmem:[%s7392_s0 + $0x240] sm:$0xff]  ;;  %7520 = vst [vmem:[#allocation35_spill] sm:$0xff] %v5442_v29  ;;  %v5447_v8 = vld [vmem:[%s7392_s0 + $0x288] sm:$0xff]  ;;  %v621_v14 = vrot.slane %v5442_v29, 1 }
  0x7d   :  { %v600_v56 = vsel %vm487_vm0, %v598_v37, %v599_v10  ;;  %7517 = vst [vmem:[#allocation32_spill] sm:$0xff] %v5427_v22  ;;  %7521 = vst [vmem:[#allocation36_spill] sm:$0xff] %v5447_v8  ;;  %v5452_v18 = vld [vmem:[%s7392_s0 + $0x298] sm:$0x3]  ;;  %v608_v37 = vrot.slane %v5427_v22, 1  ;;  %v622_v31 = vrot.slane %v5447_v8, 1 }
  0x7e   :  { %v605_v4 = vsel %vm487_vm0, %v599_v10, %v604_v58  ;;  %7522 = vst [vmem:[#allocation37_spill] sm:$0xff] %v5452_v18  ;;  %v229_v10 = vpack.c.bf16 %v5386_v55, %v5381_v6  ;;  %v626_v32 = vrot.slane %v5452_v18, 1 }
  0x7f   :  { %v958_v58 = vpack.c.bf16 %v605_v4, %v600_v56 }
  0x82   :  { %1375 = vmatmul.mubr.bf16.gmra.mrb[40].mxu1 %v956_v12  ;;  %v5432_v12 = vld [vmem:[%s7392_s0 + $0x250] sm:$0xff] }
  0x83   :  { %1944 = vmatmul.mubr.bf16.gmra.mrb[40].mxu0 %v227_v27  ;;  %3858 = vmatprep.mubr.msk.bf16.mxu1 %vm1145_vm1, %v959_v16  ;;  %7518 = vst [vmem:[#allocation33_spill] sm:$0xff] %v5432_v12  ;;  %v5437_v27 = vld [vmem:[%s7392_s0 + $0x260] sm:$0x3]  ;;  %v961_v16 = vpack.c.bf16 %v617_v20, %v613_v59  ;;  %v609_v61 = vrot.slane %v5432_v12, 1  ;;  %v5471_v59 = vld [vmem:[%s7392_s0 + $0x270] sm:$0xff] }
  0x84   :  { %3914 = vmatprep.mubr.msk.bf16.mxu0 %vm1145_vm1, %v230_v63  ;;  %7519 = vst [vmem:[#allocation34_spill] sm:$0xff] %v5437_v27  ;;  %v232_v63 = vpack.c.bf16 %v5401_v44, %v5396_v28  ;;  %v614_v30 = vrot.slane %v5437_v27, 1  ;;  %7523 = vst [vmem:[#allocation38_spill] sm:$0xff] %v5471_v59  ;;  %v5476_v20 = vld [vmem:[%s7392_s0 + $0x280] sm:$0xff] }
  0x85   :  { %v610_v56 = vsel %vm487_vm0, %v608_v37, %v609_v61  ;;  %7524 = vst [vmem:[#allocation39_spill] sm:$0xff] %v5476_v20  ;;  %v5500_v37 = vld [vmem:[%s7392_s0 + $0x2c8] sm:$0x3] }
  0x86   :  { %v615_v4 = vsel %vm487_vm0, %v609_v61, %v614_v30  ;;  %v231_v30 = vpack.c.bf16 %v5432_v12, %v5427_v22  ;;  %v5490_v61 = vld [vmem:[%s7392_s0 + $0x2a8] sm:$0xff]  ;;  %7528 = vst [vmem:[#allocation43_spill] sm:$0xff] %v5500_v37  ;;  %v234_v12 = vpack.c.bf16 %v5447_v8, %v5442_v29  ;;  %v636_v28 = vrot.slane %v5500_v37, 1 }
  0x87   :  { %7526 = vst [vmem:[#allocation41_spill] sm:$0xff] %v5490_v61  ;;  %v631_v22 = vrot.slane %v5490_v61, 1  ;;  %v233_v37 = vpack.c.bf16 %v5476_v20, %v5471_v59 }
  0x8a   :  { %1385 = vmatmul.mubr.bf16.gmra.mrb[44].mxu1 %v958_v58  ;;  %v5481_v58 = vld [vmem:[%s7392_s0 + $0x290] sm:$0x3] }
  0x8b   :  { %1954 = vmatmul.mubr.bf16.gmra.mrb[44].mxu0 %v229_v10  ;;  %3859 = vmatprep.mubr.msk.bf16.mxu1 %vm1145_vm1, %v961_v16  ;;  %7525 = vst [vmem:[#allocation40_spill] sm:$0xff] %v5481_v58  ;;  %v623_v10 = vsel %vm487_vm0, %v621_v14, %v622_v31  ;;  %v5495_v16 = vld [vmem:[%s7392_s0 + $0x2b8] sm:$0xff]  ;;  %v960_v14 = vpack.c.bf16 %v615_v4, %v610_v56  ;;  %v624_v18 = vrot.slane %v5481_v58, 1 }
  0x8c   :  { %3915 = vmatprep.mubr.msk.bf16.mxu0 %vm1145_vm1, %v232_v63  ;;  %v627_v63 = vsel %vm487_vm0, %v622_v31, %v626_v32  ;;  %7527 = vst [vmem:[#allocation42_spill] sm:$0xff] %v5495_v16  ;;  %v618_v32 = vrot.slane %v5471_v59, 1  ;;  %v619_v31 = vrot.slane %v5476_v20, 1  ;;  %v632_v44 = vrot.slane %v5495_v16, 1 }
  0x8d   :  { %v963_v27 = vpack.c.bf16 %v627_v63, %v623_v10  ;;  %v5517_v10 = vld [vmem:[%s7392_s0 + $0x2a0] sm:$0xff]  ;;  %v5522_v63 = vld [vmem:[%s7392_s0 + $0x2b0] sm:$0xff] }
  0x8e   :  { %v620_v56 = vsel %vm487_vm0, %v618_v32, %v619_v31  ;;  %v625_v4 = vsel %vm487_vm0, %v619_v31, %v624_v18  ;;  %v633_v18 = vsel %vm487_vm0, %v631_v22, %v632_v44  ;;  %v110_v32 = vld [vmem:[%s7392_s0 + $0x2f8] sm:$0x3]  ;;  %v236_v22 = vpack.c.bf16 %v5495_v16, %v5490_v61 }
  0x8f   :  { %v962_v31 = vpack.c.bf16 %v625_v4, %v620_v56  ;;  %v646_v6 = vrot.slane %v110_v32, 1 }
  0x92   :  { %1395 = vmatmul.mubr.bf16.gmra.mrb[48].mxu1 %v960_v14  ;;  %v108_v14 = vld [vmem:[%s7392_s0 + $0x2e8] sm:$0xff] }
  0x93   :  { %1964 = vmatmul.mubr.bf16.gmra.mrb[48].mxu0 %v231_v30  ;;  %3860 = vmatprep.mubr.msk.bf16.mxu1 %vm1145_vm1, %v963_v27  ;;  %v5527_v30 = vld [vmem:[%s7392_s0 + $0x2c0] sm:$0x3]  ;;  %v637_v27 = vsel %vm487_vm0, %v632_v44, %v636_v28  ;;  %v628_v28 = vrot.slane %v5517_v10, 1  ;;  %v629_v44 = vrot.slane %v5522_v63, 1  ;;  %v642_v55 = vrot.slane %v108_v14, 1 }
  0x94   :  { %3916 = vmatprep.mubr.msk.bf16.mxu0 %vm1145_vm1, %v234_v12  ;;  %7529 = vst [vmem:[#allocation44_spill] sm:$0xff] %v5527_v30  ;;  %v106_v12 = vld [vmem:[%s7392_s0 + $0x2d8] sm:$0xff]  ;;  %v634_v58 = vrot.slane %v5527_v30, 1  ;;  %v965_v8 = vpack.c.bf16 %v637_v27, %v633_v18  ;;  %v105_v18 = vld [vmem:[%s7392_s0 + $0x2d0] sm:$0xff] }
  0x95   :  { %v641_v29 = vrot.slane %v106_v12, 1  ;;  %v630_v56 = vsel %vm487_vm0, %v628_v28, %v629_v44  ;;  %v647_v61 = vsel %vm487_vm0, %v642_v55, %v646_v6  ;;  %v114_v6 = vld [vmem:[%s7392_s0 + $0x318] sm:$0xff]  ;;  %v238_v27 = vpack.c.bf16 %v108_v14, %v106_v12  ;;  %v113_v14 = vld [vmem:[%s7392_s0 + $0x310] sm:$0xff] }
  0x96   :  { %v635_v4 = vsel %vm487_vm0, %v629_v44, %v634_v58  ;;  %v112_v58 = vld [vmem:[%s7392_s0 + $0x308] sm:$0xff]  ;;  %v652_v20 = vrot.slane %v114_v6, 1 }
  0x97   :  { %v643_v16 = vsel %vm487_vm0, %v641_v29, %v642_v55  ;;  %v116_v55 = vld [vmem:[%s7392_s0 + $0x328] sm:$0x3]  ;;  %v235_v29 = vpack.c.bf16 %v5522_v63, %v5517_v10  ;;  %v964_v32 = vpack.c.bf16 %v635_v4, %v630_v56  ;;  %v651_v30 = vrot.slane %v112_v58, 1  ;;  %v115_v56 = vld [vmem:[%s7392_s0 + $0x320] sm:$0x3]  ;;  %v118_v4 = vld [vmem:[%s7392_s0 + $0x338] sm:$0xff] }
  0x98   :  { %v656_v59 = vrot.slane %v116_v55, 1  ;;  %v649_v55 = vrot.slane %v113_v14, 1 }
  0x99   :  { %v653_v12 = vsel %vm487_vm0, %v651_v30, %v652_v20 }
  0x9a   :  { %1405 = vmatmul.mubr.bf16.gmra.mrb[52].mxu1 %v962_v31  ;;  %v967_v31 = vpack.c.bf16 %v647_v61, %v643_v16  ;;  %v657_v61 = vsel %vm487_vm0, %v652_v20, %v656_v59  ;;  %v111_v16 = vld [vmem:[%s7392_s0 + $0x300] sm:$0xff]  ;;  %v120_v59 = vld [vmem:[%s7392_s0 + $0x348] sm:$0xff]  ;;  %v122_v20 = vld [vmem:[%s7392_s0 + $0x358] sm:$0x3] }
  0x9b   :  { %1974 = vmatmul.mubr.bf16.gmra.mrb[52].mxu0 %v233_v37  ;;  %3861 = vmatprep.mubr.msk.bf16.mxu1 %vm1145_vm1, %v965_v8  ;;  %v107_v37 = vld [vmem:[%s7392_s0 + $0x2e0] sm:$0xff]  ;;  %v109_v8 = vld [vmem:[%s7392_s0 + $0x2f0] sm:$0x3]  ;;  %v969_v58 = vpack.c.bf16 %v657_v61, %v653_v12  ;;  %v648_v6 = vrot.slane %v111_v16, 1  ;;  %v126_v12 = vld [vmem:[%s7392_s0 + $0x378] sm:$0xff] }
  0x9c   :  { %3917 = vmatprep.mubr.msk.bf16.mxu0 %vm1145_vm1, %v236_v22  ;;  %v638_v22 = vrot.slane %v105_v18, 1  ;;  %v639_v28 = vrot.slane %v107_v37, 1  ;;  %v644_v44 = vrot.slane %v109_v8, 1  ;;  %v237_v30 = vpack.c.bf16 %v107_v37, %v105_v18  ;;  %v117_v37 = vld [vmem:[%s7392_s0 + $0x330] sm:$0xff]  ;;  %v128_v61 = vld [vmem:[%s7392_s0 + $0x388] sm:$0x3] }
  0x9e   :  { %v640_v25 = vsel %vm487_vm0, %v638_v22, %v639_v28  ;;  %v645_v42 = vsel %vm487_vm0, %v639_v28, %v644_v44  ;;  %v650_v22 = vsel %vm487_vm0, %v648_v6, %v649_v55  ;;  %v7530_v28 = vpack.c.bf16 %v5156_v21, %v5125_v51  ;;  %v119_v44 = vld [vmem:[%s7392_s0 + $0x340] sm:$0xff]  ;;  %v121_v51 = vld [vmem:[%s7392_s0 + $0x350] sm:$0x3]  ;;  %v124_v21 = vld [vmem:[%s7392_s0 + $0x368] sm:$0xff] }
  0x9f   :  { %v966_v8 = vpack.c.bf16 %v645_v42, %v640_v25 }
  0xa2   :  { %1415 = vmatmul.mubr.bf16.gmra.mrb[56].mxu1 %v964_v32  ;;  %v662_v32 = vrot.slane %v120_v59, 1  ;;  %v664_v59 = vrot.slane %v121_v51, 1 }
  0xa3   :  { %1984 = vmatmul.mubr.bf16.gmra.mrb[56].mxu0 %v235_v29  ;;  %3862 = vmatprep.mubr.msk.bf16.mxu1 %vm1145_vm1, %v967_v31  ;;  %v654_v29 = vrot.slane %v115_v56, 1  ;;  %v666_v31 = vrot.slane %v122_v20, 1  ;;  %v658_v56 = vrot.slane %v117_v37, 1  ;;  %v671_v20 = vrot.slane %v124_v21, 1 }
  0xa4   :  { %3918 = vmatprep.mubr.msk.bf16.mxu0 %vm1145_vm1, %v238_v27  ;;  %v661_v27 = vrot.slane %v118_v4, 1  ;;  %v659_v4 = vrot.slane %v119_v44, 1 }
  0xa5   :  { %v655_v42 = vsel %vm487_vm0, %v649_v55, %v654_v29  ;;  %v667_v18 = vsel %vm487_vm0, %v662_v32, %v666_v31  ;;  %v7532_v55 = vpack.c.bf16 %v5192_v0, %v5189_v39  ;;  %v127_v39 = vld [vmem:[%s7392_s0 + $0x380] sm:$0x3]  ;;  %v130_v0 = vld [vmem:[%s7392_s0 + $0x398] sm:$0xff]  ;;  %v132_v31 = vld [vmem:[%s7392_s0 + $0x3a8] sm:$0xff] }
  0xa6   :  { %v663_v25 = vsel %vm487_vm0, %v661_v27, %v662_v32  ;;  %v968_v16 = vpack.c.bf16 %v655_v42, %v650_v22  ;;  %v660_v6 = vsel %vm487_vm0, %v658_v56, %v659_v4  ;;  %v665_v29 = vsel %vm487_vm0, %v659_v4, %v664_v59  ;;  %v134_v22 = vld [vmem:[%s7392_s0 + $0x3b8] sm:$0x3]  ;;  %v136_v4 = vld [vmem:[%s7392_s0 + $0x3c8] sm:$0xff] }
  0xa7   :  { %v971_v14 = vpack.c.bf16 %v667_v18, %v663_v25  ;;  %v674_v37 = vrot.slane %v127_v39, 1  ;;  %v681_v44 = vrot.slane %v130_v0, 1  ;;  %v682_v51 = vrot.slane %v132_v31, 1  ;;  %v138_v59 = vld [vmem:[%s7392_s0 + $0x3d8] sm:$0xff]  ;;  %v135_v39 = vld [vmem:[%s7392_s0 + $0x3c0] sm:$0xff] }
  0xa8   :  { %v686_v21 = vrot.slane %v134_v22, 1  ;;  %v2208_v31 = vrot.slane %v4881_v1, 2  ;;  %v2209_v22 = vrot.slane %v4890_v3, 2 }
  0xaa   :  { %1425 = vmatmul.mubr.bf16.gmra.mrb[60].mxu1 %v966_v8  ;;  %v676_v8 = vrot.slane %v128_v61, 1  ;;  %v131_v61 = vld [vmem:[%s7392_s0 + $0x3a0] sm:$0xff] }
  0xab   :  { %1994 = vmatmul.mubr.bf16.gmra.mrb[60].mxu0 %v237_v30  ;;  %3863 = vmatprep.mubr.msk.bf16.mxu1 %vm1145_vm1, %v969_v58  ;;  %v672_v30 = vrot.slane %v126_v12, 1  ;;  %v7531_v58 = vpack.c.bf16 %v5168_v34, %v5159_v43  ;;  %v123_v43 = vld [vmem:[%s7392_s0 + $0x360] sm:$0xff]  ;;  %v125_v34 = vld [vmem:[%s7392_s0 + $0x370] sm:$0xff] }
  0xac   :  { %3983 = vmatprep.mubr.msk.bf16.mxu0 %vm1145_vm1, %v7530_v28  ;;  %v970_v28 = vpack.c.bf16 %v665_v29, %v660_v6  ;;  %v668_v25 = vrot.slane %v123_v43, 1  ;;  %v669_v18 = vrot.slane %v125_v34, 1  ;;  %v129_v12 = vld [vmem:[%s7392_s0 + $0x390] sm:$0xff]  ;;  %v679_v6 = vrot.slane %v131_v61, 1 }
  0xad   :  { %v673_v27 = vsel %vm487_vm0, %v671_v20, %v672_v30  ;;  %v677_v32 = vsel %vm487_vm0, %v672_v30, %v676_v8  ;;  %v7534_v20 = vpack.c.bf16 %v5253_v53, %v5250_v33  ;;  %v687_v30 = vsel %vm487_vm0, %v682_v51, %v686_v21  ;;  %v140_v8 = vld [vmem:[%s7392_s0 + $0x3e8] sm:$0x3] }
  0xae   :  { %v973_v42 = vpack.c.bf16 %v677_v32, %v673_v27  ;;  %v670_v56 = vsel %vm487_vm0, %v668_v25, %v669_v18  ;;  %v2195_v29 = vrot.slane %v4860_v7, 2  ;;  %v2196_v27 = vrot.slane %v4869_v9, 2  ;;  %v137_v7 = vld [vmem:[%s7392_s0 + $0x3d0] sm:$0xff]  ;;  %v139_v9 = vld [vmem:[%s7392_s0 + $0x3e0] sm:$0x3] }
  0xaf   :  { %v2201_v33 = vrot.slane %v4876_v60, 2  ;;  %v691_v53 = vrot.slane %v136_v4, 1  ;;  %v692_v32 = vrot.slane %v138_v59, 1  ;;  %v696_v34 = vrot.slane %v140_v8, 1 }
  0xb0   :  { %v2197_v25 = vsel %vm2164_vm2, %v2195_v29, %v2196_v27  ;;  %v7536_v21 = vpack.c.bf16 %v5312_v35, %v5309_v38  ;;  %v5726_v38 = vld [vmem:[%s7392_s0 + $0x408] sm:$0xff]  ;;  %v5731_v35 = vld [vmem:[%s7392_s0 + $0x418] sm:$0x3] }
  0xb1   :  { %v2202_v1 = vsel %vm2164_vm2, %v2196_v27, %v2201_v33  ;;  %v693_v3 = vsel %vm487_vm0, %v691_v53, %v692_v32  ;;  %v702_v8 = vrot.slane %v5726_v38, 1  ;;  %v7539_v27 = vld [vmem:[#allocation4_spill] sm:$0xff]  ;;  %v7540_v53 = vld [vmem:[#allocation5_spill] sm:$0xff] }
  0xb2   :  { %1435 = vmatmul.mubr.bf16.gmra.mrb[64].mxu1 %v968_v16  ;;  %v133_v16 = vld [vmem:[%s7392_s0 + $0x3b0] sm:$0x3]  ;;  %v2619_v4 = vpack.c.bf16 %v2202_v1, %v2197_v25  ;;  %v2219_v33 = vrot.slane %v7539_v27, 2 }
  0xb3   :  { %2951 = vmatmul.mubr.bf16.vlgmr.msra.gmra.mrb[0].mxu0 %v7531_v58  ;;  %3864 = vmatprep.mubr.msk.bf16.mxu1 %vm1145_vm1, %v971_v14  ;;  %v7533_v14 = vpack.c.bf16 %v5240_v50, %v5230_v46  ;;  %v675_v46 = vsel %vm487_vm0, %v669_v18, %v674_v37  ;;  %v683_v50 = vsel %vm487_vm0, %v681_v44, %v682_v51  ;;  %v678_v58 = vrot.slane %v129_v12, 1 }
  0xb4   :  { %3984 = vmatprep.mubr.msk.bf16.mxu0 %vm1145_vm1, %v7532_v55  ;;  %v684_v55 = vrot.slane %v133_v16, 1  ;;  %v972_v43 = vpack.c.bf16 %v675_v46, %v670_v56  ;;  %v975_v0 = vpack.c.bf16 %v687_v30, %v683_v50  ;;  %v697_v18 = vsel %vm487_vm0, %v692_v32, %v696_v34  ;;  %v5721_v56 = vld [vmem:[%s7392_s0 + $0x3f8] sm:$0xff]  ;;  %v5751_v34 = vld [vmem:[%s7392_s0 + $0x400] sm:$0xff] }
  0xb5   :  { %v680_v60 = vsel %vm487_vm0, %v678_v58, %v679_v6  ;;  %v688_v37 = vrot.slane %v135_v39, 1  ;;  %v689_v44 = vrot.slane %v137_v7, 1  ;;  %v694_v51 = vrot.slane %v139_v9, 1  ;;  %v5756_v39 = vld [vmem:[%s7392_s0 + $0x410] sm:$0x3]  ;;  %v5769_v7 = vld [vmem:[%s7392_s0 + $0x438] sm:$0xff] }
  0xb6   :  { %v2210_v12 = vsel %vm2164_vm2, %v2208_v31, %v2209_v22  ;;  %v2205_v16 = vrot.slane %v4926_v15, 2  ;;  %v701_v30 = vrot.slane %v5721_v56, 1  ;;  %v706_v58 = vrot.slane %v5731_v35, 1  ;;  %v5774_v9 = vld [vmem:[%s7392_s0 + $0x448] sm:$0x3] }
  0xb7   :  { %v695_v46 = vsel %vm487_vm0, %v689_v44, %v694_v51  ;;  %v2223_v32 = vrot.slane %v7540_v53, 2 }
  0xb9   :  { %v2224_v25 = vsel %vm2164_vm2, %v2219_v33, %v2223_v32 }
  0xba   :  { %1445 = vmatmul.mubr.bf16.gmra.mrb[68].mxu1 %v970_v28  ;;  %v2213_v28 = vrot.slane %v4895_v2, 2  ;;  %v7535_v2 = vpack.c.bf16 %v5270_v62, %v5263_v13  ;;  %v2206_v13 = vrot.slane %v4931_v47, 2  ;;  %v7537_v62 = vld [vmem:[#allocation2_spill] sm:$0xff]  ;;  %v977_v47 = vpack.c.bf16 %v697_v18, %v693_v3 }
  0xbb   :  { %2961 = vmatmul.mubr.bf16.gmra.mrb[4].mxu0 %v7533_v14  ;;  %3865 = vmatprep.mubr.msk.bf16.mxu1 %vm1145_vm1, %v973_v42  ;;  %v685_v42 = vsel %vm487_vm0, %v679_v6, %v684_v55  ;;  %v2211_v14 = vrot.slane %v7537_v62, 2  ;;  %v7538_v55 = vld [vmem:[#allocation3_spill] sm:$0xff]  ;;  %v699_v3 = vrot.slane %v5751_v34, 1  ;;  %v2215_v18 = vrot.slane %v4983_v45, 2 }
  0xbc   :  { %3985 = vmatprep.mubr.msk.bf16.mxu0 %vm1145_vm1, %v7534_v20  ;;  %v2214_v61 = vsel %vm2164_vm2, %v2209_v22, %v2213_v28  ;;  %v974_v15 = vpack.c.bf16 %v685_v42, %v680_v60  ;;  %v690_v20 = vsel %vm487_vm0, %v688_v37, %v689_v44  ;;  %v2207_v50 = vsel %vm2164_vm2, %v2205_v16, %v2206_v13  ;;  %v5764_v28 = vld [vmem:[%s7392_s0 + $0x428] sm:$0xff]  ;;  %v7541_v44 = vld [vmem:[#allocation6_spill] sm:$0xff] }
  0xbd   :  { %v2622_v59 = vpack.c.bf16 %v2214_v61, %v2210_v12  ;;  %v2212_v6 = vsel %vm2164_vm2, %v2206_v13, %v2211_v14  ;;  %v2218_v29 = vrot.slane %v7538_v55, 2  ;;  %v703_v22 = vsel %vm487_vm0, %v701_v30, %v702_v8  ;;  %v5824_v55 = vld [vmem:[%s7392_s0 + $0x468] sm:$0xff] }
  0xbe   :  { %v2621_v31 = vpack.c.bf16 %v2212_v6, %v2207_v50  ;;  %v707_v60 = vsel %vm487_vm0, %v702_v8, %v706_v58  ;;  %v2216_v37 = vrot.slane %v4992_v49, 2  ;;  %v2221_v51 = vrot.slane %v7541_v44, 2  ;;  %v5812_v50 = vld [vmem:[%s7392_s0 + $0x440] sm:$0x3]  ;;  %v5819_v6 = vld [vmem:[%s7392_s0 + $0x458] sm:$0xff] }
  0xbf   :  { %v2220_v42 = vsel %vm2164_vm2, %v2218_v29, %v2219_v33  ;;  %v712_v12 = vrot.slane %v5769_v7, 1  ;;  %v716_v61 = vrot.slane %v5774_v9, 1  ;;  %v979_v16 = vpack.c.bf16 %v707_v60, %v703_v22  ;;  %v5829_v29 = vld [vmem:[%s7392_s0 + $0x478] sm:$0x3]  ;;  %v7543_v60 = vld [vmem:[#allocation8_spill] sm:$0xff] }
  0xc0   :  { %v2624_v13 = vpack.c.bf16 %v2224_v25, %v2220_v42  ;;  %v2228_v62 = vrot.slane %v5004_v24, 2  ;;  %v2229_v14 = vrot.slane %v5013_v26, 2  ;;  %v5800_v24 = vld [vmem:[%s7392_s0 + $0x420] sm:$0xff]  ;;  %v5805_v26 = vld [vmem:[%s7392_s0 + $0x430] sm:$0xff]  ;;  %v2226_v22 = vrot.slane %v5046_v23, 2  ;;  %v7544_v44 = vld [vmem:[#allocation9_spill] sm:$0xff] }
  0xc1   :  { %v708_v53 = vrot.slane %v5800_v24, 1  ;;  %v709_v32 = vrot.slane %v5805_v26, 1  ;;  %v2231_v42 = vrot.slane %v7543_v60, 2  ;;  %v5851_v23 = vld [vmem:[%s7392_s0 + $0x460] sm:$0xff] }
  0xc2   :  { %1455 = vmatmul.mubr.bf16.gmra.mrb[72].mxu1 %v972_v43  ;;  %v5746_v43 = vld [vmem:[%s7392_s0 + $0x3f0] sm:$0xff]  ;;  %v2230_v8 = vsel %vm2164_vm2, %v2228_v62, %v2229_v14  ;;  %v5908_v60 = vld [vmem:[%s7392_s0 + $0x4a0] sm:$0x3] }
  0xc3   :  { %2971 = vmatmul.mubr.bf16.gmra.mrb[8].mxu0 %v7535_v2  ;;  %3866 = vmatprep.mubr.msk.bf16.mxu1 %vm1145_vm1, %v975_v0  ;;  %v976_v0 = vpack.c.bf16 %v695_v46, %v690_v20  ;;  %v698_v1 = vrot.slane %v5746_v43, 1  ;;  %v704_v2 = vrot.slane %v5756_v39, 1  ;;  %v717_v46 = vsel %vm487_vm0, %v712_v12, %v716_v61 }
  0xc4   :  { %3986 = vmatprep.mubr.msk.bf16.mxu0 %vm1145_vm1, %v7536_v21  ;;  %v711_v21 = vrot.slane %v5764_v28, 1  ;;  %v2232_v61 = vsel %vm2164_vm2, %v2226_v22, %v2231_v42 }
  0xc5   :  { %v700_v45 = vsel %vm487_vm0, %v698_v1, %v699_v3  ;;  %v705_v49 = vsel %vm487_vm0, %v699_v3, %v704_v2  ;;  %v721_v1 = vrot.slane %v5819_v6, 1  ;;  %v722_v3 = vrot.slane %v5824_v55, 1 }
  0xc6   :  { %v713_v20 = vsel %vm487_vm0, %v711_v21, %v712_v12  ;;  %v978_v30 = vpack.c.bf16 %v705_v49, %v700_v45  ;;  %v726_v2 = vrot.slane %v5829_v29, 1  ;;  %v710_v21 = vsel %vm487_vm0, %v708_v53, %v709_v32  ;;  %v5881_v45 = vld [vmem:[%s7392_s0 + $0x4a8] sm:$0x3] }
  0xc7   :  { %v981_v33 = vpack.c.bf16 %v717_v46, %v713_v20  ;;  %v723_v62 = vsel %vm487_vm0, %v721_v1, %v722_v3  ;;  %v2235_v20 = vrot.slane %v5113_v52, 2  ;;  %v2236_v46 = vrot.slane %v5122_v54, 2 }
  0xc8   :  { %v2248_v52 = vrot.slane %v5139_v36, 2  ;;  %v2249_v54 = vrot.slane %v5144_v5, 2 }
  0xc9   :  { %v2237_v36 = vsel %vm2164_vm2, %v2235_v20, %v2236_v46 }
  0xca   :  { %1465 = vmatmul.mubr.bf16.gmra.mrb[76].mxu1 %v974_v15  ;;  %v7542_v15 = vld [vmem:[#allocation7_spill] sm:$0xff] }
  0xcb   :  { %2981 = vmatmul.mubr.bf16.gmra.mrb[12].mxu0 %v2619_v4  ;;  %3867 = vmatprep.mubr.msk.bf16.mxu1 %vm1145_vm1, %v977_v47  ;;  %v2233_v4 = vrot.slane %v7542_v15, 2  ;;  %v2217_v47 = vsel %vm2164_vm2, %v2215_v18, %v2216_v37  ;;  %v2238_v18 = vrot.slane %v5060_v19, 2  ;;  %v5857_v19 = vld [vmem:[%s7392_s0 + $0x470] sm:$0x3] }
  0xcc   :  { %3987 = vmatprep.mubr.msk.bf16.mxu0 %vm1145_vm1, %v2622_v59  ;;  %v2222_v59 = vsel %vm2164_vm2, %v2216_v37, %v2221_v51  ;;  %v2239_v37 = vrot.slane %v5065_v11, 2  ;;  %v2243_v51 = vrot.slane %v7544_v44, 2 }
  0xcd   :  { %v2234_v58 = vsel %vm2164_vm2, %v2229_v14, %v2233_v4  ;;  %v2623_v27 = vpack.c.bf16 %v2222_v59, %v2217_v47  ;;  %v727_v14 = vsel %vm487_vm0, %v722_v3, %v726_v2  ;;  %v719_v4 = vrot.slane %v5851_v23, 1 }
  0xce   :  { %v2626_v25 = vpack.c.bf16 %v2234_v58, %v2230_v8  ;;  %v2240_v49 = vsel %vm2164_vm2, %v2238_v18, %v2239_v37  ;;  %v2244_v47 = vsel %vm2164_vm2, %v2239_v37, %v2243_v51  ;;  %v724_v59 = vrot.slane %v5857_v19, 1 }
  0xcf   :  { %v983_v53 = vpack.c.bf16 %v727_v14, %v723_v62  ;;  %v734_v18 = vrot.slane %v5908_v60, 1  ;;  %v2250_v37 = vsel %vm2164_vm2, %v2248_v52, %v2249_v54  ;;  %v2245_v51 = vrot.slane %v5186_v40, 2  ;;  %v5934_v62 = vld [vmem:[%s7392_s0 + $0x4c8] sm:$0xff]  ;;  %v5939_v14 = vld [vmem:[%s7392_s0 + $0x4d8] sm:$0x3]  ;;  %v5954_v52 = vld [vmem:[%s7392_s0 + $0x4b0] sm:$0xff] }
  0xd2   :  { %1475 = vmatmul.mubr.bf16.gmra.mrb[80].mxu1 %v976_v0  ;;  %v714_v0 = vrot.slane %v5812_v50, 1 }
  0xd3   :  { %2991 = vmatmul.mubr.bf16.gmra.mrb[16].mxu0 %v2621_v31  ;;  %3868 = vmatprep.mubr.msk.bf16.mxu1 %vm1145_vm1, %v979_v16  ;;  %v2225_v31 = vrot.slane %v5038_v17, 2  ;;  %v5846_v17 = vld [vmem:[%s7392_s0 + $0x450] sm:$0xff]  ;;  %v5865_v16 = vld [vmem:[%s7392_s0 + $0x488] sm:$0xff] }
  0xd4   :  { %3988 = vmatprep.mubr.msk.bf16.mxu0 %vm1145_vm1, %v2624_v13  ;;  %v715_v11 = vsel %vm487_vm0, %v709_v32, %v714_v0  ;;  %v5870_v13 = vld [vmem:[%s7392_s0 + $0x498] sm:$0xff]  ;;  %v718_v15 = vrot.slane %v5846_v17, 1  ;;  %v731_v8 = vrot.slane %v5865_v16, 1  ;;  %v736_v32 = vrot.slane %v5881_v45, 1  ;;  %v5895_v0 = vld [vmem:[%s7392_s0 + $0x480] sm:$0xff] }
  0xd5   :  { %v2227_v12 = vsel %vm2164_vm2, %v2225_v31, %v2226_v22  ;;  %v732_v58 = vrot.slane %v5870_v13, 1  ;;  %v2628_v31 = vpack.c.bf16 %v2244_v47, %v2240_v49  ;;  %v5903_v22 = vld [vmem:[%s7392_s0 + $0x490] sm:$0xff]  ;;  %v728_v3 = vrot.slane %v5895_v0, 1 }
  0xd6   :  { %v720_v42 = vsel %vm487_vm0, %v718_v15, %v719_v4  ;;  %v729_v2 = vrot.slane %v5903_v22, 1 }
  0xd7   :  { %v737_v1 = vsel %vm487_vm0, %v732_v58, %v736_v32  ;;  %v7548_v32 = vld [vmem:[#allocation13_spill] sm:$0xff] }
  0xd8   :  { %v730_v49 = vsel %vm487_vm0, %v728_v3, %v729_v2  ;;  %v735_v47 = vsel %vm487_vm0, %v729_v2, %v734_v18 }
  0xda   :  { %1485 = vmatmul.mubr.bf16.gmra.mrb[84].mxu1 %v978_v30  ;;  %v2241_v30 = vrot.slane %v5134_v48, 2  ;;  %v2253_v48 = vrot.slane %v5150_v41, 2  ;;  %v733_v41 = vsel %vm487_vm0, %v731_v8, %v732_v58  ;;  %v7546_v58 = vld [vmem:[#allocation11_spill] sm:$0xff] }
  0xdb   :  { %3001 = vmatmul.mubr.bf16.gmra.mrb[20].mxu0 %v2623_v27  ;;  %3869 = vmatprep.mubr.msk.bf16.mxu1 %vm1145_vm1, %v981_v33  ;;  %v980_v27 = vpack.c.bf16 %v715_v11, %v710_v21  ;;  %v2625_v33 = vpack.c.bf16 %v2232_v61, %v2227_v12  ;;  %v2246_v21 = vrot.slane %v5199_v57, 2  ;;  %v7545_v11 = vld [vmem:[#allocation10_spill] sm:$0xff]  ;;  %v5929_v61 = vld [vmem:[%s7392_s0 + $0x4b8] sm:$0xff]  ;;  %v985_v57 = vpack.c.bf16 %v737_v1, %v733_v41  ;;  %v5982_v1 = vld [vmem:[%s7392_s0 + $0x508] sm:$0x3] }
  0xdc   :  { %3989 = vmatprep.mubr.msk.bf16.mxu0 %vm1145_vm1, %v2626_v25  ;;  %v725_v25 = vsel %vm487_vm0, %v719_v4, %v724_v59  ;;  %v2242_v5 = vsel %vm2164_vm2, %v2236_v46, %v2241_v30  ;;  %v2254_v44 = vsel %vm2164_vm2, %v2249_v54, %v2253_v48  ;;  %v2251_v12 = vrot.slane %v7545_v11, 2  ;;  %v5959_v54 = vld [vmem:[%s7392_s0 + $0x4c0] sm:$0xff]  ;;  %v5964_v48 = vld [vmem:[%s7392_s0 + $0x4d0] sm:$0x3]  ;;  %v5977_v41 = vld [vmem:[%s7392_s0 + $0x4f8] sm:$0xff]  ;;  %7550 = vst [vmem:[#allocation3_spill] sm:$0xff] %v5982_v1 }
  0xdd   :  { %v982_v40 = vpack.c.bf16 %v725_v25, %v720_v42  ;;  %v2627_v15 = vpack.c.bf16 %v2242_v5, %v2237_v36  ;;  %v2630_v4 = vpack.c.bf16 %v2254_v44, %v2250_v37  ;;  %v2247_v59 = vsel %vm2164_vm2, %v2245_v51, %v2246_v21  ;;  %v5972_v5 = vld [vmem:[%s7392_s0 + $0x4e8] sm:$0xff]  ;;  %7549 = vst [vmem:[#allocation2_spill] sm:$0xff] %v5977_v41 }
  0xde   :  { %v741_v20 = vrot.slane %v5929_v61, 1  ;;  %v742_v46 = vrot.slane %v5934_v62, 1  ;;  %v746_v30 = vrot.slane %v5939_v14, 1  ;;  %v2252_v8 = vsel %vm2164_vm2, %v2246_v21, %v2251_v12  ;;  %v7551_v21 = vld [vmem:[#allocation14_spill] sm:$0xff]  ;;  %v7552_v12 = vld [vmem:[#allocation15_spill] sm:$0xff] }
  0xdf   :  { %v984_v42 = vpack.c.bf16 %v735_v47, %v730_v49  ;;  %v2629_v25 = vpack.c.bf16 %v2252_v8, %v2247_v59  ;;  %v738_v37 = vrot.slane %v5954_v52, 1  ;;  %v739_v44 = vrot.slane %v5959_v54, 1  ;;  %v7555_v8 = vld [vmem:[#allocation18_spill] sm:$0xff] }
  0xe0   :  { %v743_v36 = vsel %vm487_vm0, %v741_v20, %v742_v46  ;;  %v747_v3 = vsel %vm487_vm0, %v742_v46, %v746_v30  ;;  %v744_v51 = vrot.slane %v5964_v48, 1  ;;  %v2255_v11 = vrot.slane %v7551_v21, 2  ;;  %v7554_v46 = vld [vmem:[#allocation17_spill] sm:$0xff] }
  0xe1   :  { %v752_v49 = vrot.slane %v5977_v41, 1  ;;  %v756_v47 = vrot.slane %v5982_v1, 1  ;;  %v987_v59 = vpack.c.bf16 %v747_v3, %v743_v36  ;;  %v2268_v30 = vrot.slane %v7554_v46, 2  ;;  %v6008_v3 = vld [vmem:[%s7392_s0 + $0x4e0] sm:$0xff] }
  0xe2   :  { %1495 = vmatmul.mubr.bf16.gmra.mrb[88].mxu1 %v980_v27  ;;  %v2258_v27 = vrot.slane %v7546_v58, 2  ;;  %v2269_v58 = vrot.slane %v7555_v8, 2  ;;  %7557 = vst [vmem:[#allocation4_spill] sm:$0xff] %v6008_v3 }
  0xe3   :  { %3011 = vmatmul.mubr.bf16.gmra.mrb[24].mxu0 %v2625_v33  ;;  %3870 = vmatprep.mubr.msk.bf16.mxu1 %vm1145_vm1, %v983_v53  ;;  %v7547_v33 = vld [vmem:[#allocation12_spill] sm:$0xff]  ;;  %v757_v36 = vsel %vm487_vm0, %v752_v49, %v756_v47 }
  0xe4   :  { %3990 = vmatprep.mubr.msk.bf16.mxu0 %vm1145_vm1, %v2628_v31  ;;  %v2259_v53 = vrot.slane %v7547_v33, 2  ;;  %v2263_v31 = vrot.slane %v7548_v32, 2  ;;  %v745_v32 = vsel %vm487_vm0, %v739_v44, %v744_v51  ;;  %v6032_v51 = vld [vmem:[%s7392_s0 + $0x528] sm:$0xff]  ;;  %v7563_v47 = vld [vmem:[#allocation20_spill] sm:$0xff] }
  0xe5   :  { %7561 = vst [vmem:[#allocation8_spill] sm:$0xff] %v6032_v51 }
  0xe6   :  { %v2260_v2 = vsel %vm2164_vm2, %v2258_v27, %v2259_v53  ;;  %v2264_v18 = vsel %vm2164_vm2, %v2259_v53, %v2263_v31  ;;  %v7556_v27 = vld [vmem:[#allocation19_spill] sm:$0xff]  ;;  %v740_v53 = vsel %vm487_vm0, %v738_v37, %v739_v44  ;;  %v6027_v44 = vld [vmem:[%s7392_s0 + $0x518] sm:$0xff] }
  0xe7   :  { %v2632_v20 = vpack.c.bf16 %v2264_v18, %v2260_v2  ;;  %v2273_v33 = vrot.slane %v7556_v27, 2  ;;  %v6013_v2 = vld [vmem:[%s7392_s0 + $0x4f0] sm:$0xff]  ;;  %v2270_v18 = vsel %vm2164_vm2, %v2268_v30, %v2269_v58  ;;  %7560 = vst [vmem:[#allocation7_spill] sm:$0xff] %v6027_v44  ;;  %v7565_v30 = vld [vmem:[#allocation22_spill] sm:$0xff]  ;;  %v761_v27 = vrot.slane %v6027_v44, 1 }
  0xe8   :  { %7558 = vst [vmem:[#allocation5_spill] sm:$0xff] %v6013_v2  ;;  %v2271_v8 = vrot.slane %v7565_v30, 2 }
  0xe9   :  { %v2274_v37 = vsel %vm2164_vm2, %v2269_v58, %v2273_v33  ;;  %v762_v33 = vrot.slane %v6032_v51, 1 }
  0xea   :  { %1505 = vmatmul.mubr.bf16.gmra.mrb[92].mxu1 %v982_v40  ;;  %v2256_v40 = vrot.slane %v7552_v12, 2  ;;  %v2634_v58 = vpack.c.bf16 %v2274_v37, %v2270_v18  ;;  %v6059_v18 = vld [vmem:[%s7392_s0 + $0x520] sm:$0xff] }
  0xeb   :  { %3021 = vmatmul.mubr.bf16.gmra.mrb[28].mxu0 %v2627_v15  ;;  %3871 = vmatprep.mubr.msk.bf16.mxu1 %vm1145_vm1, %v985_v57  ;;  %v7553_v15 = vld [vmem:[#allocation16_spill] sm:$0xff]  ;;  %7570 = vst [vmem:[#allocation11_spill] sm:$0xff] %v6059_v18 }
  0xec   :  { %3991 = vmatprep.mubr.msk.bf16.mxu0 %vm1145_vm1, %v2630_v4  ;;  %v2261_v57 = vrot.slane %v7553_v15, 2  ;;  %v751_v4 = vrot.slane %v5972_v5, 1  ;;  %v2257_v31 = vsel %vm2164_vm2, %v2255_v11, %v2256_v40  ;;  %v6037_v11 = vld [vmem:[%s7392_s0 + $0x538] sm:$0x3] }
  0xed   :  { %7562 = vst [vmem:[#allocation9_spill] sm:$0xff] %v6037_v11 }
  0xee   :  { %v2262_v21 = vsel %vm2164_vm2, %v2256_v40, %v2261_v57  ;;  %v753_v12 = vsel %vm487_vm0, %v751_v4, %v752_v49  ;;  %v748_v57 = vrot.slane %v6008_v3, 1  ;;  %v749_v4 = vrot.slane %v6013_v2, 1 }
  0xef   :  { %v2631_v40 = vpack.c.bf16 %v2262_v21, %v2257_v31  ;;  %v989_v15 = vpack.c.bf16 %v757_v36, %v753_v12  ;;  %v7567_v21 = vld [vmem:[#allocation24_spill] sm:$0xff]  ;;  %v7568_v36 = vld [vmem:[#allocation25_spill] sm:$0xff] }
  0xf0   :  { %v2279_v12 = vrot.slane %v7567_v21, 2  ;;  %v2283_v2 = vrot.slane %v7568_v36, 2  ;;  %v750_v37 = vsel %vm487_vm0, %v748_v57, %v749_v4  ;;  %v6073_v36 = vld [vmem:[%s7392_s0 + $0x548] sm:$0xff]  ;;  %v6078_v57 = vld [vmem:[%s7392_s0 + $0x558] sm:$0xff] }
  0xf2   :  { %1515 = vmatmul.mubr.bf16.gmra.mrb[96].mxu1 %v984_v42  ;;  %v6020_v42 = vld [vmem:[%s7392_s0 + $0x500] sm:$0x3] }
  0xf3   :  { %3031 = vmatmul.mubr.bf16.gmra.mrb[32].mxu0 %v2629_v25  ;;  %3872 = vmatprep.mubr.msk.bf16.mxu1 %vm1145_vm1, %v987_v59  ;;  %7559 = vst [vmem:[#allocation6_spill] sm:$0xff] %v6020_v42  ;;  %v986_v25 = vpack.c.bf16 %v745_v32, %v740_v53  ;;  %v754_v49 = vrot.slane %v6020_v42, 1  ;;  %v2265_v59 = vrot.slane %v7563_v47, 2  ;;  %v766_v53 = vrot.slane %v6037_v11, 1  ;;  %v7566_v32 = vld [vmem:[#allocation23_spill] sm:$0xff]  ;;  %v6054_v47 = vld [vmem:[%s7392_s0 + $0x510] sm:$0xff] }
  0xf4   :  { %3992 = vmatprep.mubr.msk.bf16.mxu0 %vm1145_vm1, %v2632_v20  ;;  %v7564_v20 = vld [vmem:[#allocation21_spill] sm:$0xff]  ;;  %v2278_v31 = vrot.slane %v7566_v32, 2  ;;  %7569 = vst [vmem:[#allocation10_spill] sm:$0xff] %v6054_v47 }
  0xf5   :  { %v2266_v46 = vrot.slane %v7564_v20, 2  ;;  %v6065_v20 = vld [vmem:[%s7392_s0 + $0x530] sm:$0x3]  ;;  %v755_v30 = vsel %vm487_vm0, %v749_v4, %v754_v49  ;;  %v758_v4 = vrot.slane %v6054_v47, 1  ;;  %v759_v49 = vrot.slane %v6059_v18, 1 }
  0xf6   :  { %7571 = vst [vmem:[#allocation12_spill] sm:$0xff] %v6065_v20  ;;  %v771_v47 = vrot.slane %v6073_v36, 1  ;;  %v772_v18 = vrot.slane %v6078_v57, 1  ;;  %v988_v44 = vpack.c.bf16 %v755_v30, %v750_v37  ;;  %v6111_v37 = vld [vmem:[%s7392_s0 + $0x550] sm:$0xff]  ;;  %v6116_v30 = vld [vmem:[%s7392_s0 + $0x560] sm:$0x3] }
  0xf7   :  { %v2267_v32 = vsel %vm2164_vm2, %v2265_v59, %v2266_v46  ;;  %v2272_v21 = vsel %vm2164_vm2, %v2266_v46, %v2271_v8  ;;  %v6089_v59 = vld [vmem:[%s7392_s0 + $0x568] sm:$0x3]  ;;  %v2280_v46 = vsel %vm2164_vm2, %v2278_v31, %v2279_v12  ;;  %v2284_v8 = vsel %vm2164_vm2, %v2279_v12, %v2283_v2  ;;  %v6103_v2 = vld [vmem:[%s7392_s0 + $0x540] sm:$0xff]  ;;  %v7577_v12 = vld [vmem:[#allocation29_spill] sm:$0xff]  ;;  %7580 = vst [vmem:[#allocation15_spill] sm:$0xff] %v6111_v37 }
  0xf8   :  { %7572 = vst [vmem:[#allocation13_spill] sm:$0xff] %v6089_v59  ;;  %v2633_v42 = vpack.c.bf16 %v2272_v21, %v2267_v32  ;;  %v776_v1 = vrot.slane %v6089_v59, 1  ;;  %7576 = vst [vmem:[#allocation14_spill] sm:$0xff] %v6103_v2  ;;  %v2636_v31 = vpack.c.bf16 %v2284_v8, %v2280_v46  ;;  %v760_v32 = vsel %vm487_vm0, %v758_v4, %v759_v49  ;;  %v7582_v4 = vld [vmem:[#allocation32_spill] sm:$0xff] }
  0xf9   :  { %7581 = vst [vmem:[#allocation16_spill] sm:$0xff] %v6116_v30  ;;  %v773_v46 = vsel %vm487_vm0, %v771_v47, %v772_v18  ;;  %v2285_v47 = vrot.slane %v7582_v4, 2 }
  0xfa   :  { %1525 = vmatmul.mubr.bf16.gmra.mrb[100].mxu1 %v986_v25  ;;  %v763_v25 = vsel %vm487_vm0, %v761_v27, %v762_v33  ;;  %v7574_v27 = vld [vmem:[#allocation27_spill] sm:$0xff]  ;;  %v777_v8 = vsel %vm487_vm0, %v772_v18, %v776_v1  ;;  %v6137_v18 = vld [vmem:[%s7392_s0 + $0x578] sm:$0xff] }
  0xfb   :  { %3041 = vmatmul.mubr.bf16.gmra.mrb[36].mxu0 %v2631_v40  ;;  %3873 = vmatprep.mubr.msk.bf16.mxu1 %vm1145_vm1, %v989_v15  ;;  %v767_v40 = vsel %vm487_vm0, %v762_v33, %v766_v53  ;;  %v764_v15 = vrot.slane %v6065_v20, 1  ;;  %v2276_v51 = vrot.slane %v7574_v27, 2  ;;  %v7575_v33 = vld [vmem:[#allocation28_spill] sm:$0xff]  ;;  %v7578_v27 = vld [vmem:[#allocation30_spill] sm:$0xff]  ;;  %7585 = vst [vmem:[#allocation17_spill] sm:$0xff] %v6137_v18 }
  0xfc   :  { %3993 = vmatprep.mubr.msk.bf16.mxu0 %vm1145_vm1, %v2634_v58  ;;  %v7573_v58 = vld [vmem:[#allocation26_spill] sm:$0xff]  ;;  %v2281_v53 = vrot.slane %v7575_v33, 2  ;;  %v991_v3 = vpack.c.bf16 %v767_v40, %v763_v25  ;;  %v2289_v20 = vrot.slane %v7578_v27, 2  ;;  %v7579_v33 = vld [vmem:[#allocation31_spill] sm:$0xff]  ;;  %v769_v27 = vrot.slane %v6111_v37, 1 }
  0xfd   :  { %v2275_v11 = vrot.slane %v7573_v58, 2  ;;  %v2288_v58 = vrot.slane %v7577_v12, 2  ;;  %v2293_v41 = vrot.slane %v7579_v33, 2  ;;  %v765_v21 = vsel %vm487_vm0, %v759_v49, %v764_v15  ;;  %v7584_v49 = vld [vmem:[#allocation34_spill] sm:$0xff] }
  0xfe   :  { %v2282_v40 = vsel %vm2164_vm2, %v2276_v51, %v2281_v53  ;;  %v768_v12 = vrot.slane %v6103_v2, 1  ;;  %v774_v33 = vrot.slane %v6116_v30, 1  ;;  %v2291_v1 = vrot.slane %v7584_v49, 2 }
  0xff   :  { %v2277_v25 = vsel %vm2164_vm2, %v2275_v11, %v2276_v51  ;;  %v2290_v11 = vsel %vm2164_vm2, %v2288_v58, %v2289_v20  ;;  %v2294_v51 = vsel %vm2164_vm2, %v2289_v20, %v2293_v41  ;;  %v6147_v41 = vld [vmem:[%s7392_s0 + $0x598] sm:$0x3]  ;;  %v990_v15 = vpack.c.bf16 %v765_v21, %v760_v32 }
 0x100   :  { %7587 = vst [vmem:[#allocation19_spill] sm:$0xff] %v6147_v41  ;;  %v2635_v53 = vpack.c.bf16 %v2282_v40, %v2277_v25  ;;  %v993_v58 = vpack.c.bf16 %v777_v8, %v773_v46  ;;  %v2638_v4 = vpack.c.bf16 %v2294_v51, %v2290_v11  ;;  %v775_v49 = vsel %vm487_vm0, %v769_v27, %v774_v33  ;;  %v7592_v25 = vld [vmem:[#allocation35_spill] sm:$0xff]  ;;  %v7593_v46 = vld [vmem:[#allocation36_spill] sm:$0xff]  ;;  %v6175_v11 = vld [vmem:[%s7392_s0 + $0x580] sm:$0xff] }
 0x101   :  { %v781_v2 = vrot.slane %v6137_v18, 1  ;;  %v2298_v40 = vrot.slane %v7592_v25, 2  ;;  %v2299_v8 = vrot.slane %v7593_v46, 2  ;;  %v6170_v33 = vld [vmem:[%s7392_s0 + $0x570] sm:$0xff]  ;;  %7596 = vst [vmem:[#allocation25_spill] sm:$0xff] %v6175_v11  ;;  %v7602_v46 = vld [vmem:[#allocation38_spill] sm:$0xff] }
 0x102   :  { %1535 = vmatmul.mubr.bf16.gmra.mrb[104].mxu1 %v988_v44  ;;  %v7583_v44 = vld [vmem:[#allocation33_spill] sm:$0xff]  ;;  %7595 = vst [vmem:[#allocation24_spill] sm:$0xff] %v6170_v33  ;;  %v6180_v51 = vld [vmem:[%s7392_s0 + $0x590] sm:$0x3]  ;;  %v7607_v18 = vld [vmem:[#allocation42_spill] sm:$0xff] }
 0x103   :  { %3051 = vmatmul.mubr.bf16.gmra.mrb[40].mxu0 %v2633_v42  ;;  %3874 = vmatprep.mubr.msk.bf16.mxu1 %vm1145_vm1, %v991_v3  ;;  %v2286_v42 = vrot.slane %v7583_v44, 2  ;;  %v6142_v3 = vld [vmem:[%s7392_s0 + $0x588] sm:$0xff]  ;;  %v770_v44 = vsel %vm487_vm0, %v768_v12, %v769_v27  ;;  %v7594_v12 = vld [vmem:[#allocation37_spill] sm:$0xff]  ;;  %7597 = vst [vmem:[#allocation26_spill] sm:$0xff] %v6180_v51  ;;  %v784_v25 = vrot.slane %v6180_v51, 1 }
 0x104   :  { %3994 = vmatprep.mubr.msk.bf16.mxu0 %vm1145_vm1, %v2636_v31  ;;  %7586 = vst [vmem:[#allocation18_spill] sm:$0xff] %v6142_v3  ;;  %v782_v59 = vrot.slane %v6142_v3, 1  ;;  %v2303_v27 = vrot.slane %v7594_v12, 2  ;;  %v2295_v12 = vrot.slane %v7602_v46, 2  ;;  %v7606_v51 = vld [vmem:[#allocation41_spill] sm:$0xff] }
 0x105   :  { %v6149_v20 = vpop.f32.mrb[0].mxu1  ;;  %v2287_v37 = vsel %vm2164_vm2, %v2285_v47, %v2286_v42  ;;  %v2292_v21 = vsel %vm2164_vm2, %v2286_v42, %v2291_v1  ;;  %v992_v47 = vpack.c.bf16 %v775_v49, %v770_v44  ;;  %v778_v44 = vrot.slane %v6170_v33, 1 }
 0x106   :  { %7588 = vst [vmem:[#allocation20_spill] sm:$0xff] %v6149_v20  ;;  %v6151_v31 = vpop.f32.mrb[1].mxu1  ;;  %v786_v20 = vrot.slane %v6147_v41, 1  ;;  %v2637_v42 = vpack.c.bf16 %v2292_v21, %v2287_v37  ;;  %v783_v1 = vsel %vm487_vm0, %v781_v2, %v782_v59  ;;  %v2300_v37 = vsel %vm2164_vm2, %v2298_v40, %v2299_v8 }
 0x107   :  { %7589 = vst [vmem:[#allocation21_spill] sm:$0xff] %v6151_v31  ;;  %v6155_v30 = vpop.f32.mrb[2].mxu1  ;;  %v2304_v2 = vsel %vm2164_vm2, %v2299_v8, %v2303_v27  ;;  %v779_v21 = vrot.slane %v6175_v11, 1  ;;  %v2308_v46 = vrot.slane %v7606_v51, 2  ;;  %v7608_v31 = vld [vmem:[#allocation43_spill] sm:$0xff] }
 0x108   :  { %7590 = vst [vmem:[#allocation22_spill] sm:$0xff] %v6155_v30  ;;  %v6161_v32 = vpop.f32.mrb[3].mxu1  ;;  %v7605_v30 = vld [vmem:[#allocation40_spill] sm:$0xff]  ;;  %v2640_v11 = vpack.c.bf16 %v2304_v2, %v2300_v37  ;;  %v6251_v37 = vld [vmem:[%s7392_s0 + $0x5d8] sm:$0xff] }
 0x109   :  { %7591 = vst [vmem:[#allocation23_spill] sm:$0xff] %v6161_v32  ;;  %v7603_v32 = vld [vmem:[#allocation39_spill] sm:$0xff]  ;;  %7609 = vst [vmem:[#allocation32_spill] sm:$0xff] %v6251_v37 }
 0x10a   :  { %1545 = vmatmul.mubr.bf16.gmra.mrb[108].mxu1 %v990_v15  ;;  %v6188_v15 = vld [vmem:[%s7392_s0 + $0x5a8] sm:$0xff]  ;;  %v2296_v41 = vrot.slane %v7603_v32, 2  ;;  %v2309_v32 = vrot.slane %v7607_v18, 2  ;;  %v6232_v18 = vld [vmem:[%s7392_s0 + $0x5a0] sm:$0xff] }
 0x10b   :  { %3061 = vmatmul.mubr.bf16.gmra.mrb[44].mxu0 %v2635_v53  ;;  %3875 = vmatprep.mubr.msk.bf16.mxu1 %vm1145_vm1, %v993_v58  ;;  %7598 = vst [vmem:[#allocation27_spill] sm:$0xff] %v6188_v15  ;;  %v6193_v53 = vld [vmem:[%s7392_s0 + $0x5b8] sm:$0xff]  ;;  %v6198_v58 = vld [vmem:[%s7392_s0 + $0x5c8] sm:$0x3] }
 0x10c   :  { %3995 = vmatprep.mubr.msk.bf16.mxu0 %vm1145_vm1, %v2638_v4  ;;  %7599 = vst [vmem:[#allocation28_spill] sm:$0xff] %v6193_v53  ;;  %7600 = vst [vmem:[#allocation29_spill] sm:$0xff] %v6198_v58  ;;  %v787_v4 = vsel %vm487_vm0, %v782_v59, %v786_v20  ;;  %v2301_v59 = vrot.slane %v7605_v30, 2  ;;  %v791_v20 = vrot.slane %v6188_v15, 1  ;;  %v792_v40 = vrot.slane %v6193_v53, 1 }
 0x10d   :  { %v6204_v49 = vpop.f32.mrb[4].mxu1  ;;  %v796_v8 = vrot.slane %v6198_v58, 1  ;;  %v995_v33 = vpack.c.bf16 %v787_v4, %v783_v1  ;;  %v780_v30 = vsel %vm487_vm0, %v778_v44, %v779_v21  ;;  %v785_v15 = vsel %vm487_vm0, %v779_v21, %v784_v25 }
 0x10e   :  { %7601 = vst [vmem:[#allocation30_spill] sm:$0xff] %v6204_v49  ;;  %v6210_v3 = vpop.f32.mrb[5].mxu1  ;;  %v2297_v53 = vsel %vm2164_vm2, %v2295_v12, %v2296_v41  ;;  %v2302_v58 = vsel %vm2164_vm2, %v2296_v41, %v2301_v59  ;;  %v793_v1 = vsel %vm487_vm0, %v791_v20, %v792_v40  ;;  %v6244_v41 = vld [vmem:[%s7392_s0 + $0x5c0] sm:$0x3]  ;;  %v994_v51 = vpack.c.bf16 %v785_v15, %v780_v30 }
 0x10f   :  { %7604 = vst [vmem:[#allocation31_spill] sm:$0xff] %v6210_v3  ;;  %v6216_v27 = vpop.f32.mrb[6].mxu1  ;;  %v2313_v3 = vrot.slane %v7608_v31, 2  ;;  %v797_v4 = vsel %vm487_vm0, %v792_v40, %v796_v8  ;;  %v6237_v31 = vld [vmem:[%s7392_s0 + $0x5b0] sm:$0xff]  ;;  %v2639_v2 = vpack.c.bf16 %v2302_v58, %v2297_v53  ;;  %v794_v12 = vrot.slane %v6244_v41, 1 }
 0x110   :  { %v6218_v49 = vpop.f32.mrb[7].mxu1  ;;  %v997_v44 = vpack.c.bf16 %v797_v4, %v793_v1  ;;  %v789_v21 = vrot.slane %v6237_v31, 1  ;;  %v2305_v59 = vrot.slane %v5517_v10, 2  ;;  %v2306_v20 = vrot.slane %v5522_v63, 2  ;;  %v7612_v40 = vld [vmem:[#allocation44_spill] sm:$0xff]  ;;  %v4403_v4 = vld [vmem:[%s7392_s0 + $0x2d8] sm:$0xff] }
 0x111   :  { %v2311_v8 = vrot.slane %v7612_v40, 2  ;;  %v801_v53 = vrot.slane %v6251_v37, 1  ;;  %v2318_v10 = vrot.slane %v4403_v4, 2  ;;  %v4404_v63 = vld [vmem:[%s7392_s0 + $0x2e8] sm:$0xff] }
 0x112   :  { %1555 = vmatmul.mubr.bf16.gmra.mrb[112].mxu1 %v992_v47  ;;  %v2310_v47 = vsel %vm2164_vm2, %v2308_v46, %v2309_v32  ;;  %v2319_v40 = vrot.slane %v4404_v63, 2 }
 0x113   :  { %3071 = vmatmul.mubr.bf16.gmra.mrb[48].mxu0 %v2637_v42  ;;  %3876 = vmatprep.mubr.msk.bf16.mxu1 %vm1145_vm1, %v995_v33  ;;  %v2314_v42 = vsel %vm2164_vm2, %v2309_v32, %v2313_v3  ;;  %v6256_v33 = vld [vmem:[%s7392_s0 + $0x5e8] sm:$0xff]  ;;  %v788_v3 = vrot.slane %v6232_v18, 1  ;;  %v2312_v4 = vsel %vm2164_vm2, %v2306_v20, %v2311_v8 }
 0x114   :  { %3996 = vmatprep.mubr.msk.bf16.mxu0 %vm1145_vm1, %v2640_v11  ;;  %7610 = vst [vmem:[#allocation33_spill] sm:$0xff] %v6256_v33  ;;  %v6261_v11 = vld [vmem:[%s7392_s0 + $0x5f8] sm:$0x3]  ;;  %v2642_v32 = vpack.c.bf16 %v2314_v42, %v2310_v47  ;;  %v802_v58 = vrot.slane %v6256_v33, 1 }
 0x115   :  { %7611 = vst [vmem:[#allocation34_spill] sm:$0xff] %v6261_v11  ;;  %v6263_v15 = vpop.f32.mrb[8].mxu1  ;;  %v806_v30 = vrot.slane %v6261_v11, 1  ;;  %v4405_v47 = vld [vmem:[%s7392_s0 + $0x2f8] sm:$0x3]  ;;  %v790_v33 = vsel %vm487_vm0, %v788_v3, %v789_v21  ;;  %v2307_v11 = vsel %vm2164_vm2, %v2305_v59, %v2306_v20  ;;  %v6300_v3 = vld [vmem:[%s7392_s0 + $0x5d0] sm:$0xff] }
 0x116   :  { %v6267_v25 = vpop.f32.mrb[9].mxu1  ;;  %v2323_v42 = vrot.slane %v4405_v47, 2  ;;  %v803_v63 = vsel %vm487_vm0, %v801_v53, %v802_v58  ;;  %7615 = vst [vmem:[#allocation37_spill] sm:$0xff] %v6300_v3  ;;  %v2641_v20 = vpack.c.bf16 %v2312_v4, %v2307_v11  ;;  %v798_v53 = vrot.slane %v6300_v3, 1  ;;  %v4409_v4 = vld [vmem:[%s7392_s0 + $0x308] sm:$0xff] }
 0x117   :  { %v6273_v46 = vpop.f32.mrb[10].mxu1 }
 0x118   :  { %7613 = vst [vmem:[#allocation35_spill] sm:$0xff] %v6273_v46  ;;  %v6278_v1 = vpop.f32.mrb[11].mxu1  ;;  %v807_v46 = vsel %vm487_vm0, %v802_v58, %v806_v30 }
 0x119   :  { %7614 = vst [vmem:[#allocation36_spill] sm:$0xff] %v6278_v1  ;;  %v795_v1 = vsel %vm487_vm0, %v789_v21, %v794_v12  ;;  %v2324_v21 = vsel %vm2164_vm2, %v2319_v40, %v2323_v42 }
 0x11a   :  { %1565 = vmatmul.mubr.bf16.gmra.mrb[116].mxu1 %v994_v51  ;;  %v6305_v51 = vld [vmem:[%s7392_s0 + $0x5e0] sm:$0xff]  ;;  %v996_v59 = vpack.c.bf16 %v795_v1, %v790_v33 }
 0x11b   :  { %3081 = vmatmul.mubr.bf16.gmra.mrb[52].mxu0 %v2639_v2  ;;  %3877 = vmatprep.mubr.msk.bf16.mxu1 %vm1145_vm1, %v997_v44  ;;  %7616 = vst [vmem:[#allocation38_spill] sm:$0xff] %v6305_v51  ;;  %v6310_v2 = vld [vmem:[%s7392_s0 + $0x5f0] sm:$0x3]  ;;  %v2320_v44 = vsel %vm2164_vm2, %v2318_v10, %v2319_v40  ;;  %v799_v58 = vrot.slane %v6305_v51, 1  ;;  %v4407_v33 = vld [vmem:[%s7392_s0 + $0x2e0] sm:$0xff] }
 0x11c   :  { %3997 = vmatprep.mubr.msk.bf16.mxu0 %vm1145_vm1, %v2642_v32  ;;  %7617 = vst [vmem:[#allocation39_spill] sm:$0xff] %v6310_v2  ;;  %v999_v32 = vpack.c.bf16 %v807_v46, %v803_v63  ;;  %v804_v30 = vrot.slane %v6310_v2, 1  ;;  %v2644_v37 = vpack.c.bf16 %v2324_v21, %v2320_v44  ;;  %v4406_v10 = vld [vmem:[%s7392_s0 + $0x2d0] sm:$0xff]  ;;  %v2316_v11 = vrot.slane %v4407_v33, 2  ;;  %v4410_v44 = vld [vmem:[%s7392_s0 + $0x318] sm:$0xff] }
 0x11d   :  { %v6314_v12 = vpop.f32.mrb[12].mxu1  ;;  %v2315_v40 = vrot.slane %v4406_v10, 2  ;;  %v4408_v46 = vld [vmem:[%s7392_s0 + $0x2f0] sm:$0x3]  ;;  %v2328_v63 = vrot.slane %v4409_v4, 2  ;;  %v2329_v21 = vrot.slane %v4410_v44, 2 }
 0x11e   :  { %v6316_v8 = vpop.f32.mrb[13].mxu1  ;;  %v2321_v1 = vrot.slane %v4408_v46, 2  ;;  %v4411_v10 = vld [vmem:[%s7392_s0 + $0x328] sm:$0x3]  ;;  %v800_v46 = vsel %vm487_vm0, %v798_v53, %v799_v58 }
 0x11f   :  { %7618 = vst [vmem:[#allocation40_spill] sm:$0xff] %v6316_v8  ;;  %v6321_v47 = vpop.f32.mrb[14].mxu1  ;;  %v2333_v33 = vrot.slane %v4411_v10, 2  ;;  %v2330_v8 = vsel %vm2164_vm2, %v2328_v63, %v2329_v21  ;;  %v240_v10 = vpack.c.bf16 %v4410_v44, %v4409_v4  ;;  %v4417_v63 = vld [vmem:[%s7392_s0 + $0x358] sm:$0x3] }
 0x120   :  { %7619 = vst [vmem:[#allocation41_spill] sm:$0xff] %v6321_v47  ;;  %v6332_v42 = vpop.f32.mrb[15].mxu1  ;;  %v2317_v47 = vsel %vm2164_vm2, %v2315_v40, %v2316_v11  ;;  %v2322_v2 = vsel %vm2164_vm2, %v2316_v11, %v2321_v1  ;;  %v4413_v40 = vld [vmem:[%s7392_s0 + $0x310] sm:$0xff]  ;;  %v4414_v1 = vld [vmem:[%s7392_s0 + $0x320] sm:$0x3]  ;;  %v2343_v44 = vrot.slane %v4417_v63, 2 }
 0x121   :  { %7620 = vst [vmem:[#allocation42_spill] sm:$0xff] %v6332_v42  ;;  %v805_v42 = vsel %vm487_vm0, %v799_v58, %v804_v30  ;;  %v2334_v51 = vsel %vm2164_vm2, %v2329_v21, %v2333_v33  ;;  %v2643_v53 = vpack.c.bf16 %v2322_v2, %v2317_v47  ;;  %v4412_v58 = vld [vmem:[%s7392_s0 + $0x300] sm:$0xff]  ;;  %v2326_v11 = vrot.slane %v4413_v40, 2  ;;  %v4416_v47 = vld [vmem:[%s7392_s0 + $0x348] sm:$0xff] }
 0x122   :  { %1575 = vmatmul.mubr.bf16.gmra.mrb[120].mxu1 %v996_v59  ;;  %v2325_v30 = vrot.slane %v4412_v58, 2  ;;  %v2339_v4 = vrot.slane %v4416_v47, 2 }
 0x123   :  { %3091 = vmatmul.mubr.bf16.gmra.mrb[56].mxu0 %v2641_v20  ;;  %3878 = vmatprep.mubr.msk.bf16.mxu1 %vm1145_vm1, %v999_v32  ;;  %v998_v20 = vpack.c.bf16 %v805_v42, %v800_v46  ;;  %v2331_v42 = vrot.slane %v4414_v1, 2 }
 0x124   :  { %3998 = vmatprep.mubr.msk.bf16.mxu0 %vm1145_vm1, %v2644_v37  ;;  %v2646_v37 = vpack.c.bf16 %v2334_v51, %v2330_v8  ;;  %v4415_v51 = vld [vmem:[%s7392_s0 + $0x338] sm:$0xff]  ;;  %v2327_v21 = vsel %vm2164_vm2, %v2325_v30, %v2326_v11  ;;  %v2344_v1 = vsel %vm2164_vm2, %v2339_v4, %v2343_v44 }
 0x125   :  { %v6351_v3 = vpop.f32.mrb[16].mxu1  ;;  %v2338_v8 = vrot.slane %v4415_v51, 2  ;;  %v2332_v33 = vsel %vm2164_vm2, %v2326_v11, %v2331_v42  ;;  %v4419_v11 = vld [vmem:[%s7392_s0 + $0x340] sm:$0xff] }
 0x126   :  { %v6353_v59 = vpop.f32.mrb[17].mxu1  ;;  %v2645_v63 = vpack.c.bf16 %v2332_v33, %v2327_v21  ;;  %v2336_v42 = vrot.slane %v4419_v11, 2  ;;  %v4423_v21 = vld [vmem:[%s7392_s0 + $0x388] sm:$0x3] }
 0x127   :  { %7621 = vst [vmem:[#allocation43_spill] sm:$0xff] %v6353_v59  ;;  %v6355_v32 = vpop.f32.mrb[18].mxu1  ;;  %v2340_v46 = vsel %vm2164_vm2, %v2338_v8, %v2339_v4  ;;  %v239_v59 = vpack.c.bf16 %v4413_v40, %v4412_v58  ;;  %v4420_v8 = vld [vmem:[%s7392_s0 + $0x350] sm:$0x3]  ;;  %v4422_v4 = vld [vmem:[%s7392_s0 + $0x378] sm:$0xff]  ;;  %v2353_v33 = vrot.slane %v4423_v21, 2 }
 0x128   :  { %7622 = vst [vmem:[#allocation44_spill] sm:$0xff] %v6355_v32  ;;  %v6366_v2 = vpop.f32.mrb[19].mxu1  ;;  %v2341_v58 = vrot.slane %v4420_v8, 2  ;;  %v2349_v44 = vrot.slane %v4422_v4, 2 }
 0x129   :  { %7623 = vst [vmem:[#allocation45_spill] sm:$0xff] %v6366_v2 }
 0x12a   :  { %1585 = vmatmul.mubr.bf16.gmra.mrb[124].mxu1 %v998_v20  ;;  %v242_v20 = vpack.c.bf16 %v4416_v47, %v4415_v51  ;;  %v4421_v51 = vld [vmem:[%s7392_s0 + $0x368] sm:$0xff] }
 0x12b   :  { %3101 = vmatmul.mubr.bf16.gmra.mrb[60].mxu0 %v2643_v53  ;;  %3919 = vmatprep.mubr.msk.bf16.mxu1 %vm1145_vm1, %v240_v10  ;;  %v2648_v10 = vpack.c.bf16 %v2344_v1, %v2340_v46  ;;  %v2348_v47 = vrot.slane %v4421_v51, 2  ;;  %v2342_v1 = vsel %vm2164_vm2, %v2336_v42, %v2341_v58 }
 0x12c   :  { %3999 = vmatprep.mubr.msk.bf16.mxu0 %vm1145_vm1, %v2646_v37  ;;  %v4418_v37 = vld [vmem:[%s7392_s0 + $0x330] sm:$0xff] }
 0x12d   :  { %v6383_v2 = vpop.f32.mrb[20].mxu1  ;;  %v2335_v30 = vrot.slane %v4418_v37, 2  ;;  %v2350_v8 = vsel %vm2164_vm2, %v2348_v47, %v2349_v44  ;;  %v4426_v47 = vld [vmem:[%s7392_s0 + $0x380] sm:$0x3] }
 0x12e   :  { %7624 = vst [vmem:[#allocation46_spill] sm:$0xff] %v6383_v2  ;;  %v6385_v32 = vpop.f32.mrb[21].mxu1  ;;  %v241_v2 = vpack.c.bf16 %v4419_v11, %v4418_v37  ;;  %v2351_v37 = vrot.slane %v4426_v47, 2 }
 0x12f   :  { %7625 = vst [vmem:[#allocation47_spill] sm:$0xff] %v6385_v32  ;;  %v6387_v53 = vpop.f32.mrb[22].mxu1  ;;  %v2337_v46 = vsel %vm2164_vm2, %v2335_v30, %v2336_v42  ;;  %v4425_v42 = vld [vmem:[%s7392_s0 + $0x370] sm:$0xff] }
 0x130   :  { %7626 = vst [vmem:[#allocation48_spill] sm:$0xff] %v6387_v53  ;;  %v6398_v40 = vpop.f32.mrb[23].mxu1  ;;  %v2647_v21 = vpack.c.bf16 %v2342_v1, %v2337_v46  ;;  %v2346_v58 = vrot.slane %v4425_v42, 2 }
 0x131   :  { %7627 = vst [vmem:[#allocation49_spill] sm:$0xff] %v6398_v40  ;;  %v2354_v40 = vsel %vm2164_vm2, %v2349_v44, %v2353_v33  ;;  %v4429_v33 = vld [vmem:[%s7392_s0 + $0x3b8] sm:$0x3] }
 0x132   :  { %2004 = vmatmul.mubr.bf16.vlgmr.msra.gmra.mrb[64].mxu1 %v239_v59  ;;  %v244_v59 = vpack.c.bf16 %v4422_v4, %v4421_v51  ;;  %v4428_v4 = vld [vmem:[%s7392_s0 + $0x3a8] sm:$0xff]  ;;  %v2363_v46 = vrot.slane %v4429_v33, 2 }
 0x133   :  { %3111 = vmatmul.mubr.bf16.gmra.mrb[64].mxu0 %v2645_v63  ;;  %3920 = vmatprep.mubr.msk.bf16.mxu1 %vm1145_vm1, %v242_v20  ;;  %v2650_v20 = vpack.c.bf16 %v2354_v40, %v2350_v8  ;;  %v4427_v40 = vld [vmem:[%s7392_s0 + $0x398] sm:$0xff]  ;;  %v2359_v44 = vrot.slane %v4428_v4, 2  ;;  %v2352_v8 = vsel %vm2164_vm2, %v2346_v58, %v2351_v37 }
 0x134   :  { %4000 = vmatprep.mubr.msk.bf16.mxu0 %vm1145_vm1, %v2648_v10  ;;  %v4424_v10 = vld [vmem:[%s7392_s0 + $0x360] sm:$0xff]  ;;  %v2358_v51 = vrot.slane %v4427_v40, 2 }
 0x135   :  { %v6415_v53 = vpop.f32.mrb[24].mxu1  ;;  %v2345_v30 = vrot.slane %v4424_v10, 2 }
 0x136   :  { %7628 = vst [vmem:[#allocation50_spill] sm:$0xff] %v6415_v53  ;;  %v6417_v32 = vpop.f32.mrb[25].mxu1  ;;  %v2360_v47 = vsel %vm2164_vm2, %v2358_v51, %v2359_v44  ;;  %v243_v53 = vpack.c.bf16 %v4425_v42, %v4424_v10  ;;  %v4432_v51 = vld [vmem:[%s7392_s0 + $0x3b0] sm:$0x3] }
 0x137   :  { %7629 = vst [vmem:[#allocation51_spill] sm:$0xff] %v6417_v32  ;;  %v6419_v63 = vpop.f32.mrb[26].mxu1  ;;  %v2347_v1 = vsel %vm2164_vm2, %v2345_v30, %v2346_v58  ;;  %v4431_v58 = vld [vmem:[%s7392_s0 + $0x3a0] sm:$0xff]  ;;  %v2361_v10 = vrot.slane %v4432_v51, 2 }
 0x138   :  { %7630 = vst [vmem:[#allocation52_spill] sm:$0xff] %v6419_v63  ;;  %v6430_v11 = vpop.f32.mrb[27].mxu1  ;;  %v2649_v33 = vpack.c.bf16 %v2352_v8, %v2347_v1  ;;  %v2356_v37 = vrot.slane %v4431_v58, 2 }
 0x139   :  { %7631 = vst [vmem:[#allocation53_spill] sm:$0xff] %v6430_v11  ;;  %v2364_v11 = vsel %vm2164_vm2, %v2359_v44, %v2363_v46  ;;  %v4433_v44 = vld [vmem:[%s7392_s0 + $0x3c8] sm:$0xff] }
 0x13a   :  { %2014 = vmatmul.mubr.bf16.gmra.mrb[68].mxu1 %v241_v2  ;;  %v4430_v2 = vld [vmem:[%s7392_s0 + $0x390] sm:$0xff]  ;;  %v2652_v30 = vpack.c.bf16 %v2364_v11, %v2360_v47  ;;  %v2368_v46 = vrot.slane %v4433_v44, 2  ;;  %v4434_v11 = vld [vmem:[%s7392_s0 + $0x3d8] sm:$0xff]  ;;  %v2362_v47 = vsel %vm2164_vm2, %v2356_v37, %v2361_v10 }
 0x13b   :  { %3121 = vmatmul.mubr.bf16.gmra.mrb[68].mxu0 %v2647_v21  ;;  %3921 = vmatprep.mubr.msk.bf16.mxu1 %vm1145_vm1, %v244_v59  ;;  %v2355_v21 = vrot.slane %v4430_v2, 2 }
 0x13c   :  { %4001 = vmatprep.mubr.msk.bf16.mxu0 %vm1145_vm1, %v2650_v20  ;;  %v246_v20 = vpack.c.bf16 %v4428_v4, %v4427_v40  ;;  %v2369_v40 = vrot.slane %v4434_v11, 2  ;;  %v4435_v4 = vld [vmem:[%s7392_s0 + $0x3e8] sm:$0x3] }
 0x13d   :  { %v6447_v63 = vpop.f32.mrb[28].mxu1  ;;  %v2373_v1 = vrot.slane %v4435_v4, 2  ;;  %v2357_v8 = vsel %vm2164_vm2, %v2355_v21, %v2356_v37  ;;  %v248_v21 = vpack.c.bf16 %v4434_v11, %v4433_v44  ;;  %v4437_v37 = vld [vmem:[%s7392_s0 + $0x3d0] sm:$0xff] }
 0x13e   :  { %7632 = vst [vmem:[#allocation54_spill] sm:$0xff] %v6447_v63  ;;  %v6449_v32 = vpop.f32.mrb[29].mxu1  ;;  %v2370_v51 = vsel %vm2164_vm2, %v2368_v46, %v2369_v40  ;;  %v245_v63 = vpack.c.bf16 %v4431_v58, %v4430_v2  ;;  %v2651_v4 = vpack.c.bf16 %v2362_v47, %v2357_v8  ;;  %v2366_v10 = vrot.slane %v4437_v37, 2  ;;  %v4438_v46 = vld [vmem:[%s7392_s0 + $0x3e0] sm:$0x3] }
 0x13f   :  { %7633 = vst [vmem:[#allocation55_spill] sm:$0xff] %v6449_v32  ;;  %v6454_v59 = vpop.f32.mrb[30].mxu1  ;;  %v2371_v2 = vrot.slane %v4438_v46, 2  ;;  %v2383_v8 = vrot.slane %v5731_v35, 2  ;;  %v2376_v46 = vrot.slane %v5751_v34, 2 }
 0x140   :  { %7634 = vst [vmem:[#allocation56_spill] sm:$0xff] %v6454_v59  ;;  %v6462_v42 = vpop.f32.mrb[31].mxu1 }
 0x141   :  { %7635 = vst [vmem:[#allocation57_spill] sm:$0xff] %v6462_v42  ;;  %v2374_v42 = vsel %vm2164_vm2, %v2369_v40, %v2373_v1  ;;  %v2378_v40 = vrot.slane %v5721_v56, 2  ;;  %v2379_v1 = vrot.slane %v5726_v38, 2  ;;  %v2372_v44 = vsel %vm2164_vm2, %v2366_v10, %v2371_v2 }
 0x142   :  { %2024 = vmatmul.mubr.bf16.gmra.mrb[72].mxu1 %v243_v53  ;;  %v4436_v53 = vld [vmem:[%s7392_s0 + $0x3c0] sm:$0xff]  ;;  %v2381_v2 = vrot.slane %v5756_v39, 2 }
 0x143   :  { %3131 = vmatmul.mubr.bf16.gmra.mrb[72].mxu0 %v2649_v33  ;;  %3922 = vmatprep.mubr.msk.bf16.mxu1 %vm1145_vm1, %v246_v20  ;;  %v2365_v33 = vrot.slane %v4436_v53, 2  ;;  %v2380_v11 = vsel %vm2164_vm2, %v2378_v40, %v2379_v1  ;;  %v2384_v47 = vsel %vm2164_vm2, %v2379_v1, %v2383_v8  ;;  %v247_v38 = vpack.c.bf16 %v4437_v37, %v4436_v53 }
 0x144   :  { %4002 = vmatprep.mubr.msk.bf16.mxu0 %vm1145_vm1, %v2652_v30  ;;  %v2654_v30 = vpack.c.bf16 %v2374_v42, %v2370_v51  ;;  %v2389_v37 = vrot.slane %v5769_v7, 2  ;;  %v2393_v40 = vrot.slane %v5774_v9, 2  ;;  %v2382_v34 = vsel %vm2164_vm2, %v2376_v46, %v2381_v2  ;;  %v4441_v7 = vld [vmem:[%s7392_s0 + $0x3f0] sm:$0xff]  ;;  %v4442_v9 = vld [vmem:[%s7392_s0 + $0x400] sm:$0xff] }
 0x145   :  { %v6479_v59 = vpop.f32.mrb[32].mxu1  ;;  %v2367_v42 = vsel %vm2164_vm2, %v2365_v33, %v2366_v10  ;;  %v4439_v33 = vld [vmem:[%s7392_s0 + $0x3f8] sm:$0xff]  ;;  %v2656_v10 = vpack.c.bf16 %v2384_v47, %v2380_v11  ;;  %v2385_v47 = vrot.slane %v5800_v24, 2  ;;  %v2398_v2 = vrot.slane %v5819_v6, 2 }
 0x146   :  { %v6481_v32 = vpop.f32.mrb[33].mxu1  ;;  %v2653_v35 = vpack.c.bf16 %v2372_v44, %v2367_v42  ;;  %v2394_v8 = vsel %vm2164_vm2, %v2389_v37, %v2393_v40  ;;  %v249_v44 = vpack.c.bf16 %v4442_v9, %v4441_v7  ;;  %v2395_v9 = vrot.slane %v5846_v17, 2 }
 0x147   :  { %v6486_v20 = vpop.f32.mrb[34].mxu1 }
 0x148   :  { %v6494_v58 = vpop.f32.mrb[35].mxu1 }
 0x14a   :  { %2034 = vmatmul.mubr.bf16.gmra.mrb[76].mxu1 %v245_v63  ;;  %v2375_v63 = vrot.slane %v5746_v43, 2  ;;  %v2388_v43 = vrot.slane %v5764_v28, 2 }
 0x14b   :  { %3141 = vmatmul.mubr.bf16.gmra.mrb[76].mxu0 %v2651_v4  ;;  %3923 = vmatprep.mubr.msk.bf16.mxu1 %vm1145_vm1, %v248_v21  ;;  %v4440_v21 = vld [vmem:[%s7392_s0 + $0x408] sm:$0xff] }
 0x14c   :  { %4003 = vmatprep.mubr.msk.bf16.mxu0 %vm1145_vm1, %v2654_v30  ;;  %v250_v30 = vpack.c.bf16 %v4440_v21, %v4439_v33  ;;  %v2377_v1 = vsel %vm2164_vm2, %v2375_v63, %v2376_v46  ;;  %v2390_v39 = vsel %vm2164_vm2, %v2388_v43, %v2389_v37  ;;  %v4444_v63 = vld [vmem:[%s7392_s0 + $0x438] sm:$0xff]  ;;  %v2399_v43 = vrot.slane %v5824_v55, 2 }
 0x14d   :  { %v6505_v51 = vpop.f32.mrb[36].mxu1  ;;  %v2655_v11 = vpack.c.bf16 %v2382_v34, %v2377_v1  ;;  %v2658_v21 = vpack.c.bf16 %v2394_v8, %v2390_v39  ;;  %v2403_v37 = vrot.slane %v5829_v29, 2  ;;  %v251_v29 = vpack.c.bf16 %v5805_v26, %v5800_v24 }
 0x14e   :  { %v6507_v56 = vpop.f32.mrb[37].mxu1  ;;  %v2413_v24 = vrot.slane %v5881_v45, 2  ;;  %v253_v45 = vpack.c.bf16 %v5851_v23, %v5846_v17  ;;  %v2423_v17 = vrot.slane %v5939_v14, 2  ;;  %v255_v14 = vpack.c.bf16 %v5903_v22, %v5895_v0 }
 0x14f   :  { %v6510_v4 = vpop.f32.mrb[38].mxu1  ;;  %v2404_v34 = vsel %vm2164_vm2, %v2399_v43, %v2403_v37  ;;  %v2405_v37 = vrot.slane %v5895_v0, 2  ;;  %v7639_v0 = vld [vmem:[#allocation3_spill] sm:$0xff] }
 0x150   :  { %v6520_v53 = vpop.f32.mrb[39].mxu1 }
 0x152   :  { %2044 = vmatmul.mubr.bf16.gmra.mrb[80].mxu1 %v247_v38 }
 0x153   :  { %3151 = vmatmul.mubr.bf16.gmra.mrb[80].mxu0 %v2653_v35  ;;  %3924 = vmatprep.mubr.msk.bf16.mxu1 %vm1145_vm1, %v250_v30  ;;  %v4443_v35 = vld [vmem:[%s7392_s0 + $0x428] sm:$0xff]  ;;  %v2386_v30 = vrot.slane %v5805_v26, 2 }
 0x154   :  { %4004 = vmatprep.mubr.msk.bf16.mxu0 %vm1145_vm1, %v2656_v10  ;;  %v252_v33 = vpack.c.bf16 %v4444_v63, %v4443_v35  ;;  %v2391_v10 = vrot.slane %v5812_v50, 2  ;;  %v2400_v50 = vsel %vm2164_vm2, %v2398_v2, %v2399_v43  ;;  %v2396_v35 = vrot.slane %v5851_v23, 2 }
 0x155   :  { %v6531_v42 = vpop.f32.mrb[40].mxu1  ;;  %v2387_v40 = vsel %vm2164_vm2, %v2385_v47, %v2386_v30  ;;  %v2660_v47 = vpack.c.bf16 %v2404_v34, %v2400_v50  ;;  %v2401_v63 = vrot.slane %v5857_v19, 2  ;;  %v2406_v34 = vrot.slane %v5903_v22, 2 }
 0x156   :  { %v6533_v28 = vpop.f32.mrb[41].mxu1  ;;  %v2392_v1 = vsel %vm2164_vm2, %v2386_v30, %v2391_v10  ;;  %v2409_v30 = vrot.slane %v5870_v13, 2  ;;  %v2397_v26 = vsel %vm2164_vm2, %v2395_v9, %v2396_v35  ;;  %v2418_v9 = vrot.slane %v5929_v61, 2 }
 0x157   :  { %v6542_v38 = vpop.f32.mrb[42].mxu1  ;;  %v2657_v7 = vpack.c.bf16 %v2392_v1, %v2387_v40  ;;  %v256_v1 = vpack.c.bf16 %v5870_v13, %v5865_v16  ;;  %v2407_v23 = vsel %vm2164_vm2, %v2405_v37, %v2406_v34  ;;  %v2433_v22 = vrot.slane %v7639_v0, 2 }
 0x158   :  { %v6552_v46 = vpop.f32.mrb[43].mxu1  ;;  %v2414_v19 = vsel %vm2164_vm2, %v2409_v30, %v2413_v24  ;;  %v258_v24 = vpack.c.bf16 %v5934_v62, %v5929_v61 }
 0x15a   :  { %2054 = vmatmul.mubr.bf16.gmra.mrb[84].mxu1 %v249_v44 }
 0x15b   :  { %3161 = vmatmul.mubr.bf16.gmra.mrb[84].mxu0 %v2655_v11  ;;  %3925 = vmatprep.mubr.msk.bf16.mxu1 %vm1145_vm1, %v252_v33  ;;  %v254_v11 = vpack.c.bf16 %v5824_v55, %v5819_v6  ;;  %v2402_v6 = vsel %vm2164_vm2, %v2396_v35, %v2401_v63 }
 0x15c   :  { %4005 = vmatprep.mubr.msk.bf16.mxu0 %vm1145_vm1, %v2658_v21  ;;  %v2408_v21 = vrot.slane %v5865_v16, 2  ;;  %v2659_v43 = vpack.c.bf16 %v2402_v6, %v2397_v26  ;;  %v2416_v6 = vrot.slane %v5959_v54, 2 }
 0x15d   :  { %v6563_v39 = vpop.f32.mrb[44].mxu1 }
 0x15e   :  { %v6565_v8 = vpop.f32.mrb[45].mxu1  ;;  %v2410_v55 = vsel %vm2164_vm2, %v2408_v21, %v2409_v30  ;;  %v2415_v21 = vrot.slane %v5954_v52, 2 }
 0x15f   :  { %v6570_v44 = vpop.f32.mrb[46].mxu1  ;;  %v2662_v50 = vpack.c.bf16 %v2414_v19, %v2410_v55  ;;  %v2421_v55 = vrot.slane %v5964_v48, 2 }
 0x160   :  { %v6576_v33 = vpop.f32.mrb[47].mxu1  ;;  %v2417_v61 = vsel %vm2164_vm2, %v2415_v21, %v2416_v6 }
 0x162   :  { %2064 = vmatmul.mubr.bf16.gmra.mrb[88].mxu1 %v251_v29  ;;  %v2411_v29 = vrot.slane %v5908_v60, 2 }
 0x163   :  { %3171 = vmatmul.mubr.bf16.gmra.mrb[88].mxu0 %v2657_v7  ;;  %3926 = vmatprep.mubr.msk.bf16.mxu1 %vm1145_vm1, %v254_v11  ;;  %v2419_v11 = vrot.slane %v5934_v62, 2  ;;  %v2422_v62 = vsel %vm2164_vm2, %v2416_v6, %v2421_v55  ;;  %v7647_v6 = vld [vmem:[#allocation7_spill] sm:$0xff] }
 0x164   :  { %4006 = vmatprep.mubr.msk.bf16.mxu0 %vm1145_vm1, %v2660_v47  ;;  %v2412_v16 = vsel %vm2164_vm2, %v2406_v34, %v2411_v29  ;;  %v257_v29 = vpack.c.bf16 %v5959_v54, %v5954_v52  ;;  %v2438_v55 = vrot.slane %v7647_v6, 2  ;;  %v7649_v54 = vld [vmem:[#allocation9_spill] sm:$0xff] }
 0x165   :  { %v6587_v10 = vpop.f32.mrb[48].mxu1  ;;  %v2420_v13 = vsel %vm2164_vm2, %v2418_v9, %v2419_v11  ;;  %v2424_v60 = vsel %vm2164_vm2, %v2419_v11, %v2423_v17  ;;  %v2661_v63 = vpack.c.bf16 %v2412_v16, %v2407_v23  ;;  %v2663_v9 = vpack.c.bf16 %v2422_v62, %v2417_v61  ;;  %v7642_v11 = vld [vmem:[#allocation4_spill] sm:$0xff] }
 0x166   :  { %v6589_v2 = vpop.f32.mrb[49].mxu1  ;;  %v2664_v26 = vpack.c.bf16 %v2424_v60, %v2420_v13  ;;  %v2425_v17 = vrot.slane %v7642_v11, 2  ;;  %v7644_v60 = vld [vmem:[#allocation5_spill] sm:$0xff] }
 0x167   :  { %v6594_v40 = vpop.f32.mrb[50].mxu1 }
 0x168   :  { %v6600_v7 = vpop.f32.mrb[51].mxu1 }
 0x16a   :  { %2074 = vmatmul.mubr.bf16.gmra.mrb[92].mxu1 %v253_v45  ;;  %v2428_v45 = vrot.slane %v5972_v5, 2 }
 0x16b   :  { %3181 = vmatmul.mubr.bf16.gmra.mrb[92].mxu0 %v2659_v43  ;;  %3927 = vmatprep.mubr.msk.bf16.mxu1 %vm1145_vm1, %v256_v1  ;;  %v7638_v43 = vld [vmem:[#allocation2_spill] sm:$0xff] }
 0x16c   :  { %4007 = vmatprep.mubr.msk.bf16.mxu0 %vm1145_vm1, %v2662_v50  ;;  %v2429_v37 = vrot.slane %v7638_v43, 2  ;;  %v260_v16 = vpack.c.bf16 %v7638_v43, %v5972_v5 }
 0x16d   :  { %v6611_v47 = vpop.f32.mrb[52].mxu1 }
 0x16e   :  { %v6613_v35 = vpop.f32.mrb[53].mxu1  ;;  %v2430_v48 = vsel %vm2164_vm2, %v2428_v45, %v2429_v37  ;;  %v2434_v1 = vsel %vm2164_vm2, %v2429_v37, %v2433_v22  ;;  %v7648_v45 = vld [vmem:[#allocation8_spill] sm:$0xff]  ;;  %v2443_v37 = vrot.slane %v7649_v54, 2 }
 0x16f   :  { %v6618_v30 = vpop.f32.mrb[54].mxu1  ;;  %v2666_v13 = vpack.c.bf16 %v2434_v1, %v2430_v48  ;;  %v2439_v52 = vrot.slane %v7648_v45, 2  ;;  %v259_v48 = vpack.c.bf16 %v7644_v60, %v7642_v11  ;;  %v2448_v11 = vrot.slane %v6073_v36, 2 }
 0x170   :  { %7636 = vst [vmem:[#allocation58_spill] sm:$0xff] %v6618_v30  ;;  %v6624_v19 = vpop.f32.mrb[55].mxu1 }
 0x171   :  { %7637 = vst [vmem:[#allocation59_spill] sm:$0xff] %v6624_v19  ;;  %v2440_v22 = vsel %vm2164_vm2, %v2438_v55, %v2439_v52  ;;  %v2444_v61 = vsel %vm2164_vm2, %v2439_v52, %v2443_v37  ;;  %v7657_v37 = vld [vmem:[#allocation13_spill] sm:$0xff]  ;;  %v7667_v19 = vld [vmem:[#allocation23_spill] sm:$0xff] }
 0x172   :  { %2084 = vmatmul.mubr.bf16.gmra.mrb[96].mxu1 %v255_v14  ;;  %v2426_v14 = vrot.slane %v7644_v60, 2  ;;  %v2449_v60 = vrot.slane %v6078_v57, 2 }
 0x173   :  { %3191 = vmatmul.mubr.bf16.gmra.mrb[96].mxu0 %v2661_v63  ;;  %3928 = vmatprep.mubr.msk.bf16.mxu1 %vm1145_vm1, %v258_v24  ;;  %v7645_v63 = vld [vmem:[#allocation6_spill] sm:$0xff] }
 0x174   :  { %4008 = vmatprep.mubr.msk.bf16.mxu0 %vm1145_vm1, %v2664_v26  ;;  %v2431_v21 = vrot.slane %v7645_v63, 2  ;;  %v3401_v26 = vlaneseq  ;;  %v2427_v5 = vsel %vm2164_vm2, %v2425_v17, %v2426_v14  ;;  %v7654_v17 = vld [vmem:[#allocation12_spill] sm:$0xff] }
 0x175   :  { %v6635_v50 = vpop.f32.mrb[56].mxu1  ;;  %v2441_v54 = vrot.slane %v7654_v17, 2 }
 0x176   :  { %7640 = vst [vmem:[#allocation2_spill] sm:$0xff] %v6635_v50  ;;  %v6637_v34 = vpop.f32.mrb[57].mxu1  ;;  %v2432_v43 = vsel %vm2164_vm2, %v2426_v14, %v2431_v21  ;;  %v3402_v0 = vshrl.u32 %v3401_v26, 7  ;;  %v262_v21 = vpack.c.bf16 %v7648_v45, %v7647_v6  ;;  %v2668_v26 = vpack.c.bf16 %v2444_v61, %v2440_v22 }
 0x177   :  { %7641 = vst [vmem:[#allocation3_spill] sm:$0xff] %v6637_v34  ;;  %v6642_v23 = vpop.f32.mrb[58].mxu1  ;;  %v2450_v22 = vsel %vm2164_vm2, %v2448_v11, %v2449_v60  ;;  %v7666_v34 = vld [vmem:[#allocation19_spill] sm:$0xff] }
 0x178   :  { %7643 = vst [vmem:[#allocation4_spill] sm:$0xff] %v6642_v23  ;;  %v6648_v24 = vpop.f32.mrb[59].mxu1  ;;  %v3403_v52 = vsub.s32 0, %v3402_v0  ;;  %v3407_v17 = vsub.s32 1, %v3402_v0  ;;  %v2463_v50 = vrot.slane %v7666_v34, 2 }
 0x179   :  { %7646 = vst [vmem:[#allocation5_spill] sm:$0xff] %v6648_v24  ;;  %v7662_v24 = vld [vmem:[#allocation21_spill] sm:$0xff] }
 0x17a   :  { %2094 = vmatmul.mubr.bf16.gmra.mrb[100].mxu1 %v257_v29  ;;  %v2665_v29 = vpack.c.bf16 %v2432_v43, %v2427_v5  ;;  %v2453_v5 = vrot.slane %v7657_v37, 2  ;;  %v3399_v43 = vld [vmem:[%s7393_s2] sm:$0x3] }
 0x17b   :  { %3201 = vmatmul.mubr.bf16.gmra.mrb[100].mxu0 %v2663_v9  ;;  %3929 = vmatprep.mubr.msk.bf16.mxu1 %vm1145_vm1, %v260_v16  ;;  %v7652_v9 = vld [vmem:[#allocation10_spill] sm:$0xff]  ;;  %v6684_v45 = vrot.slane %v3399_v43, %v3403_v52  ;;  %v7661_v52 = vld [vmem:[#allocation16_spill] sm:$0xff] }
 0x17c   :  { %4009 = vmatprep.mubr.msk.bf16.mxu0 %vm1145_vm1, %v2666_v13  ;;  %v2435_v16 = vrot.slane %v7652_v9, 2  ;;  %v7653_v13 = vld [vmem:[#allocation11_spill] sm:$0xff]  ;;  %v2454_v61 = vsel %vm2164_vm2, %v2449_v60, %v2453_v5  ;;  %v264_v60 = vpack.c.bf16 %v6078_v57, %v6073_v36 }
 0x17d   :  { %v6659_v62 = vpop.f32.mrb[60].mxu1  ;;  %v2436_v63 = vrot.slane %v7653_v13, 2  ;;  %v261_v0 = vpack.c.bf16 %v7653_v13, %v7652_v9  ;;  %v2670_v5 = vpack.c.bf16 %v2454_v61, %v2450_v22  ;;  %v7664_v13 = vld [vmem:[#allocation22_spill] sm:$0xff] }
 0x17e   :  { %7650 = vst [vmem:[#allocation6_spill] sm:$0xff] %v6659_v62  ;;  %v6663_v1 = vpop.f32.mrb[61].mxu1  ;;  %v2451_v62 = vrot.slane %v7661_v52, 2 }
 0x17f   :  { %7651 = vst [vmem:[#allocation7_spill] sm:$0xff] %v6663_v1  ;;  %v6668_v14 = vpop.f32.mrb[62].mxu1  ;;  %v2442_v6 = vsel %vm2164_vm2, %v2436_v63, %v2441_v54  ;;  %v7659_v54 = vld [vmem:[#allocation14_spill] sm:$0xff]  ;;  %v7660_v1 = vld [vmem:[#allocation15_spill] sm:$0xff] }
 0x180   :  { %7655 = vst [vmem:[#allocation8_spill] sm:$0xff] %v6668_v14  ;;  %v6672_v55 = vpop.f32.mrb[63].mxu1  ;;  %v2437_v14 = vsel %vm2164_vm2, %v2435_v16, %v2436_v63 }
 0x181   :  { %7656 = vst [vmem:[#allocation9_spill] sm:$0xff] %v6672_v55  ;;  %v6688_v55 = vrot.slane %v3399_v43, %v3407_v17  ;;  %v7663_v43 = vld [vmem:[#allocation17_spill] sm:$0xff] }
 0x182   :  { %2104 = vmatmul.mubr.bf16.gmra.mrb[104].mxu1 %v259_v48  ;;  %v2667_v48 = vpack.c.bf16 %v2442_v6, %v2437_v14  ;;  %v2458_v17 = vrot.slane %v7663_v43, 2 }
 0x183   :  { %3211 = vmatmul.mubr.bf16.gmra.mrb[104].mxu0 %v2665_v29  ;;  %3930 = vmatprep.mubr.msk.bf16.mxu1 %vm1145_vm1, %v262_v21  ;;  %v7658_v29 = vld [vmem:[#allocation20_spill] sm:$0xff]  ;;  %v2445_v21 = vrot.slane %v7659_v54, 2 }
 0x184   :  { %4010 = vmatprep.mubr.msk.bf16.mxu0 %vm1145_vm1, %v2668_v26  ;;  %v2446_v26 = vrot.slane %v7660_v1, 2 }
 0x186   :  { %v2952_v37 = vpop.f32.mrb[0].mxu0  ;;  %v2447_v36 = vsel %vm2164_vm2, %v2445_v21, %v2446_v26  ;;  %v2452_v57 = vsel %vm2164_vm2, %v2446_v26, %v2451_v62 }
 0x187   :  { %v4039_v16 = vadd.f32 %v2952_v37, %v7658_v29  ;;  %v2954_v63 = vpop.f32.mrb[1].mxu0  ;;  %v7665_v37 = vld [vmem:[#allocation18_spill] sm:$0xff] }
 0x188   :  { %v4040_v11 = vadd.f32 %v2954_v63, %v7662_v24  ;;  %v2956_v23 = vpop.f32.mrb[2].mxu0  ;;  %v2459_v29 = vrot.slane %v7665_v37, 2 }
 0x189   :  { %v3411_v9 = vadd.f32 %v4039_v16, %v6684_v45  ;;  %v4041_v14 = vadd.f32 %v2956_v23, %v7664_v13  ;;  %v2958_v6 = vpop.f32.mrb[3].mxu0  ;;  %v2669_v16 = vpack.c.bf16 %v2452_v57, %v2447_v36  ;;  %v7674_v57 = vld [vmem:[#allocation28_spill] sm:$0xff] }
 0x18a   :  { %v3412_v52 = vadd.f32 %v4040_v11, %v6688_v55  ;;  %v4042_v24 = vadd.f32 %v2958_v6, %v7667_v19  ;;  %2114 = vmatmul.mubr.bf16.gmra.mrb[108].mxu1 %v261_v0  ;;  %v2460_v34 = vsel %vm2164_vm2, %v2458_v17, %v2459_v29  ;;  %v2464_v61 = vsel %vm2164_vm2, %v2459_v29, %v2463_v50  ;;  %v7669_v11 = vld [vmem:[#allocation24_spill] sm:$0xff]  ;;  %v7671_v17 = vld [vmem:[#allocation26_spill] sm:$0xff]  ;;  %v7673_v29 = vld [vmem:[#allocation27_spill] sm:$0xff] }
 0x18b   :  { %v3539_v63 = vmax.f32 %v3411_v9, 0.0  ;;  %v3413_v30 = vadd.f32 %v4041_v14, %v6684_v45  ;;  %3221 = vmatmul.mubr.bf16.gmra.mrb[108].mxu0 %v2667_v48  ;;  %3931 = vmatprep.mubr.msk.bf16.mxu1 %vm1145_vm1, %v264_v60  ;;  %v263_v48 = vpack.c.bf16 %v7660_v1, %v7659_v54  ;;  %v2455_v50 = vrot.slane %v7669_v11, 2  ;;  %v7670_v60 = vld [vmem:[#allocation25_spill] sm:$0xff]  ;;  %v7672_v1 = vld [vmem:[#allocation31_spill] sm:$0xff] }
 0x18c   :  { %v3540_v22 = vmax.f32 %v3412_v52, 0.0  ;;  %v3414_v23 = vadd.f32 %v4042_v24, %v6688_v55  ;;  %4011 = vmatprep.mubr.msk.bf16.mxu0 %vm1145_vm1, %v2670_v5  ;;  %v2456_v5 = vrot.slane %v7670_v60, 2  ;;  %v2461_v9 = vrot.slane %v7671_v17, 2 }
 0x18d   :  { %3667 = vst [vmem:[%s7394_s3] sm:$0xff] %v3539_v63  ;;  %v3541_v19 = vmax.f32 %v3413_v30, 0.0  ;;  %v7668_v30 = vld [vmem:[#allocation30_spill] sm:$0xff]  ;;  %v266_v14 = vpack.c.bf16 %v7665_v37, %v7663_v43  ;;  %v2672_v6 = vpack.c.bf16 %v2464_v61, %v2460_v34  ;;  %v2468_v52 = vrot.slane %v7673_v29, 2 }
 0x18e   :  { %3668 = vst.msk [vmem:[%s7394_s3 + $0x8] sm:$0xff] %vm1145_vm1, %v3540_v22  ;;  %v3542_v62 = vmax.f32 %v3414_v23, 0.0  ;;  %v2962_v0 = vpop.f32.mrb[4].mxu0  ;;  %v2469_v22 = vrot.slane %v7674_v57, 2  ;;  %v7675_v23 = vld [vmem:[#allocation29_spill] sm:$0xff]  ;;  %v2457_v43 = vsel %vm2164_vm2, %v2455_v50, %v2456_v5  ;;  %v2462_v37 = vsel %vm2164_vm2, %v2456_v5, %v2461_v9 }
 0x18f   :  { %3669 = vst [vmem:[%s7394_s3 + $0x10] sm:$0xff] %v3541_v19  ;;  %v4043_v21 = vadd.f32 %v2962_v0, %v7668_v30  ;;  %v2964_v26 = vpop.f32.mrb[5].mxu0  ;;  %v2473_v19 = vrot.slane %v7675_v23, 2  ;;  %v265_v50 = vpack.c.bf16 %v7670_v60, %v7669_v11  ;;  %v2671_v5 = vpack.c.bf16 %v2462_v37, %v2457_v43 }
 0x190   :  { %3670 = vst.msk [vmem:[%s7394_s3 + $0x18] sm:$0xff] %vm1145_vm1, %v3542_v62  ;;  %v4044_v54 = vadd.f32 %v2964_v26, %v7672_v1  ;;  %v2966_v13 = vpop.f32.mrb[6].mxu0  ;;  %v2470_v61 = vsel %vm2164_vm2, %v2468_v52, %v2469_v22  ;;  %v2465_v1 = vrot.slane %v6232_v18, 2 }
 0x191   :  { %v3415_v24 = vadd.f32 %v4043_v21, %v6684_v45  ;;  %v4045_v63 = vadd.f32 %v2966_v13, %v6216_v27  ;;  %v2968_v36 = vpop.f32.mrb[7].mxu0  ;;  %v2471_v13 = vrot.slane %v6244_v41, 2  ;;  %v7678_v41 = vld [vmem:[#allocation33_spill] sm:$0xff] }
 0x192   :  { %v3416_v62 = vadd.f32 %v4044_v54, %v6688_v55  ;;  %v4046_v0 = vadd.f32 %v2968_v36, %v6218_v49  ;;  %2124 = vmatmul.mubr.bf16.gmra.mrb[112].mxu1 %v263_v48  ;;  %v2474_v48 = vsel %vm2164_vm2, %v2469_v22, %v2473_v19  ;;  %v2466_v54 = vrot.slane %v6237_v31, 2  ;;  %v7679_v19 = vld [vmem:[#allocation34_spill] sm:$0xff] }
 0x193   :  { %v3543_v30 = vmax.f32 %v3415_v24, 0.0  ;;  %v3417_v26 = vadd.f32 %v4045_v63, %v6684_v45  ;;  %3231 = vmatmul.mubr.bf16.gmra.mrb[112].mxu0 %v2669_v16  ;;  %3932 = vmatprep.mubr.msk.bf16.mxu1 %vm1145_vm1, %v266_v14  ;;  %v268_v14 = vpack.c.bf16 %v7674_v57, %v7673_v29  ;;  %v7677_v63 = vld [vmem:[#allocation35_spill] sm:$0xff]  ;;  %v2479_v23 = vrot.slane %v7678_v41, 2 }
 0x194   :  { %v3544_v34 = vmax.f32 %v3416_v62, 0.0  ;;  %v3418_v27 = vadd.f32 %v4046_v0, %v6688_v55  ;;  %4012 = vmatprep.mubr.msk.bf16.mxu0 %vm1145_vm1, %v2672_v6  ;;  %v2674_v6 = vpack.c.bf16 %v2474_v48, %v2470_v61  ;;  %v2483_v62 = vrot.slane %v7679_v19, 2 }
 0x195   :  { %3671 = vst [vmem:[%s7394_s3 + $0x20] sm:$0xff] %v3543_v30  ;;  %v3545_v49 = vmax.f32 %v3417_v26, 0.0  ;;  %v7680_v30 = vld [vmem:[#allocation36_spill] sm:$0xff]  ;;  %v2467_v37 = vsel %vm2164_vm2, %v2465_v1, %v2466_v54 }
 0x196   :  { %3672 = vst.msk [vmem:[%s7394_s3 + $0x28] sm:$0xff] %vm1145_vm1, %v3544_v34  ;;  %v3546_v16 = vmax.f32 %v3418_v27, 0.0  ;;  %v2972_v21 = vpop.f32.mrb[8].mxu0  ;;  %v2472_v34 = vsel %vm2164_vm2, %v2466_v54, %v2471_v13  ;;  %v2484_v61 = vsel %vm2164_vm2, %v2479_v23, %v2483_v62  ;;  %v7682_v54 = vld [vmem:[#allocation38_spill] sm:$0xff] }
 0x197   :  { %3673 = vst [vmem:[%s7394_s3 + $0x30] sm:$0xff] %v3545_v49  ;;  %v4047_v17 = vadd.f32 %v2972_v21, %v6263_v15  ;;  %v2974_v9 = vpop.f32.mrb[9].mxu0  ;;  %v7676_v15 = vld [vmem:[#allocation32_spill] sm:$0xff]  ;;  %v267_v21 = vpack.c.bf16 %v6237_v31, %v6232_v18  ;;  %v2476_v13 = vrot.slane %v7682_v54, 2 }
 0x198   :  { %3674 = vst.msk [vmem:[%s7394_s3 + $0x38] sm:$0xff] %vm1145_vm1, %v3546_v16  ;;  %v4048_v11 = vadd.f32 %v2974_v9, %v6267_v25  ;;  %v2976_v60 = vpop.f32.mrb[10].mxu0  ;;  %v2478_v52 = vrot.slane %v7676_v15, 2  ;;  %v7681_v9 = vld [vmem:[#allocation37_spill] sm:$0xff]  ;;  %v270_v31 = vpack.c.bf16 %v7678_v41, %v7676_v15 }
 0x199   :  { %v3419_v24 = vadd.f32 %v4047_v17, %v6684_v45  ;;  %v4049_v36 = vadd.f32 %v2976_v60, %v7677_v63  ;;  %v2978_v22 = vpop.f32.mrb[11].mxu0  ;;  %v2673_v17 = vpack.c.bf16 %v2472_v34, %v2467_v37  ;;  %v2475_v1 = vrot.slane %v7681_v9, 2 }
 0x19a   :  { %v3420_v0 = vadd.f32 %v4048_v11, %v6688_v55  ;;  %v4050_v25 = vadd.f32 %v2978_v22, %v7680_v30  ;;  %2134 = vmatmul.mubr.bf16.gmra.mrb[116].mxu1 %v265_v50  ;;  %v2480_v49 = vsel %vm2164_vm2, %v2478_v52, %v2479_v23  ;;  %v7683_v11 = vld [vmem:[#allocation40_spill] sm:$0xff]  ;;  %v7686_v23 = vld [vmem:[#allocation42_spill] sm:$0xff]  ;;  %v269_v34 = vpack.c.bf16 %v7682_v54, %v7681_v9 }
 0x19b   :  { %v3547_v26 = vmax.f32 %v3419_v24, 0.0  ;;  %v3421_v43 = vadd.f32 %v4049_v36, %v6684_v45  ;;  %3241 = vmatmul.mubr.bf16.gmra.mrb[116].mxu0 %v2671_v5  ;;  %3933 = vmatprep.mubr.msk.bf16.mxu1 %vm1145_vm1, %v268_v14  ;;  %v2676_v14 = vpack.c.bf16 %v2484_v61, %v2480_v49  ;;  %v7685_v24 = vld [vmem:[#allocation41_spill] sm:$0xff]  ;;  %v2477_v41 = vsel %vm2164_vm2, %v2475_v1, %v2476_v13  ;;  %v7687_v49 = vld [vmem:[#allocation43_spill] sm:$0xff] }
 0x19c   :  { %v3548_v29 = vmax.f32 %v3420_v0, 0.0  ;;  %v3422_v57 = vadd.f32 %v4050_v25, %v6688_v55  ;;  %4013 = vmatprep.mubr.msk.bf16.mxu0 %vm1145_vm1, %v2674_v6  ;;  %v7684_v6 = vld [vmem:[#allocation39_spill] sm:$0xff] }
 0x19d   :  { %3675 = vst [vmem:[%s7394_s3 + $0x40] sm:$0xff] %v3547_v26  ;;  %v3549_v27 = vmax.f32 %v3421_v43, 0.0 }
 0x19e   :  { %3676 = vst.msk [vmem:[%s7394_s3 + $0x48] sm:$0xff] %vm1145_vm1, %v3548_v29  ;;  %v3550_v48 = vmax.f32 %v3422_v57, 0.0  ;;  %v2982_v16 = vpop.f32.mrb[12].mxu0 }
 0x19f   :  { %3677 = vst [vmem:[%s7394_s3 + $0x50] sm:$0xff] %v3549_v27  ;;  %v4051_v50 = vadd.f32 %v2982_v16, %v6314_v12  ;;  %v2984_v5 = vpop.f32.mrb[13].mxu0  ;;  %v2481_v12 = vrot.slane %v7684_v6, 2 }
 0x1a0   :  { %3678 = vst.msk [vmem:[%s7394_s3 + $0x58] sm:$0xff] %vm1145_vm1, %v3550_v48  ;;  %v4052_v60 = vadd.f32 %v2984_v5, %v7683_v11  ;;  %v2986_v18 = vpop.f32.mrb[14].mxu0 }
 0x1a1   :  { %v3423_v52 = vadd.f32 %v4051_v50, %v6684_v45  ;;  %v4053_v63 = vadd.f32 %v2986_v18, %v7685_v24  ;;  %v2988_v36 = vpop.f32.mrb[15].mxu0  ;;  %v2482_v25 = vsel %vm2164_vm2, %v2476_v13, %v2481_v12 }
 0x1a2   :  { %v3424_v22 = vadd.f32 %v4052_v60, %v6688_v55  ;;  %v4054_v19 = vadd.f32 %v2988_v36, %v7686_v23  ;;  %2144 = vmatmul.mubr.bf16.gmra.mrb[120].mxu1 %v267_v21  ;;  %v2675_v27 = vpack.c.bf16 %v2482_v25, %v2477_v41  ;;  %v7688_v21 = vld [vmem:[#allocation44_spill] sm:$0xff] }
 0x1a3   :  { %v3551_v62 = vmax.f32 %v3423_v52, 0.0  ;;  %v3425_v0 = vadd.f32 %v4053_v63, %v6684_v45  ;;  %3251 = vmatmul.mubr.bf16.gmra.mrb[120].mxu0 %v2673_v17  ;;  %3934 = vmatprep.mubr.msk.bf16.mxu1 %vm1145_vm1, %v270_v31  ;;  %v7689_v17 = vld [vmem:[#allocation45_spill] sm:$0xff]  ;;  %v7691_v52 = vld [vmem:[#allocation47_spill] sm:$0xff] }
 0x1a4   :  { %v3552_v30 = vmax.f32 %v3424_v22, 0.0  ;;  %v3426_v15 = vadd.f32 %v4054_v19, %v6688_v55  ;;  %4014 = vmatprep.mubr.msk.bf16.mxu0 %vm1145_vm1, %v2676_v14  ;;  %v7690_v14 = vld [vmem:[#allocation46_spill] sm:$0xff]  ;;  %v7692_v22 = vld [vmem:[#allocation48_spill] sm:$0xff] }
 0x1a5   :  { %3679 = vst [vmem:[%s7394_s3 + $0x60] sm:$0xff] %v3551_v62  ;;  %v3553_v26 = vmax.f32 %v3425_v0, 0.0  ;;  %v7693_v0 = vld [vmem:[#allocation49_spill] sm:$0xff] }
 0x1a6   :  { %3680 = vst.msk [vmem:[%s7394_s3 + $0x68] sm:$0xff] %vm1145_vm1, %v3552_v30  ;;  %v3554_v43 = vmax.f32 %v3426_v15, 0.0  ;;  %v2992_v29 = vpop.f32.mrb[16].mxu0 }
 0x1a7   :  { %3681 = vst [vmem:[%s7394_s3 + $0x70] sm:$0xff] %v3553_v26  ;;  %v4055_v57 = vadd.f32 %v2992_v29, %v6351_v3  ;;  %v2994_v37 = vpop.f32.mrb[17].mxu0 }
 0x1a8   :  { %3682 = vst.msk [vmem:[%s7394_s3 + $0x78] sm:$0xff] %vm1145_vm1, %v3554_v43  ;;  %v4056_v61 = vadd.f32 %v2994_v37, %v7687_v49  ;;  %v2996_v48 = vpop.f32.mrb[18].mxu0  ;;  %v7694_v37 = vld [vmem:[#allocation50_spill] sm:$0xff]  ;;  %v7695_v49 = vld [vmem:[#allocation51_spill] sm:$0xff] }
 0x1a9   :  { %v3427_v16 = vadd.f32 %v4055_v57, %v6684_v45  ;;  %v4057_v50 = vadd.f32 %v2996_v48, %v7688_v21  ;;  %v2998_v5 = vpop.f32.mrb[19].mxu0  ;;  %v7696_v21 = vld [vmem:[#allocation52_spill] sm:$0xff] }
 0x1aa   :  { %v3428_v3 = vadd.f32 %v4056_v61, %v6688_v55  ;;  %v4058_v1 = vadd.f32 %v2998_v5, %v7689_v17  ;;  %2154 = vmatmul.mubr.bf16.gmra.mrb[124].mxu1 %v269_v34  ;;  %v7697_v17 = vld [vmem:[#allocation53_spill] sm:$0xff] }
 0x1ab   :  { %v3555_v13 = vmax.f32 %v3427_v16, 0.0  ;;  %v3429_v9 = vadd.f32 %v4057_v50, %v6684_v45  ;;  %3261 = vmatmul.mubr.bf16.gmra.mrb[124].mxu0 %v2675_v27 }
 0x1ac   :  { %v3556_v54 = vmax.f32 %v3428_v3, 0.0  ;;  %v3430_v11 = vadd.f32 %v4058_v1, %v6688_v55 }
 0x1ad   :  { %3683 = vst [vmem:[%s7394_s3 + $0x80] sm:$0xff] %v3555_v13  ;;  %v3557_v60 = vmax.f32 %v3429_v9, 0.0 }
 0x1ae   :  { %3684 = vst.msk [vmem:[%s7394_s3 + $0x88] sm:$0xff] %vm1145_vm1, %v3556_v54  ;;  %v3558_v18 = vmax.f32 %v3430_v11, 0.0  ;;  %v3002_v31 = vpop.f32.mrb[20].mxu0 }
 0x1af   :  { %3685 = vst [vmem:[%s7394_s3 + $0x90] sm:$0xff] %v3557_v60  ;;  %v4059_v6 = vadd.f32 %v3002_v31, %v7690_v14  ;;  %v3004_v12 = vpop.f32.mrb[21].mxu0  ;;  %v7698_v14 = vld [vmem:[#allocation54_spill] sm:$0xff] }
 0x1b0   :  { %3686 = vst.msk [vmem:[%s7394_s3 + $0x98] sm:$0xff] %vm1145_vm1, %v3558_v18  ;;  %v4060_v24 = vadd.f32 %v3004_v12, %v7691_v52  ;;  %v3006_v63 = vpop.f32.mrb[22].mxu0  ;;  %v7699_v52 = vld [vmem:[#allocation55_spill] sm:$0xff] }
 0x1b1   :  { %v3431_v36 = vadd.f32 %v4059_v6, %v6684_v45  ;;  %v4061_v23 = vadd.f32 %v3006_v63, %v7692_v22  ;;  %v3008_v19 = vpop.f32.mrb[23].mxu0  ;;  %v7700_v22 = vld [vmem:[#allocation56_spill] sm:$0xff] }
 0x1b2   :  { %v3432_v62 = vadd.f32 %v4060_v24, %v6688_v55  ;;  %v4062_v30 = vadd.f32 %v3008_v19, %v7693_v0  ;;  %v7701_v0 = vld [vmem:[#allocation57_spill] sm:$0xff] }
 0x1b3   :  { %v3559_v15 = vmax.f32 %v3431_v36, 0.0  ;;  %v3433_v41 = vadd.f32 %v4061_v23, %v6684_v45 }
 0x1b4   :  { %v3560_v25 = vmax.f32 %v3432_v62, 0.0  ;;  %v3434_v26 = vadd.f32 %v4062_v30, %v6688_v55 }
 0x1b5   :  { %3687 = vst [vmem:[%s7394_s3 + $0xa0] sm:$0xff] %v3559_v15  ;;  %v3561_v43 = vmax.f32 %v3433_v41, 0.0 }
 0x1b6   :  { %3688 = vst.msk [vmem:[%s7394_s3 + $0xa8] sm:$0xff] %vm1145_vm1, %v3560_v25  ;;  %v3562_v29 = vmax.f32 %v3434_v26, 0.0  ;;  %v3012_v57 = vpop.f32.mrb[24].mxu0 }
 0x1b7   :  { %3689 = vst [vmem:[%s7394_s3 + $0xb0] sm:$0xff] %v3561_v43  ;;  %v4063_v34 = vadd.f32 %v3012_v57, %v7694_v37  ;;  %v3014_v27 = vpop.f32.mrb[25].mxu0 }
 0x1b8   :  { %3690 = vst.msk [vmem:[%s7394_s3 + $0xb8] sm:$0xff] %vm1145_vm1, %v3562_v29  ;;  %v4064_v61 = vadd.f32 %v3014_v27, %v7695_v49  ;;  %v3016_v48 = vpop.f32.mrb[26].mxu0 }
 0x1b9   :  { %v3435_v16 = vadd.f32 %v4063_v34, %v6684_v45  ;;  %v4065_v50 = vadd.f32 %v3016_v48, %v7696_v21  ;;  %v3018_v5 = vpop.f32.mrb[27].mxu0 }
 0x1ba   :  { %v3436_v3 = vadd.f32 %v4064_v61, %v6688_v55  ;;  %v4066_v1 = vadd.f32 %v3018_v5, %v7697_v17 }
 0x1bb   :  { %v3563_v13 = vmax.f32 %v3435_v16, 0.0  ;;  %v3437_v9 = vadd.f32 %v4065_v50, %v6684_v45 }
 0x1bc   :  { %v3564_v54 = vmax.f32 %v3436_v3, 0.0  ;;  %v3438_v11 = vadd.f32 %v4066_v1, %v6688_v55 }
 0x1bd   :  { %3691 = vst [vmem:[%s7394_s3 + $0xc0] sm:$0xff] %v3563_v13  ;;  %v3565_v60 = vmax.f32 %v3437_v9, 0.0 }
 0x1be   :  { %3692 = vst.msk [vmem:[%s7394_s3 + $0xc8] sm:$0xff] %vm1145_vm1, %v3564_v54  ;;  %v3566_v18 = vmax.f32 %v3438_v11, 0.0  ;;  %v3022_v31 = vpop.f32.mrb[28].mxu0 }
 0x1bf   :  { %3693 = vst [vmem:[%s7394_s3 + $0xd0] sm:$0xff] %v3565_v60  ;;  %v4067_v6 = vadd.f32 %v3022_v31, %v7698_v14  ;;  %v3024_v12 = vpop.f32.mrb[29].mxu0 }
 0x1c0   :  { %3694 = vst.msk [vmem:[%s7394_s3 + $0xd8] sm:$0xff] %vm1145_vm1, %v3566_v18  ;;  %v4068_v24 = vadd.f32 %v3024_v12, %v7699_v52  ;;  %v3026_v63 = vpop.f32.mrb[30].mxu0 }
 0x1c1   :  { %v3439_v36 = vadd.f32 %v4067_v6, %v6684_v45  ;;  %v4069_v23 = vadd.f32 %v3026_v63, %v7700_v22  ;;  %v3028_v19 = vpop.f32.mrb[31].mxu0 }
 0x1c2   :  { %v3440_v62 = vadd.f32 %v4068_v24, %v6688_v55  ;;  %v4070_v30 = vadd.f32 %v3028_v19, %v7701_v0 }
 0x1c3   :  { %v3567_v15 = vmax.f32 %v3439_v36, 0.0  ;;  %v3441_v41 = vadd.f32 %v4069_v23, %v6684_v45 }
 0x1c4   :  { %v3568_v25 = vmax.f32 %v3440_v62, 0.0  ;;  %v3442_v26 = vadd.f32 %v4070_v30, %v6688_v55 }
 0x1c5   :  { %3695 = vst [vmem:[%s7394_s3 + $0xe0] sm:$0xff] %v3567_v15  ;;  %v3569_v43 = vmax.f32 %v3441_v41, 0.0 }
 0x1c6   :  { %3696 = vst.msk [vmem:[%s7394_s3 + $0xe8] sm:$0xff] %vm1145_vm1, %v3568_v25  ;;  %v3570_v29 = vmax.f32 %v3442_v26, 0.0  ;;  %v3032_v57 = vpop.f32.mrb[32].mxu0 }
 0x1c7   :  { %3697 = vst [vmem:[%s7394_s3 + $0xf0] sm:$0xff] %v3569_v43  ;;  %v4071_v37 = vadd.f32 %v3032_v57, %v6479_v59  ;;  %v3034_v34 = vpop.f32.mrb[33].mxu0 }
 0x1c8   :  { %3698 = vst.msk [vmem:[%s7394_s3 + $0xf8] sm:$0xff] %vm1145_vm1, %v3570_v29  ;;  %v4072_v27 = vadd.f32 %v3034_v34, %v6481_v32  ;;  %v3036_v49 = vpop.f32.mrb[34].mxu0 }
 0x1c9   :  { %v3443_v61 = vadd.f32 %v4071_v37, %v6684_v45  ;;  %v4073_v48 = vadd.f32 %v3036_v49, %v6486_v20  ;;  %v3038_v16 = vpop.f32.mrb[35].mxu0 }
 0x1ca   :  { %v3444_v21 = vadd.f32 %v4072_v27, %v6688_v55  ;;  %v4074_v50 = vadd.f32 %v3038_v16, %v6494_v58 }
 0x1cb   :  { %v3571_v5 = vmax.f32 %v3443_v61, 0.0  ;;  %v3445_v59 = vadd.f32 %v4073_v48, %v6684_v45 }
 0x1cc   :  { %v3572_v3 = vmax.f32 %v3444_v21, 0.0  ;;  %v3446_v17 = vadd.f32 %v4074_v50, %v6688_v55 }
 0x1cd   :  { %3699 = vst [vmem:[%s7394_s3 + $0x100] sm:$0xff] %v3571_v5  ;;  %v3573_v32 = vmax.f32 %v3445_v59, 0.0 }
 0x1ce   :  { %3700 = vst.msk [vmem:[%s7394_s3 + $0x108] sm:$0xff] %vm1145_vm1, %v3572_v3  ;;  %v3574_v20 = vmax.f32 %v3446_v17, 0.0  ;;  %v3042_v1 = vpop.f32.mrb[36].mxu0 }
 0x1cf   :  { %3701 = vst [vmem:[%s7394_s3 + $0x110] sm:$0xff] %v3573_v32  ;;  %v4075_v58 = vadd.f32 %v3042_v1, %v6505_v51  ;;  %v3044_v13 = vpop.f32.mrb[37].mxu0 }
 0x1d0   :  { %3702 = vst.msk [vmem:[%s7394_s3 + $0x118] sm:$0xff] %vm1145_vm1, %v3574_v20  ;;  %v4076_v9 = vadd.f32 %v3044_v13, %v6507_v56  ;;  %v3046_v54 = vpop.f32.mrb[38].mxu0 }
 0x1d1   :  { %v3447_v11 = vadd.f32 %v4075_v58, %v6684_v45  ;;  %v4077_v60 = vadd.f32 %v3046_v54, %v6510_v4  ;;  %v3048_v18 = vpop.f32.mrb[39].mxu0 }
 0x1d2   :  { %v3448_v31 = vadd.f32 %v4076_v9, %v6688_v55  ;;  %v4078_v14 = vadd.f32 %v3048_v18, %v6520_v53 }
 0x1d3   :  { %v3575_v6 = vmax.f32 %v3447_v11, 0.0  ;;  %v3449_v51 = vadd.f32 %v4077_v60, %v6684_v45 }
 0x1d4   :  { %v3576_v12 = vmax.f32 %v3448_v31, 0.0  ;;  %v3450_v52 = vadd.f32 %v4078_v14, %v6688_v55 }
 0x1d5   :  { %3703 = vst [vmem:[%s7394_s3 + $0x120] sm:$0xff] %v3575_v6  ;;  %v3577_v56 = vmax.f32 %v3449_v51, 0.0  ;;  %v7702_v6 = vld [vmem:[#allocation58_spill] sm:$0xff] }
 0x1d6   :  { %3704 = vst.msk [vmem:[%s7394_s3 + $0x128] sm:$0xff] %vm1145_vm1, %v3576_v12  ;;  %v3578_v4 = vmax.f32 %v3450_v52, 0.0  ;;  %v3052_v24 = vpop.f32.mrb[40].mxu0 }
 0x1d7   :  { %3705 = vst [vmem:[%s7394_s3 + $0x130] sm:$0xff] %v3577_v56  ;;  %v4079_v53 = vadd.f32 %v3052_v24, %v6531_v42  ;;  %v3054_v63 = vpop.f32.mrb[41].mxu0  ;;  %v7703_v56 = vld [vmem:[#allocation59_spill] sm:$0xff] }
 0x1d8   :  { %3706 = vst.msk [vmem:[%s7394_s3 + $0x138] sm:$0xff] %vm1145_vm1, %v3578_v4  ;;  %v4080_v36 = vadd.f32 %v3054_v63, %v6533_v28  ;;  %v3056_v22 = vpop.f32.mrb[42].mxu0 }
 0x1d9   :  { %v3451_v23 = vadd.f32 %v4079_v53, %v6684_v45  ;;  %v4081_v19 = vadd.f32 %v3056_v22, %v6542_v38  ;;  %v3058_v62 = vpop.f32.mrb[43].mxu0 }
 0x1da   :  { %v3452_v0 = vadd.f32 %v4080_v36, %v6688_v55  ;;  %v4082_v30 = vadd.f32 %v3058_v62, %v6552_v46 }
 0x1db   :  { %v3579_v15 = vmax.f32 %v3451_v23, 0.0  ;;  %v3453_v42 = vadd.f32 %v4081_v19, %v6684_v45  ;;  %v7704_v23 = vld [vmem:[#allocation2_spill] sm:$0xff] }
 0x1dc   :  { %v3580_v41 = vmax.f32 %v3452_v0, 0.0  ;;  %v3454_v25 = vadd.f32 %v4082_v30, %v6688_v55  ;;  %v7705_v0 = vld [vmem:[#allocation3_spill] sm:$0xff] }
 0x1dd   :  { %3707 = vst [vmem:[%s7394_s3 + $0x140] sm:$0xff] %v3579_v15  ;;  %v3581_v28 = vmax.f32 %v3453_v42, 0.0 }
 0x1de   :  { %3708 = vst.msk [vmem:[%s7394_s3 + $0x148] sm:$0xff] %vm1145_vm1, %v3580_v41  ;;  %v3582_v38 = vmax.f32 %v3454_v25, 0.0  ;;  %v3062_v26 = vpop.f32.mrb[44].mxu0  ;;  %v7706_v41 = vld [vmem:[#allocation4_spill] sm:$0xff] }
 0x1df   :  { %3709 = vst [vmem:[%s7394_s3 + $0x150] sm:$0xff] %v3581_v28  ;;  %v4083_v46 = vadd.f32 %v3062_v26, %v6563_v39  ;;  %v3064_v43 = vpop.f32.mrb[45].mxu0  ;;  %v7707_v26 = vld [vmem:[#allocation5_spill] sm:$0xff] }
 0x1e0   :  { %3710 = vst.msk [vmem:[%s7394_s3 + $0x158] sm:$0xff] %vm1145_vm1, %v3582_v38  ;;  %v4084_v29 = vadd.f32 %v3064_v43, %v6565_v8  ;;  %v3066_v57 = vpop.f32.mrb[46].mxu0 }
 0x1e1   :  { %v3455_v37 = vadd.f32 %v4083_v46, %v6684_v45  ;;  %v4085_v34 = vadd.f32 %v3066_v57, %v6570_v44  ;;  %v3068_v27 = vpop.f32.mrb[47].mxu0 }
 0x1e2   :  { %v3456_v49 = vadd.f32 %v4084_v29, %v6688_v55  ;;  %v4086_v61 = vadd.f32 %v3068_v27, %v6576_v33 }
 0x1e3   :  { %v3583_v48 = vmax.f32 %v3455_v37, 0.0  ;;  %v3457_v39 = vadd.f32 %v4085_v34, %v6684_v45 }
 0x1e4   :  { %v3584_v16 = vmax.f32 %v3456_v49, 0.0  ;;  %v3458_v21 = vadd.f32 %v4086_v61, %v6688_v55  ;;  %v7708_v61 = vld [vmem:[#allocation6_spill] sm:$0xff] }
 0x1e5   :  { %3711 = vst [vmem:[%s7394_s3 + $0x160] sm:$0xff] %v3583_v48  ;;  %v3585_v8 = vmax.f32 %v3457_v39, 0.0 }
 0x1e6   :  { %3712 = vst.msk [vmem:[%s7394_s3 + $0x168] sm:$0xff] %vm1145_vm1, %v3584_v16  ;;  %v3586_v44 = vmax.f32 %v3458_v21, 0.0  ;;  %v3072_v50 = vpop.f32.mrb[48].mxu0  ;;  %v7709_v16 = vld [vmem:[#allocation7_spill] sm:$0xff] }
 0x1e7   :  { %3713 = vst [vmem:[%s7394_s3 + $0x170] sm:$0xff] %v3585_v8  ;;  %v4087_v33 = vadd.f32 %v3072_v50, %v6587_v10  ;;  %v3074_v5 = vpop.f32.mrb[49].mxu0  ;;  %v7710_v50 = vld [vmem:[#allocation8_spill] sm:$0xff] }
 0x1e8   :  { %3714 = vst.msk [vmem:[%s7394_s3 + $0x178] sm:$0xff] %vm1145_vm1, %v3586_v44  ;;  %v4088_v59 = vadd.f32 %v3074_v5, %v6589_v2  ;;  %v3076_v3 = vpop.f32.mrb[50].mxu0 }
 0x1e9   :  { %v3459_v17 = vadd.f32 %v4087_v33, %v6684_v45  ;;  %v4089_v32 = vadd.f32 %v3076_v3, %v6594_v40  ;;  %v3078_v20 = vpop.f32.mrb[51].mxu0  ;;  %v7711_v3 = vld [vmem:[#allocation9_spill] sm:$0xff] }
 0x1ea   :  { %v3460_v1 = vadd.f32 %v4088_v59, %v6688_v55  ;;  %v4090_v58 = vadd.f32 %v3078_v20, %v6600_v7 }
 0x1eb   :  { %v3587_v13 = vmax.f32 %v3459_v17, 0.0  ;;  %v3461_v10 = vadd.f32 %v4089_v32, %v6684_v45 }
 0x1ec   :  { %v3588_v9 = vmax.f32 %v3460_v1, 0.0  ;;  %v3462_v54 = vadd.f32 %v4090_v58, %v6688_v55 }
 0x1ed   :  { %3715 = vst [vmem:[%s7394_s3 + $0x180] sm:$0xff] %v3587_v13  ;;  %v3589_v2 = vmax.f32 %v3461_v10, 0.0 }
 0x1ee   :  { %3716 = vst.msk [vmem:[%s7394_s3 + $0x188] sm:$0xff] %vm1145_vm1, %v3588_v9  ;;  %v3590_v40 = vmax.f32 %v3462_v54, 0.0  ;;  %v3082_v11 = vpop.f32.mrb[52].mxu0 }
 0x1ef   :  { %3717 = vst [vmem:[%s7394_s3 + $0x190] sm:$0xff] %v3589_v2  ;;  %v4091_v7 = vadd.f32 %v3082_v11, %v6611_v47  ;;  %v3084_v60 = vpop.f32.mrb[53].mxu0 }
 0x1f0   :  { %3718 = vst.msk [vmem:[%s7394_s3 + $0x198] sm:$0xff] %vm1145_vm1, %v3590_v40  ;;  %v4092_v18 = vadd.f32 %v3084_v60, %v6613_v35  ;;  %v3086_v31 = vpop.f32.mrb[54].mxu0 }
 0x1f1   :  { %v3463_v14 = vadd.f32 %v4091_v7, %v6684_v45  ;;  %v4093_v51 = vadd.f32 %v3086_v31, %v7702_v6  ;;  %v3088_v12 = vpop.f32.mrb[55].mxu0 }
 0x1f2   :  { %v3464_v52 = vadd.f32 %v4092_v18, %v6688_v55  ;;  %v4094_v4 = vadd.f32 %v3088_v12, %v7703_v56 }
 0x1f3   :  { %v3591_v24 = vmax.f32 %v3463_v14, 0.0  ;;  %v3465_v47 = vadd.f32 %v4093_v51, %v6684_v45 }
 0x1f4   :  { %v3592_v53 = vmax.f32 %v3464_v52, 0.0  ;;  %v3466_v63 = vadd.f32 %v4094_v4, %v6688_v55 }
 0x1f5   :  { %3719 = vst [vmem:[%s7394_s3 + $0x1a0] sm:$0xff] %v3591_v24  ;;  %v3593_v35 = vmax.f32 %v3465_v47, 0.0 }
 0x1f6   :  { %3720 = vst.msk [vmem:[%s7394_s3 + $0x1a8] sm:$0xff] %vm1145_vm1, %v3592_v53  ;;  %v3594_v36 = vmax.f32 %v3466_v63, 0.0  ;;  %v3092_v22 = vpop.f32.mrb[56].mxu0 }
 0x1f7   :  { %3721 = vst [vmem:[%s7394_s3 + $0x1b0] sm:$0xff] %v3593_v35  ;;  %v4095_v19 = vadd.f32 %v3092_v22, %v7704_v23  ;;  %v3094_v62 = vpop.f32.mrb[57].mxu0 }
 0x1f8   :  { %3722 = vst.msk [vmem:[%s7394_s3 + $0x1b8] sm:$0xff] %vm1145_vm1, %v3594_v36  ;;  %v4096_v30 = vadd.f32 %v3094_v62, %v7705_v0  ;;  %v3096_v15 = vpop.f32.mrb[58].mxu0 }
 0x1f9   :  { %v3467_v42 = vadd.f32 %v4095_v19, %v6684_v45  ;;  %v4097_v25 = vadd.f32 %v3096_v15, %v7706_v41  ;;  %v3098_v28 = vpop.f32.mrb[59].mxu0 }
 0x1fa   :  { %v3468_v38 = vadd.f32 %v4096_v30, %v6688_v55  ;;  %v4098_v46 = vadd.f32 %v3098_v28, %v7707_v26 }
 0x1fb   :  { %v3595_v43 = vmax.f32 %v3467_v42, 0.0  ;;  %v3469_v29 = vadd.f32 %v4097_v25, %v6684_v45 }
 0x1fc   :  { %v3596_v57 = vmax.f32 %v3468_v38, 0.0  ;;  %v3470_v37 = vadd.f32 %v4098_v46, %v6688_v55 }
 0x1fd   :  { %3723 = vst [vmem:[%s7394_s3 + $0x1c0] sm:$0xff] %v3595_v43  ;;  %v3597_v34 = vmax.f32 %v3469_v29, 0.0 }
 0x1fe   :  { %3724 = vst.msk [vmem:[%s7394_s3 + $0x1c8] sm:$0xff] %vm1145_vm1, %v3596_v57  ;;  %v3598_v27 = vmax.f32 %v3470_v37, 0.0  ;;  %v3102_v49 = vpop.f32.mrb[60].mxu0 }
 0x1ff   :  { %3725 = vst [vmem:[%s7394_s3 + $0x1d0] sm:$0xff] %v3597_v34  ;;  %v4099_v48 = vadd.f32 %v3102_v49, %v7708_v61  ;;  %v3104_v39 = vpop.f32.mrb[61].mxu0 }
 0x200   :  { %3726 = vst.msk [vmem:[%s7394_s3 + $0x1d8] sm:$0xff] %vm1145_vm1, %v3598_v27  ;;  %v4100_v21 = vadd.f32 %v3104_v39, %v7709_v16  ;;  %v3106_v8 = vpop.f32.mrb[62].mxu0 }
 0x201   :  { %v3471_v44 = vadd.f32 %v4099_v48, %v6684_v45  ;;  %v4101_v33 = vadd.f32 %v3106_v8, %v7710_v50  ;;  %v3108_v5 = vpop.f32.mrb[63].mxu0 }
 0x202   :  { %v3472_v59 = vadd.f32 %v4100_v21, %v6688_v55  ;;  %v4102_v17 = vadd.f32 %v3108_v5, %v7711_v3 }
 0x203   :  { %v3599_v32 = vmax.f32 %v3471_v44, 0.0  ;;  %v3473_v20 = vadd.f32 %v4101_v33, %v6684_v45 }
 0x204   :  { %v3600_v1 = vmax.f32 %v3472_v59, 0.0  ;;  %v3474_v58 = vadd.f32 %v4102_v17, %v6688_v55 }
 0x205   :  { %3727 = vst [vmem:[%s7394_s3 + $0x1e0] sm:$0xff] %v3599_v32  ;;  %v3601_v13 = vmax.f32 %v3473_v20, 0.0  ;;  %v2005_v9 = vpop.f32.mrb[64].mxu1 }
 0x206   :  { %3728 = vst.msk [vmem:[%s7394_s3 + $0x1e8] sm:$0xff] %vm1145_vm1, %v3600_v1  ;;  %v3602_v10 = vmax.f32 %v3474_v58, 0.0  ;;  %v3112_v54 = vpop.f32.mrb[64].mxu0  ;;  %v2007_v40 = vpop.f32.mrb[65].mxu1 }
 0x207   :  { %3729 = vst [vmem:[%s7394_s3 + $0x1f0] sm:$0xff] %v3601_v13  ;;  %v4103_v2 = vadd.f32 %v3112_v54, %v2005_v9  ;;  %v3114_v11 = vpop.f32.mrb[65].mxu0  ;;  %v2009_v60 = vpop.f32.mrb[66].mxu1 }
 0x208   :  { %3730 = vst.msk [vmem:[%s7394_s3 + $0x1f8] sm:$0xff] %vm1145_vm1, %v3602_v10  ;;  %v4104_v7 = vadd.f32 %v3114_v11, %v2007_v40  ;;  %v3116_v18 = vpop.f32.mrb[66].mxu0  ;;  %v2011_v6 = vpop.f32.mrb[67].mxu1 }
 0x209   :  { %v3475_v31 = vadd.f32 %v4103_v2, %v6684_v45  ;;  %v4105_v14 = vadd.f32 %v3116_v18, %v2009_v60  ;;  %v3118_v51 = vpop.f32.mrb[67].mxu0 }
 0x20a   :  { %v3476_v12 = vadd.f32 %v4104_v7, %v6688_v55  ;;  %v4106_v52 = vadd.f32 %v3118_v51, %v2011_v6 }
 0x20b   :  { %v3603_v56 = vmax.f32 %v3475_v31, 0.0  ;;  %v3477_v4 = vadd.f32 %v4105_v14, %v6684_v45 }
 0x20c   :  { %v3604_v24 = vmax.f32 %v3476_v12, 0.0  ;;  %v3478_v47 = vadd.f32 %v4106_v52, %v6688_v55 }
 0x20d   :  { %3731 = vst [vmem:[%s7394_s3 + $0x200] sm:$0xff] %v3603_v56  ;;  %v3605_v53 = vmax.f32 %v3477_v4, 0.0  ;;  %v2015_v35 = vpop.f32.mrb[68].mxu1 }
 0x20e   :  { %3732 = vst.msk [vmem:[%s7394_s3 + $0x208] sm:$0xff] %vm1145_vm1, %v3604_v24  ;;  %v3606_v63 = vmax.f32 %v3478_v47, 0.0  ;;  %v3122_v36 = vpop.f32.mrb[68].mxu0  ;;  %v2017_v23 = vpop.f32.mrb[69].mxu1 }
 0x20f   :  { %3733 = vst [vmem:[%s7394_s3 + $0x210] sm:$0xff] %v3605_v53  ;;  %v4107_v22 = vadd.f32 %v3122_v36, %v2015_v35  ;;  %v3124_v19 = vpop.f32.mrb[69].mxu0  ;;  %v2019_v0 = vpop.f32.mrb[70].mxu1 }
 0x210   :  { %3734 = vst.msk [vmem:[%s7394_s3 + $0x218] sm:$0xff] %vm1145_vm1, %v3606_v63  ;;  %v4108_v62 = vadd.f32 %v3124_v19, %v2017_v23  ;;  %v3126_v30 = vpop.f32.mrb[70].mxu0  ;;  %v2021_v41 = vpop.f32.mrb[71].mxu1 }
 0x211   :  { %v3479_v15 = vadd.f32 %v4107_v22, %v6684_v45  ;;  %v4109_v42 = vadd.f32 %v3126_v30, %v2019_v0  ;;  %v3128_v25 = vpop.f32.mrb[71].mxu0 }
 0x212   :  { %v3480_v28 = vadd.f32 %v4108_v62, %v6688_v55  ;;  %v4110_v38 = vadd.f32 %v3128_v25, %v2021_v41 }
 0x213   :  { %v3607_v26 = vmax.f32 %v3479_v15, 0.0  ;;  %v3481_v46 = vadd.f32 %v4109_v42, %v6684_v45 }
 0x214   :  { %v3608_v43 = vmax.f32 %v3480_v28, 0.0  ;;  %v3482_v29 = vadd.f32 %v4110_v38, %v6688_v55 }
 0x215   :  { %3735 = vst [vmem:[%s7394_s3 + $0x220] sm:$0xff] %v3607_v26  ;;  %v3609_v57 = vmax.f32 %v3481_v46, 0.0  ;;  %v2025_v34 = vpop.f32.mrb[72].mxu1 }
 0x216   :  { %3736 = vst.msk [vmem:[%s7394_s3 + $0x228] sm:$0xff] %vm1145_vm1, %v3608_v43  ;;  %v3610_v37 = vmax.f32 %v3482_v29, 0.0  ;;  %v3132_v27 = vpop.f32.mrb[72].mxu0  ;;  %v2027_v61 = vpop.f32.mrb[73].mxu1 }
 0x217   :  { %3737 = vst [vmem:[%s7394_s3 + $0x230] sm:$0xff] %v3609_v57  ;;  %v4111_v49 = vadd.f32 %v3132_v27, %v2025_v34  ;;  %v3134_v48 = vpop.f32.mrb[73].mxu0  ;;  %v2029_v16 = vpop.f32.mrb[74].mxu1 }
 0x218   :  { %3738 = vst.msk [vmem:[%s7394_s3 + $0x238] sm:$0xff] %vm1145_vm1, %v3610_v37  ;;  %v4112_v39 = vadd.f32 %v3134_v48, %v2027_v61  ;;  %v3136_v21 = vpop.f32.mrb[74].mxu0  ;;  %v2031_v50 = vpop.f32.mrb[75].mxu1 }
 0x219   :  { %v3483_v8 = vadd.f32 %v4111_v49, %v6684_v45  ;;  %v4113_v44 = vadd.f32 %v3136_v21, %v2029_v16  ;;  %v3138_v33 = vpop.f32.mrb[75].mxu0 }
 0x21a   :  { %v3484_v5 = vadd.f32 %v4112_v39, %v6688_v55  ;;  %v4114_v59 = vadd.f32 %v3138_v33, %v2031_v50 }
 0x21b   :  { %v3611_v3 = vmax.f32 %v3483_v8, 0.0  ;;  %v3485_v17 = vadd.f32 %v4113_v44, %v6684_v45 }
 0x21c   :  { %v3612_v32 = vmax.f32 %v3484_v5, 0.0  ;;  %v3486_v20 = vadd.f32 %v4114_v59, %v6688_v55 }
 0x21d   :  { %3739 = vst [vmem:[%s7394_s3 + $0x240] sm:$0xff] %v3611_v3  ;;  %v3613_v1 = vmax.f32 %v3485_v17, 0.0  ;;  %v2035_v13 = vpop.f32.mrb[76].mxu1 }
 0x21e   :  { %3740 = vst.msk [vmem:[%s7394_s3 + $0x248] sm:$0xff] %vm1145_vm1, %v3612_v32  ;;  %v3614_v58 = vmax.f32 %v3486_v20, 0.0  ;;  %v3142_v10 = vpop.f32.mrb[76].mxu0  ;;  %v2037_v54 = vpop.f32.mrb[77].mxu1 }
 0x21f   :  { %3741 = vst [vmem:[%s7394_s3 + $0x250] sm:$0xff] %v3613_v1  ;;  %v4115_v9 = vadd.f32 %v3142_v10, %v2035_v13  ;;  %v3144_v2 = vpop.f32.mrb[77].mxu0  ;;  %v2039_v11 = vpop.f32.mrb[78].mxu1 }
 0x220   :  { %3742 = vst.msk [vmem:[%s7394_s3 + $0x258] sm:$0xff] %vm1145_vm1, %v3614_v58  ;;  %v4116_v40 = vadd.f32 %v3144_v2, %v2037_v54  ;;  %v3146_v7 = vpop.f32.mrb[78].mxu0  ;;  %v2041_v31 = vpop.f32.mrb[79].mxu1 }
 0x221   :  { %v3487_v60 = vadd.f32 %v4115_v9, %v6684_v45  ;;  %v4117_v18 = vadd.f32 %v3146_v7, %v2039_v11  ;;  %v3148_v14 = vpop.f32.mrb[79].mxu0 }
 0x222   :  { %v3488_v6 = vadd.f32 %v4116_v40, %v6688_v55  ;;  %v4118_v51 = vadd.f32 %v3148_v14, %v2041_v31 }
 0x223   :  { %v3615_v12 = vmax.f32 %v3487_v60, 0.0  ;;  %v3489_v52 = vadd.f32 %v4117_v18, %v6684_v45 }
 0x224   :  { %v3616_v56 = vmax.f32 %v3488_v6, 0.0  ;;  %v3490_v4 = vadd.f32 %v4118_v51, %v6688_v55 }
 0x225   :  { %3743 = vst [vmem:[%s7394_s3 + $0x260] sm:$0xff] %v3615_v12  ;;  %v3617_v24 = vmax.f32 %v3489_v52, 0.0  ;;  %v2045_v53 = vpop.f32.mrb[80].mxu1 }
 0x226   :  { %3744 = vst.msk [vmem:[%s7394_s3 + $0x268] sm:$0xff] %vm1145_vm1, %v3616_v56  ;;  %v3618_v47 = vmax.f32 %v3490_v4, 0.0  ;;  %v3152_v63 = vpop.f32.mrb[80].mxu0  ;;  %v2047_v36 = vpop.f32.mrb[81].mxu1 }
 0x227   :  { %3745 = vst [vmem:[%s7394_s3 + $0x270] sm:$0xff] %v3617_v24  ;;  %v4119_v35 = vadd.f32 %v3152_v63, %v2045_v53  ;;  %v3154_v22 = vpop.f32.mrb[81].mxu0  ;;  %v2049_v19 = vpop.f32.mrb[82].mxu1 }
 0x228   :  { %3746 = vst.msk [vmem:[%s7394_s3 + $0x278] sm:$0xff] %vm1145_vm1, %v3618_v47  ;;  %v4120_v23 = vadd.f32 %v3154_v22, %v2047_v36  ;;  %v3156_v62 = vpop.f32.mrb[82].mxu0  ;;  %v2051_v15 = vpop.f32.mrb[83].mxu1 }
 0x229   :  { %v3491_v0 = vadd.f32 %v4119_v35, %v6684_v45  ;;  %v4121_v30 = vadd.f32 %v3156_v62, %v2049_v19  ;;  %v3158_v42 = vpop.f32.mrb[83].mxu0 }
 0x22a   :  { %v3492_v41 = vadd.f32 %v4120_v23, %v6688_v55  ;;  %v4122_v25 = vadd.f32 %v3158_v42, %v2051_v15 }
 0x22b   :  { %v3619_v28 = vmax.f32 %v3491_v0, 0.0  ;;  %v3493_v38 = vadd.f32 %v4121_v30, %v6684_v45 }
 0x22c   :  { %v3620_v26 = vmax.f32 %v3492_v41, 0.0  ;;  %v3494_v46 = vadd.f32 %v4122_v25, %v6688_v55 }
 0x22d   :  { %3747 = vst [vmem:[%s7394_s3 + $0x280] sm:$0xff] %v3619_v28  ;;  %v3621_v43 = vmax.f32 %v3493_v38, 0.0  ;;  %v2055_v57 = vpop.f32.mrb[84].mxu1 }
 0x22e   :  { %3748 = vst.msk [vmem:[%s7394_s3 + $0x288] sm:$0xff] %vm1145_vm1, %v3620_v26  ;;  %v3622_v29 = vmax.f32 %v3494_v46, 0.0  ;;  %v3162_v37 = vpop.f32.mrb[84].mxu0  ;;  %v2057_v27 = vpop.f32.mrb[85].mxu1 }
 0x22f   :  { %3749 = vst [vmem:[%s7394_s3 + $0x290] sm:$0xff] %v3621_v43  ;;  %v4123_v34 = vadd.f32 %v3162_v37, %v2055_v57  ;;  %v3164_v49 = vpop.f32.mrb[85].mxu0  ;;  %v2059_v48 = vpop.f32.mrb[86].mxu1 }
 0x230   :  { %3750 = vst.msk [vmem:[%s7394_s3 + $0x298] sm:$0xff] %vm1145_vm1, %v3622_v29  ;;  %v4124_v61 = vadd.f32 %v3164_v49, %v2057_v27  ;;  %v3166_v39 = vpop.f32.mrb[86].mxu0  ;;  %v2061_v8 = vpop.f32.mrb[87].mxu1 }
 0x231   :  { %v3495_v16 = vadd.f32 %v4123_v34, %v6684_v45  ;;  %v4125_v21 = vadd.f32 %v3166_v39, %v2059_v48  ;;  %v3168_v44 = vpop.f32.mrb[87].mxu0 }
 0x232   :  { %v3496_v50 = vadd.f32 %v4124_v61, %v6688_v55  ;;  %v4126_v33 = vadd.f32 %v3168_v44, %v2061_v8 }
 0x233   :  { %v3623_v5 = vmax.f32 %v3495_v16, 0.0  ;;  %v3497_v59 = vadd.f32 %v4125_v21, %v6684_v45 }
 0x234   :  { %v3624_v3 = vmax.f32 %v3496_v50, 0.0  ;;  %v3498_v17 = vadd.f32 %v4126_v33, %v6688_v55 }
 0x235   :  { %3751 = vst [vmem:[%s7394_s3 + $0x2a0] sm:$0xff] %v3623_v5  ;;  %v3625_v32 = vmax.f32 %v3497_v59, 0.0  ;;  %v2065_v1 = vpop.f32.mrb[88].mxu1 }
 0x236   :  { %3752 = vst.msk [vmem:[%s7394_s3 + $0x2a8] sm:$0xff] %vm1145_vm1, %v3624_v3  ;;  %v3626_v20 = vmax.f32 %v3498_v17, 0.0  ;;  %v3172_v58 = vpop.f32.mrb[88].mxu0  ;;  %v2067_v10 = vpop.f32.mrb[89].mxu1 }
 0x237   :  { %3753 = vst [vmem:[%s7394_s3 + $0x2b0] sm:$0xff] %v3625_v32  ;;  %v4127_v13 = vadd.f32 %v3172_v58, %v2065_v1  ;;  %v3174_v9 = vpop.f32.mrb[89].mxu0  ;;  %v2069_v2 = vpop.f32.mrb[90].mxu1 }
 0x238   :  { %3754 = vst.msk [vmem:[%s7394_s3 + $0x2b8] sm:$0xff] %vm1145_vm1, %v3626_v20  ;;  %v4128_v54 = vadd.f32 %v3174_v9, %v2067_v10  ;;  %v3176_v40 = vpop.f32.mrb[90].mxu0  ;;  %v2071_v60 = vpop.f32.mrb[91].mxu1 }
 0x239   :  { %v3499_v11 = vadd.f32 %v4127_v13, %v6684_v45  ;;  %v4129_v7 = vadd.f32 %v3176_v40, %v2069_v2  ;;  %v3178_v18 = vpop.f32.mrb[91].mxu0 }
 0x23a   :  { %v3500_v31 = vadd.f32 %v4128_v54, %v6688_v55  ;;  %v4130_v14 = vadd.f32 %v3178_v18, %v2071_v60 }
 0x23b   :  { %v3627_v6 = vmax.f32 %v3499_v11, 0.0  ;;  %v3501_v51 = vadd.f32 %v4129_v7, %v6684_v45 }
 0x23c   :  { %v3628_v12 = vmax.f32 %v3500_v31, 0.0  ;;  %v3502_v52 = vadd.f32 %v4130_v14, %v6688_v55 }
 0x23d   :  { %3755 = vst [vmem:[%s7394_s3 + $0x2c0] sm:$0xff] %v3627_v6  ;;  %v3629_v56 = vmax.f32 %v3501_v51, 0.0  ;;  %v2075_v24 = vpop.f32.mrb[92].mxu1 }
 0x23e   :  { %3756 = vst.msk [vmem:[%s7394_s3 + $0x2c8] sm:$0xff] %vm1145_vm1, %v3628_v12  ;;  %v3630_v4 = vmax.f32 %v3502_v52, 0.0  ;;  %v3182_v47 = vpop.f32.mrb[92].mxu0  ;;  %v2077_v63 = vpop.f32.mrb[93].mxu1 }
 0x23f   :  { %3757 = vst [vmem:[%s7394_s3 + $0x2d0] sm:$0xff] %v3629_v56  ;;  %v4131_v53 = vadd.f32 %v3182_v47, %v2075_v24  ;;  %v3184_v35 = vpop.f32.mrb[93].mxu0  ;;  %v2079_v22 = vpop.f32.mrb[94].mxu1 }
 0x240   :  { %3758 = vst.msk [vmem:[%s7394_s3 + $0x2d8] sm:$0xff] %vm1145_vm1, %v3630_v4  ;;  %v4132_v36 = vadd.f32 %v3184_v35, %v2077_v63  ;;  %v3186_v23 = vpop.f32.mrb[94].mxu0  ;;  %v2081_v0 = vpop.f32.mrb[95].mxu1 }
 0x241   :  { %v3503_v19 = vadd.f32 %v4131_v53, %v6684_v45  ;;  %v4133_v62 = vadd.f32 %v3186_v23, %v2079_v22  ;;  %v3188_v30 = vpop.f32.mrb[95].mxu0 }
 0x242   :  { %v3504_v15 = vadd.f32 %v4132_v36, %v6688_v55  ;;  %v4134_v42 = vadd.f32 %v3188_v30, %v2081_v0 }
 0x243   :  { %v3631_v41 = vmax.f32 %v3503_v19, 0.0  ;;  %v3505_v25 = vadd.f32 %v4133_v62, %v6684_v45 }
 0x244   :  { %v3632_v28 = vmax.f32 %v3504_v15, 0.0  ;;  %v3506_v38 = vadd.f32 %v4134_v42, %v6688_v55 }
 0x245   :  { %3759 = vst [vmem:[%s7394_s3 + $0x2e0] sm:$0xff] %v3631_v41  ;;  %v3633_v26 = vmax.f32 %v3505_v25, 0.0  ;;  %v2085_v43 = vpop.f32.mrb[96].mxu1 }
 0x246   :  { %3760 = vst.msk [vmem:[%s7394_s3 + $0x2e8] sm:$0xff] %vm1145_vm1, %v3632_v28  ;;  %v3634_v46 = vmax.f32 %v3506_v38, 0.0  ;;  %v3192_v29 = vpop.f32.mrb[96].mxu0  ;;  %v2087_v37 = vpop.f32.mrb[97].mxu1 }
 0x247   :  { %3761 = vst [vmem:[%s7394_s3 + $0x2f0] sm:$0xff] %v3633_v26  ;;  %v4135_v57 = vadd.f32 %v3192_v29, %v2085_v43  ;;  %v3194_v34 = vpop.f32.mrb[97].mxu0  ;;  %v2089_v49 = vpop.f32.mrb[98].mxu1 }
 0x248   :  { %3762 = vst.msk [vmem:[%s7394_s3 + $0x2f8] sm:$0xff] %vm1145_vm1, %v3634_v46  ;;  %v4136_v27 = vadd.f32 %v3194_v34, %v2087_v37  ;;  %v3196_v61 = vpop.f32.mrb[98].mxu0  ;;  %v2091_v16 = vpop.f32.mrb[99].mxu1 }
 0x249   :  { %v3507_v48 = vadd.f32 %v4135_v57, %v6684_v45  ;;  %v4137_v39 = vadd.f32 %v3196_v61, %v2089_v49  ;;  %v3198_v21 = vpop.f32.mrb[99].mxu0 }
 0x24a   :  { %v3508_v8 = vadd.f32 %v4136_v27, %v6688_v55  ;;  %v4138_v44 = vadd.f32 %v3198_v21, %v2091_v16 }
 0x24b   :  { %v3635_v50 = vmax.f32 %v3507_v48, 0.0  ;;  %v3509_v33 = vadd.f32 %v4137_v39, %v6684_v45 }
 0x24c   :  { %v3636_v5 = vmax.f32 %v3508_v8, 0.0  ;;  %v3510_v59 = vadd.f32 %v4138_v44, %v6688_v55 }
 0x24d   :  { %3763 = vst [vmem:[%s7394_s3 + $0x300] sm:$0xff] %v3635_v50  ;;  %v3637_v3 = vmax.f32 %v3509_v33, 0.0  ;;  %v2095_v32 = vpop.f32.mrb[100].mxu1 }
 0x24e   :  { %3764 = vst.msk [vmem:[%s7394_s3 + $0x308] sm:$0xff] %vm1145_vm1, %v3636_v5  ;;  %v3638_v17 = vmax.f32 %v3510_v59, 0.0  ;;  %v3202_v20 = vpop.f32.mrb[100].mxu0  ;;  %v2097_v58 = vpop.f32.mrb[101].mxu1 }
 0x24f   :  { %3765 = vst [vmem:[%s7394_s3 + $0x310] sm:$0xff] %v3637_v3  ;;  %v4139_v1 = vadd.f32 %v3202_v20, %v2095_v32  ;;  %v3204_v13 = vpop.f32.mrb[101].mxu0  ;;  %v2099_v9 = vpop.f32.mrb[102].mxu1 }
 0x250   :  { %3766 = vst.msk [vmem:[%s7394_s3 + $0x318] sm:$0xff] %vm1145_vm1, %v3638_v17  ;;  %v4140_v10 = vadd.f32 %v3204_v13, %v2097_v58  ;;  %v3206_v54 = vpop.f32.mrb[102].mxu0  ;;  %v2101_v11 = vpop.f32.mrb[103].mxu1 }
 0x251   :  { %v3511_v2 = vadd.f32 %v4139_v1, %v6684_v45  ;;  %v4141_v40 = vadd.f32 %v3206_v54, %v2099_v9  ;;  %v3208_v7 = vpop.f32.mrb[103].mxu0 }
 0x252   :  { %v3512_v60 = vadd.f32 %v4140_v10, %v6688_v55  ;;  %v4142_v18 = vadd.f32 %v3208_v7, %v2101_v11 }
 0x253   :  { %v3639_v31 = vmax.f32 %v3511_v2, 0.0  ;;  %v3513_v14 = vadd.f32 %v4141_v40, %v6684_v45 }
 0x254   :  { %v3640_v6 = vmax.f32 %v3512_v60, 0.0  ;;  %v3514_v51 = vadd.f32 %v4142_v18, %v6688_v55 }
 0x255   :  { %3767 = vst [vmem:[%s7394_s3 + $0x320] sm:$0xff] %v3639_v31  ;;  %v3641_v12 = vmax.f32 %v3513_v14, 0.0  ;;  %v2105_v56 = vpop.f32.mrb[104].mxu1 }
 0x256   :  { %3768 = vst.msk [vmem:[%s7394_s3 + $0x328] sm:$0xff] %vm1145_vm1, %v3640_v6  ;;  %v3642_v52 = vmax.f32 %v3514_v51, 0.0  ;;  %v3212_v4 = vpop.f32.mrb[104].mxu0  ;;  %v2107_v47 = vpop.f32.mrb[105].mxu1 }
 0x257   :  { %3769 = vst [vmem:[%s7394_s3 + $0x330] sm:$0xff] %v3641_v12  ;;  %v4143_v24 = vadd.f32 %v3212_v4, %v2105_v56  ;;  %v3214_v53 = vpop.f32.mrb[105].mxu0  ;;  %v2109_v35 = vpop.f32.mrb[106].mxu1 }
 0x258   :  { %3770 = vst.msk [vmem:[%s7394_s3 + $0x338] sm:$0xff] %vm1145_vm1, %v3642_v52  ;;  %v4144_v63 = vadd.f32 %v3214_v53, %v2107_v47  ;;  %v3216_v36 = vpop.f32.mrb[106].mxu0  ;;  %v2111_v19 = vpop.f32.mrb[107].mxu1 }
 0x259   :  { %v3515_v22 = vadd.f32 %v4143_v24, %v6684_v45  ;;  %v4145_v23 = vadd.f32 %v3216_v36, %v2109_v35  ;;  %v3218_v62 = vpop.f32.mrb[107].mxu0 }
 0x25a   :  { %v3516_v0 = vadd.f32 %v4144_v63, %v6688_v55  ;;  %v4146_v30 = vadd.f32 %v3218_v62, %v2111_v19 }
 0x25b   :  { %v3643_v15 = vmax.f32 %v3515_v22, 0.0  ;;  %v3517_v42 = vadd.f32 %v4145_v23, %v6684_v45 }
 0x25c   :  { %v3644_v41 = vmax.f32 %v3516_v0, 0.0  ;;  %v3518_v25 = vadd.f32 %v4146_v30, %v6688_v55 }
 0x25d   :  { %3771 = vst [vmem:[%s7394_s3 + $0x340] sm:$0xff] %v3643_v15  ;;  %v3645_v28 = vmax.f32 %v3517_v42, 0.0  ;;  %v2115_v26 = vpop.f32.mrb[108].mxu1 }
 0x25e   :  { %3772 = vst.msk [vmem:[%s7394_s3 + $0x348] sm:$0xff] %vm1145_vm1, %v3644_v41  ;;  %v3646_v38 = vmax.f32 %v3518_v25, 0.0  ;;  %v3222_v46 = vpop.f32.mrb[108].mxu0  ;;  %v2117_v29 = vpop.f32.mrb[109].mxu1 }
 0x25f   :  { %3773 = vst [vmem:[%s7394_s3 + $0x350] sm:$0xff] %v3645_v28  ;;  %v4147_v43 = vadd.f32 %v3222_v46, %v2115_v26  ;;  %v3224_v57 = vpop.f32.mrb[109].mxu0  ;;  %v2119_v34 = vpop.f32.mrb[110].mxu1 }
 0x260   :  { %3774 = vst.msk [vmem:[%s7394_s3 + $0x358] sm:$0xff] %vm1145_vm1, %v3646_v38  ;;  %v4148_v37 = vadd.f32 %v3224_v57, %v2117_v29  ;;  %v3226_v27 = vpop.f32.mrb[110].mxu0  ;;  %v2121_v48 = vpop.f32.mrb[111].mxu1 }
 0x261   :  { %v3519_v49 = vadd.f32 %v4147_v43, %v6684_v45  ;;  %v4149_v61 = vadd.f32 %v3226_v27, %v2119_v34  ;;  %v3228_v39 = vpop.f32.mrb[111].mxu0 }
 0x262   :  { %v3520_v16 = vadd.f32 %v4148_v37, %v6688_v55  ;;  %v4150_v21 = vadd.f32 %v3228_v39, %v2121_v48 }
 0x263   :  { %v3647_v8 = vmax.f32 %v3519_v49, 0.0  ;;  %v3521_v44 = vadd.f32 %v4149_v61, %v6684_v45 }
 0x264   :  { %v3648_v50 = vmax.f32 %v3520_v16, 0.0  ;;  %v3522_v33 = vadd.f32 %v4150_v21, %v6688_v55 }
 0x265   :  { %3775 = vst [vmem:[%s7394_s3 + $0x360] sm:$0xff] %v3647_v8  ;;  %v3649_v5 = vmax.f32 %v3521_v44, 0.0  ;;  %v2125_v3 = vpop.f32.mrb[112].mxu1 }
 0x266   :  { %3776 = vst.msk [vmem:[%s7394_s3 + $0x368] sm:$0xff] %vm1145_vm1, %v3648_v50  ;;  %v3650_v59 = vmax.f32 %v3522_v33, 0.0  ;;  %v3232_v17 = vpop.f32.mrb[112].mxu0  ;;  %v2127_v20 = vpop.f32.mrb[113].mxu1 }
 0x267   :  { %3777 = vst [vmem:[%s7394_s3 + $0x370] sm:$0xff] %v3649_v5  ;;  %v4151_v32 = vadd.f32 %v3232_v17, %v2125_v3  ;;  %v3234_v1 = vpop.f32.mrb[113].mxu0  ;;  %v2129_v13 = vpop.f32.mrb[114].mxu1 }
 0x268   :  { %3778 = vst.msk [vmem:[%s7394_s3 + $0x378] sm:$0xff] %vm1145_vm1, %v3650_v59  ;;  %v4152_v58 = vadd.f32 %v3234_v1, %v2127_v20  ;;  %v3236_v10 = vpop.f32.mrb[114].mxu0  ;;  %v2131_v2 = vpop.f32.mrb[115].mxu1 }
 0x269   :  { %v3523_v9 = vadd.f32 %v4151_v32, %v6684_v45  ;;  %v4153_v54 = vadd.f32 %v3236_v10, %v2129_v13  ;;  %v3238_v40 = vpop.f32.mrb[115].mxu0 }
 0x26a   :  { %v3524_v11 = vadd.f32 %v4152_v58, %v6688_v55  ;;  %v4154_v7 = vadd.f32 %v3238_v40, %v2131_v2 }
 0x26b   :  { %v3651_v60 = vmax.f32 %v3523_v9, 0.0  ;;  %v3525_v18 = vadd.f32 %v4153_v54, %v6684_v45 }
 0x26c   :  { %v3652_v31 = vmax.f32 %v3524_v11, 0.0  ;;  %v3526_v14 = vadd.f32 %v4154_v7, %v6688_v55 }
 0x26d   :  { %3779 = vst [vmem:[%s7394_s3 + $0x380] sm:$0xff] %v3651_v60  ;;  %v3653_v6 = vmax.f32 %v3525_v18, 0.0  ;;  %v2135_v12 = vpop.f32.mrb[116].mxu1 }
 0x26e   :  { %3780 = vst.msk [vmem:[%s7394_s3 + $0x388] sm:$0xff] %vm1145_vm1, %v3652_v31  ;;  %v3654_v51 = vmax.f32 %v3526_v14, 0.0  ;;  %v3242_v52 = vpop.f32.mrb[116].mxu0  ;;  %v2137_v4 = vpop.f32.mrb[117].mxu1 }
 0x26f   :  { %3781 = vst [vmem:[%s7394_s3 + $0x390] sm:$0xff] %v3653_v6  ;;  %v4155_v56 = vadd.f32 %v3242_v52, %v2135_v12  ;;  %v3244_v24 = vpop.f32.mrb[117].mxu0  ;;  %v2139_v53 = vpop.f32.mrb[118].mxu1 }
 0x270   :  { %3782 = vst.msk [vmem:[%s7394_s3 + $0x398] sm:$0xff] %vm1145_vm1, %v3654_v51  ;;  %v4156_v47 = vadd.f32 %v3244_v24, %v2137_v4  ;;  %v3246_v63 = vpop.f32.mrb[118].mxu0  ;;  %v2141_v22 = vpop.f32.mrb[119].mxu1 }
 0x271   :  { %v3527_v35 = vadd.f32 %v4155_v56, %v6684_v45  ;;  %v4157_v36 = vadd.f32 %v3246_v63, %v2139_v53  ;;  %v3248_v23 = vpop.f32.mrb[119].mxu0 }
 0x272   :  { %v3528_v19 = vadd.f32 %v4156_v47, %v6688_v55  ;;  %v4158_v62 = vadd.f32 %v3248_v23, %v2141_v22 }
 0x273   :  { %v3655_v0 = vmax.f32 %v3527_v35, 0.0  ;;  %v3529_v30 = vadd.f32 %v4157_v36, %v6684_v45 }
 0x274   :  { %v3656_v15 = vmax.f32 %v3528_v19, 0.0  ;;  %v3530_v42 = vadd.f32 %v4158_v62, %v6688_v55 }
 0x275   :  { %3783 = vst [vmem:[%s7394_s3 + $0x3a0] sm:$0xff] %v3655_v0  ;;  %v3657_v41 = vmax.f32 %v3529_v30, 0.0  ;;  %v2145_v28 = vpop.f32.mrb[120].mxu1 }
 0x276   :  { %3784 = vst.msk [vmem:[%s7394_s3 + $0x3a8] sm:$0xff] %vm1145_vm1, %v3656_v15  ;;  %v3658_v25 = vmax.f32 %v3530_v42, 0.0  ;;  %v3252_v38 = vpop.f32.mrb[120].mxu0  ;;  %v2147_v46 = vpop.f32.mrb[121].mxu1 }
 0x277   :  { %3785 = vst [vmem:[%s7394_s3 + $0x3b0] sm:$0xff] %v3657_v41  ;;  %v4159_v26 = vadd.f32 %v3252_v38, %v2145_v28  ;;  %v3254_v43 = vpop.f32.mrb[121].mxu0  ;;  %v2149_v57 = vpop.f32.mrb[122].mxu1 }
 0x278   :  { %3786 = vst.msk [vmem:[%s7394_s3 + $0x3b8] sm:$0xff] %vm1145_vm1, %v3658_v25  ;;  %v4160_v29 = vadd.f32 %v3254_v43, %v2147_v46  ;;  %v3256_v37 = vpop.f32.mrb[122].mxu0  ;;  %v2151_v49 = vpop.f32.mrb[123].mxu1 }
 0x279   :  { %v3531_v34 = vadd.f32 %v4159_v26, %v6684_v45  ;;  %v4161_v27 = vadd.f32 %v3256_v37, %v2149_v57  ;;  %v3258_v61 = vpop.f32.mrb[123].mxu0 }
 0x27a   :  { %v3532_v48 = vadd.f32 %v4160_v29, %v6688_v55  ;;  %v4162_v39 = vadd.f32 %v3258_v61, %v2151_v49 }
 0x27b   :  { %v3659_v16 = vmax.f32 %v3531_v34, 0.0  ;;  %v3533_v21 = vadd.f32 %v4161_v27, %v6684_v45 }
 0x27c   :  { %v3660_v8 = vmax.f32 %v3532_v48, 0.0  ;;  %v3534_v44 = vadd.f32 %v4162_v39, %v6688_v55 }
 0x27d   :  { %3787 = vst [vmem:[%s7394_s3 + $0x3c0] sm:$0xff] %v3659_v16  ;;  %v3661_v50 = vmax.f32 %v3533_v21, 0.0  ;;  %v2155_v5 = vpop.f32.mrb[124].mxu1 }
 0x27e   :  { %3788 = vst.msk [vmem:[%s7394_s3 + $0x3c8] sm:$0xff] %vm1145_vm1, %v3660_v8  ;;  %v3662_v33 = vmax.f32 %v3534_v44, 0.0  ;;  %v3262_v59 = vpop.f32.mrb[124].mxu0  ;;  %v2157_v17 = vpop.f32.mrb[125].mxu1 }
 0x27f   :  { %3789 = vst [vmem:[%s7394_s3 + $0x3d0] sm:$0xff] %v3661_v50  ;;  %v4163_v3 = vadd.f32 %v3262_v59, %v2155_v5  ;;  %v3264_v32 = vpop.f32.mrb[125].mxu0  ;;  %v2159_v1 = vpop.f32.mrb[126].mxu1 }
 0x280   :  { %3790 = vst.msk [vmem:[%s7394_s3 + $0x3d8] sm:$0xff] %vm1145_vm1, %v3662_v33  ;;  %v4164_v20 = vadd.f32 %v3264_v32, %v2157_v17  ;;  %v3266_v58 = vpop.f32.mrb[126].mxu0  ;;  %v2161_v9 = vpop.f32.mrb[127].mxu1 }
 0x281   :  { %v3535_v13 = vadd.f32 %v4163_v3, %v6684_v45  ;;  %v4165_v10 = vadd.f32 %v3266_v58, %v2159_v1  ;;  %v3268_v54 = vpop.f32.mrb[127].mxu0 }
 0x282   :  { %v3536_v2 = vadd.f32 %v4164_v20, %v6688_v55  ;;  %v4166_v40 = vadd.f32 %v3268_v54, %v2161_v9 }
 0x283   :  { %v3663_v11 = vmax.f32 %v3535_v13, 0.0  ;;  %v3537_v7 = vadd.f32 %v4165_v10, %v6684_v45 }
 0x284   :  { %v3664_v60 = vmax.f32 %v3536_v2, 0.0  ;;  %v3538_v18 = vadd.f32 %v4166_v40, %v6688_v55 }
 0x285   :  { %3791 = vst [vmem:[%s7394_s3 + $0x3e0] sm:$0xff] %v3663_v11  ;;  %v3665_v31 = vmax.f32 %v3537_v7, 0.0 }
 0x286   :  { %3792 = vst.msk [vmem:[%s7394_s3 + $0x3e8] sm:$0xff] %vm1145_vm1, %v3664_v60  ;;  %v3666_v14 = vmax.f32 %v3538_v18, 0.0 }
 0x287   :  { %3793 = vst [vmem:[%s7394_s3 + $0x3f0] sm:$0xff] %v3665_v31 }
 0x288   :  { %3794 = vst.msk [vmem:[%s7394_s3 + $0x3f8] sm:$0xff] %vm1145_vm1, %v3666_v14 }

// kernel: block8_forward.7
= control target key start
LH: loop header
LB: loop body
LE: loop exit
PB: predicated region body
PF: predicated region fallthrough
CT: control target
= control target key end

     0   :  { %s3675_s0 = inlined_call_operand.vmem [shape: f32[512,192], index: 0, kind: input, shape index: {}]   ;;  %s3676_s1 = inlined_call_operand.vmem [shape: f32[512,192], index: 1, kind: input, shape index: {}]   ;;  %s3677_s2 = inlined_call_operand.vmem [shape: bf16[192,1792], index: 2, kind: input, shape index: {}]   ;;  %s3678_s3 = inlined_call_operand.vmem [shape: bf16[192,1792], index: 3, kind: input, shape index: {}]   ;;  %s3679_s4 = inlined_call_operand.vmem [shape: f32[1,1792], index: 4, kind: input, shape index: {}]   ;;  %s3680_s5 = inlined_call_operand.vmem [shape: f32[512,1792], index: 5, kind: input, shape index: {}]   ;;  %s3681_s6 = inlined_call_operand.hbm [shape: f32[512,1792], index: 6, kind: output, shape index: {}]  }
   0x1   :  { %3683 = sst [smem:[#allocation9_spill]] %s3677_s2 }
   0x2   :  { %3684 = sst [smem:[#allocation10_spill]] %s3678_s3 }
   0x3   :  { %11 = vsyncpa [#allocation6], 0 }
   0x4   :  { %13 = vsyncpa [#allocation6 + $0x1], 0  ;;  %s2811_s21 = smov 0   ;;  %s2813_s22 = smov 0  }
   0x5   :  { %s2815_s23 = smov 0   ;;  %s2817_s24 = smov 0  }
   0x6   :  { %s2819_s25 = smov 0   ;;  %s2821_s26 = smov 0  }
   0x7   :  { %s2823_s27 = smov 0   ;;  %s2825_s28 = smov 0  }
   0x8   :  { %s2827_s29 = smov 0   ;;  %s2829_s30 = smov 0  }
   0x9 LB: > { %s2315_s7 = sadd.s32 4294967295, %s2770_s30   ;;  %s2316_s8 = sadd.s32 4294967294, %s2770_s30   ;;  %s2770_s30 = sphi %s2829_s30, %s19_s30   ;;  %s2766_s29 = sphi %s2827_s29, %s3701_s29   ;;  %s2762_s28 = sphi %s2825_s28, %s3700_s28   ;;  %s2758_s27 = sphi %s2823_s27, %s3699_s27   ;;  %s2754_s26 = sphi %s2821_s26, %s3698_s26   ;;  %s2750_s25 = sphi %s2819_s25, %s3697_s25   ;;  %s2746_s24 = sphi %s2817_s24, %s3696_s24   ;;  %s2742_s23 = sphi %s2815_s23, %s3695_s23   ;;  %s2738_s22 = sphi %s2813_s22, %s3694_s22   ;;  %s2734_s21 = sphi %s2811_s21, %s3693_s21  }
   0xa   : > { %s28_s9 = sadd.s32 1, %s2762_s28  ;;  %s31_s10 = sadd.s32 1, %s2766_s29 }
   0xb   : > { %p29_p0 = scmp.ge.s32.totalorder %s28_s9, 7  ;;  %s90_s11 = sadd.s32 1, %s2750_s25 }
   0xc   : > { %p97_p1 = scmp.ne.s32.totalorder %s2750_s25, %s2746_s24  ;;  %p98_p2 = scmp.eq.s32.totalorder %s2770_s30, 0 }
   0xd   : > { %s3703_s9 = smov (%p29_p0, %s28_s9), 0  ;;  %s3705_s10 = smov (!%p29_p0, %s31_s10), %s2766_s29 }
   0xe   : > { %3685 = sst [smem:[#allocation8_spill]] %s3703_s9  ;;  %s87_s12 = ssub.s32 %s2762_s28, %s3703_s9 }
   0xf   : > { %p2874_p3 = por %p98_p2, %p97_p1  ;;  %p33_p4 = scmp.ge.s32.totalorder %s3705_s10, 2 }
  0x10   : > { %p88_p5 = scmp.eq.s32.totalorder %s87_s12, 0  ;;  %s170_s14 = sadd.s32 1, %s2742_s23 }
  0x11   : > { %p177_p6 = scmp.ne.s32.totalorder %s2742_s23, %s2738_s22  ;;  %s3707_s10 = smov (%p33_p4, %s3705_s10), 0 }
  0x12   : > { %s2884_s15 = scalar_select %p88_p5, %s2750_s25, %s90_s11  }
  0x13   : > { %s165_s16 = ssub.s32 %s2766_s29, %s3707_s10  ;;  %p2888_p7 = por %p177_p6, %p98_p2 }
  0x14   : > { %s167_s18 = sor.u32 %s165_s16, %s87_s12  ;;  %p209_p8 = scmp.eq.s32.totalorder %s2315_s7, 13 }
  0x15   : > { %p168_p9 = scmp.eq.s32.totalorder %s167_s18, 0  ;;  %p214_p10 = scmp.ne.s32.totalorder %s2738_s22, %s2734_s21 }
  0x16   : > { %p2894_p11 = por %p209_p8, %p177_p6  ;;  %p215_p12 = scmp.eq.s32.totalorder %s2316_s8, 13 }
  0x17   : > { %s2899_s20 = scalar_select %p168_p9, %s2742_s23, %s170_s14  }
  0x18   : > { %p2901_p13 = por %p215_p12, %p214_p10  ;;  %p2318_p0 = scmp.ge.s32.totalorder %s2770_s30, 14 }
  0x1a   : > { %231 = sbr.rel (%p2318_p0) target bundleno = 119 (0x77), region = 16 }
  0x21   : > { %254 = sbr.rel (!%p2874_p3) target bundleno = 56 (0x38), region = 28  ;;  %s256_s7 = sand.u32 (%p2874_p3), 1, %s2750_s25  }
  0x22   : > { %s2425_s11 = sshll.u32 (%p2874_p3), %s2762_s28, 3  ;;  %s2493_s12 = smul.u32 (%p2874_p3), 192, %s256_s7 }
  0x23   : > { %s3690_s2 = sld [smem:[#allocation9_spill]] (%p2874_p3) }
  0x24   : > { %s2921_s14 = scalar_lea.vmem (%p2874_p3), [#allocation2], %s2493_s12 }
  0x29   : > { %s2913_s8 = scalar_lea.vmem %s3690_s2, %s2425_s11 }
  0x2a   : > { %v335_v0 = vld [vmem:[%s2913_s8] sm:$0xff]  ;;  %v337_v1 = vld [vmem:[%s2913_s8 + $0x38] sm:$0xff]  ;;  %v339_v2 = vld [vmem:[%s2913_s8 + $0x70] sm:$0xff] }
  0x2b   : > { %v341_v3 = vld [vmem:[%s2913_s8 + $0xa8] sm:$0xff]  ;;  %v343_v4 = vld [vmem:[%s2913_s8 + $0xe0] sm:$0xff]  ;;  %v345_v5 = vld [vmem:[%s2913_s8 + $0x118] sm:$0xff]  ;;  %336 = vst [vmem:[%s2921_s14] sm:$0xff] %v335_v0 }
  0x2c   : > { %338 = vst [vmem:[%s2921_s14 + $0x8] sm:$0xff] %v337_v1  ;;  %340 = vst [vmem:[%s2921_s14 + $0x10] sm:$0xff] %v339_v2  ;;  %v347_v6 = vld [vmem:[%s2913_s8 + $0x150] sm:$0xff]  ;;  %v349_v7 = vld [vmem:[%s2913_s8 + $0x188] sm:$0xff] }
  0x2d   : > { %342 = vst [vmem:[%s2921_s14 + $0x18] sm:$0xff] %v341_v3  ;;  %344 = vst [vmem:[%s2921_s14 + $0x20] sm:$0xff] %v343_v4  ;;  %v351_v8 = vld [vmem:[%s2913_s8 + $0x1c0] sm:$0xff]  ;;  %v353_v9 = vld [vmem:[%s2913_s8 + $0x1f8] sm:$0xff] }
  0x2e   : > { %346 = vst [vmem:[%s2921_s14 + $0x28] sm:$0xff] %v345_v5  ;;  %348 = vst [vmem:[%s2921_s14 + $0x30] sm:$0xff] %v347_v6  ;;  %v355_v10 = vld [vmem:[%s2913_s8 + $0x230] sm:$0xff]  ;;  %v357_v11 = vld [vmem:[%s2913_s8 + $0x268] sm:$0xff] }
  0x2f   : > { %350 = vst [vmem:[%s2921_s14 + $0x38] sm:$0xff] %v349_v7  ;;  %352 = vst [vmem:[%s2921_s14 + $0x40] sm:$0xff] %v351_v8  ;;  %v359_v12 = vld [vmem:[%s2913_s8 + $0x2a0] sm:$0xff]  ;;  %v361_v13 = vld [vmem:[%s2913_s8 + $0x2d8] sm:$0xff] }
  0x30   : > { %354 = vst [vmem:[%s2921_s14 + $0x48] sm:$0xff] %v353_v9  ;;  %356 = vst [vmem:[%s2921_s14 + $0x50] sm:$0xff] %v355_v10  ;;  %v363_v14 = vld [vmem:[%s2913_s8 + $0x310] sm:$0xff]  ;;  %v365_v15 = vld [vmem:[%s2913_s8 + $0x348] sm:$0xff] }
  0x31   : > { %358 = vst [vmem:[%s2921_s14 + $0x58] sm:$0xff] %v357_v11  ;;  %360 = vst [vmem:[%s2921_s14 + $0x60] sm:$0xff] %v359_v12  ;;  %v367_v16 = vld [vmem:[%s2913_s8 + $0x380] sm:$0xff]  ;;  %v369_v17 = vld [vmem:[%s2913_s8 + $0x3b8] sm:$0xff] }
  0x32   : > { %362 = vst [vmem:[%s2921_s14 + $0x68] sm:$0xff] %v361_v13  ;;  %364 = vst [vmem:[%s2921_s14 + $0x70] sm:$0xff] %v363_v14  ;;  %v371_v18 = vld [vmem:[%s2913_s8 + $0x3f0] sm:$0xff]  ;;  %v373_v19 = vld [vmem:[%s2913_s8 + $0x428] sm:$0xff] }
  0x33   : > { %366 = vst [vmem:[%s2921_s14 + $0x78] sm:$0xff] %v365_v15  ;;  %368 = vst [vmem:[%s2921_s14 + $0x80] sm:$0xff] %v367_v16  ;;  %v375_v20 = vld [vmem:[%s2913_s8 + $0x460] sm:$0xff]  ;;  %v377_v21 = vld [vmem:[%s2913_s8 + $0x498] sm:$0xff] }
  0x34   : > { %370 = vst [vmem:[%s2921_s14 + $0x88] sm:$0xff] %v369_v17  ;;  %372 = vst [vmem:[%s2921_s14 + $0x90] sm:$0xff] %v371_v18  ;;  %v379_v22 = vld [vmem:[%s2913_s8 + $0x4d0] sm:$0xff]  ;;  %v381_v23 = vld [vmem:[%s2913_s8 + $0x508] sm:$0xff] }
  0x35   : > { %374 = vst [vmem:[%s2921_s14 + $0x98] sm:$0xff] %v373_v19  ;;  %376 = vst [vmem:[%s2921_s14 + $0xa0] sm:$0xff] %v375_v20 }
  0x36   : > { %378 = vst [vmem:[%s2921_s14 + $0xa8] sm:$0xff] %v377_v21  ;;  %380 = vst [vmem:[%s2921_s14 + $0xb0] sm:$0xff] %v379_v22 }
  0x37   : > { %382 = vst [vmem:[%s2921_s14 + $0xb8] sm:$0xff] %v381_v23 }
  0x38 PF: > { %388 = sbr.rel (!%p2874_p3) target bundleno = 79 (0x4f), region = 66  ;;  %s390_s7 = sand.u32 (%p2874_p3), 1, %s2750_s25  }
  0x39   : > { %s2426_s11 = sshll.u32 (%p2874_p3), %s2762_s28, 3  ;;  %s2494_s12 = smul.u32 (%p2874_p3), 192, %s390_s7 }
  0x3a   : > { %s3691_s3 = sld [smem:[#allocation10_spill]] (%p2874_p3) }
  0x3b   : > { %s2980_s13 = scalar_lea.vmem (%p2874_p3), [#allocation3], %s2494_s12 }
  0x40   : > { %s2972_s2 = scalar_lea.vmem %s3691_s3, %s2426_s11 }
  0x41   : > { %v469_v24 = vld [vmem:[%s2972_s2] sm:$0xff]  ;;  %v471_v25 = vld [vmem:[%s2972_s2 + $0x38] sm:$0xff]  ;;  %v473_v26 = vld [vmem:[%s2972_s2 + $0x70] sm:$0xff] }
  0x42   : > { %v475_v27 = vld [vmem:[%s2972_s2 + $0xa8] sm:$0xff]  ;;  %v477_v28 = vld [vmem:[%s2972_s2 + $0xe0] sm:$0xff]  ;;  %v479_v29 = vld [vmem:[%s2972_s2 + $0x118] sm:$0xff]  ;;  %470 = vst [vmem:[%s2980_s13] sm:$0xff] %v469_v24 }
  0x43   : > { %472 = vst [vmem:[%s2980_s13 + $0x8] sm:$0xff] %v471_v25  ;;  %474 = vst [vmem:[%s2980_s13 + $0x10] sm:$0xff] %v473_v26  ;;  %v481_v30 = vld [vmem:[%s2972_s2 + $0x150] sm:$0xff]  ;;  %v483_v31 = vld [vmem:[%s2972_s2 + $0x188] sm:$0xff] }
  0x44   : > { %476 = vst [vmem:[%s2980_s13 + $0x18] sm:$0xff] %v475_v27  ;;  %478 = vst [vmem:[%s2980_s13 + $0x20] sm:$0xff] %v477_v28  ;;  %v485_v32 = vld [vmem:[%s2972_s2 + $0x1c0] sm:$0xff]  ;;  %v487_v33 = vld [vmem:[%s2972_s2 + $0x1f8] sm:$0xff] }
  0x45   : > { %480 = vst [vmem:[%s2980_s13 + $0x28] sm:$0xff] %v479_v29  ;;  %482 = vst [vmem:[%s2980_s13 + $0x30] sm:$0xff] %v481_v30  ;;  %v489_v34 = vld [vmem:[%s2972_s2 + $0x230] sm:$0xff]  ;;  %v491_v35 = vld [vmem:[%s2972_s2 + $0x268] sm:$0xff] }
  0x46   : > { %484 = vst [vmem:[%s2980_s13 + $0x38] sm:$0xff] %v483_v31  ;;  %486 = vst [vmem:[%s2980_s13 + $0x40] sm:$0xff] %v485_v32  ;;  %v493_v36 = vld [vmem:[%s2972_s2 + $0x2a0] sm:$0xff]  ;;  %v495_v37 = vld [vmem:[%s2972_s2 + $0x2d8] sm:$0xff] }
  0x47   : > { %488 = vst [vmem:[%s2980_s13 + $0x48] sm:$0xff] %v487_v33  ;;  %490 = vst [vmem:[%s2980_s13 + $0x50] sm:$0xff] %v489_v34  ;;  %v497_v38 = vld [vmem:[%s2972_s2 + $0x310] sm:$0xff]  ;;  %v499_v39 = vld [vmem:[%s2972_s2 + $0x348] sm:$0xff] }
  0x48   : > { %492 = vst [vmem:[%s2980_s13 + $0x58] sm:$0xff] %v491_v35  ;;  %494 = vst [vmem:[%s2980_s13 + $0x60] sm:$0xff] %v493_v36  ;;  %v501_v40 = vld [vmem:[%s2972_s2 + $0x380] sm:$0xff]  ;;  %v503_v41 = vld [vmem:[%s2972_s2 + $0x3b8] sm:$0xff] }
  0x49   : > { %496 = vst [vmem:[%s2980_s13 + $0x68] sm:$0xff] %v495_v37  ;;  %498 = vst [vmem:[%s2980_s13 + $0x70] sm:$0xff] %v497_v38  ;;  %v505_v42 = vld [vmem:[%s2972_s2 + $0x3f0] sm:$0xff]  ;;  %v507_v43 = vld [vmem:[%s2972_s2 + $0x428] sm:$0xff] }
  0x4a   : > { %500 = vst [vmem:[%s2980_s13 + $0x78] sm:$0xff] %v499_v39  ;;  %502 = vst [vmem:[%s2980_s13 + $0x80] sm:$0xff] %v501_v40  ;;  %v509_v44 = vld [vmem:[%s2972_s2 + $0x460] sm:$0xff]  ;;  %v511_v45 = vld [vmem:[%s2972_s2 + $0x498] sm:$0xff] }
  0x4b   : > { %504 = vst [vmem:[%s2980_s13 + $0x88] sm:$0xff] %v503_v41  ;;  %506 = vst [vmem:[%s2980_s13 + $0x90] sm:$0xff] %v505_v42  ;;  %v513_v46 = vld [vmem:[%s2972_s2 + $0x4d0] sm:$0xff]  ;;  %v515_v47 = vld [vmem:[%s2972_s2 + $0x508] sm:$0xff] }
  0x4c   : > { %508 = vst [vmem:[%s2980_s13 + $0x98] sm:$0xff] %v507_v43  ;;  %510 = vst [vmem:[%s2980_s13 + $0xa0] sm:$0xff] %v509_v44 }
  0x4d   : > { %512 = vst [vmem:[%s2980_s13 + $0xa8] sm:$0xff] %v511_v45  ;;  %514 = vst [vmem:[%s2980_s13 + $0xb0] sm:$0xff] %v513_v46 }
  0x4e   : > { %516 = vst [vmem:[%s2980_s13 + $0xb8] sm:$0xff] %v515_v47 }
  0x4f PF: > { %530 = sbr.rel (!%p2888_p7) target bundleno = 119 (0x77), region = 108  ;;  %s532_s8 = sand.u32 (%p2888_p7), 1, %s2742_s23  }
  0x50   : > { %s2325_s14 = sshll.u32 (%p2888_p7), %s2762_s28, 1  ;;  %s2323_s7 = sshll.u32 (%p2888_p7), %s532_s8, 9 }
  0x51   : > { %s2495_s11 = smul.u32 (%p2888_p7), 448, %s2766_s29  ;;  %s3037_s17 = scalar_lea.vmem (%p2888_p7), [#allocation4], %s2323_s7 }
  0x53   : > { %s538_s12 = sadd.s32 (%p2888_p7), %s2495_s11, %s2325_s14 }
  0x54   : > { %s2327_s16 = sshll.u32 (%p2888_p7), %s538_s12, 3 }
  0x55   : > { %s3032_s2 = scalar_lea.vmem (%p2888_p7), %s3680_s5, %s2327_s16 }
  0x56   : > { %v553_v48 = vld [vmem:[%s3032_s2] sm:$0xff]  ;;  %v555_v49 = vld [vmem:[%s3032_s2 + $0x8] sm:$0xff]  ;;  %v557_v50 = vld [vmem:[%s3032_s2 + $0x70] sm:$0xff] }
  0x57   : > { %554 = vst [vmem:[%s3037_s17] sm:$0xff] %v553_v48  ;;  %556 = vst [vmem:[%s3037_s17 + $0x8] sm:$0xff] %v555_v49  ;;  %v559_v51 = vld [vmem:[%s3032_s2 + $0x78] sm:$0xff]  ;;  %v561_v52 = vld [vmem:[%s3032_s2 + $0xe0] sm:$0xff] }
  0x58   : > { %558 = vst [vmem:[%s3037_s17 + $0x10] sm:$0xff] %v557_v50  ;;  %v563_v53 = vld [vmem:[%s3032_s2 + $0xe8] sm:$0xff]  ;;  %560 = vst [vmem:[%s3037_s17 + $0x18] sm:$0xff] %v559_v51  ;;  %v565_v54 = vld [vmem:[%s3032_s2 + $0x150] sm:$0xff] }
  0x59   : > { %562 = vst [vmem:[%s3037_s17 + $0x20] sm:$0xff] %v561_v52  ;;  %564 = vst [vmem:[%s3037_s17 + $0x28] sm:$0xff] %v563_v53  ;;  %v567_v55 = vld [vmem:[%s3032_s2 + $0x158] sm:$0xff]  ;;  %v569_v56 = vld [vmem:[%s3032_s2 + $0x1c0] sm:$0xff] }
  0x5a   : > { %566 = vst [vmem:[%s3037_s17 + $0x30] sm:$0xff] %v565_v54  ;;  %568 = vst [vmem:[%s3037_s17 + $0x38] sm:$0xff] %v567_v55  ;;  %v571_v57 = vld [vmem:[%s3032_s2 + $0x1c8] sm:$0xff]  ;;  %v573_v58 = vld [vmem:[%s3032_s2 + $0x230] sm:$0xff] }
  0x5b   : > { %570 = vst [vmem:[%s3037_s17 + $0x40] sm:$0xff] %v569_v56  ;;  %v575_v59 = vld [vmem:[%s3032_s2 + $0x238] sm:$0xff]  ;;  %572 = vst [vmem:[%s3037_s17 + $0x48] sm:$0xff] %v571_v57  ;;  %v577_v60 = vld [vmem:[%s3032_s2 + $0x2a0] sm:$0xff] }
  0x5c   : > { %574 = vst [vmem:[%s3037_s17 + $0x50] sm:$0xff] %v573_v58  ;;  %576 = vst [vmem:[%s3037_s17 + $0x58] sm:$0xff] %v575_v59  ;;  %v579_v61 = vld [vmem:[%s3032_s2 + $0x2a8] sm:$0xff]  ;;  %v581_v62 = vld [vmem:[%s3032_s2 + $0x310] sm:$0xff] }
  0x5d   : > { %578 = vst [vmem:[%s3037_s17 + $0x60] sm:$0xff] %v577_v60  ;;  %580 = vst [vmem:[%s3037_s17 + $0x68] sm:$0xff] %v579_v61  ;;  %v583_v63 = vld [vmem:[%s3032_s2 + $0x318] sm:$0xff]  ;;  %v585_v0 = vld [vmem:[%s3032_s2 + $0x380] sm:$0xff] }
  0x5e   : > { %582 = vst [vmem:[%s3037_s17 + $0x70] sm:$0xff] %v581_v62  ;;  %v587_v1 = vld [vmem:[%s3032_s2 + $0x388] sm:$0xff]  ;;  %584 = vst [vmem:[%s3037_s17 + $0x78] sm:$0xff] %v583_v63  ;;  %v589_v2 = vld [vmem:[%s3032_s2 + $0x3f0] sm:$0xff] }
  0x5f   : > { %586 = vst [vmem:[%s3037_s17 + $0x80] sm:$0xff] %v585_v0  ;;  %588 = vst [vmem:[%s3037_s17 + $0x88] sm:$0xff] %v587_v1  ;;  %v591_v3 = vld [vmem:[%s3032_s2 + $0x3f8] sm:$0xff]  ;;  %v593_v4 = vld [vmem:[%s3032_s2 + $0x460] sm:$0xff] }
  0x60   : > { %590 = vst [vmem:[%s3037_s17 + $0x90] sm:$0xff] %v589_v2  ;;  %592 = vst [vmem:[%s3037_s17 + $0x98] sm:$0xff] %v591_v3  ;;  %v595_v5 = vld [vmem:[%s3032_s2 + $0x468] sm:$0xff]  ;;  %v597_v6 = vld [vmem:[%s3032_s2 + $0x4d0] sm:$0xff] }
  0x61   : > { %594 = vst [vmem:[%s3037_s17 + $0xa0] sm:$0xff] %v593_v4  ;;  %v599_v7 = vld [vmem:[%s3032_s2 + $0x4d8] sm:$0xff]  ;;  %596 = vst [vmem:[%s3037_s17 + $0xa8] sm:$0xff] %v595_v5  ;;  %v601_v8 = vld [vmem:[%s3032_s2 + $0x540] sm:$0xff] }
  0x62   : > { %598 = vst [vmem:[%s3037_s17 + $0xb0] sm:$0xff] %v597_v6  ;;  %600 = vst [vmem:[%s3037_s17 + $0xb8] sm:$0xff] %v599_v7  ;;  %v603_v9 = vld [vmem:[%s3032_s2 + $0x548] sm:$0xff]  ;;  %v605_v10 = vld [vmem:[%s3032_s2 + $0x5b0] sm:$0xff] }
  0x63   : > { %602 = vst [vmem:[%s3037_s17 + $0xc0] sm:$0xff] %v601_v8  ;;  %604 = vst [vmem:[%s3037_s17 + $0xc8] sm:$0xff] %v603_v9  ;;  %v607_v11 = vld [vmem:[%s3032_s2 + $0x5b8] sm:$0xff]  ;;  %v609_v12 = vld [vmem:[%s3032_s2 + $0x620] sm:$0xff] }
  0x64   : > { %606 = vst [vmem:[%s3037_s17 + $0xd0] sm:$0xff] %v605_v10  ;;  %v611_v13 = vld [vmem:[%s3032_s2 + $0x628] sm:$0xff]  ;;  %608 = vst [vmem:[%s3037_s17 + $0xd8] sm:$0xff] %v607_v11  ;;  %v613_v14 = vld [vmem:[%s3032_s2 + $0x690] sm:$0xff] }
  0x65   : > { %610 = vst [vmem:[%s3037_s17 + $0xe0] sm:$0xff] %v609_v12  ;;  %612 = vst [vmem:[%s3037_s17 + $0xe8] sm:$0xff] %v611_v13  ;;  %v615_v15 = vld [vmem:[%s3032_s2 + $0x698] sm:$0xff]  ;;  %v617_v16 = vld [vmem:[%s3032_s2 + $0x700] sm:$0xff] }
  0x66   : > { %614 = vst [vmem:[%s3037_s17 + $0xf0] sm:$0xff] %v613_v14  ;;  %616 = vst [vmem:[%s3037_s17 + $0xf8] sm:$0xff] %v615_v15  ;;  %v619_v17 = vld [vmem:[%s3032_s2 + $0x708] sm:$0xff]  ;;  %v621_v18 = vld [vmem:[%s3032_s2 + $0x770] sm:$0xff] }
  0x67   : > { %618 = vst [vmem:[%s3037_s17 + $0x100] sm:$0xff] %v617_v16  ;;  %v623_v19 = vld [vmem:[%s3032_s2 + $0x778] sm:$0xff]  ;;  %620 = vst [vmem:[%s3037_s17 + $0x108] sm:$0xff] %v619_v17  ;;  %v625_v20 = vld [vmem:[%s3032_s2 + $0x7e0] sm:$0xff] }
  0x68   : > { %622 = vst [vmem:[%s3037_s17 + $0x110] sm:$0xff] %v621_v18  ;;  %624 = vst [vmem:[%s3037_s17 + $0x118] sm:$0xff] %v623_v19  ;;  %v627_v21 = vld [vmem:[%s3032_s2 + $0x7e8] sm:$0xff]  ;;  %v629_v22 = vld [vmem:[%s3032_s2 + $0x850] sm:$0xff] }
  0x69   : > { %626 = vst [vmem:[%s3037_s17 + $0x120] sm:$0xff] %v625_v20  ;;  %628 = vst [vmem:[%s3037_s17 + $0x128] sm:$0xff] %v627_v21  ;;  %v631_v23 = vld [vmem:[%s3032_s2 + $0x858] sm:$0xff]  ;;  %v633_v24 = vld [vmem:[%s3032_s2 + $0x8c0] sm:$0xff] }
  0x6a   : > { %630 = vst [vmem:[%s3037_s17 + $0x130] sm:$0xff] %v629_v22  ;;  %v635_v25 = vld [vmem:[%s3032_s2 + $0x8c8] sm:$0xff]  ;;  %632 = vst [vmem:[%s3037_s17 + $0x138] sm:$0xff] %v631_v23  ;;  %v637_v26 = vld [vmem:[%s3032_s2 + $0x930] sm:$0xff] }
  0x6b   : > { %634 = vst [vmem:[%s3037_s17 + $0x140] sm:$0xff] %v633_v24  ;;  %636 = vst [vmem:[%s3037_s17 + $0x148] sm:$0xff] %v635_v25  ;;  %v639_v27 = vld [vmem:[%s3032_s2 + $0x938] sm:$0xff]  ;;  %v641_v28 = vld [vmem:[%s3032_s2 + $0x9a0] sm:$0xff] }
  0x6c   : > { %638 = vst [vmem:[%s3037_s17 + $0x150] sm:$0xff] %v637_v26  ;;  %640 = vst [vmem:[%s3037_s17 + $0x158] sm:$0xff] %v639_v27  ;;  %v643_v29 = vld [vmem:[%s3032_s2 + $0x9a8] sm:$0xff]  ;;  %v645_v30 = vld [vmem:[%s3032_s2 + $0xa10] sm:$0xff] }
  0x6d   : > { %642 = vst [vmem:[%s3037_s17 + $0x160] sm:$0xff] %v641_v28  ;;  %v647_v31 = vld [vmem:[%s3032_s2 + $0xa18] sm:$0xff]  ;;  %644 = vst [vmem:[%s3037_s17 + $0x168] sm:$0xff] %v643_v29  ;;  %v649_v32 = vld [vmem:[%s3032_s2 + $0xa80] sm:$0xff] }
  0x6e   : > { %646 = vst [vmem:[%s3037_s17 + $0x170] sm:$0xff] %v645_v30  ;;  %648 = vst [vmem:[%s3037_s17 + $0x178] sm:$0xff] %v647_v31  ;;  %v651_v33 = vld [vmem:[%s3032_s2 + $0xa88] sm:$0xff]  ;;  %v653_v34 = vld [vmem:[%s3032_s2 + $0xaf0] sm:$0xff] }
  0x6f   : > { %650 = vst [vmem:[%s3037_s17 + $0x180] sm:$0xff] %v649_v32  ;;  %652 = vst [vmem:[%s3037_s17 + $0x188] sm:$0xff] %v651_v33  ;;  %v655_v35 = vld [vmem:[%s3032_s2 + $0xaf8] sm:$0xff]  ;;  %v657_v36 = vld [vmem:[%s3032_s2 + $0xb60] sm:$0xff] }
  0x70   : > { %654 = vst [vmem:[%s3037_s17 + $0x190] sm:$0xff] %v653_v34  ;;  %v659_v37 = vld [vmem:[%s3032_s2 + $0xb68] sm:$0xff]  ;;  %656 = vst [vmem:[%s3037_s17 + $0x198] sm:$0xff] %v655_v35  ;;  %v661_v38 = vld [vmem:[%s3032_s2 + $0xbd0] sm:$0xff] }
  0x71   : > { %658 = vst [vmem:[%s3037_s17 + $0x1a0] sm:$0xff] %v657_v36  ;;  %660 = vst [vmem:[%s3037_s17 + $0x1a8] sm:$0xff] %v659_v37  ;;  %v663_v39 = vld [vmem:[%s3032_s2 + $0xbd8] sm:$0xff]  ;;  %v665_v40 = vld [vmem:[%s3032_s2 + $0xc40] sm:$0xff] }
  0x72   : > { %662 = vst [vmem:[%s3037_s17 + $0x1b0] sm:$0xff] %v661_v38  ;;  %664 = vst [vmem:[%s3037_s17 + $0x1b8] sm:$0xff] %v663_v39  ;;  %v667_v41 = vld [vmem:[%s3032_s2 + $0xc48] sm:$0xff]  ;;  %v669_v42 = vld [vmem:[%s3032_s2 + $0xcb0] sm:$0xff] }
  0x73   : > { %666 = vst [vmem:[%s3037_s17 + $0x1c0] sm:$0xff] %v665_v40  ;;  %v671_v43 = vld [vmem:[%s3032_s2 + $0xcb8] sm:$0xff]  ;;  %668 = vst [vmem:[%s3037_s17 + $0x1c8] sm:$0xff] %v667_v41  ;;  %v673_v44 = vld [vmem:[%s3032_s2 + $0xd20] sm:$0xff] }
  0x74   : > { %670 = vst [vmem:[%s3037_s17 + $0x1d0] sm:$0xff] %v669_v42  ;;  %672 = vst [vmem:[%s3037_s17 + $0x1d8] sm:$0xff] %v671_v43  ;;  %v675_v45 = vld [vmem:[%s3032_s2 + $0xd28] sm:$0xff]  ;;  %v677_v46 = vld [vmem:[%s3032_s2 + $0xd90] sm:$0xff] }
  0x75   : > { %674 = vst [vmem:[%s3037_s17 + $0x1e0] sm:$0xff] %v673_v44  ;;  %676 = vst [vmem:[%s3037_s17 + $0x1e8] sm:$0xff] %v675_v45  ;;  %v679_v47 = vld [vmem:[%s3032_s2 + $0xd98] sm:$0xff] }
  0x76   : > { %678 = vst [vmem:[%s3037_s17 + $0x1f0] sm:$0xff] %v677_v46  ;;  %680 = vst [vmem:[%s3037_s17 + $0x1f8] sm:$0xff] %v679_v47 }
  0x77 PF: > { %p2328_p1 = scmp.ge.s32.totalorder %s2770_s30, 1  ;;  %p685_p2 = scmp.lt.s32.totalorder %s2770_s30, 15 }
  0x79   : > { %p686_p3 = pnand %p2328_p1, %p685_p2 }
  0x7a   : > { %s692_s3 = sand.u32 (!%p686_p3), 1, %s2746_s24   ;;  %s2331_s24 = sshll.u32 (!%p686_p3), %s2758_s27, 5  ;;  %vm1145_vm0 = vcmask (!%p686_p3), 523264  }
  0x7b   : > { %689 = sbr.rel (%p686_p3) target bundleno = 538 (0x21a), region = 131  ;;  %p760_p4 = scmp.lt.s32.totalorder (!%p686_p3), %s2331_s24, 63 }
  0x7c   : > { %s2496_s13 = smul.u32 (!%p686_p3), 192, %s692_s3  ;;  %s3391_s3 = sshll.u32 (!%p686_p3), %s2754_s26, 1 }
  0x7d   : > { %p776_p5 = scmp.lt.s32.totalorder (!%p686_p3), %s3391_s3, 13 }
  0x7e   : > { %s3167_s8 = scalar_lea.vmem (!%p686_p3), [#allocation3], %s2496_s13  ;;  %s3170_s14 = scalar_lea.vmem (!%p686_p3), [#allocation2], %s2496_s13 }
  0x7f   : > { %v2588_v48 = vld [vmem:[%s3167_s8 + $0x4] ss:$8 sps:$4 sm:$0xff] (!%p686_p3)   ;;  %v2592_v50 = vld [vmem:[%s3167_s8] ss:$8 sps:$4 sm:$0xff] (!%p686_p3)   ;;  %v2594_v52 = vld [vmem:[%s3167_s8 + $0x14] ss:$8 sps:$4 sm:$0xff] (!%p686_p3)  }
  0x80   : > { %v2590_v49 = vld [vmem:[%s3170_s14 + $0x4] ss:$8 sps:$4 sm:$0xff] (!%p686_p3)   ;;  %1194 = vmatprep.subr.bf16.mxu1 (!%p686_p3), %v2588_v48  ;;  %v2593_v51 = vld [vmem:[%s3170_s14] ss:$8 sps:$4 sm:$0xff] (!%p686_p3)   ;;  %v2596_v53 = vld [vmem:[%s3170_s14 + $0x14] ss:$8 sps:$4 sm:$0xff] (!%p686_p3)  }
  0x81   : > { %1555 = vmatprep.subr.bf16.mxu0 (!%p686_p3), %v2590_v49  ;;  %1195 = vmatpush1.bf16.msra.mxu1 (!%p686_p3), %v2592_v50  ;;  %v2598_v54 = vld [vmem:[%s3167_s8 + $0x10] ss:$8 sps:$4 sm:$0xff] (!%p686_p3)   ;;  %v2600_v56 = vld [vmem:[%s3167_s8 + $0x24] ss:$8 sps:$4 sm:$0xff] (!%p686_p3)   ;;  %v2604_v58 = vld [vmem:[%s3167_s8 + $0x20] ss:$8 sps:$4 sm:$0xff] (!%p686_p3)  }
  0x82   : > { %1556 = vmatpush1.bf16.msra.mxu0 %v2593_v51  ;;  %1196 = vmatprep.subr.bf16.mxu1 %v2594_v52  ;;  %v2599_v55 = vld [vmem:[%s3170_s14 + $0x10] ss:$8 sps:$4 sm:$0xff]   ;;  %v2602_v57 = vld [vmem:[%s3170_s14 + $0x24] ss:$8 sps:$4 sm:$0xff]   ;;  %v2605_v59 = vld [vmem:[%s3170_s14 + $0x20] ss:$8 sps:$4 sm:$0xff]  }
  0x83   : > { %1557 = vmatprep.subr.bf16.mxu0 %v2596_v53  ;;  %v2606_v60 = vld [vmem:[%s3167_s8 + $0x34] ss:$8 sps:$4 sm:$0xff]   ;;  %v2610_v62 = vld [vmem:[%s3167_s8 + $0x30] ss:$8 sps:$4 sm:$0xff]   ;;  %v2612_v0 = vld [vmem:[%s3167_s8 + $0x44] ss:$8 sps:$4 sm:$0xff]  }
  0x84   : > { %v2608_v61 = vld [vmem:[%s3170_s14 + $0x34] ss:$8 sps:$4 sm:$0xff]   ;;  %v2611_v63 = vld [vmem:[%s3170_s14 + $0x30] ss:$8 sps:$4 sm:$0xff]   ;;  %v2614_v1 = vld [vmem:[%s3170_s14 + $0x44] ss:$8 sps:$4 sm:$0xff]  }
  0x85   : > { %1197 = vmatpush1.bf16.msra.mxu1 %v2598_v54  ;;  %v2616_v2 = vld [vmem:[%s3167_s8 + $0x40] ss:$8 sps:$4 sm:$0xff]   ;;  %v2618_v4 = vld [vmem:[%s3167_s8 + $0x54] ss:$8 sps:$4 sm:$0xff]   ;;  %v2622_v6 = vld [vmem:[%s3167_s8 + $0x50] ss:$8 sps:$4 sm:$0xff]  }
  0x86   : > { %1558 = vmatpush1.bf16.msra.mxu0 %v2599_v55  ;;  %1198 = vmatprep.subr.bf16.mxu1 %v2600_v56  ;;  %v2617_v3 = vld [vmem:[%s3170_s14 + $0x40] ss:$8 sps:$4 sm:$0xff]   ;;  %v2620_v5 = vld [vmem:[%s3170_s14 + $0x54] ss:$8 sps:$4 sm:$0xff]   ;;  %v2623_v7 = vld [vmem:[%s3170_s14 + $0x50] ss:$8 sps:$4 sm:$0xff]  }
  0x87   : > { %1559 = vmatprep.subr.bf16.mxu0 %v2602_v57  ;;  %v2624_v8 = vld [vmem:[%s3167_s8 + $0x64] ss:$8 sps:$4 sm:$0xff]   ;;  %s3709_s24 = smov (!%p760_p4, %s2331_s24), 63  ;;  %v2628_v10 = vld [vmem:[%s3167_s8 + $0x60] ss:$8 sps:$4 sm:$0xff]  }
  0x88   : > { %v2626_v9 = vld [vmem:[%s3170_s14 + $0x64] ss:$8 sps:$4 sm:$0xff]   ;;  %v2629_v11 = vld [vmem:[%s3170_s14 + $0x60] ss:$8 sps:$4 sm:$0xff]   ;;  %v2630_v12 = vld [vmem:[%s3167_s8 + $0x74] ss:$8 sps:$4 sm:$0xff]  }
  0x89   : > { %1199 = vmatpush1.bf16.msra.mxu1 %v2604_v58  ;;  %v2632_v13 = vld [vmem:[%s3170_s14 + $0x74] ss:$8 sps:$4 sm:$0xff]   ;;  %s2427_s7 = sshll.u32 %s3709_s24, 4  ;;  %v2634_v14 = vld [vmem:[%s3167_s8 + $0x70] ss:$8 sps:$4 sm:$0xff]  }
  0x8a   : > { %1560 = vmatpush1.bf16.msra.mxu0 %v2605_v59  ;;  %1200 = vmatprep.subr.bf16.mxu1 %v2606_v60  ;;  %v2635_v15 = vld [vmem:[%s3170_s14 + $0x70] ss:$8 sps:$4 sm:$0xff]   ;;  %v2636_v16 = vld [vmem:[%s3167_s8 + $0x84] ss:$8 sps:$4 sm:$0xff]   ;;  %s3209_s16 = scalar_lea.vmem %s3676_s1, %s2427_s7  ;;  %s3214_s17 = scalar_lea.vmem %s3675_s0, %s2427_s7  ;;  %v2640_v18 = vld [vmem:[%s3167_s8 + $0x80] ss:$8 sps:$4 sm:$0xff]  }
  0x8b   : > { %1561 = vmatprep.subr.bf16.mxu0 %v2608_v61  ;;  %v2638_v17 = vld [vmem:[%s3170_s14 + $0x84] ss:$8 sps:$4 sm:$0xff]   ;;  %v2641_v19 = vld [vmem:[%s3170_s14 + $0x80] ss:$8 sps:$4 sm:$0xff]   ;;  %v908_v21 = vld [vmem:[%s3209_s16 + $0x18] sm:$0xff]  ;;  %s777_s13 = scalar_select %p776_p5, %s3391_s3, 13 }
  0x8c   : > { %v906_v20 = vld [vmem:[%s3209_s16 + $0x8] sm:$0xff]  ;;  %v2642_v23 = vld [vmem:[%s3167_s8 + $0x94] ss:$8 sps:$4 sm:$0xff]   ;;  %v2646_v28 = vld [vmem:[%s3167_s8 + $0x90] ss:$8 sps:$4 sm:$0xff]   ;;  %s706_s7 = sand.u32 1, %s2738_s22  }
  0x8d   : > { %1201 = vmatpush1.bf16.msra.mxu1 %v2610_v62  ;;  %v786_v22 = vld [vmem:[%s3214_s17 + $0x8] sm:$0xff]  ;;  %v2644_v24 = vld [vmem:[%s3170_s14 + $0x94] ss:$8 sps:$4 sm:$0xff]   ;;  %v970_v25 = vpack.c.bf16 %v908_v21, %v906_v20  ;;  %v2647_v29 = vld [vmem:[%s3170_s14 + $0x90] ss:$8 sps:$4 sm:$0xff]   ;;  %s778_s24 = scalar_lea.vmem %s3679_s4, %s777_s13  ;;  %s3401_s11 = sshll.u32 %s706_s7, 9 }
  0x8e   : > { %1562 = vmatpush1.bf16.msra.mxu0 %v2611_v63  ;;  %1202 = vmatprep.subr.bf16.mxu1 %v2612_v0  ;;  %v788_v26 = vld [vmem:[%s3214_s17 + $0x18] sm:$0xff]  ;;  %v2648_v30 = vld [vmem:[%s3167_s8 + $0xa4] ss:$8 sps:$4 sm:$0xff]   ;;  %v2652_v32 = vld [vmem:[%s3167_s8 + $0xa0] ss:$8 sps:$4 sm:$0xff]   ;;  %s3409_s26 = scalar_lea.vmem [#allocation4], %s3401_s11 }
  0x8f   : > { %1563 = vmatprep.subr.bf16.mxu0 %v2614_v1  ;;  %v850_v27 = vpack.c.bf16 %v788_v26, %v786_v22  ;;  %2362 = vmatprep.mubr.msk.bf16.mxu1 %vm1145_vm0, %v970_v25  ;;  %v2650_v31 = vld [vmem:[%s3170_s14 + $0xa4] ss:$8 sps:$4 sm:$0xff]   ;;  %v2653_v33 = vld [vmem:[%s3170_s14 + $0xa0] ss:$8 sps:$4 sm:$0xff]   ;;  %v2654_v34 = vld [vmem:[%s3167_s8 + $0xb4] ss:$8 sps:$4 sm:$0xff]  }
  0x90   : > { %v2656_v35 = vld [vmem:[%s3170_s14 + $0xb4] ss:$8 sps:$4 sm:$0xff]   ;;  %v2658_v36 = vld [vmem:[%s3167_s8 + $0xb0] ss:$8 sps:$4 sm:$0xff]   ;;  %v905_v38 = vld [vmem:[%s3209_s16] sm:$0xff]  ;;  %s3419_s12 = scalar_lea.vmem [#allocation5], %s3401_s11 }
  0x91   : > { %1203 = vmatpush1.bf16.msra.mxu1 %v2616_v2  ;;  %2402 = vmatprep.mubr.msk.bf16.mxu0 %vm1145_vm0, %v850_v27  ;;  %v2659_v37 = vld [vmem:[%s3170_s14 + $0xb0] ss:$8 sps:$4 sm:$0xff]   ;;  %v785_v40 = vld [vmem:[%s3214_s17] sm:$0xff]  ;;  %v910_v42 = vld [vmem:[%s3209_s16 + $0x28] sm:$0xff]  ;;  %s2161_s2 = sshll.u32 %s3419_s12, 4  ;;  %s3617_s8 = scalar_lea.sflag [#allocation6], %s706_s7  ;;  %s3610_s2 = int_to_ptr.vmem [resolvable:$true] %s2161_s2 }
  0x92   : > { %1564 = vmatpush1.bf16.msra.mxu0 %v2617_v3  ;;  %1204 = vmatprep.subr.bf16.mxu1 %v2618_v4  ;;  %v907_v39 = vld [vmem:[%s3209_s16 + $0x10] sm:$0xff]  ;;  %v912_v43 = vld [vmem:[%s3209_s16 + $0x38] sm:$0xff]  ;;  %v790_v44 = vld [vmem:[%s3214_s17 + $0x28] sm:$0xff]  ;;  %s2660_s14 = scalar_lea.vmem %s3610_s2, 8192 }
  0x93   : > { %1565 = vmatprep.subr.bf16.mxu0 %v2620_v5  ;;  %v787_v41 = vld [vmem:[%s3214_s17 + $0x10] sm:$0xff]  ;;  %v792_v45 = vld [vmem:[%s3214_s17 + $0x38] sm:$0xff]  ;;  %v969_v46 = vpack.c.bf16 %v907_v39, %v905_v38  ;;  %v972_v48 = vpack.c.bf16 %v912_v43, %v910_v42  ;;  %v909_v50 = vld [vmem:[%s3209_s16 + $0x20] sm:$0xff]  ;;  %p2661_p6 = scmp.ne.s32.totalorder %s3610_s2, %s2660_s14 }
  0x94   : > { %v849_v47 = vpack.c.bf16 %v787_v41, %v785_v40  ;;  %v852_v49 = vpack.c.bf16 %v792_v45, %v790_v44  ;;  %v911_v51 = vld [vmem:[%s3209_s16 + $0x30] sm:$0xff]  ;;  %v789_v52 = vld [vmem:[%s3214_s17 + $0x20] sm:$0xff]  ;;  %v914_v54 = vld [vmem:[%s3209_s16 + $0x48] sm:$0xff] }
  0x95   : > { %1205 = vmatpush1.bf16.msra.mxu1 %v2622_v6  ;;  %v791_v53 = vld [vmem:[%s3214_s17 + $0x30] sm:$0xff]  ;;  %v916_v55 = vld [vmem:[%s3209_s16 + $0x58] sm:$0xff]  ;;  %v794_v56 = vld [vmem:[%s3214_s17 + $0x48] sm:$0xff]  ;;  %v971_v58 = vpack.c.bf16 %v911_v51, %v909_v50  ;;  %p2662_p7 = pnand %p2661_p6, %p2894_p11 }
  0x96   : > { %1566 = vmatpush1.bf16.msra.mxu0 %v2623_v7  ;;  %1206 = vmatprep.subr.bf16.mxu1 %v2624_v8  ;;  %v796_v57 = vld [vmem:[%s3214_s17 + $0x58] sm:$0xff]  ;;  %v851_v59 = vpack.c.bf16 %v791_v53, %v789_v52  ;;  %v974_v60 = vpack.c.bf16 %v916_v55, %v914_v54  ;;  %v913_v62 = vld [vmem:[%s3209_s16 + $0x40] sm:$0xff]  ;;  %v915_v63 = vld [vmem:[%s3209_s16 + $0x50] sm:$0xff] }
  0x97   : > { %1567 = vmatprep.subr.bf16.mxu0 %v2626_v9  ;;  %v854_v61 = vpack.c.bf16 %v796_v57, %v794_v56  ;;  %v793_v0 = vld [vmem:[%s3214_s17 + $0x40] sm:$0xff]  ;;  %v795_v1 = vld [vmem:[%s3214_s17 + $0x50] sm:$0xff]  ;;  %v918_v2 = vld [vmem:[%s3209_s16 + $0x68] sm:$0xff]  ;;  %v973_v6 = vpack.c.bf16 %v915_v63, %v913_v62  ;;  %p2663_p8 = pneg %p2662_p7 }
  0x98   : > { %v920_v3 = vld [vmem:[%s3209_s16 + $0x78] sm:$0xff]  ;;  %v798_v4 = vld [vmem:[%s3214_s17 + $0x68] sm:$0xff]  ;;  %v853_v7 = vpack.c.bf16 %v795_v1, %v793_v0  ;;  %v921_v22 = vld [vmem:[%s3209_s16 + $0x80] sm:$0xff] }
  0x99   : > { %1207 = vmatpush1.bf16.msra.mxu1 %v2628_v10  ;;  %v800_v5 = vld [vmem:[%s3214_s17 + $0x78] sm:$0xff]  ;;  %v976_v8 = vpack.c.bf16 %v920_v3, %v918_v2  ;;  %v917_v10 = vld [vmem:[%s3209_s16 + $0x60] sm:$0xff]  ;;  %v803_v25 = vld [vmem:[%s3214_s17 + $0x90] sm:$0xff] }
  0x9a   : > { %1568 = vmatpush1.bf16.msra.mxu0 %v2629_v11  ;;  %1208 = vmatprep.subr.bf16.mxu1 %v2630_v12  ;;  %v856_v9 = vpack.c.bf16 %v800_v5, %v798_v4  ;;  %v919_v11 = vld [vmem:[%s3209_s16 + $0x70] sm:$0xff]  ;;  %v797_v12 = vld [vmem:[%s3214_s17 + $0x60] sm:$0xff]  ;;  %v926_v26 = vld [vmem:[%s3209_s16 + $0xa8] sm:$0xff] }
  0x9b   : > { %1569 = vmatprep.subr.bf16.mxu0 %v2632_v13  ;;  %v799_v13 = vld [vmem:[%s3214_s17 + $0x70] sm:$0xff]  ;;  %v928_v27 = vld [vmem:[%s3209_s16 + $0xb8] sm:$0xff]  ;;  %v930_v38 = vld [vmem:[%s3209_s16 + $0xc8] sm:$0xff] }
  0x9c   : > { %v932_v39 = vld [vmem:[%s3209_s16 + $0xd8] sm:$0xff]  ;;  %v810_v40 = vld [vmem:[%s3214_s17 + $0xc8] sm:$0xff] }
  0x9d   : > { %1209 = vmatpush1.bf16.msra.mxu1 %v2634_v14  ;;  %v922_v14 = vld [vmem:[%s3209_s16 + $0x88] sm:$0xff]  ;;  %v812_v41 = vld [vmem:[%s3214_s17 + $0xd8] sm:$0xff]  ;;  %v982_v44 = vpack.c.bf16 %v932_v39, %v930_v38 }
  0x9e   : > { %1570 = vmatpush1.bf16.msra.mxu0 %v2635_v15  ;;  %1210 = vmatprep.subr.bf16.mxu1 %v2636_v16  ;;  %v924_v15 = vld [vmem:[%s3209_s16 + $0x98] sm:$0xff]  ;;  %v802_v16 = vld [vmem:[%s3214_s17 + $0x88] sm:$0xff]  ;;  %v862_v45 = vpack.c.bf16 %v812_v41, %v810_v40 }
  0x9f   : > { %1571 = vmatprep.subr.bf16.mxu0 %v2638_v17  ;;  %v804_v17 = vld [vmem:[%s3214_s17 + $0x98] sm:$0xff]  ;;  %v978_v20 = vpack.c.bf16 %v924_v15, %v922_v14  ;;  %v934_v50 = vld [vmem:[%s3209_s16 + $0xe8] sm:$0xff] }
  0xa0   : > { %v858_v21 = vpack.c.bf16 %v804_v17, %v802_v16  ;;  %v936_v51 = vld [vmem:[%s3209_s16 + $0xf8] sm:$0xff]  ;;  %v814_v52 = vld [vmem:[%s3214_s17 + $0xe8] sm:$0xff] }
  0xa1   : > { %1211 = vmatpush1.bf16.msra.mxu1 %v2640_v18  ;;  %v975_v18 = vpack.c.bf16 %v919_v11, %v917_v10  ;;  %v816_v53 = vld [vmem:[%s3214_s17 + $0xf8] sm:$0xff]  ;;  %v984_v56 = vpack.c.bf16 %v936_v51, %v934_v50  ;;  %v938_v62 = vld [vmem:[%s3209_s16 + $0x108] sm:$0xff] }
  0xa2   : > { %1572 = vmatpush1.bf16.msra.mxu0 %v2641_v19  ;;  %1212 = vmatprep.subr.bf16.mxu1 %v2642_v23  ;;  %v855_v19 = vpack.c.bf16 %v799_v13, %v797_v12  ;;  %v923_v23 = vld [vmem:[%s3209_s16 + $0x90] sm:$0xff]  ;;  %v864_v57 = vpack.c.bf16 %v816_v53, %v814_v52  ;;  %v940_v63 = vld [vmem:[%s3209_s16 + $0x118] sm:$0xff]  ;;  %v818_v0 = vld [vmem:[%s3214_s17 + $0x108] sm:$0xff] }
  0xa3   : > { %1573 = vmatprep.subr.bf16.mxu0 %v2644_v24  ;;  %v801_v24 = vld [vmem:[%s3214_s17 + $0x80] sm:$0xff]  ;;  %v820_v1 = vld [vmem:[%s3214_s17 + $0x118] sm:$0xff]  ;;  %v986_v4 = vpack.c.bf16 %v940_v63, %v938_v62  ;;  %v942_v10 = vld [vmem:[%s3209_s16 + $0x128] sm:$0xff] }
  0xa4   : > { %v866_v5 = vpack.c.bf16 %v820_v1, %v818_v0  ;;  %v944_v11 = vld [vmem:[%s3209_s16 + $0x138] sm:$0xff]  ;;  %v822_v12 = vld [vmem:[%s3214_s17 + $0x128] sm:$0xff] }
  0xa5   : > { %1213 = vmatpush1.bf16.msra.mxu1 %v2646_v28  ;;  %v806_v28 = vld [vmem:[%s3214_s17 + $0xa8] sm:$0xff]  ;;  %v824_v13 = vld [vmem:[%s3214_s17 + $0x138] sm:$0xff]  ;;  %v988_v16 = vpack.c.bf16 %v944_v11, %v942_v10 }
  0xa6   : > { %1574 = vmatpush1.bf16.msra.mxu0 %v2647_v29  ;;  %1214 = vmatprep.subr.bf16.mxu1 %v2648_v30  ;;  %v808_v29 = vld [vmem:[%s3214_s17 + $0xb8] sm:$0xff]  ;;  %v977_v30 = vpack.c.bf16 %v923_v23, %v921_v22  ;;  %v868_v17 = vpack.c.bf16 %v824_v13, %v822_v12  ;;  %v946_v22 = vld [vmem:[%s3209_s16 + $0x148] sm:$0xff] }
  0xa7   : > { %1575 = vmatprep.subr.bf16.mxu0 %v2650_v31  ;;  %v857_v31 = vpack.c.bf16 %v803_v25, %v801_v24  ;;  %v948_v23 = vld [vmem:[%s3209_s16 + $0x158] sm:$0xff]  ;;  %v826_v24 = vld [vmem:[%s3214_s17 + $0x148] sm:$0xff] }
  0xa8   : > { %v828_v25 = vld [vmem:[%s3214_s17 + $0x158] sm:$0xff] }
  0xa9   : > { %1215 = vmatpush1.bf16.msra.mxu1 %v2652_v32  ;;  %v980_v32 = vpack.c.bf16 %v928_v27, %v926_v26 }
  0xaa   : > { %1576 = vmatpush1.bf16.msra.mxu0 %v2653_v33  ;;  %1216 = vmatprep.subr.bf16.mxu1 %v2654_v34  ;;  %v860_v33 = vpack.c.bf16 %v808_v29, %v806_v28  ;;  %v925_v34 = vld [vmem:[%s3209_s16 + $0xa0] sm:$0xff]  ;;  %v990_v28 = vpack.c.bf16 %v948_v23, %v946_v22  ;;  %v870_v29 = vpack.c.bf16 %v828_v25, %v826_v24 }
  0xab   : > { %1577 = vmatprep.subr.bf16.mxu0 %v2656_v35  ;;  %v927_v35 = vld [vmem:[%s3209_s16 + $0xb0] sm:$0xff] }
  0xac   : > { %v979_v42 = vpack.c.bf16 %v927_v35, %v925_v34  ;;  %v950_v34 = vld [vmem:[%s3209_s16 + $0x168] sm:$0xff]  ;;  %v952_v35 = vld [vmem:[%s3209_s16 + $0x178] sm:$0xff] }
  0xad   : > { %1217 = vmatpush1.bf16.msra.mxu1 %v2658_v36  ;;  %v805_v36 = vld [vmem:[%s3214_s17 + $0xa0] sm:$0xff]  ;;  %v992_v40 = vpack.c.bf16 %v952_v35, %v950_v34 }
  0xae   : > { %1578 = vmatpush1.bf16.msra.mxu0 %v2659_v37  ;;  %v807_v37 = vld [vmem:[%s3214_s17 + $0xb0] sm:$0xff]  ;;  %v1748_v35 = vld [vmem:[%s778_s24] sm:$0x3]  ;;  %s2772_s24 = smov [#allocation5]  }
  0xaf   : > { %v859_v43 = vpack.c.bf16 %v807_v37, %v805_v36  ;;  %v830_v36 = vld [vmem:[%s3214_s17 + $0x168] sm:$0xff]  ;;  %v832_v37 = vld [vmem:[%s3214_s17 + $0x178] sm:$0xff]  ;;  %s2664_s11 = sshll.u32 %s2772_s24, 4  ;;  %s2665_s11 = int_to_ptr.vmem [resolvable:$false] %s2664_s11 }
  0xb0   : > { %1227 = vmatmul.mubr.bf16.vlgmr.msra.gmra.mrb[0].mxu1 %v969_v46  ;;  %v929_v46 = vld [vmem:[%s3209_s16 + $0xc0] sm:$0xff]  ;;  %v872_v41 = vpack.c.bf16 %v832_v37, %v830_v36  ;;  %p2667_p9 = scmp.lt.s32.totalorder %s3610_s2, %s2665_s11 }
  0xb1   : > { %1588 = vmatmul.mubr.bf16.vlgmr.msra.gmra.mrb[0].mxu0 %v849_v47  ;;  %2363 = vmatprep.mubr.msk.bf16.mxu1 %vm1145_vm0, %v972_v48  ;;  %v931_v47 = vld [vmem:[%s3209_s16 + $0xd0] sm:$0xff]  ;;  %v809_v48 = vld [vmem:[%s3214_s17 + $0xc0] sm:$0xff] }
  0xb2   : > { %2403 = vmatprep.mubr.msk.bf16.mxu0 %vm1145_vm0, %v852_v49  ;;  %v811_v49 = vld [vmem:[%s3214_s17 + $0xd0] sm:$0xff]  ;;  %v981_v54 = vpack.c.bf16 %v931_v47, %v929_v46  ;;  %v954_v46 = vld [vmem:[%s3209_s16 + $0x188] sm:$0xff]  ;;  %v956_v47 = vld [vmem:[%s3209_s16 + $0x198] sm:$0xff] }
  0xb3   : > { %v861_v55 = vpack.c.bf16 %v811_v49, %v809_v48  ;;  %v834_v48 = vld [vmem:[%s3214_s17 + $0x188] sm:$0xff]  ;;  %v836_v49 = vld [vmem:[%s3214_s17 + $0x198] sm:$0xff]  ;;  %v994_v52 = vpack.c.bf16 %v956_v47, %v954_v46 }
  0xb4   : > { %v874_v53 = vpack.c.bf16 %v836_v49, %v834_v48 }
  0xb8   : > { %1237 = vmatmul.mubr.bf16.gmra.mrb[4].mxu1 %v971_v58  ;;  %v933_v58 = vld [vmem:[%s3209_s16 + $0xe0] sm:$0xff] }
  0xb9   : > { %1598 = vmatmul.mubr.bf16.gmra.mrb[4].mxu0 %v851_v59  ;;  %2364 = vmatprep.mubr.msk.bf16.mxu1 %vm1145_vm0, %v974_v60  ;;  %v935_v59 = vld [vmem:[%s3209_s16 + $0xf0] sm:$0xff]  ;;  %v813_v60 = vld [vmem:[%s3214_s17 + $0xe0] sm:$0xff] }
  0xba   : > { %2404 = vmatprep.mubr.msk.bf16.mxu0 %vm1145_vm0, %v854_v61  ;;  %v815_v61 = vld [vmem:[%s3214_s17 + $0xf0] sm:$0xff]  ;;  %v983_v2 = vpack.c.bf16 %v935_v59, %v933_v58  ;;  %v958_v58 = vld [vmem:[%s3209_s16 + $0x1a8] sm:$0xff]  ;;  %v960_v59 = vld [vmem:[%s3209_s16 + $0x1b8] sm:$0xff] }
  0xbb   : > { %v863_v3 = vpack.c.bf16 %v815_v61, %v813_v60  ;;  %v838_v60 = vld [vmem:[%s3214_s17 + $0x1a8] sm:$0xff]  ;;  %v840_v61 = vld [vmem:[%s3214_s17 + $0x1b8] sm:$0xff]  ;;  %v996_v0 = vpack.c.bf16 %v960_v59, %v958_v58  ;;  %v1890_v58 = vld [vmem:[%s3409_s26 + $0x10] sm:$0xff] }
  0xbc   : > { %v876_v1 = vpack.c.bf16 %v840_v61, %v838_v60 }
  0xc0   : > { %1247 = vmatmul.mubr.bf16.gmra.mrb[8].mxu1 %v973_v6  ;;  %v937_v6 = vld [vmem:[%s3209_s16 + $0x100] sm:$0xff] }
  0xc1   : > { %1608 = vmatmul.mubr.bf16.gmra.mrb[8].mxu0 %v853_v7  ;;  %2365 = vmatprep.mubr.msk.bf16.mxu1 %vm1145_vm0, %v976_v8  ;;  %v939_v7 = vld [vmem:[%s3209_s16 + $0x110] sm:$0xff]  ;;  %v817_v8 = vld [vmem:[%s3214_s17 + $0x100] sm:$0xff] }
  0xc2   : > { %2405 = vmatprep.mubr.msk.bf16.mxu0 %vm1145_vm0, %v856_v9  ;;  %v819_v9 = vld [vmem:[%s3214_s17 + $0x110] sm:$0xff]  ;;  %v985_v14 = vpack.c.bf16 %v939_v7, %v937_v6  ;;  %v962_v6 = vld [vmem:[%s3209_s16 + $0x1c8] sm:$0xff]  ;;  %v964_v7 = vld [vmem:[%s3209_s16 + $0x1d8] sm:$0xff] }
  0xc3   : > { %v865_v15 = vpack.c.bf16 %v819_v9, %v817_v8  ;;  %v842_v8 = vld [vmem:[%s3214_s17 + $0x1c8] sm:$0xff]  ;;  %v844_v9 = vld [vmem:[%s3214_s17 + $0x1d8] sm:$0xff]  ;;  %v998_v12 = vpack.c.bf16 %v964_v7, %v962_v6 }
  0xc4   : > { %v878_v13 = vpack.c.bf16 %v844_v9, %v842_v8 }
  0xc8   : > { %1257 = vmatmul.mubr.bf16.gmra.mrb[12].mxu1 %v975_v18  ;;  %v941_v18 = vld [vmem:[%s3209_s16 + $0x120] sm:$0xff] }
  0xc9   : > { %1618 = vmatmul.mubr.bf16.gmra.mrb[12].mxu0 %v855_v19  ;;  %2366 = vmatprep.mubr.msk.bf16.mxu1 %vm1145_vm0, %v978_v20  ;;  %v943_v19 = vld [vmem:[%s3209_s16 + $0x130] sm:$0xff]  ;;  %v821_v20 = vld [vmem:[%s3214_s17 + $0x120] sm:$0xff] }
  0xca   : > { %2406 = vmatprep.mubr.msk.bf16.mxu0 %vm1145_vm0, %v858_v21  ;;  %v823_v21 = vld [vmem:[%s3214_s17 + $0x130] sm:$0xff]  ;;  %v987_v26 = vpack.c.bf16 %v943_v19, %v941_v18  ;;  %v966_v18 = vld [vmem:[%s3209_s16 + $0x1e8] sm:$0xff]  ;;  %v968_v19 = vld [vmem:[%s3209_s16 + $0x1f8] sm:$0xff] }
  0xcb   : > { %v867_v27 = vpack.c.bf16 %v823_v21, %v821_v20  ;;  %v846_v20 = vld [vmem:[%s3214_s17 + $0x1e8] sm:$0xff]  ;;  %v848_v21 = vld [vmem:[%s3214_s17 + $0x1f8] sm:$0xff]  ;;  %v1000_v24 = vpack.c.bf16 %v968_v19, %v966_v18  ;;  %v1892_v19 = vld [vmem:[%s3409_s26 + $0x20] sm:$0xff] }
  0xcc   : > { %v880_v25 = vpack.c.bf16 %v848_v21, %v846_v20 }
  0xd0   : > { %1267 = vmatmul.mubr.bf16.gmra.mrb[16].mxu1 %v977_v30  ;;  %v945_v30 = vld [vmem:[%s3209_s16 + $0x140] sm:$0xff] }
  0xd1   : > { %1628 = vmatmul.mubr.bf16.gmra.mrb[16].mxu0 %v857_v31  ;;  %2367 = vmatprep.mubr.msk.bf16.mxu1 %vm1145_vm0, %v980_v32  ;;  %v947_v31 = vld [vmem:[%s3209_s16 + $0x150] sm:$0xff]  ;;  %v825_v32 = vld [vmem:[%s3214_s17 + $0x140] sm:$0xff] }
  0xd2   : > { %2407 = vmatprep.mubr.msk.bf16.mxu0 %vm1145_vm0, %v860_v33  ;;  %v827_v33 = vld [vmem:[%s3214_s17 + $0x150] sm:$0xff]  ;;  %v989_v38 = vpack.c.bf16 %v947_v31, %v945_v30 }
  0xd3   : > { %v869_v39 = vpack.c.bf16 %v827_v33, %v825_v32  ;;  %v1750_v32 = vlaneseq }
  0xd5   : > { %v1751_v33 = vshrl.u32 %v1750_v32, 7 }
  0xd7   : > { %v1752_v34 = vsub.s32 0, %v1751_v33  ;;  %v1756_v36 = vsub.s32 1, %v1751_v33 }
  0xd8   : > { %1277 = vmatmul.mubr.bf16.gmra.mrb[20].mxu1 %v979_v42  ;;  %v949_v42 = vld [vmem:[%s3209_s16 + $0x160] sm:$0xff] }
  0xd9   : > { %1638 = vmatmul.mubr.bf16.gmra.mrb[20].mxu0 %v859_v43  ;;  %2368 = vmatprep.mubr.msk.bf16.mxu1 %vm1145_vm0, %v982_v44  ;;  %v951_v43 = vld [vmem:[%s3209_s16 + $0x170] sm:$0xff]  ;;  %v829_v44 = vld [vmem:[%s3214_s17 + $0x160] sm:$0xff]  ;;  %v3403_v37 = vrot.slane %v1748_v35, %v1752_v34 }
  0xda   : > { %2408 = vmatprep.mubr.msk.bf16.mxu0 %vm1145_vm0, %v862_v45  ;;  %v831_v45 = vld [vmem:[%s3214_s17 + $0x170] sm:$0xff]  ;;  %v991_v50 = vpack.c.bf16 %v951_v43, %v949_v42 }
  0xdb   : > { %v871_v51 = vpack.c.bf16 %v831_v45, %v829_v44 }
  0xe0   : > { %1287 = vmatmul.mubr.bf16.gmra.mrb[24].mxu1 %v981_v54  ;;  %v953_v54 = vld [vmem:[%s3209_s16 + $0x180] sm:$0xff] }
  0xe1   : > { %1648 = vmatmul.mubr.bf16.gmra.mrb[24].mxu0 %v861_v55  ;;  %2369 = vmatprep.mubr.msk.bf16.mxu1 %vm1145_vm0, %v984_v56  ;;  %v955_v55 = vld [vmem:[%s3209_s16 + $0x190] sm:$0xff]  ;;  %v833_v56 = vld [vmem:[%s3214_s17 + $0x180] sm:$0xff] }
  0xe2   : > { %2409 = vmatprep.mubr.msk.bf16.mxu0 %vm1145_vm0, %v864_v57  ;;  %v835_v57 = vld [vmem:[%s3214_s17 + $0x190] sm:$0xff]  ;;  %v993_v62 = vpack.c.bf16 %v955_v55, %v953_v54  ;;  %v1889_v55 = vld [vmem:[%s3409_s26 + $0x8] sm:$0xff] }
  0xe3   : > { %v873_v63 = vpack.c.bf16 %v835_v57, %v833_v56 }
  0xe8   : > { %1297 = vmatmul.mubr.bf16.gmra.mrb[28].mxu1 %v983_v2  ;;  %v957_v2 = vld [vmem:[%s3209_s16 + $0x1a0] sm:$0xff] }
  0xe9   : > { %1658 = vmatmul.mubr.bf16.gmra.mrb[28].mxu0 %v863_v3  ;;  %2370 = vmatprep.mubr.msk.bf16.mxu1 %vm1145_vm0, %v986_v4  ;;  %v959_v3 = vld [vmem:[%s3209_s16 + $0x1b0] sm:$0xff]  ;;  %v837_v4 = vld [vmem:[%s3214_s17 + $0x1a0] sm:$0xff] }
  0xea   : > { %2410 = vmatprep.mubr.msk.bf16.mxu0 %vm1145_vm0, %v866_v5  ;;  %v839_v5 = vld [vmem:[%s3214_s17 + $0x1b0] sm:$0xff]  ;;  %v995_v10 = vpack.c.bf16 %v959_v3, %v957_v2 }
  0xeb   : > { %v875_v11 = vpack.c.bf16 %v839_v5, %v837_v4 }
  0xf0   : > { %1307 = vmatmul.mubr.bf16.gmra.mrb[32].mxu1 %v985_v14  ;;  %v961_v14 = vld [vmem:[%s3209_s16 + $0x1c0] sm:$0xff] }
  0xf1   : > { %1668 = vmatmul.mubr.bf16.gmra.mrb[32].mxu0 %v865_v15  ;;  %2371 = vmatprep.mubr.msk.bf16.mxu1 %vm1145_vm0, %v988_v16  ;;  %v963_v15 = vld [vmem:[%s3209_s16 + $0x1d0] sm:$0xff]  ;;  %v841_v16 = vld [vmem:[%s3214_s17 + $0x1c0] sm:$0xff] }
  0xf2   : > { %2411 = vmatprep.mubr.msk.bf16.mxu0 %vm1145_vm0, %v868_v17  ;;  %v843_v17 = vld [vmem:[%s3214_s17 + $0x1d0] sm:$0xff]  ;;  %v997_v22 = vpack.c.bf16 %v963_v15, %v961_v14 }
  0xf3   : > { %v877_v23 = vpack.c.bf16 %v843_v17, %v841_v16 }
  0xf8   : > { %1317 = vmatmul.mubr.bf16.gmra.mrb[36].mxu1 %v987_v26  ;;  %v965_v26 = vld [vmem:[%s3209_s16 + $0x1e0] sm:$0xff] }
  0xf9   : > { %1678 = vmatmul.mubr.bf16.gmra.mrb[36].mxu0 %v867_v27  ;;  %2372 = vmatprep.mubr.msk.bf16.mxu1 %vm1145_vm0, %v990_v28  ;;  %v967_v27 = vld [vmem:[%s3209_s16 + $0x1f0] sm:$0xff]  ;;  %v845_v28 = vld [vmem:[%s3214_s17 + $0x1e0] sm:$0xff]  ;;  %s2497_s16 = smul.u32 448, %s2758_s27 }
  0xfa   : > { %2412 = vmatprep.mubr.msk.bf16.mxu0 %vm1145_vm0, %v870_v29  ;;  %v847_v29 = vld [vmem:[%s3214_s17 + $0x1f0] sm:$0xff]  ;;  %v999_v30 = vpack.c.bf16 %v967_v27, %v965_v26 }
  0xfb   : > { %v879_v31 = vpack.c.bf16 %v847_v29, %v845_v28  ;;  %v1894_v26 = vld [vmem:[%s3409_s26 + $0x30] sm:$0xff]  ;;  %s2158_s27 = sadd.s32 %s2497_s16, %s3391_s3 }
  0xfc   : > { %s2422_s18 = sshll.u32 %s2158_s27, 7 }
  0xfd   : > { %s3607_s13 = scalar_lea.hbm %s3681_s6, %s2422_s18 }
 0x100   : > { %1327 = vmatmul.mubr.bf16.gmra.mrb[40].mxu1 %v989_v38 }
 0x101   : > { %1688 = vmatmul.mubr.bf16.gmra.mrb[40].mxu0 %v869_v39  ;;  %2373 = vmatprep.mubr.msk.bf16.mxu1 %vm1145_vm0, %v992_v40  ;;  %v3405_v40 = vrot.slane %v1748_v35, %v1756_v36 }
 0x102   : > { %2413 = vmatprep.mubr.msk.bf16.mxu0 %vm1145_vm0, %v872_v41 }
 0x108   : > { %1337 = vmatmul.mubr.bf16.gmra.mrb[44].mxu1 %v991_v50 }
 0x109   : > { %1698 = vmatmul.mubr.bf16.gmra.mrb[44].mxu0 %v871_v51  ;;  %2374 = vmatprep.mubr.msk.bf16.mxu1 %vm1145_vm0, %v994_v52  ;;  %v1888_v51 = vld [vmem:[%s3409_s26] sm:$0xff] }
 0x10a   : > { %2414 = vmatprep.mubr.msk.bf16.mxu0 %vm1145_vm0, %v874_v53 }
 0x110   : > { %1347 = vmatmul.mubr.bf16.gmra.mrb[48].mxu1 %v993_v62  ;;  %v1891_v62 = vld [vmem:[%s3409_s26 + $0x18] sm:$0xff] }
 0x111   : > { %1708 = vmatmul.mubr.bf16.gmra.mrb[48].mxu0 %v873_v63  ;;  %2375 = vmatprep.mubr.msk.bf16.mxu1 %vm1145_vm0, %v996_v0 }
 0x112   : > { %2415 = vmatprep.mubr.msk.bf16.mxu0 %vm1145_vm0, %v876_v1 }
 0x118   : > { %1357 = vmatmul.mubr.bf16.gmra.mrb[52].mxu1 %v995_v10 }
 0x119   : > { %1718 = vmatmul.mubr.bf16.gmra.mrb[52].mxu0 %v875_v11  ;;  %2376 = vmatprep.mubr.msk.bf16.mxu1 %vm1145_vm0, %v998_v12 }
 0x11a   : > { %2416 = vmatprep.mubr.msk.bf16.mxu0 %vm1145_vm0, %v878_v13 }
 0x120   : > { %1367 = vmatmul.mubr.bf16.gmra.mrb[56].mxu1 %v997_v22 }
 0x121   : > { %1728 = vmatmul.mubr.bf16.gmra.mrb[56].mxu0 %v877_v23  ;;  %2377 = vmatprep.mubr.msk.bf16.mxu1 %vm1145_vm0, %v1000_v24  ;;  %v1893_v23 = vld [vmem:[%s3409_s26 + $0x28] sm:$0xff] }
 0x122   : > { %2417 = vmatprep.mubr.msk.bf16.mxu0 %vm1145_vm0, %v880_v25 }
 0x128   : > { %1377 = vmatmul.mubr.bf16.gmra.mrb[60].mxu1 %v999_v30  ;;  %v1895_v30 = vld [vmem:[%s3409_s26 + $0x38] sm:$0xff] }
 0x129   : > { %1738 = vmatmul.mubr.bf16.gmra.mrb[60].mxu0 %v879_v31 }
 0x183   : > { %v1228_v38 = vpop.f32.mrb[0].mxu1 }
 0x184   : > { %v1589_v39 = vpop.f32.mrb[0].mxu0  ;;  %v1230_v42 = vpop.f32.mrb[1].mxu1 }
 0x185   : > { %v1590_v41 = vadd.f32 %v1589_v39, %v1228_v38  ;;  %v1591_v43 = vpop.f32.mrb[1].mxu0  ;;  %v1232_v45 = vpop.f32.mrb[2].mxu1 }
 0x186   : > { %v1592_v44 = vadd.f32 %v1591_v43, %v1230_v42  ;;  %v1593_v46 = vpop.f32.mrb[2].mxu0  ;;  %v1234_v49 = vpop.f32.mrb[3].mxu1 }
 0x187   : > { %v1760_v47 = vadd.f32 %v3403_v37, %v1590_v41  ;;  %v1594_v48 = vadd.f32 %v1593_v46, %v1232_v45  ;;  %v1595_v50 = vpop.f32.mrb[3].mxu0 }
 0x188   : > { %v1761_v52 = vadd.f32 %v3405_v40, %v1592_v44  ;;  %v1596_v53 = vadd.f32 %v1595_v50, %v1234_v49 }
 0x189   : > { %v1824_v54 = vmul.f32 0.2, %v1760_v47  ;;  %v1762_v56 = vadd.f32 %v3403_v37, %v1594_v48 }
 0x18a   : > { %v1825_v57 = vmul.f32 0.2, %v1761_v52  ;;  %v1763_v59 = vadd.f32 %v3405_v40, %v1596_v53  ;;  %v1896_v53 = vld [vmem:[%s3409_s26 + $0x40] sm:$0xff] }
 0x18b   : > { %v1952_v60 = vadd.f32 %v1888_v51, %v1824_v54  ;;  %v1826_v61 = vmul.f32 0.2, %v1762_v56  ;;  %v1238_v1 = vpop.f32.mrb[4].mxu1 }
 0x18c   : > { %v1953_v63 = vadd.f32 %v1889_v55, %v1825_v57  ;;  %v1827_v0 = vmul.f32 0.2, %v1763_v59  ;;  %v1599_v2 = vpop.f32.mrb[4].mxu0  ;;  %v1240_v6 = vpop.f32.mrb[5].mxu1  ;;  %v1897_v57 = vld [vmem:[%s3409_s26 + $0x48] sm:$0xff] }
 0x18d   : > { %v2016_v3 = vmax.f32 %v1952_v60, 0.0  ;;  %v1954_v4 = vadd.f32 %v1890_v58, %v1826_v61  ;;  %v1600_v5 = vadd.f32 %v1599_v2, %v1238_v1  ;;  %v1601_v7 = vpop.f32.mrb[5].mxu0  ;;  %v1242_v11 = vpop.f32.mrb[6].mxu1  ;;  %v1898_v60 = vld [vmem:[%s3409_s26 + $0x50] sm:$0xff] }
 0x18e   : > { %v2017_v8 = vmax.f32 %v1953_v63, 0.0  ;;  %v1955_v9 = vadd.f32 %v1891_v62, %v1827_v0  ;;  %v1602_v10 = vadd.f32 %v1601_v7, %v1240_v6  ;;  %v1603_v12 = vpop.f32.mrb[6].mxu0  ;;  %v1244_v16 = vpop.f32.mrb[7].mxu1  ;;  %v1899_v0 = vld [vmem:[%s3409_s26 + $0x58] sm:$0xff] }
 0x18f   : > { %2080 = vst [vmem:[%s3419_s12] sm:$0xff] %v2016_v3  ;;  %v2018_v13 = vmax.f32 %v1954_v4, 0.0  ;;  %v1764_v14 = vadd.f32 %v3403_v37, %v1600_v5  ;;  %v1604_v15 = vadd.f32 %v1603_v12, %v1242_v11  ;;  %v1605_v17 = vpop.f32.mrb[7].mxu0 }
 0x190   : > { %2081 = vst [vmem:[%s3419_s12 + $0x8] sm:$0xff] %v2017_v8  ;;  %v2019_v18 = vmax.f32 %v1955_v9, 0.0  ;;  %v1765_v20 = vadd.f32 %v3405_v40, %v1602_v10  ;;  %v1606_v21 = vadd.f32 %v1605_v17, %v1244_v16 }
 0x191   : > { %2082 = vst [vmem:[%s3419_s12 + $0x10] sm:$0xff] %v2018_v13  ;;  %v1828_v22 = vmul.f32 0.2, %v1764_v14  ;;  %v1766_v24 = vadd.f32 %v3403_v37, %v1604_v15 }
 0x192   : > { %2083 = vst [vmem:[%s3419_s12 + $0x18] sm:$0xff] %v2019_v18  ;;  %v1829_v25 = vmul.f32 0.2, %v1765_v20  ;;  %v1767_v27 = vadd.f32 %v3405_v40, %v1606_v21  ;;  %v1900_v21 = vld [vmem:[%s3409_s26 + $0x60] sm:$0xff] }
 0x193   : > { %v1956_v28 = vadd.f32 %v1892_v19, %v1828_v22  ;;  %v1830_v29 = vmul.f32 0.2, %v1766_v24  ;;  %v1248_v33 = vpop.f32.mrb[8].mxu1 }
 0x194   : > { %v1957_v31 = vadd.f32 %v1893_v23, %v1829_v25  ;;  %v1831_v32 = vmul.f32 0.2, %v1767_v27  ;;  %v1609_v34 = vpop.f32.mrb[8].mxu0  ;;  %v1250_v39 = vpop.f32.mrb[9].mxu1  ;;  %v1901_v25 = vld [vmem:[%s3409_s26 + $0x68] sm:$0xff] }
 0x195   : > { %v2020_v35 = vmax.f32 %v1956_v28, 0.0  ;;  %v1958_v36 = vadd.f32 %v1894_v26, %v1830_v29  ;;  %v1610_v38 = vadd.f32 %v1609_v34, %v1248_v33  ;;  %v1611_v41 = vpop.f32.mrb[9].mxu0  ;;  %v1252_v45 = vpop.f32.mrb[10].mxu1  ;;  %v1902_v28 = vld [vmem:[%s3409_s26 + $0x70] sm:$0xff] }
 0x196   : > { %v2021_v42 = vmax.f32 %v1957_v31, 0.0  ;;  %v1959_v43 = vadd.f32 %v1895_v30, %v1831_v32  ;;  %v1612_v44 = vadd.f32 %v1611_v41, %v1250_v39  ;;  %v1613_v46 = vpop.f32.mrb[10].mxu0  ;;  %v1254_v50 = vpop.f32.mrb[11].mxu1  ;;  %v1903_v32 = vld [vmem:[%s3409_s26 + $0x78] sm:$0xff] }
 0x197   : > { %2084 = vst [vmem:[%s3419_s12 + $0x20] sm:$0xff] %v2020_v35  ;;  %v2022_v47 = vmax.f32 %v1958_v36, 0.0  ;;  %v1768_v48 = vadd.f32 %v3403_v37, %v1610_v38  ;;  %v1614_v49 = vadd.f32 %v1613_v46, %v1252_v45  ;;  %v1615_v51 = vpop.f32.mrb[11].mxu0 }
 0x198   : > { %2085 = vst [vmem:[%s3419_s12 + $0x28] sm:$0xff] %v2021_v42  ;;  %v2023_v52 = vmax.f32 %v1959_v43, 0.0  ;;  %v1769_v54 = vadd.f32 %v3405_v40, %v1612_v44  ;;  %v1616_v55 = vadd.f32 %v1615_v51, %v1254_v50 }
 0x199   : > { %2086 = vst [vmem:[%s3419_s12 + $0x30] sm:$0xff] %v2022_v47  ;;  %v1832_v56 = vmul.f32 0.2, %v1768_v48  ;;  %v1770_v58 = vadd.f32 %v3403_v37, %v1614_v49 }
 0x19a   : > { %2087 = vst [vmem:[%s3419_s12 + $0x38] sm:$0xff] %v2023_v52  ;;  %v1833_v59 = vmul.f32 0.2, %v1769_v54  ;;  %v1771_v61 = vadd.f32 %v3405_v40, %v1616_v55  ;;  %v1904_v55 = vld [vmem:[%s3409_s26 + $0x80] sm:$0xff] }
 0x19b   : > { %v1960_v62 = vadd.f32 %v1896_v53, %v1832_v56  ;;  %v1834_v63 = vmul.f32 0.2, %v1770_v58  ;;  %v1258_v3 = vpop.f32.mrb[12].mxu1 }
 0x19c   : > { %v1961_v1 = vadd.f32 %v1897_v57, %v1833_v59  ;;  %v1835_v2 = vmul.f32 0.2, %v1771_v61  ;;  %v1619_v4 = vpop.f32.mrb[12].mxu0  ;;  %v1260_v8 = vpop.f32.mrb[13].mxu1  ;;  %v1905_v59 = vld [vmem:[%s3409_s26 + $0x88] sm:$0xff] }
 0x19d   : > { %v2024_v5 = vmax.f32 %v1960_v62, 0.0  ;;  %v1962_v6 = vadd.f32 %v1898_v60, %v1834_v63  ;;  %v1620_v7 = vadd.f32 %v1619_v4, %v1258_v3  ;;  %v1621_v9 = vpop.f32.mrb[13].mxu0  ;;  %v1262_v13 = vpop.f32.mrb[14].mxu1  ;;  %v1906_v62 = vld [vmem:[%s3409_s26 + $0x90] sm:$0xff] }
 0x19e   : > { %v2025_v10 = vmax.f32 %v1961_v1, 0.0  ;;  %v1963_v11 = vadd.f32 %v1899_v0, %v1835_v2  ;;  %v1622_v12 = vadd.f32 %v1621_v9, %v1260_v8  ;;  %v1623_v14 = vpop.f32.mrb[14].mxu0  ;;  %v1264_v18 = vpop.f32.mrb[15].mxu1  ;;  %v1907_v2 = vld [vmem:[%s3409_s26 + $0x98] sm:$0xff] }
 0x19f   : > { %2088 = vst [vmem:[%s3419_s12 + $0x40] sm:$0xff] %v2024_v5  ;;  %v2026_v15 = vmax.f32 %v1962_v6, 0.0  ;;  %v1772_v16 = vadd.f32 %v3403_v37, %v1620_v7  ;;  %v1624_v17 = vadd.f32 %v1623_v14, %v1262_v13  ;;  %v1625_v19 = vpop.f32.mrb[15].mxu0 }
 0x1a0   : > { %2089 = vst [vmem:[%s3419_s12 + $0x48] sm:$0xff] %v2025_v10  ;;  %v2027_v20 = vmax.f32 %v1963_v11, 0.0  ;;  %v1773_v22 = vadd.f32 %v3405_v40, %v1622_v12  ;;  %v1626_v23 = vadd.f32 %v1625_v19, %v1264_v18 }
 0x1a1   : > { %2090 = vst [vmem:[%s3419_s12 + $0x50] sm:$0xff] %v2026_v15  ;;  %v1836_v24 = vmul.f32 0.2, %v1772_v16  ;;  %v1774_v26 = vadd.f32 %v3403_v37, %v1624_v17 }
 0x1a2   : > { %2091 = vst [vmem:[%s3419_s12 + $0x58] sm:$0xff] %v2027_v20  ;;  %v1837_v27 = vmul.f32 0.2, %v1773_v22  ;;  %v1775_v29 = vadd.f32 %v3405_v40, %v1626_v23  ;;  %v1908_v23 = vld [vmem:[%s3409_s26 + $0xa0] sm:$0xff] }
 0x1a3   : > { %v1964_v30 = vadd.f32 %v1900_v21, %v1836_v24  ;;  %v1838_v31 = vmul.f32 0.2, %v1774_v26  ;;  %v1268_v35 = vpop.f32.mrb[16].mxu1 }
 0x1a4   : > { %v1965_v33 = vadd.f32 %v1901_v25, %v1837_v27  ;;  %v1839_v34 = vmul.f32 0.2, %v1775_v29  ;;  %v1629_v36 = vpop.f32.mrb[16].mxu0  ;;  %v1270_v42 = vpop.f32.mrb[17].mxu1  ;;  %v1909_v27 = vld [vmem:[%s3409_s26 + $0xa8] sm:$0xff] }
 0x1a5   : > { %v2028_v38 = vmax.f32 %v1964_v30, 0.0  ;;  %v1966_v39 = vadd.f32 %v1902_v28, %v1838_v31  ;;  %v1630_v41 = vadd.f32 %v1629_v36, %v1268_v35  ;;  %v1631_v43 = vpop.f32.mrb[17].mxu0  ;;  %v1272_v47 = vpop.f32.mrb[18].mxu1  ;;  %v1910_v30 = vld [vmem:[%s3409_s26 + $0xb0] sm:$0xff] }
 0x1a6   : > { %v2029_v44 = vmax.f32 %v1965_v33, 0.0  ;;  %v1967_v45 = vadd.f32 %v1903_v32, %v1839_v34  ;;  %v1632_v46 = vadd.f32 %v1631_v43, %v1270_v42  ;;  %v1633_v48 = vpop.f32.mrb[18].mxu0  ;;  %v1274_v52 = vpop.f32.mrb[19].mxu1  ;;  %v1911_v34 = vld [vmem:[%s3409_s26 + $0xb8] sm:$0xff] }
 0x1a7   : > { %2092 = vst [vmem:[%s3419_s12 + $0x60] sm:$0xff] %v2028_v38  ;;  %v2030_v49 = vmax.f32 %v1966_v39, 0.0  ;;  %v1776_v50 = vadd.f32 %v3403_v37, %v1630_v41  ;;  %v1634_v51 = vadd.f32 %v1633_v48, %v1272_v47  ;;  %v1635_v53 = vpop.f32.mrb[19].mxu0 }
 0x1a8   : > { %2093 = vst [vmem:[%s3419_s12 + $0x68] sm:$0xff] %v2029_v44  ;;  %v2031_v54 = vmax.f32 %v1967_v45, 0.0  ;;  %v1777_v56 = vadd.f32 %v3405_v40, %v1632_v46  ;;  %v1636_v57 = vadd.f32 %v1635_v53, %v1274_v52 }
 0x1a9   : > { %2094 = vst [vmem:[%s3419_s12 + $0x70] sm:$0xff] %v2030_v49  ;;  %v1840_v58 = vmul.f32 0.2, %v1776_v50  ;;  %v1778_v60 = vadd.f32 %v3403_v37, %v1634_v51 }
 0x1aa   : > { %2095 = vst [vmem:[%s3419_s12 + $0x78] sm:$0xff] %v2031_v54  ;;  %v1841_v61 = vmul.f32 0.2, %v1777_v56  ;;  %v1779_v63 = vadd.f32 %v3405_v40, %v1636_v57  ;;  %v1912_v57 = vld [vmem:[%s3409_s26 + $0xc0] sm:$0xff] }
 0x1ab   : > { %v1968_v0 = vadd.f32 %v1904_v55, %v1840_v58  ;;  %v1842_v1 = vmul.f32 0.2, %v1778_v60  ;;  %v1278_v5 = vpop.f32.mrb[20].mxu1 }
 0x1ac   : > { %v1969_v3 = vadd.f32 %v1905_v59, %v1841_v61  ;;  %v1843_v4 = vmul.f32 0.2, %v1779_v63  ;;  %v1639_v6 = vpop.f32.mrb[20].mxu0  ;;  %v1280_v10 = vpop.f32.mrb[21].mxu1  ;;  %v1913_v61 = vld [vmem:[%s3409_s26 + $0xc8] sm:$0xff] }
 0x1ad   : > { %v2032_v7 = vmax.f32 %v1968_v0, 0.0  ;;  %v1970_v8 = vadd.f32 %v1906_v62, %v1842_v1  ;;  %v1640_v9 = vadd.f32 %v1639_v6, %v1278_v5  ;;  %v1641_v11 = vpop.f32.mrb[21].mxu0  ;;  %v1282_v15 = vpop.f32.mrb[22].mxu1  ;;  %v1914_v0 = vld [vmem:[%s3409_s26 + $0xd0] sm:$0xff] }
 0x1ae   : > { %v2033_v12 = vmax.f32 %v1969_v3, 0.0  ;;  %v1971_v13 = vadd.f32 %v1907_v2, %v1843_v4  ;;  %v1642_v14 = vadd.f32 %v1641_v11, %v1280_v10  ;;  %v1643_v16 = vpop.f32.mrb[22].mxu0  ;;  %v1284_v20 = vpop.f32.mrb[23].mxu1  ;;  %v1915_v4 = vld [vmem:[%s3409_s26 + $0xd8] sm:$0xff] }
 0x1af   : > { %2096 = vst [vmem:[%s3419_s12 + $0x80] sm:$0xff] %v2032_v7  ;;  %v2034_v17 = vmax.f32 %v1970_v8, 0.0  ;;  %v1780_v18 = vadd.f32 %v3403_v37, %v1640_v9  ;;  %v1644_v19 = vadd.f32 %v1643_v16, %v1282_v15  ;;  %v1645_v21 = vpop.f32.mrb[23].mxu0 }
 0x1b0   : > { %2097 = vst [vmem:[%s3419_s12 + $0x88] sm:$0xff] %v2033_v12  ;;  %v2035_v22 = vmax.f32 %v1971_v13, 0.0  ;;  %v1781_v24 = vadd.f32 %v3405_v40, %v1642_v14  ;;  %v1646_v25 = vadd.f32 %v1645_v21, %v1284_v20 }
 0x1b1   : > { %2098 = vst [vmem:[%s3419_s12 + $0x90] sm:$0xff] %v2034_v17  ;;  %v1844_v26 = vmul.f32 0.2, %v1780_v18  ;;  %v1782_v28 = vadd.f32 %v3403_v37, %v1644_v19 }
 0x1b2   : > { %2099 = vst [vmem:[%s3419_s12 + $0x98] sm:$0xff] %v2035_v22  ;;  %v1845_v29 = vmul.f32 0.2, %v1781_v24  ;;  %v1783_v31 = vadd.f32 %v3405_v40, %v1646_v25  ;;  %v1916_v25 = vld [vmem:[%s3409_s26 + $0xe0] sm:$0xff] }
 0x1b3   : > { %v1972_v32 = vadd.f32 %v1908_v23, %v1844_v26  ;;  %v1846_v33 = vmul.f32 0.2, %v1782_v28  ;;  %v1288_v38 = vpop.f32.mrb[24].mxu1 }
 0x1b4   : > { %v1973_v35 = vadd.f32 %v1909_v27, %v1845_v29  ;;  %v1847_v36 = vmul.f32 0.2, %v1783_v31  ;;  %v1649_v39 = vpop.f32.mrb[24].mxu0  ;;  %v1290_v44 = vpop.f32.mrb[25].mxu1  ;;  %v1917_v29 = vld [vmem:[%s3409_s26 + $0xe8] sm:$0xff] }
 0x1b5   : > { %v2036_v41 = vmax.f32 %v1972_v32, 0.0  ;;  %v1974_v42 = vadd.f32 %v1910_v30, %v1846_v33  ;;  %v1650_v43 = vadd.f32 %v1649_v39, %v1288_v38  ;;  %v1651_v45 = vpop.f32.mrb[25].mxu0  ;;  %v1292_v49 = vpop.f32.mrb[26].mxu1  ;;  %v1918_v32 = vld [vmem:[%s3409_s26 + $0xf0] sm:$0xff] }
 0x1b6   : > { %v2037_v46 = vmax.f32 %v1973_v35, 0.0  ;;  %v1975_v47 = vadd.f32 %v1911_v34, %v1847_v36  ;;  %v1652_v48 = vadd.f32 %v1651_v45, %v1290_v44  ;;  %v1653_v50 = vpop.f32.mrb[26].mxu0  ;;  %v1294_v54 = vpop.f32.mrb[27].mxu1  ;;  %v1919_v36 = vld [vmem:[%s3409_s26 + $0xf8] sm:$0xff] }
 0x1b7   : > { %2100 = vst [vmem:[%s3419_s12 + $0xa0] sm:$0xff] %v2036_v41  ;;  %v2038_v51 = vmax.f32 %v1974_v42, 0.0  ;;  %v1784_v52 = vadd.f32 %v3403_v37, %v1650_v43  ;;  %v1654_v53 = vadd.f32 %v1653_v50, %v1292_v49  ;;  %v1655_v55 = vpop.f32.mrb[27].mxu0 }
 0x1b8   : > { %2101 = vst [vmem:[%s3419_s12 + $0xa8] sm:$0xff] %v2037_v46  ;;  %v2039_v56 = vmax.f32 %v1975_v47, 0.0  ;;  %v1785_v58 = vadd.f32 %v3405_v40, %v1652_v48  ;;  %v1656_v59 = vadd.f32 %v1655_v55, %v1294_v54 }
 0x1b9   : > { %2102 = vst [vmem:[%s3419_s12 + $0xb0] sm:$0xff] %v2038_v51  ;;  %v1848_v60 = vmul.f32 0.2, %v1784_v52  ;;  %v1786_v62 = vadd.f32 %v3403_v37, %v1654_v53 }
 0x1ba   : > { %2103 = vst [vmem:[%s3419_s12 + $0xb8] sm:$0xff] %v2039_v56  ;;  %v1849_v63 = vmul.f32 0.2, %v1785_v58  ;;  %v1787_v1 = vadd.f32 %v3405_v40, %v1656_v59  ;;  %v1920_v59 = vld [vmem:[%s3409_s26 + $0x100] sm:$0xff] }
 0x1bb   : > { %v1976_v2 = vadd.f32 %v1912_v57, %v1848_v60  ;;  %v1850_v3 = vmul.f32 0.2, %v1786_v62  ;;  %v1298_v7 = vpop.f32.mrb[28].mxu1 }
 0x1bc   : > { %v1977_v5 = vadd.f32 %v1913_v61, %v1849_v63  ;;  %v1851_v6 = vmul.f32 0.2, %v1787_v1  ;;  %v1659_v8 = vpop.f32.mrb[28].mxu0  ;;  %v1300_v12 = vpop.f32.mrb[29].mxu1  ;;  %v1921_v63 = vld [vmem:[%s3409_s26 + $0x108] sm:$0xff] }
 0x1bd   : > { %v2040_v9 = vmax.f32 %v1976_v2, 0.0  ;;  %v1978_v10 = vadd.f32 %v1914_v0, %v1850_v3  ;;  %v1660_v11 = vadd.f32 %v1659_v8, %v1298_v7  ;;  %v1661_v13 = vpop.f32.mrb[29].mxu0  ;;  %v1302_v17 = vpop.f32.mrb[30].mxu1  ;;  %v1922_v2 = vld [vmem:[%s3409_s26 + $0x110] sm:$0xff] }
 0x1be   : > { %v2041_v14 = vmax.f32 %v1977_v5, 0.0  ;;  %v1979_v15 = vadd.f32 %v1915_v4, %v1851_v6  ;;  %v1662_v16 = vadd.f32 %v1661_v13, %v1300_v12  ;;  %v1663_v18 = vpop.f32.mrb[30].mxu0  ;;  %v1304_v22 = vpop.f32.mrb[31].mxu1  ;;  %v1923_v6 = vld [vmem:[%s3409_s26 + $0x118] sm:$0xff] }
 0x1bf   : > { %2104 = vst [vmem:[%s3419_s12 + $0xc0] sm:$0xff] %v2040_v9  ;;  %v2042_v19 = vmax.f32 %v1978_v10, 0.0  ;;  %v1788_v20 = vadd.f32 %v3403_v37, %v1660_v11  ;;  %v1664_v21 = vadd.f32 %v1663_v18, %v1302_v17  ;;  %v1665_v23 = vpop.f32.mrb[31].mxu0 }
 0x1c0   : > { %2105 = vst [vmem:[%s3419_s12 + $0xc8] sm:$0xff] %v2041_v14  ;;  %v2043_v24 = vmax.f32 %v1979_v15, 0.0  ;;  %v1789_v26 = vadd.f32 %v3405_v40, %v1662_v16  ;;  %v1666_v27 = vadd.f32 %v1665_v23, %v1304_v22 }
 0x1c1   : > { %2106 = vst [vmem:[%s3419_s12 + $0xd0] sm:$0xff] %v2042_v19  ;;  %v1852_v28 = vmul.f32 0.2, %v1788_v20  ;;  %v1790_v30 = vadd.f32 %v3403_v37, %v1664_v21 }
 0x1c2   : > { %2107 = vst [vmem:[%s3419_s12 + $0xd8] sm:$0xff] %v2043_v24  ;;  %v1853_v31 = vmul.f32 0.2, %v1789_v26  ;;  %v1791_v33 = vadd.f32 %v3405_v40, %v1666_v27  ;;  %v1924_v27 = vld [vmem:[%s3409_s26 + $0x120] sm:$0xff] }
 0x1c3   : > { %v1980_v34 = vadd.f32 %v1916_v25, %v1852_v28  ;;  %v1854_v35 = vmul.f32 0.2, %v1790_v30  ;;  %v1308_v41 = vpop.f32.mrb[32].mxu1 }
 0x1c4   : > { %v1981_v38 = vadd.f32 %v1917_v29, %v1853_v31  ;;  %v1855_v39 = vmul.f32 0.2, %v1791_v33  ;;  %v1669_v42 = vpop.f32.mrb[32].mxu0  ;;  %v1310_v46 = vpop.f32.mrb[33].mxu1  ;;  %v1925_v31 = vld [vmem:[%s3409_s26 + $0x128] sm:$0xff] }
 0x1c5   : > { %v2044_v43 = vmax.f32 %v1980_v34, 0.0  ;;  %v1982_v44 = vadd.f32 %v1918_v32, %v1854_v35  ;;  %v1670_v45 = vadd.f32 %v1669_v42, %v1308_v41  ;;  %v1671_v47 = vpop.f32.mrb[33].mxu0  ;;  %v1312_v51 = vpop.f32.mrb[34].mxu1  ;;  %v1926_v34 = vld [vmem:[%s3409_s26 + $0x130] sm:$0xff] }
 0x1c6   : > { %v2045_v48 = vmax.f32 %v1981_v38, 0.0  ;;  %v1983_v49 = vadd.f32 %v1919_v36, %v1855_v39  ;;  %v1672_v50 = vadd.f32 %v1671_v47, %v1310_v46  ;;  %v1673_v52 = vpop.f32.mrb[34].mxu0  ;;  %v1314_v56 = vpop.f32.mrb[35].mxu1  ;;  %v1927_v39 = vld [vmem:[%s3409_s26 + $0x138] sm:$0xff] }
 0x1c7   : > { %2108 = vst [vmem:[%s3419_s12 + $0xe0] sm:$0xff] %v2044_v43  ;;  %v2046_v53 = vmax.f32 %v1982_v44, 0.0  ;;  %v1792_v54 = vadd.f32 %v3403_v37, %v1670_v45  ;;  %v1674_v55 = vadd.f32 %v1673_v52, %v1312_v51  ;;  %v1675_v57 = vpop.f32.mrb[35].mxu0 }
 0x1c8   : > { %2109 = vst [vmem:[%s3419_s12 + $0xe8] sm:$0xff] %v2045_v48  ;;  %v2047_v58 = vmax.f32 %v1983_v49, 0.0  ;;  %v1793_v60 = vadd.f32 %v3405_v40, %v1672_v50  ;;  %v1676_v61 = vadd.f32 %v1675_v57, %v1314_v56 }
 0x1c9   : > { %2110 = vst [vmem:[%s3419_s12 + $0xf0] sm:$0xff] %v2046_v53  ;;  %v1856_v62 = vmul.f32 0.2, %v1792_v54  ;;  %v1794_v0 = vadd.f32 %v3403_v37, %v1674_v55 }
 0x1ca   : > { %2111 = vst [vmem:[%s3419_s12 + $0xf8] sm:$0xff] %v2047_v58  ;;  %v1857_v1 = vmul.f32 0.2, %v1793_v60  ;;  %v1795_v3 = vadd.f32 %v3405_v40, %v1676_v61  ;;  %v1928_v61 = vld [vmem:[%s3409_s26 + $0x140] sm:$0xff] }
 0x1cb   : > { %v1984_v4 = vadd.f32 %v1920_v59, %v1856_v62  ;;  %v1858_v5 = vmul.f32 0.2, %v1794_v0  ;;  %v1318_v9 = vpop.f32.mrb[36].mxu1 }
 0x1cc   : > { %v1985_v7 = vadd.f32 %v1921_v63, %v1857_v1  ;;  %v1859_v8 = vmul.f32 0.2, %v1795_v3  ;;  %v1679_v10 = vpop.f32.mrb[36].mxu0  ;;  %v1320_v14 = vpop.f32.mrb[37].mxu1  ;;  %v1929_v1 = vld [vmem:[%s3409_s26 + $0x148] sm:$0xff] }
 0x1cd   : > { %v2048_v11 = vmax.f32 %v1984_v4, 0.0  ;;  %v1986_v12 = vadd.f32 %v1922_v2, %v1858_v5  ;;  %v1680_v13 = vadd.f32 %v1679_v10, %v1318_v9  ;;  %v1681_v15 = vpop.f32.mrb[37].mxu0  ;;  %v1322_v19 = vpop.f32.mrb[38].mxu1  ;;  %v1930_v4 = vld [vmem:[%s3409_s26 + $0x150] sm:$0xff] }
 0x1ce   : > { %v2049_v16 = vmax.f32 %v1985_v7, 0.0  ;;  %v1987_v17 = vadd.f32 %v1923_v6, %v1859_v8  ;;  %v1682_v18 = vadd.f32 %v1681_v15, %v1320_v14  ;;  %v1683_v20 = vpop.f32.mrb[38].mxu0  ;;  %v1324_v24 = vpop.f32.mrb[39].mxu1  ;;  %v1931_v8 = vld [vmem:[%s3409_s26 + $0x158] sm:$0xff] }
 0x1cf   : > { %2112 = vst [vmem:[%s3419_s12 + $0x100] sm:$0xff] %v2048_v11  ;;  %v2050_v21 = vmax.f32 %v1986_v12, 0.0  ;;  %v1796_v22 = vadd.f32 %v3403_v37, %v1680_v13  ;;  %v1684_v23 = vadd.f32 %v1683_v20, %v1322_v19  ;;  %v1685_v25 = vpop.f32.mrb[39].mxu0 }
 0x1d0   : > { %2113 = vst [vmem:[%s3419_s12 + $0x108] sm:$0xff] %v2049_v16  ;;  %v2051_v26 = vmax.f32 %v1987_v17, 0.0  ;;  %v1797_v28 = vadd.f32 %v3405_v40, %v1682_v18  ;;  %v1686_v29 = vadd.f32 %v1685_v25, %v1324_v24 }
 0x1d1   : > { %2114 = vst [vmem:[%s3419_s12 + $0x110] sm:$0xff] %v2050_v21  ;;  %v1860_v30 = vmul.f32 0.2, %v1796_v22  ;;  %v1798_v32 = vadd.f32 %v3403_v37, %v1684_v23 }
 0x1d2   : > { %2115 = vst [vmem:[%s3419_s12 + $0x118] sm:$0xff] %v2051_v26  ;;  %v1861_v33 = vmul.f32 0.2, %v1797_v28  ;;  %v1799_v35 = vadd.f32 %v3405_v40, %v1686_v29  ;;  %v1932_v29 = vld [vmem:[%s3409_s26 + $0x160] sm:$0xff] }
 0x1d3   : > { %v1988_v36 = vadd.f32 %v1924_v27, %v1860_v30  ;;  %v1862_v38 = vmul.f32 0.2, %v1798_v32  ;;  %v1328_v43 = vpop.f32.mrb[40].mxu1 }
 0x1d4   : > { %v1989_v41 = vadd.f32 %v1925_v31, %v1861_v33  ;;  %v1863_v42 = vmul.f32 0.2, %v1799_v35  ;;  %v1689_v44 = vpop.f32.mrb[40].mxu0  ;;  %v1330_v48 = vpop.f32.mrb[41].mxu1  ;;  %v1933_v33 = vld [vmem:[%s3409_s26 + $0x168] sm:$0xff] }
 0x1d5   : > { %v2052_v45 = vmax.f32 %v1988_v36, 0.0  ;;  %v1990_v46 = vadd.f32 %v1926_v34, %v1862_v38  ;;  %v1690_v47 = vadd.f32 %v1689_v44, %v1328_v43  ;;  %v1691_v49 = vpop.f32.mrb[41].mxu0  ;;  %v1332_v53 = vpop.f32.mrb[42].mxu1  ;;  %v1934_v36 = vld [vmem:[%s3409_s26 + $0x170] sm:$0xff] }
 0x1d6   : > { %v2053_v50 = vmax.f32 %v1989_v41, 0.0  ;;  %v1991_v51 = vadd.f32 %v1927_v39, %v1863_v42  ;;  %v1692_v52 = vadd.f32 %v1691_v49, %v1330_v48  ;;  %v1693_v54 = vpop.f32.mrb[42].mxu0  ;;  %v1334_v58 = vpop.f32.mrb[43].mxu1  ;;  %v1935_v42 = vld [vmem:[%s3409_s26 + $0x178] sm:$0xff] }
 0x1d7   : > { %2116 = vst [vmem:[%s3419_s12 + $0x120] sm:$0xff] %v2052_v45  ;;  %v2054_v55 = vmax.f32 %v1990_v46, 0.0  ;;  %v1800_v56 = vadd.f32 %v3403_v37, %v1690_v47  ;;  %v1694_v57 = vadd.f32 %v1693_v54, %v1332_v53  ;;  %v1695_v59 = vpop.f32.mrb[43].mxu0 }
 0x1d8   : > { %2117 = vst [vmem:[%s3419_s12 + $0x128] sm:$0xff] %v2053_v50  ;;  %v2055_v60 = vmax.f32 %v1991_v51, 0.0  ;;  %v1801_v62 = vadd.f32 %v3405_v40, %v1692_v52  ;;  %v1696_v63 = vadd.f32 %v1695_v59, %v1334_v58 }
 0x1d9   : > { %2118 = vst [vmem:[%s3419_s12 + $0x130] sm:$0xff] %v2054_v55  ;;  %v1864_v0 = vmul.f32 0.2, %v1800_v56  ;;  %v1802_v2 = vadd.f32 %v3403_v37, %v1694_v57 }
 0x1da   : > { %2119 = vst [vmem:[%s3419_s12 + $0x138] sm:$0xff] %v2055_v60  ;;  %v1865_v3 = vmul.f32 0.2, %v1801_v62  ;;  %v1803_v5 = vadd.f32 %v3405_v40, %v1696_v63  ;;  %v1936_v63 = vld [vmem:[%s3409_s26 + $0x180] sm:$0xff] }
 0x1db   : > { %v1992_v6 = vadd.f32 %v1928_v61, %v1864_v0  ;;  %v1866_v7 = vmul.f32 0.2, %v1802_v2  ;;  %v1338_v11 = vpop.f32.mrb[44].mxu1 }
 0x1dc   : > { %v1993_v9 = vadd.f32 %v1929_v1, %v1865_v3  ;;  %v1867_v10 = vmul.f32 0.2, %v1803_v5  ;;  %v1699_v12 = vpop.f32.mrb[44].mxu0  ;;  %v1340_v16 = vpop.f32.mrb[45].mxu1  ;;  %v1937_v3 = vld [vmem:[%s3409_s26 + $0x188] sm:$0xff] }
 0x1dd   : > { %v2056_v13 = vmax.f32 %v1992_v6, 0.0  ;;  %v1994_v14 = vadd.f32 %v1930_v4, %v1866_v7  ;;  %v1700_v15 = vadd.f32 %v1699_v12, %v1338_v11  ;;  %v1701_v17 = vpop.f32.mrb[45].mxu0  ;;  %v1342_v21 = vpop.f32.mrb[46].mxu1  ;;  %v1938_v6 = vld [vmem:[%s3409_s26 + $0x190] sm:$0xff] }
 0x1de   : > { %v2057_v18 = vmax.f32 %v1993_v9, 0.0  ;;  %v1995_v19 = vadd.f32 %v1931_v8, %v1867_v10  ;;  %v1702_v20 = vadd.f32 %v1701_v17, %v1340_v16  ;;  %v1703_v22 = vpop.f32.mrb[46].mxu0  ;;  %v1344_v26 = vpop.f32.mrb[47].mxu1  ;;  %v1939_v10 = vld [vmem:[%s3409_s26 + $0x198] sm:$0xff] }
 0x1df   : > { %2120 = vst [vmem:[%s3419_s12 + $0x140] sm:$0xff] %v2056_v13  ;;  %v2058_v23 = vmax.f32 %v1994_v14, 0.0  ;;  %v1804_v24 = vadd.f32 %v3403_v37, %v1700_v15  ;;  %v1704_v25 = vadd.f32 %v1703_v22, %v1342_v21  ;;  %v1705_v27 = vpop.f32.mrb[47].mxu0 }
 0x1e0   : > { %2121 = vst [vmem:[%s3419_s12 + $0x148] sm:$0xff] %v2057_v18  ;;  %v2059_v28 = vmax.f32 %v1995_v19, 0.0  ;;  %v1805_v30 = vadd.f32 %v3405_v40, %v1702_v20  ;;  %v1706_v31 = vadd.f32 %v1705_v27, %v1344_v26 }
 0x1e1   : > { %2122 = vst [vmem:[%s3419_s12 + $0x150] sm:$0xff] %v2058_v23  ;;  %v1868_v32 = vmul.f32 0.2, %v1804_v24  ;;  %v1806_v34 = vadd.f32 %v3403_v37, %v1704_v25 }
 0x1e2   : > { %2123 = vst [vmem:[%s3419_s12 + $0x158] sm:$0xff] %v2059_v28  ;;  %v1869_v35 = vmul.f32 0.2, %v1805_v30  ;;  %v1807_v38 = vadd.f32 %v3405_v40, %v1706_v31  ;;  %v1940_v31 = vld [vmem:[%s3409_s26 + $0x1a0] sm:$0xff] }
 0x1e3   : > { %v1996_v39 = vadd.f32 %v1932_v29, %v1868_v32  ;;  %v1870_v41 = vmul.f32 0.2, %v1806_v34  ;;  %v1348_v45 = vpop.f32.mrb[48].mxu1 }
 0x1e4   : > { %v1997_v43 = vadd.f32 %v1933_v33, %v1869_v35  ;;  %v1871_v44 = vmul.f32 0.2, %v1807_v38  ;;  %v1709_v46 = vpop.f32.mrb[48].mxu0  ;;  %v1350_v50 = vpop.f32.mrb[49].mxu1  ;;  %v1941_v35 = vld [vmem:[%s3409_s26 + $0x1a8] sm:$0xff] }
 0x1e5   : > { %v2060_v47 = vmax.f32 %v1996_v39, 0.0  ;;  %v1998_v48 = vadd.f32 %v1934_v36, %v1870_v41  ;;  %v1710_v49 = vadd.f32 %v1709_v46, %v1348_v45  ;;  %v1711_v51 = vpop.f32.mrb[49].mxu0  ;;  %v1352_v55 = vpop.f32.mrb[50].mxu1  ;;  %v1942_v39 = vld [vmem:[%s3409_s26 + $0x1b0] sm:$0xff] }
 0x1e6   : > { %v2061_v52 = vmax.f32 %v1997_v43, 0.0  ;;  %v1999_v53 = vadd.f32 %v1935_v42, %v1871_v44  ;;  %v1712_v54 = vadd.f32 %v1711_v51, %v1350_v50  ;;  %v1713_v56 = vpop.f32.mrb[50].mxu0  ;;  %v1354_v60 = vpop.f32.mrb[51].mxu1  ;;  %v1943_v44 = vld [vmem:[%s3409_s26 + $0x1b8] sm:$0xff] }
 0x1e7   : > { %2124 = vst [vmem:[%s3419_s12 + $0x160] sm:$0xff] %v2060_v47  ;;  %v2062_v57 = vmax.f32 %v1998_v48, 0.0  ;;  %v1808_v58 = vadd.f32 %v3403_v37, %v1710_v49  ;;  %v1714_v59 = vadd.f32 %v1713_v56, %v1352_v55  ;;  %v1715_v61 = vpop.f32.mrb[51].mxu0 }
 0x1e8   : > { %2125 = vst [vmem:[%s3419_s12 + $0x168] sm:$0xff] %v2061_v52  ;;  %v2063_v62 = vmax.f32 %v1999_v53, 0.0  ;;  %v1809_v0 = vadd.f32 %v3405_v40, %v1712_v54  ;;  %v1716_v1 = vadd.f32 %v1715_v61, %v1354_v60 }
 0x1e9   : > { %2126 = vst [vmem:[%s3419_s12 + $0x170] sm:$0xff] %v2062_v57  ;;  %v1872_v2 = vmul.f32 0.2, %v1808_v58  ;;  %v1810_v4 = vadd.f32 %v3403_v37, %v1714_v59 }
 0x1ea   : > { %2127 = vst [vmem:[%s3419_s12 + $0x178] sm:$0xff] %v2063_v62  ;;  %v1873_v5 = vmul.f32 0.2, %v1809_v0  ;;  %v1811_v7 = vadd.f32 %v3405_v40, %v1716_v1  ;;  %v1944_v1 = vld [vmem:[%s3409_s26 + $0x1c0] sm:$0xff] }
 0x1eb   : > { %v2000_v8 = vadd.f32 %v1936_v63, %v1872_v2  ;;  %v1874_v9 = vmul.f32 0.2, %v1810_v4  ;;  %v1358_v13 = vpop.f32.mrb[52].mxu1 }
 0x1ec   : > { %v2001_v11 = vadd.f32 %v1937_v3, %v1873_v5  ;;  %v1875_v12 = vmul.f32 0.2, %v1811_v7  ;;  %v1719_v14 = vpop.f32.mrb[52].mxu0  ;;  %v1360_v18 = vpop.f32.mrb[53].mxu1  ;;  %v1945_v5 = vld [vmem:[%s3409_s26 + $0x1c8] sm:$0xff] }
 0x1ed   : > { %v2064_v15 = vmax.f32 %v2000_v8, 0.0  ;;  %v2002_v16 = vadd.f32 %v1938_v6, %v1874_v9  ;;  %v1720_v17 = vadd.f32 %v1719_v14, %v1358_v13  ;;  %v1721_v19 = vpop.f32.mrb[53].mxu0  ;;  %v1362_v23 = vpop.f32.mrb[54].mxu1  ;;  %v1946_v8 = vld [vmem:[%s3409_s26 + $0x1d0] sm:$0xff] }
 0x1ee   : > { %v2065_v20 = vmax.f32 %v2001_v11, 0.0  ;;  %v2003_v21 = vadd.f32 %v1939_v10, %v1875_v12  ;;  %v1722_v22 = vadd.f32 %v1721_v19, %v1360_v18  ;;  %v1723_v24 = vpop.f32.mrb[54].mxu0  ;;  %v1364_v28 = vpop.f32.mrb[55].mxu1  ;;  %v1947_v12 = vld [vmem:[%s3409_s26 + $0x1d8] sm:$0xff] }
 0x1ef   : > { %2128 = vst [vmem:[%s3419_s12 + $0x180] sm:$0xff] %v2064_v15  ;;  %v2066_v25 = vmax.f32 %v2002_v16, 0.0  ;;  %v1812_v26 = vadd.f32 %v3403_v37, %v1720_v17  ;;  %v1724_v27 = vadd.f32 %v1723_v24, %v1362_v23  ;;  %v1725_v29 = vpop.f32.mrb[55].mxu0 }
 0x1f0   : > { %2129 = vst [vmem:[%s3419_s12 + $0x188] sm:$0xff] %v2065_v20  ;;  %v2067_v30 = vmax.f32 %v2003_v21, 0.0  ;;  %v1813_v32 = vadd.f32 %v3405_v40, %v1722_v22  ;;  %v1726_v33 = vadd.f32 %v1725_v29, %v1364_v28 }
 0x1f1   : > { %2130 = vst [vmem:[%s3419_s12 + $0x190] sm:$0xff] %v2066_v25  ;;  %v1876_v34 = vmul.f32 0.2, %v1812_v26  ;;  %v1814_v36 = vadd.f32 %v3403_v37, %v1724_v27 }
 0x1f2   : > { %2131 = vst [vmem:[%s3419_s12 + $0x198] sm:$0xff] %v2067_v30  ;;  %v1877_v38 = vmul.f32 0.2, %v1813_v32  ;;  %v1815_v41 = vadd.f32 %v3405_v40, %v1726_v33  ;;  %v1948_v33 = vld [vmem:[%s3409_s26 + $0x1e0] sm:$0xff] }
 0x1f3   : > { %v2004_v42 = vadd.f32 %v1940_v31, %v1876_v34  ;;  %v1878_v43 = vmul.f32 0.2, %v1814_v36  ;;  %v1368_v47 = vpop.f32.mrb[56].mxu1 }
 0x1f4   : > { %v2005_v45 = vadd.f32 %v1941_v35, %v1877_v38  ;;  %v1879_v46 = vmul.f32 0.2, %v1815_v41  ;;  %v1729_v48 = vpop.f32.mrb[56].mxu0  ;;  %v1370_v52 = vpop.f32.mrb[57].mxu1  ;;  %v1949_v38 = vld [vmem:[%s3409_s26 + $0x1e8] sm:$0xff] }
 0x1f5   : > { %v2068_v49 = vmax.f32 %v2004_v42, 0.0  ;;  %v2006_v50 = vadd.f32 %v1942_v39, %v1878_v43  ;;  %v1730_v51 = vadd.f32 %v1729_v48, %v1368_v47  ;;  %v1731_v53 = vpop.f32.mrb[57].mxu0  ;;  %v1372_v57 = vpop.f32.mrb[58].mxu1  ;;  %v1950_v42 = vld [vmem:[%s3409_s26 + $0x1f0] sm:$0xff] }
 0x1f6   : > { %v2069_v54 = vmax.f32 %v2005_v45, 0.0  ;;  %v2007_v55 = vadd.f32 %v1943_v44, %v1879_v46  ;;  %v1732_v56 = vadd.f32 %v1731_v53, %v1370_v52  ;;  %v1733_v58 = vpop.f32.mrb[58].mxu0  ;;  %v1374_v62 = vpop.f32.mrb[59].mxu1  ;;  %v1951_v46 = vld [vmem:[%s3409_s26 + $0x1f8] sm:$0xff]  ;;  %s2666_s26 = scalar_lea.vmem %s2665_s11, 16384 }
 0x1f7   : > { %2132 = vst [vmem:[%s3419_s12 + $0x1a0] sm:$0xff] %v2068_v49  ;;  %v2070_v59 = vmax.f32 %v2006_v50, 0.0  ;;  %v1816_v60 = vadd.f32 %v3403_v37, %v1730_v51  ;;  %v1734_v61 = vadd.f32 %v1733_v58, %v1372_v57  ;;  %v1735_v63 = vpop.f32.mrb[59].mxu0  ;;  %p2668_p10 = scmp.lt.s32.totalorder %s2666_s26, %s2660_s14 }
 0x1f8   : > { %2133 = vst [vmem:[%s3419_s12 + $0x1a8] sm:$0xff] %v2069_v54  ;;  %v2071_v0 = vmax.f32 %v2007_v55, 0.0  ;;  %v1817_v2 = vadd.f32 %v3405_v40, %v1732_v56  ;;  %v1736_v3 = vadd.f32 %v1735_v63, %v1374_v62 }
 0x1f9   : > { %2134 = vst [vmem:[%s3419_s12 + $0x1b0] sm:$0xff] %v2070_v59  ;;  %v1880_v4 = vmul.f32 0.2, %v1816_v60  ;;  %v1818_v6 = vadd.f32 %v3403_v37, %v1734_v61  ;;  %p2669_p12 = por %p2668_p10, %p2667_p9 }
 0x1fa   : > { %2135 = vst [vmem:[%s3419_s12 + $0x1b8] sm:$0xff] %v2071_v0  ;;  %v1881_v7 = vmul.f32 0.2, %v1817_v2  ;;  %v1819_v9 = vadd.f32 %v3405_v40, %v1736_v3 }
 0x1fb   : > { %v2008_v10 = vadd.f32 %v1944_v1, %v1880_v4  ;;  %v1882_v11 = vmul.f32 0.2, %v1818_v6  ;;  %v1378_v15 = vpop.f32.mrb[60].mxu1  ;;  %p2670_p0 = pnand %p2669_p12, %p2663_p8 }
 0x1fc   : > { %v2009_v13 = vadd.f32 %v1945_v5, %v1881_v7  ;;  %v1883_v14 = vmul.f32 0.2, %v1819_v9  ;;  %v1739_v16 = vpop.f32.mrb[60].mxu0  ;;  %v1380_v20 = vpop.f32.mrb[61].mxu1 }
 0x1fd   : > { %v2072_v17 = vmax.f32 %v2008_v10, 0.0  ;;  %v2010_v18 = vadd.f32 %v1946_v8, %v1882_v11  ;;  %v1740_v19 = vadd.f32 %v1739_v16, %v1378_v15  ;;  %v1741_v21 = vpop.f32.mrb[61].mxu0  ;;  %v1382_v25 = vpop.f32.mrb[62].mxu1 }
 0x1fe   : > { %v2073_v22 = vmax.f32 %v2009_v13, 0.0  ;;  %v2011_v23 = vadd.f32 %v1947_v12, %v1883_v14  ;;  %v1742_v24 = vadd.f32 %v1741_v21, %v1380_v20  ;;  %v1743_v26 = vpop.f32.mrb[62].mxu0  ;;  %v1384_v30 = vpop.f32.mrb[63].mxu1 }
 0x1ff   : > { %2136 = vst [vmem:[%s3419_s12 + $0x1c0] sm:$0xff] %v2072_v17  ;;  %v2074_v27 = vmax.f32 %v2010_v18, 0.0  ;;  %v1820_v28 = vadd.f32 %v3403_v37, %v1740_v19  ;;  %v1744_v29 = vadd.f32 %v1743_v26, %v1382_v25  ;;  %v1745_v31 = vpop.f32.mrb[63].mxu0 }
 0x200   : > { %2137 = vst [vmem:[%s3419_s12 + $0x1c8] sm:$0xff] %v2073_v22  ;;  %v2075_v32 = vmax.f32 %v2011_v23, 0.0  ;;  %v1821_v34 = vadd.f32 %v3405_v40, %v1742_v24  ;;  %v1746_v35 = vadd.f32 %v1745_v31, %v1384_v30 }
 0x201   : > { %2138 = vst [vmem:[%s3419_s12 + $0x1d0] sm:$0xff] %v2074_v27  ;;  %v1884_v36 = vmul.f32 0.2, %v1820_v28  ;;  %v1822_v39 = vadd.f32 %v3403_v37, %v1744_v29 }
 0x202   : > { %2139 = vst [vmem:[%s3419_s12 + $0x1d8] sm:$0xff] %v2075_v32  ;;  %v1885_v41 = vmul.f32 0.2, %v1821_v34  ;;  %v1823_v43 = vadd.f32 %v3405_v40, %v1746_v35 }
 0x203   : > { %v2012_v44 = vadd.f32 %v1948_v33, %v1884_v36  ;;  %v1886_v45 = vmul.f32 0.2, %v1822_v39 }
 0x204   : > { %v2013_v47 = vadd.f32 %v1949_v38, %v1885_v41  ;;  %v1887_v48 = vmul.f32 0.2, %v1823_v43 }
 0x205   : > { %v2076_v49 = vmax.f32 %v2012_v44, 0.0  ;;  %v2014_v37 = vadd.f32 %v1950_v42, %v1886_v45 }
 0x206   : > { %v2077_v50 = vmax.f32 %v2013_v47, 0.0  ;;  %v2015_v51 = vadd.f32 %v1951_v46, %v1887_v48 }
 0x207   : > { %2140 = vst [vmem:[%s3419_s12 + $0x1e0] sm:$0xff] %v2076_v49  ;;  %v2078_v40 = vmax.f32 %v2014_v37, 0.0 }
 0x208   : > { %2141 = vst [vmem:[%s3419_s12 + $0x1e8] sm:$0xff] %v2077_v50  ;;  %v2079_v52 = vmax.f32 %v2015_v51, 0.0 }
 0x209   : > { %2142 = vst [vmem:[%s3419_s12 + $0x1f0] sm:$0xff] %v2078_v40 }
 0x20a   : > { %2143 = vst [vmem:[%s3419_s12 + $0x1f8] sm:$0xff] %v2079_v52 }
 0x20b   : > { %2673 = shalt.err (!%p2670_p0)
}
 0x20c   : > { %s2674_s7 = scalar_lea.hbm %s3607_s13, 8192  ;;  %s2678_s27 = scalar_lea.hbm %s3681_s6, 114688 }
 0x20d   : > { %p2675_p1 = scmp.ne.s32.totalorder %s3607_s13, %s2674_s7  ;;  %p2679_p4 = scmp.lt.u32.totalorder %s3607_s13, %s3681_s6 }
 0x20e   : > { %p2680_p5 = scmp.lt.u32.totalorder %s2678_s27, %s2674_s7  ;;  %p2682_p7 = scmp.lt.u32.totalorder %s2674_s7, %s3607_s13 }
 0x20f   : > { %p2676_p2 = pnand %p2675_p1, %p2894_p11 }
 0x210   : > { %p2681_p6 = por %p2680_p5, %p2679_p4 }
 0x211   : > { %p2677_p3 = pneg %p2676_p2 }
 0x212   : > { %p2683_p8 = por %p2682_p7, %p2681_p6 }
 0x214   : > { %p2684_p9 = pnand %p2683_p8, %p2677_p3 }
 0x216   : > { %2687 = shalt.err (!%p2684_p9)
}
 0x217   : > { %s2773_s3 = smov 256   ;;  %s2774_s14 = smov 1792  }
 0x218   : > { %s2775_s24 = smov 16  }
 0x219   : > { %2498 = dma.vmem_to_hbm [thread:$0]  (%p2894_p11), %s3610_s2, 8192, %s3607_s13, %s3617_s8, %s2773_s3, %s2774_s14, %s2775_s24  }
 0x21a PF: > { %p2504_p10 = scmp.ge.s32.totalorder %s2770_s30, 2  ;;  %s2176_s11 = sand.u32 1, %s2734_s21  }
 0x21b   : > { %s2177_s26 = scalar_lea.sflag [#allocation6], %s2176_s11 }
 0x21c   : > { %p2501_p12 = pnand %p2504_p10, %p2901_p13 }
 0x21e   : > { %2729 = dma.done.wait (!%p2501_p12), %s2177_s26, 8192  }
 0x21f   : > { %2731 = vsyncadd (!%p2501_p12), %s2177_s26, 4294959104  ;;  %s19_s30 = sadd.s32 1, %s2770_s30   ;;  %s3692_s19 = sld [smem:[#allocation8_spill]] }
 0x220   : > { %p16_p0 = scmp.ge.s32.totalorder %s19_s30, 16   ;;  %s3693_s21 = smov %s2738_s22 }
 0x221   : > { %s3694_s22 = smov %s2742_s23  ;;  %s3695_s23 = smov %s2899_s20 }
 0x222   : > { %s3696_s24 = smov %s2750_s25  ;;  %s3697_s25 = smov %s2884_s15 }
 0x223   : > { %s3698_s26 = smov %s2762_s28  ;;  %s3699_s27 = smov %s2766_s29 }
 0x224   : > { %s3701_s29 = smov %s3707_s10  ;;  %18 = sbr.rel (!%p16_p0) target bundleno = 9 (0x9), region = 208 }
 0x225   : > { %s3700_s28 = smov %s3692_s19 }
 0x22b   :  { %2182 = vsyncpa [#allocation6], 1 }
 0x22c   :  { %2184 = vsyncpa [#allocation6 + $0x1], 1 }

</bundles_post_ra>
